<compile_context>
chip_gen: v7x
topology: tpu7x:2x2x1
jax: 0.10.0
libtpu: 0.0.40
codegen_flags: <defaults>
</compile_context>

<pallas_src>
import functools

import jax
import jax.numpy as jnp
import numpy as np
from jax.experimental import pallas as pl
from jax.experimental.pallas import tpu as pltpu

EPS = 1e-5
LANE = 128
MXU_DTYPE = jnp.bfloat16          # MXU operand / inter-pass activation dtype
VMEM_BUDGET = 40 * 1024 * 1024    # per-step working-set target (v7x: 64 MiB/TC)
VMEM_LIMIT = 48 * 1024 * 1024     # scoped VMEM limit handed to Mosaic


# --------------------------------------------------------------------------- helpers
def _round_up(x, m):
    return (x + m - 1) // m * m


def _pad_last(a, to):
    pad = to - a.shape[-1]
    if pad == 0:
        return a
    return jnp.pad(a, [(0, 0)] * (a.ndim - 1) + [(0, pad)])


def _bcast_spec(shape):
    zeros = (0,) * len(shape)
    return pl.BlockSpec(shape, lambda ni, ht: zeros)


def _pick_tile_h(h, w, coutp, *, target_rows=512, vmem_budget=VMEM_BUDGET):
    """Largest divisor TH of H whose pass-2 working set fits `vmem_budget`.
    Prefer TH*W <= target_rows but keep growing until >= 256 MXU rows (v6e/v7x
    MXU is 256 deep and per-step overhead ~0.35us favours big tiles)."""
    def pass2_bytes(th):
        band_in = (th + 2) * w * coutp * 2              # bf16 y1 band (dbl-buffered)
        y2_out = th * w * coutp * 4                     # f32 tile   (dbl-buffered)
        hbuf = (th + 2) * (w + 2) * coutp * 2           # bf16 scratch
        w2 = 9 * coutp * coutp * 2                      # bf16 weight slab
        temps = th * w * (3 * coutp * 2 + coutp * 4)    # concat slab + f32 acc
        return 2 * band_in + 2 * y2_out + hbuf + 2 * w2 + temps

    best = 1
    for th in range(1, h + 1):
        if h % th:
            continue
        if pass2_bytes(th) > vmem_budget:
            break
        if th * w <= target_rows or best * w < 256:
            best = th
    return best


def _partial_stats(acc):
    """[sum, sum-of-squares] over rows -> (2, C), f32.
    NOTE: variance is finalized as E[x^2]-mean^2 (guarded with max(.,0)); fine at
    these scales, switch to a shifted/Welford accumulation for very large N*H*W."""
    return jnp.concatenate([jnp.sum(acc, axis=0, keepdims=True),
                            jnp.sum(acc * acc, axis=0, keepdims=True)], axis=0)


def _bn_scale_shift(stats, gamma_p, beta_p, count):
    """Global training-mode BN finalize from per-tile partials (tiny jnp op)."""
    s = jnp.sum(stats[:, :, 0, :], axis=(0, 1))
    sq = jnp.sum(stats[:, :, 1, :], axis=(0, 1))
    mean = s / count
    var = jnp.maximum(sq / count - mean * mean, 0.0)
    scale = gamma_p * jax.lax.rsqrt(var + EPS)
    shift = beta_p - mean * scale
    return (scale.reshape(1, -1).astype(jnp.float32),
            shift.reshape(1, -1).astype(jnp.float32))


# --------------------------------------------------------------------------- kernels
def _make_pass1_kernel(th, w, cin, coutp, proj):
    """conv1 (3x3, SAME) + optional 1x1 shortcut conv, plus per-tile BN partials.

    Output is a (TH+2)-row *band*: the 1-row halo on each side is recomputed here
    so pass 2 can read one contiguous, auto-prefetched band with no manual DMA.
    """
    thb = th + 2

    def kernel(*refs):
        if proj:
            x_ref, w1_ref, ws_ref, y1_ref, st1_ref, sc_ref, sts_ref = refs
        else:
            x_ref, w1_ref, y1_ref, st1_ref = refs

        # In-VMEM im2col: 9 shifted windows -> (THB, W, 9*Cin) patch, then a
        # single MXU matmul with K = 9*Cin (instead of nine K=Cin dots).
        taps = [x_ref[kh:kh + thb, kw:kw + w, :]
                for kh in range(3) for kw in range(3)]
        patch = jnp.concatenate(taps, axis=-1).reshape(thb * w, 9 * cin)
        acc = jnp.dot(patch, w1_ref[...], preferred_element_type=jnp.float32)

        # (conv bias dropped: the BN that follows cancels it exactly)
        y1_ref[...] = acc.reshape(thb, w, coutp).astype(y1_ref.dtype)
        # BN partials over the TH valid rows only (skip the recomputed halo rows).
        st1_ref[...] = _partial_stats(acc[w:w + th * w])

        if proj:
            xc = x_ref[2:2 + th, 1:1 + w, :].reshape(th * w, cin)
            sc = jnp.dot(xc, ws_ref[...], preferred_element_type=jnp.float32)
            sc_ref[...] = sc.reshape(th, w, coutp).astype(sc_ref.dtype)
            sts_ref[...] = _partial_stats(sc)

    return kernel


def _make_pass2_kernel(th, w, coutp, mxu_dtype):
    """h1 = relu(bn1(y1)) fused into conv2 (3x3, SAME) + per-tile BN partials for bn2.

    y1 arrives as a (TH+2)-row band through the regular BlockSpec pipeline.  The
    column-padded band is written in place into a scratch (no concatenate copy);
    only the two image-boundary tiles zero their out-of-image halo row.
    """
    thb = th + 2

    def kernel(y1_ref, w2_ref, sc1_ref, sh1_ref, y2_ref, st2_ref, hbuf):
        ht = pl.program_id(1)

        scale = sc1_ref[...].reshape(1, 1, coutp)
        shift = sh1_ref[...].reshape(1, 1, coutp)
        h1 = jnp.maximum(y1_ref[...].astype(jnp.float32) * scale + shift, 0.0)

        # Column-padded band scratch: interior, then zero edge columns.
        hbuf[:, 1:1 + w, :] = h1.astype(mxu_dtype)
        zcol = jnp.zeros((thb, 1, coutp), mxu_dtype)
        hbuf[:, 0:1, :] = zcol
        hbuf[:, w + 1:w + 2, :] = zcol

        # Halo rows at the image boundary hold recomputed out-of-image values;
        # SAME padding of h1 requires them to be zero.
        @pl.when(ht == 0)
        def _():
            hbuf[0:1, :, :] = jnp.zeros((1, w + 2, coutp), mxu_dtype)

        @pl.when(ht == pl.num_programs(1) - 1)
        def _():
            hbuf[thb - 1:thb, :, :] = jnp.zeros((1, w + 2, coutp), mxu_dtype)

        # conv2 as 3 MXU matmuls (one per kh), each K = 3*Coutp (kw taps fused,
        # lane-aligned concatenation).
        acc = jnp.zeros((th * w, coutp), jnp.float32)
        for kh in range(3):
            slab = jnp.concatenate(
                [hbuf[kh:kh + th, kw:kw + w, :] for kw in range(3)],
                axis=-1).reshape(th * w, 3 * coutp)
            acc = acc + jnp.dot(slab, w2_ref[kh],
                                preferred_element_type=jnp.float32)

        y2_ref[...] = acc.reshape(th, w, coutp)
        st2_ref[...] = _partial_stats(acc)

    return kernel


def _make_pass3_kernel(cout, proj):
    """out = relu(bn2(y2) + shortcut), with the channel un-padding folded in."""
    if proj:
        def kernel(y2_ref, s2_ref, b2_ref, sc_ref, ss_ref, bs_ref, out_ref):
            s2 = s2_ref[...].reshape(1, 1, cout)
            b2 = b2_ref[...].reshape(1, 1, cout)
            ss = ss_ref[...].reshape(1, 1, cout)
            bs = bs_ref[...].reshape(1, 1, cout)
            h2 = y2_ref[:, :, :cout] * s2 + b2
            sc = sc_ref[:, :, :cout].astype(jnp.float32) * ss + bs
            out_ref[...] = jnp.maximum(h2 + sc, 0.0)
    else:
        def kernel(y2_ref, s2_ref, b2_ref, x_ref, out_ref):
            s2 = s2_ref[...].reshape(1, 1, cout)
            b2 = b2_ref[...].reshape(1, 1, cout)
            out_ref[...] = jnp.maximum(
                y2_ref[:, :, :cout] * s2 + b2 + x_ref[...], 0.0)
    return kernel


# --------------------------------------------------------------------------- wrapper
@functools.partial(jax.jit, static_argnames=("in_channels", "out_channels"))
def residual_block(x_nchw, params, *, in_channels, out_channels):
    n, cin, h, w = x_nchw.shape
    assert cin == in_channels
    cout = out_channels
    proj = in_channels != out_channels
    coutp = _round_up(max(cout, LANE), LANE)          # lane-dense intermediate channels
    th = _pick_tile_h(h, w, coutp)
    htn = h // th
    thb = th + 2
    nhw = n * h * w

    x_nhwc = jnp.transpose(x_nchw, (0, 2, 3, 1)).astype(jnp.float32)   # NHWC

    # Overlapping row bands of the spatially padded input: one contiguous block
    # per grid step, fully auto-pipelined by BlockSpec (no manual DMA/semaphores).
    xp2 = jnp.pad(x_nhwc, ((0, 0), (2, 2), (1, 1), (0, 0)))
    rows = jnp.arange(htn)[:, None] * th + jnp.arange(th + 4)[None, :]
    xbands = xp2[:, rows].astype(MXU_DTYPE)           # (N, HT, TH+4, W+2, Cin)

    # Weights: HWIO -> im2col slabs, zero-padded to lane-dense Coutp, bf16 operands.
    w1s = _pad_last(params["w1"].reshape(9 * cin, cout), coutp).astype(MXU_DTYPE)
    w2p4 = jnp.pad(params["w2"],
                   ((0, 0), (0, 0), (0, coutp - cout), (0, coutp - cout)))
    w2s = w2p4.reshape(3, 3 * coutp, coutp).astype(MXU_DTYPE)

    grid = (n, htn)
    cparams = pltpu.CompilerParams(
        dimension_semantics=("parallel", "parallel"),   # both axes independent
        vmem_limit_bytes=VMEM_LIMIT)

    band_in_spec = pl.BlockSpec((None, None, thb + 2, w + 2, cin),
                                lambda ni, ht: (ni, ht, 0, 0, 0))
    y1band_spec = pl.BlockSpec((None, None, thb, w, coutp),
                               lambda ni, ht: (ni, ht, 0, 0, 0))
    tile_spec_p = pl.BlockSpec((None, th, w, coutp), lambda ni, ht: (ni, ht, 0, 0))
    stats_spec = pl.BlockSpec((None, None, 2, coutp), lambda ni, ht: (ni, ht, 0, 0))

    # ---------------- pass 1: conv1 (+ 1x1 shortcut conv) + BN partial stats -------
    in_specs1 = [band_in_spec, _bcast_spec((9 * cin, coutp))]
    args1 = [xbands, w1s]
    out_shapes1 = [jax.ShapeDtypeStruct((n, htn, thb, w, coutp), MXU_DTYPE),
                   jax.ShapeDtypeStruct((n, htn, 2, coutp), jnp.float32)]
    out_specs1 = [y1band_spec, stats_spec]
    if proj:
        wss = _pad_last(params["ws"], coutp).astype(MXU_DTYPE)
        in_specs1.append(_bcast_spec((cin, coutp)))
        args1.append(wss)
        out_shapes1 += [jax.ShapeDtypeStruct((n, h, w, coutp), MXU_DTYPE),
                        jax.ShapeDtypeStruct((n, htn, 2, coutp), jnp.float32)]
        out_specs1 += [tile_spec_p, stats_spec]

    flops1 = 2 * n * htn * thb * w * 9 * cin * coutp + (2 * nhw * cin * coutp if proj else 0)
    bytes1 = int(xbands.size * 2 + n * htn * thb * w * coutp * 2
                 + (nhw * coutp * 2 if proj else 0))
    outs1 = pl.pallas_call(
        _make_pass1_kernel(th, w, cin, coutp, proj),
        grid=grid,
        in_specs=in_specs1,
        out_specs=out_specs1,
        out_shape=out_shapes1,
        compiler_params=cparams,
        cost_estimate=pl.CostEstimate(flops=flops1, transcendentals=0,
                                      bytes_accessed=bytes1),
    )(*args1)
    if proj:
        y1b, st1, sc_raw, st_s = outs1
    else:
        y1b, st1 = outs1

    g1p, be1p = _pad_last(params["g1"], coutp), _pad_last(params["be1"], coutp)
    scale1, shift1 = _bn_scale_shift(st1, g1p, be1p, nhw)

    # ---------------- pass 2: bn1 + relu fused into conv2 + BN partial stats -------
    flops2 = 2 * nhw * 9 * coutp * coutp
    bytes2 = int(n * htn * thb * w * coutp * 2 + nhw * coutp * 4 + w2s.size * 2)
    y2, st2 = pl.pallas_call(
        _make_pass2_kernel(th, w, coutp, MXU_DTYPE),
        grid=grid,
        in_specs=[y1band_spec,
                  _bcast_spec((3, 3 * coutp, coutp)),
                  _bcast_spec((1, coutp)),
                  _bcast_spec((1, coutp))],
        out_specs=[tile_spec_p, stats_spec],
        out_shape=[jax.ShapeDtypeStruct((n, h, w, coutp), jnp.float32),
                   jax.ShapeDtypeStruct((n, htn, 2, coutp), jnp.float32)],
        scratch_shapes=[pltpu.VMEM((thb, w + 2, coutp), MXU_DTYPE)],
        compiler_params=cparams,
        cost_estimate=pl.CostEstimate(flops=flops2, transcendentals=0,
                                      bytes_accessed=bytes2),
    )(y1b, w2s, scale1, shift1)

    g2p, be2p = _pad_last(params["g2"], coutp), _pad_last(params["be2"], coutp)
    scale2, shift2 = _bn_scale_shift(st2, g2p, be2p, nhw)
    scale2, shift2 = scale2[:, :cout], shift2[:, :cout]

    # ---------------- pass 3: bn2 + shortcut + add + relu (unpadded output) --------
    tile_spec_c = pl.BlockSpec((None, th, w, cout), lambda ni, ht: (ni, ht, 0, 0))
    sspec = _bcast_spec((1, cout))

    if proj:
        gsp, besp = _pad_last(params["gs"], coutp), _pad_last(params["bes"], coutp)
        scale_s, shift_s = _bn_scale_shift(st_s, gsp, besp, nhw)
        scale_s, shift_s = scale_s[:, :cout], shift_s[:, :cout]
        in_specs3 = [tile_spec_p, sspec, sspec, tile_spec_p, sspec, sspec]
        args3 = [y2, scale2, shift2, sc_raw, scale_s, shift_s]
        bytes3 = int(nhw * (coutp * 4 + coutp * 2 + cout * 4))
    else:
        xin_spec = pl.BlockSpec((None, th, w, cin), lambda ni, ht: (ni, ht, 0, 0))
        in_specs3 = [tile_spec_p, sspec, sspec, xin_spec]
        args3 = [y2, scale2, shift2, x_nhwc]
        bytes3 = int(nhw * (coutp * 4 + cin * 4 + cout * 4))

    out_nhwc = pl.pallas_call(
        _make_pass3_kernel(cout, proj),
        grid=grid,
        in_specs=in_specs3,
        out_specs=tile_spec_c,
        out_shape=jax.ShapeDtypeStruct((n, h, w, cout), jnp.float32),
        compiler_params=cparams,
        cost_estimate=pl.CostEstimate(flops=6 * nhw * cout, transcendentals=0,
                                      bytes_accessed=bytes3),
    )(*args3)

    # TODO(synk): the NHWC->NCHW transpose stays in XLA; folding it into pass 3 would
    # need an in-kernel (TH,W,C)->(C,TH,W) relayout of questionable value here.
    return jnp.transpose(out_nhwc, (0, 3, 1, 2))


# --------------------------------------------------------------------------- params
def init_params(key, cin, cout):
    ks = jax.random.split(key, 6)

    def u(k, shape, fan_in):
        bound = 1.0 / np.sqrt(fan_in)
        return jax.random.uniform(k, shape, jnp.float32, -bound, bound)

    p = {
        "w1": u(ks[0], (3, 3, cin, cout), 9 * cin),    # HWIO
        "b1": u(ks[1], (cout,), 9 * cin),
        "g1": jnp.ones((cout,), jnp.float32),
        "be1": jnp.zeros((cout,), jnp.float32),
        "w2": u(ks[2], (3, 3, cout, cout), 9 * cout),
        "b2": u(ks[3], (cout,), 9 * cout),
        "g2": jnp.ones((cout,), jnp.float32),
        "be2": jnp.zeros((cout,), jnp.float32),
    }
    if cin != cout:
        p["ws"] = u(ks[4], (cin, cout), cin)           # 1x1 conv as (Cin, Cout)
        p["bs"] = u(ks[5], (cout,), cin)
        p["gs"] = jnp.ones((cout,), jnp.float32)
        p["bes"] = jnp.zeros((cout,), jnp.float32)
    return p


# --------------------------------------------------------------------------- reference
def reference_forward(x_nchw, params, cin, cout):
    x = jnp.transpose(x_nchw, (0, 2, 3, 1)).astype(jnp.float32)

    def conv(a, w, b):
        y = jax.lax.conv_general_dilated(
            a, w, (1, 1), "SAME", dimension_numbers=("NHWC", "HWIO", "NHWC"))
        return y + b.reshape(1, 1, 1, -1)

    def bn(a, g, bt):
        m = jnp.mean(a, axis=(0, 1, 2), keepdims=True)
        v = jnp.mean((a - m) ** 2, axis=(0, 1, 2), keepdims=True)
        return (a - m) * jax.lax.rsqrt(v + EPS) * g.reshape(1, 1, 1, -1) + bt.reshape(1, 1, 1, -1)

    h = jax.nn.relu(bn(conv(x, params["w1"], params["b1"]), params["g1"], params["be1"]))
    h = bn(conv(h, params["w2"], params["b2"]), params["g2"], params["be2"])
    if cin != cout:
        sc = bn(conv(x, params["ws"].reshape(1, 1, cin, cout), params["bs"]),
                params["gs"], params["bes"])
    else:
        sc = x
    return jnp.transpose(jax.nn.relu(h + sc), (0, 3, 1, 2))


# --------------------------------------------------------------------------- main
if __name__ == "__main__":
    N, CIN, COUT, H, W = 2, 4, 8, 16, 16

    key = jax.random.PRNGKey(0)
    kx, kp = jax.random.split(key)
    x = jax.random.normal(kx, (N, CIN, H, W), jnp.float32)      # NCHW, like PyTorch
    params = init_params(kp, CIN, COUT)

    # projection-shortcut branch (in_channels != out_channels)
    out = jax.block_until_ready(residual_block(x, params, in_channels=CIN, out_channels=COUT))
    ref = jax.block_until_ready(reference_forward(x, params, CIN, COUT))
    assert out.shape == (N, COUT, H, W)
    # tolerance accounts for bf16 MXU operands and bf16 inter-pass activations
    # (reference is pure f32)
    np.testing.assert_allclose(np.asarray(out), np.asarray(ref), rtol=5e-2, atol=5e-2)

    # identity-shortcut branch (in_channels == out_channels)
    params_id = init_params(jax.random.PRNGKey(1), COUT, COUT)
    x_id = jax.random.normal(jax.random.PRNGKey(2), (N, COUT, H, W), jnp.float32)
    out_id = jax.block_until_ready(
        residual_block(x_id, params_id, in_channels=COUT, out_channels=COUT))
    ref_id = jax.block_until_ready(reference_forward(x_id, params_id, COUT, COUT))
    np.testing.assert_allclose(np.asarray(out_id), np.asarray(ref_id), rtol=5e-2, atol=5e-2)

    print("KERNEL_OK")
</pallas_src>

<mosaic_0001>
module attributes {stable_mosaic.version = 11 : i64} {
  func.func @kernel(%arg0: i32, %arg1: i32, %arg2: memref<1x1x20x18x4xbf16, #tpu.memory_space<vmem>>, %arg3: memref<36x128xbf16, #tpu.memory_space<vmem>>, %arg4: memref<4x128xbf16, #tpu.memory_space<vmem>>, %arg5: memref<1x1x18x16x128xbf16, #tpu.memory_space<vmem>>, %arg6: memref<1x1x2x128xf32, #tpu.memory_space<vmem>>, %arg7: memref<1x16x16x128xbf16, #tpu.memory_space<vmem>>, %arg8: memref<1x1x2x128xf32, #tpu.memory_space<vmem>>) attributes {dimension_semantics = [#tpu.dimension_semantics<parallel>, #tpu.dimension_semantics<parallel>], iteration_bounds = array<i64: 2, 1>, scalar_prefetch = 0 : i64, scratch_operands = 0 : i64, tpu.core_type = #tpu.core_type<tc>, window_params = [{transform_indices = @transform_0, window_bounds = array<i64: 1, 1, 20, 18, 4>}, {pipeline_mode = #tpu.pipeline_mode<synchronous>, transform_indices = @transform_1, window_bounds = array<i64: 36, 128>}, {pipeline_mode = #tpu.pipeline_mode<synchronous>, transform_indices = @transform_2, window_bounds = array<i64: 4, 128>}, {transform_indices = @transform_3, window_bounds = array<i64: 1, 1, 18, 16, 128>}, {transform_indices = @transform_4, window_bounds = array<i64: 1, 1, 2, 128>}, {transform_indices = @transform_5, window_bounds = array<i64: 1, 16, 16, 128>}, {transform_indices = @transform_6, window_bounds = array<i64: 1, 1, 2, 128>}]} {
    %c0 = arith.constant 0 : index
    %c0_0 = arith.constant 0 : index
    %c0_1 = arith.constant 0 : index
    %c0_2 = arith.constant 0 : index
    %c0_3 = arith.constant 0 : index
    %0 = vector.load %arg2[%c0, %c0_0, %c0_1, %c0_2, %c0_3] : memref<1x1x20x18x4xbf16, #tpu.memory_space<vmem>>, vector<1x1x18x16x4xbf16>
    %1 = vector.shape_cast %0 : vector<1x1x18x16x4xbf16> to vector<18x16x4xbf16>
    %c0_4 = arith.constant 0 : index
    %c0_5 = arith.constant 0 : index
    %c0_6 = arith.constant 0 : index
    %c1 = arith.constant 1 : index
    %c0_7 = arith.constant 0 : index
    %2 = vector.load %arg2[%c0_4, %c0_5, %c0_6, %c1, %c0_7] : memref<1x1x20x18x4xbf16, #tpu.memory_space<vmem>>, vector<1x1x18x16x4xbf16>
    %3 = vector.shape_cast %2 : vector<1x1x18x16x4xbf16> to vector<18x16x4xbf16>
    %c0_8 = arith.constant 0 : index
    %c0_9 = arith.constant 0 : index
    %c0_10 = arith.constant 0 : index
    %c2 = arith.constant 2 : index
    %c0_11 = arith.constant 0 : index
    %4 = vector.load %arg2[%c0_8, %c0_9, %c0_10, %c2, %c0_11] : memref<1x1x20x18x4xbf16, #tpu.memory_space<vmem>>, vector<1x1x18x16x4xbf16>
    %5 = vector.shape_cast %4 : vector<1x1x18x16x4xbf16> to vector<18x16x4xbf16>
    %c0_12 = arith.constant 0 : index
    %c0_13 = arith.constant 0 : index
    %c1_14 = arith.constant 1 : index
    %c0_15 = arith.constant 0 : index
    %c0_16 = arith.constant 0 : index
    %6 = vector.load %arg2[%c0_12, %c0_13, %c1_14, %c0_15, %c0_16] : memref<1x1x20x18x4xbf16, #tpu.memory_space<vmem>>, vector<1x1x18x16x4xbf16>
    %7 = vector.shape_cast %6 : vector<1x1x18x16x4xbf16> to vector<18x16x4xbf16>
    %c0_17 = arith.constant 0 : index
    %c0_18 = arith.constant 0 : index
    %c1_19 = arith.constant 1 : index
    %c1_20 = arith.constant 1 : index
    %c0_21 = arith.constant 0 : index
    %8 = vector.load %arg2[%c0_17, %c0_18, %c1_19, %c1_20, %c0_21] : memref<1x1x20x18x4xbf16, #tpu.memory_space<vmem>>, vector<1x1x18x16x4xbf16>
    %9 = vector.shape_cast %8 : vector<1x1x18x16x4xbf16> to vector<18x16x4xbf16>
    %c0_22 = arith.constant 0 : index
    %c0_23 = arith.constant 0 : index
    %c1_24 = arith.constant 1 : index
    %c2_25 = arith.constant 2 : index
    %c0_26 = arith.constant 0 : index
    %10 = vector.load %arg2[%c0_22, %c0_23, %c1_24, %c2_25, %c0_26] : memref<1x1x20x18x4xbf16, #tpu.memory_space<vmem>>, vector<1x1x18x16x4xbf16>
    %11 = vector.shape_cast %10 : vector<1x1x18x16x4xbf16> to vector<18x16x4xbf16>
    %c0_27 = arith.constant 0 : index
    %c0_28 = arith.constant 0 : index
    %c2_29 = arith.constant 2 : index
    %c0_30 = arith.constant 0 : index
    %c0_31 = arith.constant 0 : index
    %12 = vector.load %arg2[%c0_27, %c0_28, %c2_29, %c0_30, %c0_31] : memref<1x1x20x18x4xbf16, #tpu.memory_space<vmem>>, vector<1x1x18x16x4xbf16>
    %13 = vector.shape_cast %12 : vector<1x1x18x16x4xbf16> to vector<18x16x4xbf16>
    %c0_32 = arith.constant 0 : index
    %c0_33 = arith.constant 0 : index
    %c2_34 = arith.constant 2 : index
    %c1_35 = arith.constant 1 : index
    %c0_36 = arith.constant 0 : index
    %14 = vector.load %arg2[%c0_32, %c0_33, %c2_34, %c1_35, %c0_36] : memref<1x1x20x18x4xbf16, #tpu.memory_space<vmem>>, vector<1x1x18x16x4xbf16>
    %15 = vector.shape_cast %14 : vector<1x1x18x16x4xbf16> to vector<18x16x4xbf16>
    %c0_37 = arith.constant 0 : index
    %c0_38 = arith.constant 0 : index
    %c2_39 = arith.constant 2 : index
    %c2_40 = arith.constant 2 : index
    %c0_41 = arith.constant 0 : index
    %16 = vector.load %arg2[%c0_37, %c0_38, %c2_39, %c2_40, %c0_41] : memref<1x1x20x18x4xbf16, #tpu.memory_space<vmem>>, vector<1x1x18x16x4xbf16>
    %17 = vector.shape_cast %16 : vector<1x1x18x16x4xbf16> to vector<18x16x4xbf16>
    %18 = tpu.concatenate %1, %3, %5, %7, %9, %11, %13, %15, %17 in 2 : vector<18x16x4xbf16>, vector<18x16x4xbf16>, vector<18x16x4xbf16>, vector<18x16x4xbf16>, vector<18x16x4xbf16>, vector<18x16x4xbf16>, vector<18x16x4xbf16>, vector<18x16x4xbf16>, vector<18x16x4xbf16> -> vector<18x16x36xbf16>
    %19 = vector.shape_cast %18 : vector<18x16x36xbf16> to vector<288x36xbf16>
    %c0_42 = arith.constant 0 : index
    %c0_43 = arith.constant 0 : index
    %20 = vector.load %arg3[%c0_42, %c0_43] : memref<36x128xbf16, #tpu.memory_space<vmem>>, vector<36x128xbf16>
    %cst = arith.constant dense<0.000000e+00> : vector<288x128xf32>
    %21 = tpu.matmul %19, %20, %cst {dimension_numbers = #tpu.dot_dimension_numbers<[1], [0], [0], [1], [0, 0, 1, 1], [], []>} : vector<288x36xbf16>, vector<36x128xbf16>, vector<288x128xf32> -> vector<288x128xf32>
    %22 = vector.shape_cast %21 : vector<288x128xf32> to vector<18x16x128xf32>
    %23 = arith.truncf %22 : vector<18x16x128xf32> to vector<18x16x128xbf16>
    %c0_44 = arith.constant 0 : index
    %c0_45 = arith.constant 0 : index
    %c0_46 = arith.constant 0 : index
    %c0_47 = arith.constant 0 : index
    %c0_48 = arith.constant 0 : index
    %24 = vector.load %arg5[%c0_44, %c0_45, %c0_46, %c0_47, %c0_48] : memref<1x1x18x16x128xbf16, #tpu.memory_space<vmem>>, vector<1x1x18x16x128xbf16>
    %25 = vector.shape_cast %24 : vector<1x1x18x16x128xbf16> to vector<18x16x128xbf16>
    %26 = vector.shape_cast %23 : vector<18x16x128xbf16> to vector<1x1x18x16x128xbf16>
    tpu.vector_store %arg5[%c0_44, %c0_45, %c0_46, %c0_47, %c0_48], %26 {strides = array<i32>} : memref<1x1x18x16x128xbf16, #tpu.memory_space<vmem>>, vector<1x1x18x16x128xbf16>,
    %27 = vector.extract_strided_slice %21 {offsets = [16, 0], sizes = [256, 128], strides = [1, 1]} : vector<288x128xf32> to vector<256x128xf32>
    %cst_49 = arith.constant dense<0.000000e+00> : vector<128xf32>
    %28 = vector.multi_reduction <add>, %27, %cst_49 [0] : vector<256x128xf32> to vector<128xf32>
    %29 = vector.shape_cast %28 : vector<128xf32> to vector<1x128xf32>
    %30 = arith.mulf %27, %27 : vector<256x128xf32>
    %cst_50 = arith.constant dense<0.000000e+00> : vector<128xf32>
    %31 = vector.multi_reduction <add>, %30, %cst_50 [0] : vector<256x128xf32> to vector<128xf32>
    %32 = vector.shape_cast %31 : vector<128xf32> to vector<1x128xf32>
    %33 = tpu.concatenate %29, %32 in 0 : vector<1x128xf32>, vector<1x128xf32> -> vector<2x128xf32>
    %c0_51 = arith.constant 0 : index
    %c0_52 = arith.constant 0 : index
    %c0_53 = arith.constant 0 : index
    %c0_54 = arith.constant 0 : index
    %34 = vector.load %arg6[%c0_51, %c0_52, %c0_53, %c0_54] : memref<1x1x2x128xf32, #tpu.memory_space<vmem>>, vector<1x1x2x128xf32>
    %35 = vector.shape_cast %34 : vector<1x1x2x128xf32> to vector<2x128xf32>
    %36 = vector.shape_cast %33 : vector<2x128xf32> to vector<1x1x2x128xf32>
    tpu.vector_store %arg6[%c0_51, %c0_52, %c0_53, %c0_54], %36 {strides = array<i32>} : memref<1x1x2x128xf32, #tpu.memory_space<vmem>>, vector<1x1x2x128xf32>,
    %c0_55 = arith.constant 0 : index
    %c0_56 = arith.constant 0 : index
    %c2_57 = arith.constant 2 : index
    %c1_58 = arith.constant 1 : index
    %c0_59 = arith.constant 0 : index
    %37 = vector.load %arg2[%c0_55, %c0_56, %c2_57, %c1_58, %c0_59] : memref<1x1x20x18x4xbf16, #tpu.memory_space<vmem>>, vector<1x1x16x16x4xbf16>
    %38 = vector.shape_cast %37 : vector<1x1x16x16x4xbf16> to vector<16x16x4xbf16>
    %39 = vector.shape_cast %38 : vector<16x16x4xbf16> to vector<256x4xbf16>
    %c0_60 = arith.constant 0 : index
    %c0_61 = arith.constant 0 : index
    %40 = vector.load %arg4[%c0_60, %c0_61] : memref<4x128xbf16, #tpu.memory_space<vmem>>, vector<4x128xbf16>
    %cst_62 = arith.constant dense<0.000000e+00> : vector<256x128xf32>
    %41 = tpu.matmul %39, %40, %cst_62 {dimension_numbers = #tpu.dot_dimension_numbers<[1], [0], [0], [1], [0, 0, 1, 1], [], []>} : vector<256x4xbf16>, vector<4x128xbf16>, vector<256x128xf32> -> vector<256x128xf32>
    %42 = vector.shape_cast %41 : vector<256x128xf32> to vector<16x16x128xf32>
    %43 = arith.truncf %42 : vector<16x16x128xf32> to vector<16x16x128xbf16>
    %c0_63 = arith.constant 0 : index
    %c0_64 = arith.constant 0 : index
    %c0_65 = arith.constant 0 : index
    %c0_66 = arith.constant 0 : index
    %44 = vector.load %arg7[%c0_63, %c0_64, %c0_65, %c0_66] : memref<1x16x16x128xbf16, #tpu.memory_space<vmem>>, vector<1x16x16x128xbf16>
    %45 = vector.shape_cast %44 : vector<1x16x16x128xbf16> to vector<16x16x128xbf16>
    %46 = vector.shape_cast %43 : vector<16x16x128xbf16> to vector<1x16x16x128xbf16>
    tpu.vector_store %arg7[%c0_63, %c0_64, %c0_65, %c0_66], %46 {strides = array<i32>} : memref<1x16x16x128xbf16, #tpu.memory_space<vmem>>, vector<1x16x16x128xbf16>,
    %cst_67 = arith.constant dense<0.000000e+00> : vector<128xf32>
    %47 = vector.multi_reduction <add>, %41, %cst_67 [0] : vector<256x128xf32> to vector<128xf32>
    %48 = vector.shape_cast %47 : vector<128xf32> to vector<1x128xf32>
    %49 = arith.mulf %41, %41 : vector<256x128xf32>
    %cst_68 = arith.constant dense<0.000000e+00> : vector<128xf32>
    %50 = vector.multi_reduction <add>, %49, %cst_68 [0] : vector<256x128xf32> to vector<128xf32>
    %51 = vector.shape_cast %50 : vector<128xf32> to vector<1x128xf32>
    %52 = tpu.concatenate %48, %51 in 0 : vector<1x128xf32>, vector<1x128xf32> -> vector<2x128xf32>
    %c0_69 = arith.constant 0 : index
    %c0_70 = arith.constant 0 : index
    %c0_71 = arith.constant 0 : index
    %c0_72 = arith.constant 0 : index
    %53 = vector.load %arg8[%c0_69, %c0_70, %c0_71, %c0_72] : memref<1x1x2x128xf32, #tpu.memory_space<vmem>>, vector<1x1x2x128xf32>
    %54 = vector.shape_cast %53 : vector<1x1x2x128xf32> to vector<2x128xf32>
    %55 = vector.shape_cast %52 : vector<2x128xf32> to vector<1x1x2x128xf32>
    tpu.vector_store %arg8[%c0_69, %c0_70, %c0_71, %c0_72], %55 {strides = array<i32>} : memref<1x1x2x128xf32, #tpu.memory_space<vmem>>, vector<1x1x2x128xf32>,
    return
  }
  func.func @transform_0(%arg0: i32, %arg1: i32) -> (i32, i32, i32, i32, i32) {
    %c0_i32 = arith.constant 0 : i32
    %c0_i32_0 = arith.constant 0 : i32
    %c0_i32_1 = arith.constant 0 : i32
    %c0_i32_2 = arith.constant 0 : i32
    return %arg0, %arg1, %c0_i32, %c0_i32_0, %c0_i32_1 : i32, i32, i32, i32, i32
  }
  func.func @transform_1(%arg0: i32, %arg1: i32) -> (i32, i32) {
    %c0_i32 = arith.constant 0 : i32
    %c0_i32_0 = arith.constant 0 : i32
    %c0_i32_1 = arith.constant 0 : i32
    return %c0_i32, %c0_i32_0 : i32, i32
  }
  func.func @transform_2(%arg0: i32, %arg1: i32) -> (i32, i32) {
    %c0_i32 = arith.constant 0 : i32
    %c0_i32_0 = arith.constant 0 : i32
    %c0_i32_1 = arith.constant 0 : i32
    return %c0_i32, %c0_i32_0 : i32, i32
  }
  func.func @transform_3(%arg0: i32, %arg1: i32) -> (i32, i32, i32, i32, i32) {
    %c0_i32 = arith.constant 0 : i32
    %c0_i32_0 = arith.constant 0 : i32
    %c0_i32_1 = arith.constant 0 : i32
    %c0_i32_2 = arith.constant 0 : i32
    return %arg0, %arg1, %c0_i32, %c0_i32_0, %c0_i32_1 : i32, i32, i32, i32, i32
  }
  func.func @transform_4(%arg0: i32, %arg1: i32) -> (i32, i32, i32, i32) {
    %c0_i32 = arith.constant 0 : i32
    %c0_i32_0 = arith.constant 0 : i32
    %c0_i32_1 = arith.constant 0 : i32
    return %arg0, %arg1, %c0_i32, %c0_i32_0 : i32, i32, i32, i32
  }
  func.func @transform_5(%arg0: i32, %arg1: i32) -> (i32, i32, i32, i32) {
    %c0_i32 = arith.constant 0 : i32
    %c0_i32_0 = arith.constant 0 : i32
    %c0_i32_1 = arith.constant 0 : i32
    return %arg0, %arg1, %c0_i32, %c0_i32_0 : i32, i32, i32, i32
  }
  func.func @transform_6(%arg0: i32, %arg1: i32) -> (i32, i32, i32, i32) {
    %c0_i32 = arith.constant 0 : i32
    %c0_i32_0 = arith.constant 0 : i32
    %c0_i32_1 = arith.constant 0 : i32
    return %arg0, %arg1, %c0_i32, %c0_i32_0 : i32, i32, i32, i32
  }
}

module attributes {stable_mosaic.version = 11 : i64} {
  func.func @kernel(%arg0: i32, %arg1: i32, %arg2: memref<1x1x18x16x128xbf16, #tpu.memory_space<vmem>>, %arg3: memref<3x384x128xbf16, #tpu.memory_space<vmem>>, %arg4: memref<1x128xf32, #tpu.memory_space<vmem>>, %arg5: memref<1x128xf32, #tpu.memory_space<vmem>>, %arg6: memref<1x16x16x128xf32, #tpu.memory_space<vmem>>, %arg7: memref<1x1x2x128xf32, #tpu.memory_space<vmem>>, %arg8: memref<18x18x128xbf16, #tpu.memory_space<vmem>>) attributes {dimension_semantics = [#tpu.dimension_semantics<parallel>, #tpu.dimension_semantics<parallel>], iteration_bounds = array<i64: 2, 1>, scalar_prefetch = 0 : i64, scratch_operands = 1 : i64, tpu.core_type = #tpu.core_type<tc>, window_params = [{transform_indices = @transform_0, window_bounds = array<i64: 1, 1, 18, 16, 128>}, {pipeline_mode = #tpu.pipeline_mode<synchronous>, transform_indices = @transform_1, window_bounds = array<i64: 3, 384, 128>}, {pipeline_mode = #tpu.pipeline_mode<synchronous>, transform_indices = @transform_2, window_bounds = array<i64: 1, 128>}, {pipeline_mode = #tpu.pipeline_mode<synchronous>, transform_indices = @transform_3, window_bounds = array<i64: 1, 128>}, {transform_indices = @transform_4, window_bounds = array<i64: 1, 16, 16, 128>}, {transform_indices = @transform_5, window_bounds = array<i64: 1, 1, 2, 128>}]} {
    %c0 = arith.constant 0 : index
    %c0_0 = arith.constant 0 : index
    %0 = vector.load %arg4[%c0, %c0_0] : memref<1x128xf32, #tpu.memory_space<vmem>>, vector<1x128xf32>
    %1 = vector.shape_cast %0 : vector<1x128xf32> to vector<1x1x128xf32>
    %c0_1 = arith.constant 0 : index
    %c0_2 = arith.constant 0 : index
    %2 = vector.load %arg5[%c0_1, %c0_2] : memref<1x128xf32, #tpu.memory_space<vmem>>, vector<1x128xf32>
    %3 = vector.shape_cast %2 : vector<1x128xf32> to vector<1x1x128xf32>
    %c0_3 = arith.constant 0 : index
    %c0_4 = arith.constant 0 : index
    %c0_5 = arith.constant 0 : index
    %c0_6 = arith.constant 0 : index
    %c0_7 = arith.constant 0 : index
    %4 = vector.load %arg2[%c0_3, %c0_4, %c0_5, %c0_6, %c0_7] : memref<1x1x18x16x128xbf16, #tpu.memory_space<vmem>>, vector<1x1x18x16x128xbf16>
    %5 = vector.shape_cast %4 : vector<1x1x18x16x128xbf16> to vector<18x16x128xbf16>
    %6 = arith.extf %5 : vector<18x16x128xbf16> to vector<18x16x128xf32>
    %7 = vector.broadcast %1 : vector<1x1x128xf32> to vector<18x16x128xf32>
    %8 = arith.mulf %6, %7 : vector<18x16x128xf32>
    %9 = vector.broadcast %3 : vector<1x1x128xf32> to vector<18x16x128xf32>
    %10 = arith.addf %8, %9 : vector<18x16x128xf32>
    %cst = arith.constant 0.000000e+00 : f32
    %11 = vector.broadcast %cst : f32 to vector<18x16x128xf32>
    %12 = arith.maximumf %10, %11 : vector<18x16x128xf32>
    %13 = arith.truncf %12 : vector<18x16x128xf32> to vector<18x16x128xbf16>
    %c0_8 = arith.constant 0 : index
    %c1 = arith.constant 1 : index
    %c0_9 = arith.constant 0 : index
    %14 = vector.load %arg8[%c0_8, %c1, %c0_9] : memref<18x18x128xbf16, #tpu.memory_space<vmem>>, vector<18x16x128xbf16>
    tpu.vector_store %arg8[%c0_8, %c1, %c0_9], %13 {strides = array<i32>} : memref<18x18x128xbf16, #tpu.memory_space<vmem>>, vector<18x16x128xbf16>,
    %cst_10 = arith.constant 0.000000e+00 : bf16
    %15 = vector.broadcast %cst_10 : bf16 to vector<18x1x128xbf16>
    %c0_11 = arith.constant 0 : index
    %c0_12 = arith.constant 0 : index
    %c0_13 = arith.constant 0 : index
    %16 = vector.load %arg8[%c0_11, %c0_12, %c0_13] : memref<18x18x128xbf16, #tpu.memory_space<vmem>>, vector<18x1x128xbf16>
    tpu.vector_store %arg8[%c0_11, %c0_12, %c0_13], %15 {strides = array<i32>} : memref<18x18x128xbf16, #tpu.memory_space<vmem>>, vector<18x1x128xbf16>,
    %c0_14 = arith.constant 0 : index
    %c17 = arith.constant 17 : index
    %c0_15 = arith.constant 0 : index
    %17 = vector.load %arg8[%c0_14, %c17, %c0_15] : memref<18x18x128xbf16, #tpu.memory_space<vmem>>, vector<18x1x128xbf16>
    tpu.vector_store %arg8[%c0_14, %c17, %c0_15], %15 {strides = array<i32>} : memref<18x18x128xbf16, #tpu.memory_space<vmem>>, vector<18x1x128xbf16>,
    %c0_i32 = arith.constant 0 : i32
    %18 = arith.cmpi eq, %arg1, %c0_i32 : i32
    %19 = arith.extui %18 : i1 to i32
    %c0_i32_16 = arith.constant 0 : i32
    %20 = arith.cmpi ne, %19, %c0_i32_16 : i32
    scf.if %20 {
      %cst_68 = arith.constant 0.000000e+00 : bf16
      %65 = vector.broadcast %cst_68 : bf16 to vector<1x18x128xbf16>
      %c0_69 = arith.constant 0 : index
      %c0_70 = arith.constant 0 : index
      %c0_71 = arith.constant 0 : index
      %66 = vector.load %arg8[%c0_69, %c0_70, %c0_71] : memref<18x18x128xbf16, #tpu.memory_space<vmem>>, vector<1x18x128xbf16>
      tpu.vector_store %arg8[%c0_69, %c0_70, %c0_71], %65 {strides = array<i32>} : memref<18x18x128xbf16, #tpu.memory_space<vmem>>, vector<1x18x128xbf16>,
    } else {
    }
    %c0_i32_17 = arith.constant 0 : i32
    %21 = arith.cmpi eq, %arg1, %c0_i32_17 : i32
    %22 = arith.extui %21 : i1 to i32
    %c0_i32_18 = arith.constant 0 : i32
    %23 = arith.cmpi ne, %22, %c0_i32_18 : i32
    scf.if %23 {
      %cst_68 = arith.constant 0.000000e+00 : bf16
      %65 = vector.broadcast %cst_68 : bf16 to vector<1x18x128xbf16>
      %c17_69 = arith.constant 17 : index
      %c0_70 = arith.constant 0 : index
      %c0_71 = arith.constant 0 : index
      %66 = vector.load %arg8[%c17_69, %c0_70, %c0_71] : memref<18x18x128xbf16, #tpu.memory_space<vmem>>, vector<1x18x128xbf16>
      tpu.vector_store %arg8[%c17_69, %c0_70, %c0_71], %65 {strides = array<i32>} : memref<18x18x128xbf16, #tpu.memory_space<vmem>>, vector<1x18x128xbf16>,
    } else {
    }
    %cst_19 = arith.constant 0.000000e+00 : f32
    %24 = vector.broadcast %cst_19 : f32 to vector<256x128xf32>
    %c0_20 = arith.constant 0 : index
    %c0_21 = arith.constant 0 : index
    %c0_22 = arith.constant 0 : index
    %25 = vector.load %arg8[%c0_20, %c0_21, %c0_22] : memref<18x18x128xbf16, #tpu.memory_space<vmem>>, vector<16x16x128xbf16>
    %c0_23 = arith.constant 0 : index
    %c1_24 = arith.constant 1 : index
    %c0_25 = arith.constant 0 : index
    %26 = vector.load %arg8[%c0_23, %c1_24, %c0_25] : memref<18x18x128xbf16, #tpu.memory_space<vmem>>, vector<16x16x128xbf16>
    %c0_26 = arith.constant 0 : index
    %c2 = arith.constant 2 : index
    %c0_27 = arith.constant 0 : index
    %27 = vector.load %arg8[%c0_26, %c2, %c0_27] : memref<18x18x128xbf16, #tpu.memory_space<vmem>>, vector<16x16x128xbf16>
    %28 = tpu.concatenate %25, %26, %27 in 2 : vector<16x16x128xbf16>, vector<16x16x128xbf16>, vector<16x16x128xbf16> -> vector<16x16x384xbf16>
    %29 = vector.shape_cast %28 : vector<16x16x384xbf16> to vector<256x384xbf16>
    %c0_28 = arith.constant 0 : index
    %c0_29 = arith.constant 0 : index
    %c0_30 = arith.constant 0 : index
    %30 = vector.load %arg3[%c0_28, %c0_29, %c0_30] : memref<3x384x128xbf16, #tpu.memory_space<vmem>>, vector<1x384x128xbf16>
    %31 = vector.shape_cast %30 : vector<1x384x128xbf16> to vector<384x128xbf16>
    %cst_31 = arith.constant dense<0.000000e+00> : vector<256x128xf32>
    %32 = tpu.matmul %29, %31, %cst_31 {dimension_numbers = #tpu.dot_dimension_numbers<[1], [0], [0], [1], [0, 0, 1, 1], [], []>} : vector<256x384xbf16>, vector<384x128xbf16>, vector<256x128xf32> -> vector<256x128xf32>
    %33 = arith.addf %24, %32 : vector<256x128xf32>
    %c1_32 = arith.constant 1 : index
    %c0_33 = arith.constant 0 : index
    %c0_34 = arith.constant 0 : index
    %34 = vector.load %arg8[%c1_32, %c0_33, %c0_34] : memref<18x18x128xbf16, #tpu.memory_space<vmem>>, vector<16x16x128xbf16>
    %c1_35 = arith.constant 1 : index
    %c1_36 = arith.constant 1 : index
    %c0_37 = arith.constant 0 : index
    %35 = vector.load %arg8[%c1_35, %c1_36, %c0_37] : memref<18x18x128xbf16, #tpu.memory_space<vmem>>, vector<16x16x128xbf16>
    %c1_38 = arith.constant 1 : index
    %c2_39 = arith.constant 2 : index
    %c0_40 = arith.constant 0 : index
    %36 = vector.load %arg8[%c1_38, %c2_39, %c0_40] : memref<18x18x128xbf16, #tpu.memory_space<vmem>>, vector<16x16x128xbf16>
    %37 = tpu.concatenate %34, %35, %36 in 2 : vector<16x16x128xbf16>, vector<16x16x128xbf16>, vector<16x16x128xbf16> -> vector<16x16x384xbf16>
    %38 = vector.shape_cast %37 : vector<16x16x384xbf16> to vector<256x384xbf16>
    %c1_41 = arith.constant 1 : index
    %c0_42 = arith.constant 0 : index
    %c0_43 = arith.constant 0 : index
    %39 = vector.load %arg3[%c1_41, %c0_42, %c0_43] : memref<3x384x128xbf16, #tpu.memory_space<vmem>>, vector<1x384x128xbf16>
    %40 = vector.shape_cast %39 : vector<1x384x128xbf16> to vector<384x128xbf16>
    %cst_44 = arith.constant dense<0.000000e+00> : vector<256x128xf32>
    %41 = tpu.matmul %38, %40, %cst_44 {dimension_numbers = #tpu.dot_dimension_numbers<[1], [0], [0], [1], [0, 0, 1, 1], [], []>} : vector<256x384xbf16>, vector<384x128xbf16>, vector<256x128xf32> -> vector<256x128xf32>
    %42 = arith.addf %33, %41 : vector<256x128xf32>
    %c2_45 = arith.constant 2 : index
    %c0_46 = arith.constant 0 : index
    %c0_47 = arith.constant 0 : index
    %43 = vector.load %arg8[%c2_45, %c0_46, %c0_47] : memref<18x18x128xbf16, #tpu.memory_space<vmem>>, vector<16x16x128xbf16>
    %c2_48 = arith.constant 2 : index
    %c1_49 = arith.constant 1 : index
    %c0_50 = arith.constant 0 : index
    %44 = vector.load %arg8[%c2_48, %c1_49, %c0_50] : memref<18x18x128xbf16, #tpu.memory_space<vmem>>, vector<16x16x128xbf16>
    %c2_51 = arith.constant 2 : index
    %c2_52 = arith.constant 2 : index
    %c0_53 = arith.constant 0 : index
    %45 = vector.load %arg8[%c2_51, %c2_52, %c0_53] : memref<18x18x128xbf16, #tpu.memory_space<vmem>>, vector<16x16x128xbf16>
    %46 = tpu.concatenate %43, %44, %45 in 2 : vector<16x16x128xbf16>, vector<16x16x128xbf16>, vector<16x16x128xbf16> -> vector<16x16x384xbf16>
    %47 = vector.shape_cast %46 : vector<16x16x384xbf16> to vector<256x384xbf16>
    %c2_54 = arith.constant 2 : index
    %c0_55 = arith.constant 0 : index
    %c0_56 = arith.constant 0 : index
    %48 = vector.load %arg3[%c2_54, %c0_55, %c0_56] : memref<3x384x128xbf16, #tpu.memory_space<vmem>>, vector<1x384x128xbf16>
    %49 = vector.shape_cast %48 : vector<1x384x128xbf16> to vector<384x128xbf16>
    %cst_57 = arith.constant dense<0.000000e+00> : vector<256x128xf32>
    %50 = tpu.matmul %47, %49, %cst_57 {dimension_numbers = #tpu.dot_dimension_numbers<[1], [0], [0], [1], [0, 0, 1, 1], [], []>} : vector<256x384xbf16>, vector<384x128xbf16>, vector<256x128xf32> -> vector<256x128xf32>
    %51 = arith.addf %42, %50 : vector<256x128xf32>
    %52 = vector.shape_cast %51 : vector<256x128xf32> to vector<16x16x128xf32>
    %c0_58 = arith.constant 0 : index
    %c0_59 = arith.constant 0 : index
    %c0_60 = arith.constant 0 : index
    %c0_61 = arith.constant 0 : index
    %53 = vector.load %arg6[%c0_58, %c0_59, %c0_60, %c0_61] : memref<1x16x16x128xf32, #tpu.memory_space<vmem>>, vector<1x16x16x128xf32>
    %54 = vector.shape_cast %53 : vector<1x16x16x128xf32> to vector<16x16x128xf32>
    %55 = vector.shape_cast %52 : vector<16x16x128xf32> to vector<1x16x16x128xf32>
    tpu.vector_store %arg6[%c0_58, %c0_59, %c0_60, %c0_61], %55 {strides = array<i32>} : memref<1x16x16x128xf32, #tpu.memory_space<vmem>>, vector<1x16x16x128xf32>,
    %cst_62 = arith.constant dense<0.000000e+00> : vector<128xf32>
    %56 = vector.multi_reduction <add>, %51, %cst_62 [0] : vector<256x128xf32> to vector<128xf32>
    %57 = vector.shape_cast %56 : vector<128xf32> to vector<1x128xf32>
    %58 = arith.mulf %51, %51 : vector<256x128xf32>
    %cst_63 = arith.constant dense<0.000000e+00> : vector<128xf32>
    %59 = vector.multi_reduction <add>, %58, %cst_63 [0] : vector<256x128xf32> to vector<128xf32>
    %60 = vector.shape_cast %59 : vector<128xf32> to vector<1x128xf32>
    %61 = tpu.concatenate %57, %60 in 0 : vector<1x128xf32>, vector<1x128xf32> -> vector<2x128xf32>
    %c0_64 = arith.constant 0 : index
    %c0_65 = arith.constant 0 : index
    %c0_66 = arith.constant 0 : index
    %c0_67 = arith.constant 0 : index
    %62 = vector.load %arg7[%c0_64, %c0_65, %c0_66, %c0_67] : memref<1x1x2x128xf32, #tpu.memory_space<vmem>>, vector<1x1x2x128xf32>
    %63 = vector.shape_cast %62 : vector<1x1x2x128xf32> to vector<2x128xf32>
    %64 = vector.shape_cast %61 : vector<2x128xf32> to vector<1x1x2x128xf32>
    tpu.vector_store %arg7[%c0_64, %c0_65, %c0_66, %c0_67], %64 {strides = array<i32>} : memref<1x1x2x128xf32, #tpu.memory_space<vmem>>, vector<1x1x2x128xf32>,
    return
  }
  func.func @transform_0(%arg0: i32, %arg1: i32) -> (i32, i32, i32, i32, i32) {
    %c0_i32 = arith.constant 0 : i32
    %c0_i32_0 = arith.constant 0 : i32
    %c0_i32_1 = arith.constant 0 : i32
    %c0_i32_2 = arith.constant 0 : i32
    return %arg0, %arg1, %c0_i32, %c0_i32_0, %c0_i32_1 : i32, i32, i32, i32, i32
  }
  func.func @transform_1(%arg0: i32, %arg1: i32) -> (i32, i32, i32) {
    %c0_i32 = arith.constant 0 : i32
    %c0_i32_0 = arith.constant 0 : i32
    %c0_i32_1 = arith.constant 0 : i32
    %c0_i32_2 = arith.constant 0 : i32
    return %c0_i32, %c0_i32_0, %c0_i32_1 : i32, i32, i32
  }
  func.func @transform_2(%arg0: i32, %arg1: i32) -> (i32, i32) {
    %c0_i32 = arith.constant 0 : i32
    %c0_i32_0 = arith.constant 0 : i32
    %c0_i32_1 = arith.constant 0 : i32
    return %c0_i32, %c0_i32_0 : i32, i32
  }
  func.func @transform_3(%arg0: i32, %arg1: i32) -> (i32, i32) {
    %c0_i32 = arith.constant 0 : i32
    %c0_i32_0 = arith.constant 0 : i32
    %c0_i32_1 = arith.constant 0 : i32
    return %c0_i32, %c0_i32_0 : i32, i32
  }
  func.func @transform_4(%arg0: i32, %arg1: i32) -> (i32, i32, i32, i32) {
    %c0_i32 = arith.constant 0 : i32
    %c0_i32_0 = arith.constant 0 : i32
    %c0_i32_1 = arith.constant 0 : i32
    return %arg0, %arg1, %c0_i32, %c0_i32_0 : i32, i32, i32, i32
  }
  func.func @transform_5(%arg0: i32, %arg1: i32) -> (i32, i32, i32, i32) {
    %c0_i32 = arith.constant 0 : i32
    %c0_i32_0 = arith.constant 0 : i32
    %c0_i32_1 = arith.constant 0 : i32
    return %arg0, %arg1, %c0_i32, %c0_i32_0 : i32, i32, i32, i32
  }
}

module attributes {stable_mosaic.version = 11 : i64} {
  func.func @kernel(%arg0: i32, %arg1: i32, %arg2: memref<1x16x16x128xf32, #tpu.memory_space<vmem>>, %arg3: memref<1x8xf32, #tpu.memory_space<vmem>>, %arg4: memref<1x8xf32, #tpu.memory_space<vmem>>, %arg5: memref<1x16x16x128xbf16, #tpu.memory_space<vmem>>, %arg6: memref<1x8xf32, #tpu.memory_space<vmem>>, %arg7: memref<1x8xf32, #tpu.memory_space<vmem>>, %arg8: memref<1x16x16x8xf32, #tpu.memory_space<vmem>>) attributes {dimension_semantics = [#tpu.dimension_semantics<parallel>, #tpu.dimension_semantics<parallel>], iteration_bounds = array<i64: 2, 1>, scalar_prefetch = 0 : i64, scratch_operands = 0 : i64, tpu.core_type = #tpu.core_type<tc>, window_params = [{transform_indices = @transform_0, window_bounds = array<i64: 1, 16, 16, 128>}, {pipeline_mode = #tpu.pipeline_mode<synchronous>, transform_indices = @transform_1, window_bounds = array<i64: 1, 8>}, {pipeline_mode = #tpu.pipeline_mode<synchronous>, transform_indices = @transform_2, window_bounds = array<i64: 1, 8>}, {transform_indices = @transform_3, window_bounds = array<i64: 1, 16, 16, 128>}, {pipeline_mode = #tpu.pipeline_mode<synchronous>, transform_indices = @transform_4, window_bounds = array<i64: 1, 8>}, {pipeline_mode = #tpu.pipeline_mode<synchronous>, transform_indices = @transform_5, window_bounds = array<i64: 1, 8>}, {transform_indices = @transform_6, window_bounds = array<i64: 1, 16, 16, 8>}]} {
    %c0 = arith.constant 0 : index
    %c0_0 = arith.constant 0 : index
    %0 = vector.load %arg3[%c0, %c0_0] : memref<1x8xf32, #tpu.memory_space<vmem>>, vector<1x8xf32>
    %1 = vector.shape_cast %0 : vector<1x8xf32> to vector<1x1x8xf32>
    %c0_1 = arith.constant 0 : index
    %c0_2 = arith.constant 0 : index
    %2 = vector.load %arg4[%c0_1, %c0_2] : memref<1x8xf32, #tpu.memory_space<vmem>>, vector<1x8xf32>
    %3 = vector.shape_cast %2 : vector<1x8xf32> to vector<1x1x8xf32>
    %c0_3 = arith.constant 0 : index
    %c0_4 = arith.constant 0 : index
    %4 = vector.load %arg6[%c0_3, %c0_4] : memref<1x8xf32, #tpu.memory_space<vmem>>, vector<1x8xf32>
    %5 = vector.shape_cast %4 : vector<1x8xf32> to vector<1x1x8xf32>
    %c0_5 = arith.constant 0 : index
    %c0_6 = arith.constant 0 : index
    %6 = vector.load %arg7[%c0_5, %c0_6] : memref<1x8xf32, #tpu.memory_space<vmem>>, vector<1x8xf32>
    %7 = vector.shape_cast %6 : vector<1x8xf32> to vector<1x1x8xf32>
    %c0_7 = arith.constant 0 : index
    %c0_8 = arith.constant 0 : index
    %c0_9 = arith.constant 0 : index
    %c0_10 = arith.constant 0 : index
    %8 = vector.load %arg2[%c0_7, %c0_8, %c0_9, %c0_10] : memref<1x16x16x128xf32, #tpu.memory_space<vmem>>, vector<1x16x16x8xf32>
    %9 = vector.shape_cast %8 : vector<1x16x16x8xf32> to vector<16x16x8xf32>
    %10 = vector.broadcast %1 : vector<1x1x8xf32> to vector<16x16x8xf32>
    %11 = arith.mulf %9, %10 : vector<16x16x8xf32>
    %12 = vector.broadcast %3 : vector<1x1x8xf32> to vector<16x16x8xf32>
    %13 = arith.addf %11, %12 : vector<16x16x8xf32>
    %c0_11 = arith.constant 0 : index
    %c0_12 = arith.constant 0 : index
    %c0_13 = arith.constant 0 : index
    %c0_14 = arith.constant 0 : index
    %14 = vector.load %arg5[%c0_11, %c0_12, %c0_13, %c0_14] : memref<1x16x16x128xbf16, #tpu.memory_space<vmem>>, vector<1x16x16x8xbf16>
    %15 = vector.shape_cast %14 : vector<1x16x16x8xbf16> to vector<16x16x8xbf16>
    %16 = arith.extf %15 : vector<16x16x8xbf16> to vector<16x16x8xf32>
    %17 = vector.broadcast %5 : vector<1x1x8xf32> to vector<16x16x8xf32>
    %18 = arith.mulf %16, %17 : vector<16x16x8xf32>
    %19 = vector.broadcast %7 : vector<1x1x8xf32> to vector<16x16x8xf32>
    %20 = arith.addf %18, %19 : vector<16x16x8xf32>
    %21 = arith.addf %13, %20 : vector<16x16x8xf32>
    %cst = arith.constant 0.000000e+00 : f32
    %22 = vector.broadcast %cst : f32 to vector<16x16x8xf32>
    %23 = arith.maximumf %21, %22 : vector<16x16x8xf32>
    %c0_15 = arith.constant 0 : index
    %c0_16 = arith.constant 0 : index
    %c0_17 = arith.constant 0 : index
    %c0_18 = arith.constant 0 : index
    %24 = vector.load %arg8[%c0_15, %c0_16, %c0_17, %c0_18] : memref<1x16x16x8xf32, #tpu.memory_space<vmem>>, vector<1x16x16x8xf32>
    %25 = vector.shape_cast %24 : vector<1x16x16x8xf32> to vector<16x16x8xf32>
    %26 = vector.shape_cast %23 : vector<16x16x8xf32> to vector<1x16x16x8xf32>
    tpu.vector_store %arg8[%c0_15, %c0_16, %c0_17, %c0_18], %26 {strides = array<i32>} : memref<1x16x16x8xf32, #tpu.memory_space<vmem>>, vector<1x16x16x8xf32>,
    return
  }
  func.func @transform_0(%arg0: i32, %arg1: i32) -> (i32, i32, i32, i32) {
    %c0_i32 = arith.constant 0 : i32
    %c0_i32_0 = arith.constant 0 : i32
    %c0_i32_1 = arith.constant 0 : i32
    return %arg0, %arg1, %c0_i32, %c0_i32_0 : i32, i32, i32, i32
  }
  func.func @transform_1(%arg0: i32, %arg1: i32) -> (i32, i32) {
    %c0_i32 = arith.constant 0 : i32
    %c0_i32_0 = arith.constant 0 : i32
    %c0_i32_1 = arith.constant 0 : i32
    return %c0_i32, %c0_i32_0 : i32, i32
  }
  func.func @transform_2(%arg0: i32, %arg1: i32) -> (i32, i32) {
    %c0_i32 = arith.constant 0 : i32
    %c0_i32_0 = arith.constant 0 : i32
    %c0_i32_1 = arith.constant 0 : i32
    return %c0_i32, %c0_i32_0 : i32, i32
  }
  func.func @transform_3(%arg0: i32, %arg1: i32) -> (i32, i32, i32, i32) {
    %c0_i32 = arith.constant 0 : i32
    %c0_i32_0 = arith.constant 0 : i32
    %c0_i32_1 = arith.constant 0 : i32
    return %arg0, %arg1, %c0_i32, %c0_i32_0 : i32, i32, i32, i32
  }
  func.func @transform_4(%arg0: i32, %arg1: i32) -> (i32, i32) {
    %c0_i32 = arith.constant 0 : i32
    %c0_i32_0 = arith.constant 0 : i32
    %c0_i32_1 = arith.constant 0 : i32
    return %c0_i32, %c0_i32_0 : i32, i32
  }
  func.func @transform_5(%arg0: i32, %arg1: i32) -> (i32, i32) {
    %c0_i32 = arith.constant 0 : i32
    %c0_i32_0 = arith.constant 0 : i32
    %c0_i32_1 = arith.constant 0 : i32
    return %c0_i32, %c0_i32_0 : i32, i32
  }
  func.func @transform_6(%arg0: i32, %arg1: i32) -> (i32, i32, i32, i32) {
    %c0_i32 = arith.constant 0 : i32
    %c0_i32_0 = arith.constant 0 : i32
    %c0_i32_1 = arith.constant 0 : i32
    return %arg0, %arg1, %c0_i32, %c0_i32_0 : i32, i32, i32, i32
  }
}

</mosaic_0001>

<bundles_post_ra>
// kernel: residual_block.5
= control target key start
LH: loop header
LB: loop body
LE: loop exit
PB: predicated region body
PF: predicated region fallthrough
CT: control target
= control target key end

     0   :  { %s983_s21 = smov 0   ;;  %s985_s22 = smov 0   ;;  %s1293_s0 = inlined_call_operand.vmem [shape: f32[2,16,16,128], index: 0, kind: input, shape index: {}]   ;;  %s1294_s1 = inlined_call_operand.vmem [shape: f32[1,8], index: 1, kind: input, shape index: {}]   ;;  %s1295_s2 = inlined_call_operand.vmem [shape: f32[1,8], index: 2, kind: input, shape index: {}]   ;;  %s1296_s3 = inlined_call_operand.vmem [shape: bf16[2,16,16,128], index: 3, kind: input, shape index: {}]   ;;  %s1297_s4 = inlined_call_operand.vmem [shape: f32[1,8], index: 4, kind: input, shape index: {}]   ;;  %s1298_s5 = inlined_call_operand.vmem [shape: f32[1,8], index: 5, kind: input, shape index: {}]   ;;  %s1299_s6 = inlined_call_operand.vmem [shape: f32[2,16,16,8], index: 6, kind: output, shape index: {}]  }
   0x1   :  { %s987_s23 = smov 0  }
   0x2 LB: > { %s28_s24 = sadd.s32 1, %s942_s22  ;;  %p805_p0 = scmp.ge.s32.totalorder %s946_s23, 1  ;;  %s946_s23 = sphi %s987_s23, %s16_s23   ;;  %s942_s22 = sphi %s985_s22, %s1301_s22   ;;  %s938_s21 = sphi %s983_s21, %s1300_s21  }
   0x3   : > { %p30_p1 = scmp.ge.s32.totalorder %s28_s24, 2  ;;  %p252_p2 = scmp.lt.s32.totalorder %s946_s23, 3 }
   0x5   : > { %s1303_s24 = smov (%p30_p1, %s28_s24), 0  ;;  %p253_p3 = pnand %p805_p0, %p252_p2 }
   0x6   : > { %p303_p4 = scmp.lt.s32.totalorder (!%p253_p3), %s938_s21, 1  ;;  %v1008_v0 = vld [vmem:[%s1294_s1] ss:$0 sm:$0xff] (!%p253_p3)  ;;  %vm651_vm0 = vcmask (!%p253_p3), 64512  }
   0x7   : > { %256 = sbr.rel (%p253_p3) target bundleno = 81 (0x51), region = 44  ;;  %v1025_v1 = vld [vmem:[%s1295_s2] ss:$0 sm:$0xff] (!%p253_p3) }
   0x8   : > { %v1030_v2 = vld [vmem:[%s1297_s4] ss:$0 sm:$0xff] (!%p253_p3) }
   0x9   : > { %v1043_v13 = vld [vmem:[%s1298_s5] ss:$0 sm:$0xff] (!%p253_p3) }
   0xe   : > { %s1305_s21 = smov (!%p303_p4, %s938_s21), 1 }
   0xf   : > { %s818_s25 = sshll.u32 %s1305_s21, 8  ;;  %s819_s26 = sshll.u32 %s1305_s21, 7 }
  0x10   : > { %s1015_s7 = scalar_lea.vmem %s1293_s0, %s818_s25  ;;  %s1020_s10 = scalar_lea.vmem %s1296_s3, %s819_s26 }
  0x11   : > { %v339_v3 = vld [vmem:[%s1015_s7] sm:$0xff]  ;;  %v340_v5 = vld [vmem:[%s1015_s7 + $0x8] sm:$0xff]  ;;  %v341_v10 = vld [vmem:[%s1015_s7 + $0x10] sm:$0xff]  ;;  %s1073_s19 = scalar_lea.vmem %s1299_s6, %s818_s25 }
  0x12   : > { %v822_v4 = vld [vmem:[%s1020_s10] sm:$0xff]   ;;  %v377_v6 = vmul.f32 %v1008_v0, %v339_v3  ;;  %v378_v8 = vmul.f32 %v1008_v0, %v340_v5  ;;  %v885_v11 = vld [vmem:[%s1020_s10 + $0x8] sm:$0xff]   ;;  %v342_v12 = vld [vmem:[%s1015_s7 + $0x18] sm:$0xff]  ;;  %v379_v14 = vmul.f32 %v1008_v0, %v341_v10 }
  0x13   : > { %v823_v7 = vunpack.c.l.bf16 %v822_v4  ;;  %v824_v9 = vunpack.c.h.bf16 %v822_v4  ;;  %v827_v15 = vunpack.c.l.bf16 %v885_v11  ;;  %v380_v16 = vmul.f32 %v1008_v0, %v342_v12  ;;  %v343_v18 = vld [vmem:[%s1015_s7 + $0x20] sm:$0xff]  ;;  %v886_v19 = vld [vmem:[%s1020_s10 + $0x10] sm:$0xff]   ;;  %v344_v24 = vld [vmem:[%s1015_s7 + $0x28] sm:$0xff] }
  0x14   : > { %v828_v17 = vunpack.c.h.bf16 %v885_v11  ;;  %v415_v20 = vadd.f32 %v1025_v1, %v377_v6  ;;  %v416_v22 = vadd.f32 %v1025_v1, %v378_v8  ;;  %v417_v25 = vadd.f32 %v1025_v1, %v379_v14  ;;  %v345_v37 = vld [vmem:[%s1015_s7 + $0x30] sm:$0xff]  ;;  %v887_v42 = vld [vmem:[%s1020_s10 + $0x18] sm:$0xff]   ;;  %v347_v52 = vld [vmem:[%s1015_s7 + $0x40] sm:$0xff] }
  0x15   : > { %v517_v21 = vmul.f32 %v823_v7, %v1030_v2  ;;  %v518_v23 = vmul.f32 %v824_v9, %v1030_v2  ;;  %v519_v26 = vmul.f32 %v827_v15, %v1030_v2  ;;  %v418_v27 = vadd.f32 %v1025_v1, %v380_v16  ;;  %v346_v47 = vld [vmem:[%s1015_s7 + $0x38] sm:$0xff]  ;;  %v888_v53 = vld [vmem:[%s1020_s10 + $0x20] sm:$0xff]   ;;  %v348_v58 = vld [vmem:[%s1015_s7 + $0x48] sm:$0xff] }
  0x16   : > { %v520_v28 = vmul.f32 %v828_v17, %v1030_v2  ;;  %v381_v31 = vmul.f32 %v1008_v0, %v343_v18  ;;  %v831_v32 = vunpack.c.l.bf16 %v886_v19  ;;  %v382_v35 = vmul.f32 %v1008_v0, %v344_v24  ;;  %v349_v6 = vld [vmem:[%s1015_s7 + $0x50] sm:$0xff]  ;;  %v889_v11 = vld [vmem:[%s1020_s10 + $0x28] sm:$0xff]   ;;  %v350_v12 = vld [vmem:[%s1015_s7 + $0x58] sm:$0xff] }
  0x17   : > { %v555_v29 = vadd.f32 %v1043_v13, %v517_v21  ;;  %v556_v30 = vadd.f32 %v1043_v13, %v518_v23  ;;  %v557_v33 = vadd.f32 %v1043_v13, %v519_v26  ;;  %v832_v36 = vunpack.c.h.bf16 %v886_v19  ;;  %v351_v26 = vld [vmem:[%s1015_s7 + $0x60] sm:$0xff] }
  0x18   : > { %v558_v34 = vadd.f32 %v1043_v13, %v520_v28  ;;  %v419_v40 = vadd.f32 %v1025_v1, %v381_v31  ;;  %v521_v41 = vmul.f32 %v831_v32, %v1030_v2  ;;  %v420_v45 = vadd.f32 %v1025_v1, %v382_v35  ;;  %v890_v31 = vld [vmem:[%s1020_s10 + $0x30] sm:$0xff]   ;;  %v352_v32 = vld [vmem:[%s1015_s7 + $0x68] sm:$0xff] }
  0x19   : > { %v587_v38 = vadd.f32 %v555_v29, %v415_v20  ;;  %v588_v39 = vadd.f32 %v556_v30, %v416_v22  ;;  %v589_v43 = vadd.f32 %v557_v33, %v417_v25  ;;  %v522_v46 = vmul.f32 %v832_v36, %v1030_v2 }
  0x1a   : > { %v590_v44 = vadd.f32 %v558_v34, %v418_v27  ;;  %v559_v50 = vadd.f32 %v1043_v13, %v521_v41  ;;  %v383_v51 = vmul.f32 %v1008_v0, %v345_v37  ;;  %v835_v57 = vunpack.c.l.bf16 %v887_v42  ;;  %v353_v41 = vld [vmem:[%s1015_s7 + $0x70] sm:$0xff] }
  0x1b   : > { %v619_v48 = vmax.f32 %v587_v38, 0.0  ;;  %v620_v49 = vmax.f32 %v588_v39, 0.0  ;;  %v621_v54 = vmax.f32 %v589_v43, 0.0  ;;  %v560_v56 = vadd.f32 %v1043_v13, %v522_v46  ;;  %v891_v46 = vld [vmem:[%s1020_s10 + $0x38] sm:$0xff]  }
  0x1c   : > { %v622_v55 = vmax.f32 %v590_v44, 0.0  ;;  %v591_v59 = vadd.f32 %v559_v50, %v419_v40  ;;  %v421_v60 = vadd.f32 %v1025_v1, %v383_v51  ;;  %v384_v61 = vmul.f32 %v1008_v0, %v346_v47  ;;  %v354_v51 = vld [vmem:[%s1015_s7 + $0x78] sm:$0xff] }
  0x1d   : > { %652 = vst.msk [vmem:[%s1073_s19] sm:$0xff] %vm651_vm0, %v619_v48  ;;  %653 = vst.msk [vmem:[%s1073_s19 + $0x8] sm:$0xff] %vm651_vm0, %v620_v49  ;;  %v836_v62 = vunpack.c.h.bf16 %v887_v42  ;;  %v592_v63 = vadd.f32 %v560_v56, %v420_v45  ;;  %v523_v3 = vmul.f32 %v835_v57, %v1030_v2  ;;  %v385_v4 = vmul.f32 %v1008_v0, %v347_v52 }
  0x1e   : > { %654 = vst.msk [vmem:[%s1073_s19 + $0x10] sm:$0xff] %vm651_vm0, %v621_v54  ;;  %655 = vst.msk [vmem:[%s1073_s19 + $0x18] sm:$0xff] %vm651_vm0, %v622_v55  ;;  %v839_v5 = vunpack.c.l.bf16 %v888_v53  ;;  %v623_v7 = vmax.f32 %v591_v59, 0.0  ;;  %v422_v8 = vadd.f32 %v1025_v1, %v384_v61  ;;  %v386_v10 = vmul.f32 %v1008_v0, %v348_v58  ;;  %v892_v61 = vld [vmem:[%s1020_s10 + $0x40] sm:$0xff]  }
  0x1f   : > { %v524_v9 = vmul.f32 %v836_v62, %v1030_v2  ;;  %v624_v14 = vmax.f32 %v592_v63, 0.0  ;;  %v561_v15 = vadd.f32 %v1043_v13, %v523_v3  ;;  %v423_v16 = vadd.f32 %v1025_v1, %v385_v4 }
  0x20   : > { %v525_v17 = vmul.f32 %v839_v5, %v1030_v2  ;;  %656 = vst.msk [vmem:[%s1073_s19 + $0x20] sm:$0xff] %vm651_vm0, %v623_v7  ;;  %v424_v19 = vadd.f32 %v1025_v1, %v386_v10  ;;  %v840_v20 = vunpack.c.h.bf16 %v888_v53  ;;  %v387_v21 = vmul.f32 %v1008_v0, %v349_v6  ;;  %v356_v5 = vld [vmem:[%s1015_s7 + $0x88] sm:$0xff] }
  0x21   : > { %v562_v18 = vadd.f32 %v1043_v13, %v524_v9  ;;  %657 = vst.msk [vmem:[%s1073_s19 + $0x28] sm:$0xff] %vm651_vm0, %v624_v14  ;;  %v593_v22 = vadd.f32 %v561_v15, %v421_v60  ;;  %v843_v24 = vunpack.c.l.bf16 %v889_v11  ;;  %v388_v25 = vmul.f32 %v1008_v0, %v350_v12  ;;  %v355_v60 = vld [vmem:[%s1015_s7 + $0x80] sm:$0xff] }
  0x22   : > { %v563_v23 = vadd.f32 %v1043_v13, %v525_v17  ;;  %v526_v28 = vmul.f32 %v840_v20, %v1030_v2  ;;  %v425_v29 = vadd.f32 %v1025_v1, %v387_v21  ;;  %v844_v30 = vunpack.c.h.bf16 %v889_v11  ;;  %v893_v20 = vld [vmem:[%s1020_s10 + $0x48] sm:$0xff]  }
  0x23   : > { %v594_v27 = vadd.f32 %v562_v18, %v422_v8  ;;  %v625_v33 = vmax.f32 %v593_v22, 0.0  ;;  %v527_v35 = vmul.f32 %v843_v24, %v1030_v2  ;;  %v426_v36 = vadd.f32 %v1025_v1, %v388_v25  ;;  %v358_v25 = vld [vmem:[%s1015_s7 + $0x98] sm:$0xff] }
  0x24   : > { %v595_v34 = vadd.f32 %v563_v23, %v423_v16  ;;  %v564_v38 = vadd.f32 %v1043_v13, %v526_v28  ;;  %v528_v39 = vmul.f32 %v844_v30, %v1030_v2  ;;  %v389_v40 = vmul.f32 %v1008_v0, %v351_v26 }
  0x25   : > { %v626_v37 = vmax.f32 %v594_v27, 0.0  ;;  %658 = vst.msk [vmem:[%s1073_s19 + $0x30] sm:$0xff] %vm651_vm0, %v625_v33  ;;  %v565_v43 = vadd.f32 %v1043_v13, %v527_v35  ;;  %v847_v44 = vunpack.c.l.bf16 %v890_v31  ;;  %v390_v45 = vmul.f32 %v1008_v0, %v352_v32 }
  0x26   : > { %v627_v42 = vmax.f32 %v595_v34, 0.0  ;;  %v596_v47 = vadd.f32 %v564_v38, %v424_v19  ;;  %v566_v48 = vadd.f32 %v1043_v13, %v528_v39  ;;  %v427_v49 = vadd.f32 %v1025_v1, %v389_v40  ;;  %v357_v19 = vld [vmem:[%s1015_s7 + $0x90] sm:$0xff]  ;;  %v359_v34 = vld [vmem:[%s1015_s7 + $0xa0] sm:$0xff] }
  0x27   : > { %659 = vst.msk [vmem:[%s1073_s19 + $0x38] sm:$0xff] %vm651_vm0, %v626_v37  ;;  %v848_v50 = vunpack.c.h.bf16 %v890_v31  ;;  %v597_v52 = vadd.f32 %v565_v43, %v425_v29  ;;  %v529_v53 = vmul.f32 %v847_v44, %v1030_v2  ;;  %v428_v54 = vadd.f32 %v1025_v1, %v390_v45  ;;  %v894_v39 = vld [vmem:[%s1020_s10 + $0x50] sm:$0xff]   ;;  %v360_v44 = vld [vmem:[%s1015_s7 + $0xa8] sm:$0xff] }
  0x28   : > { %660 = vst.msk [vmem:[%s1073_s19 + $0x40] sm:$0xff] %vm651_vm0, %v627_v42  ;;  %v391_v55 = vmul.f32 %v1008_v0, %v353_v41  ;;  %v628_v56 = vmax.f32 %v596_v47, 0.0  ;;  %v598_v57 = vadd.f32 %v566_v48, %v426_v36  ;;  %v851_v59 = vunpack.c.l.bf16 %v891_v46 }
  0x29   : > { %v530_v58 = vmul.f32 %v848_v50, %v1030_v2  ;;  %v629_v62 = vmax.f32 %v597_v52, 0.0  ;;  %v567_v63 = vadd.f32 %v1043_v13, %v529_v53  ;;  %v392_v4 = vmul.f32 %v1008_v0, %v354_v51 }
  0x2a   : > { %v429_v3 = vadd.f32 %v1025_v1, %v391_v55  ;;  %661 = vst.msk [vmem:[%s1073_s19 + $0x48] sm:$0xff] %vm651_vm0, %v628_v56  ;;  %v630_v6 = vmax.f32 %v598_v57, 0.0  ;;  %v531_v8 = vmul.f32 %v851_v59, %v1030_v2  ;;  %v852_v9 = vunpack.c.h.bf16 %v891_v46  ;;  %v362_v59 = vld [vmem:[%s1015_s7 + $0xb8] sm:$0xff] }
  0x2b   : > { %v568_v7 = vadd.f32 %v1043_v13, %v530_v58  ;;  %662 = vst.msk [vmem:[%s1073_s19 + $0x50] sm:$0xff] %vm651_vm0, %v629_v62  ;;  %v599_v10 = vadd.f32 %v567_v63, %v427_v49  ;;  %v430_v11 = vadd.f32 %v1025_v1, %v392_v4  ;;  %v393_v12 = vmul.f32 %v1008_v0, %v355_v60  ;;  %v361_v49 = vld [vmem:[%s1015_s7 + $0xb0] sm:$0xff] }
  0x2c   : > { %v855_v14 = vunpack.c.l.bf16 %v892_v61  ;;  %663 = vst.msk [vmem:[%s1073_s19 + $0x58] sm:$0xff] %vm651_vm0, %v630_v6  ;;  %v569_v16 = vadd.f32 %v1043_v13, %v531_v8  ;;  %v532_v17 = vmul.f32 %v852_v9, %v1030_v2  ;;  %v394_v18 = vmul.f32 %v1008_v0, %v356_v5  ;;  %v896_v8 = vld [vmem:[%s1020_s10 + $0x60] sm:$0xff]  }
  0x2d   : > { %v600_v15 = vadd.f32 %v568_v7, %v428_v54  ;;  %v631_v21 = vmax.f32 %v599_v10, 0.0  ;;  %v431_v22 = vadd.f32 %v1025_v1, %v393_v12  ;;  %v856_v24 = vunpack.c.h.bf16 %v892_v61  ;;  %v895_v54 = vld [vmem:[%s1020_s10 + $0x58] sm:$0xff]   ;;  %v363_v7 = vld [vmem:[%s1015_s7 + $0xc0] sm:$0xff] }
  0x2e   : > { %v533_v23 = vmul.f32 %v855_v14, %v1030_v2  ;;  %v601_v27 = vadd.f32 %v569_v16, %v429_v3  ;;  %v570_v28 = vadd.f32 %v1043_v13, %v532_v17  ;;  %v432_v29 = vadd.f32 %v1025_v1, %v394_v18  ;;  %v364_v14 = vld [vmem:[%s1015_s7 + $0xc8] sm:$0xff] }
  0x2f   : > { %v632_v26 = vmax.f32 %v600_v15, 0.0  ;;  %664 = vst.msk [vmem:[%s1073_s19 + $0x60] sm:$0xff] %vm651_vm0, %v631_v21  ;;  %v534_v31 = vmul.f32 %v856_v24, %v1030_v2  ;;  %v395_v32 = vmul.f32 %v1008_v0, %v357_v19  ;;  %v859_v33 = vunpack.c.l.bf16 %v893_v20 }
  0x30   : > { %v571_v30 = vadd.f32 %v1043_v13, %v533_v23  ;;  %v633_v35 = vmax.f32 %v601_v27, 0.0  ;;  %v602_v36 = vadd.f32 %v570_v28, %v430_v11  ;;  %v396_v37 = vmul.f32 %v1008_v0, %v358_v25  ;;  %v365_v27 = vld [vmem:[%s1015_s7 + $0xd0] sm:$0xff]  ;;  %v897_v28 = vld [vmem:[%s1020_s10 + $0x68] sm:$0xff]  }
  0x31   : > { %665 = vst.msk [vmem:[%s1073_s19 + $0x68] sm:$0xff] %vm651_vm0, %v632_v26  ;;  %v860_v38 = vunpack.c.h.bf16 %v893_v20  ;;  %v572_v41 = vadd.f32 %v1043_v13, %v534_v31  ;;  %v433_v42 = vadd.f32 %v1025_v1, %v395_v32  ;;  %v535_v43 = vmul.f32 %v859_v33, %v1030_v2  ;;  %v366_v33 = vld [vmem:[%s1015_s7 + $0xd8] sm:$0xff] }
  0x32   : > { %v603_v40 = vadd.f32 %v571_v30, %v431_v22  ;;  %666 = vst.msk [vmem:[%s1073_s19 + $0x70] sm:$0xff] %vm651_vm0, %v633_v35  ;;  %v634_v45 = vmax.f32 %v602_v36, 0.0  ;;  %v434_v46 = vadd.f32 %v1025_v1, %v396_v37  ;;  %v397_v48 = vmul.f32 %v1008_v0, %v359_v34 }
  0x33   : > { %v536_v47 = vmul.f32 %v860_v38, %v1030_v2  ;;  %v604_v51 = vadd.f32 %v572_v41, %v432_v29  ;;  %v573_v52 = vadd.f32 %v1043_v13, %v535_v43  ;;  %v863_v53 = vunpack.c.l.bf16 %v894_v39 }
  0x34   : > { %v635_v50 = vmax.f32 %v603_v40, 0.0  ;;  %667 = vst.msk [vmem:[%s1073_s19 + $0x78] sm:$0xff] %vm651_vm0, %v634_v45  ;;  %v435_v56 = vadd.f32 %v1025_v1, %v397_v48  ;;  %v398_v57 = vmul.f32 %v1008_v0, %v360_v44  ;;  %v864_v58 = vunpack.c.h.bf16 %v894_v39 }
  0x35   : > { %v574_v55 = vadd.f32 %v1043_v13, %v536_v47  ;;  %v636_v60 = vmax.f32 %v604_v51, 0.0  ;;  %v605_v61 = vadd.f32 %v573_v52, %v433_v42  ;;  %v537_v62 = vmul.f32 %v863_v53, %v1030_v2  ;;  %v367_v42 = vld [vmem:[%s1015_s7 + $0xe0] sm:$0xff]  ;;  %v898_v47 = vld [vmem:[%s1020_s10 + $0x70] sm:$0xff]   ;;  %v368_v52 = vld [vmem:[%s1015_s7 + $0xe8] sm:$0xff] }
  0x36   : > { %668 = vst.msk [vmem:[%s1073_s19 + $0x80] sm:$0xff] %vm651_vm0, %v635_v50  ;;  %v399_v63 = vmul.f32 %v1008_v0, %v361_v49  ;;  %v436_v4 = vadd.f32 %v1025_v1, %v398_v57  ;;  %v538_v5 = vmul.f32 %v864_v58, %v1030_v2  ;;  %v867_v6 = vunpack.c.l.bf16 %v895_v54  ;;  %v369_v57 = vld [vmem:[%s1015_s7 + $0xf0] sm:$0xff] }
  0x37   : > { %v606_v3 = vadd.f32 %v574_v55, %v434_v46  ;;  %669 = vst.msk [vmem:[%s1073_s19 + $0x88] sm:$0xff] %vm651_vm0, %v636_v60  ;;  %v637_v9 = vmax.f32 %v605_v61, 0.0  ;;  %v575_v10 = vadd.f32 %v1043_v13, %v537_v62  ;;  %v400_v12 = vmul.f32 %v1008_v0, %v362_v59  ;;  %v899_v62 = vld [vmem:[%s1020_s10 + $0x78] sm:$0xff]  }
  0x38   : > { %v437_v11 = vadd.f32 %v1025_v1, %v399_v63  ;;  %v576_v16 = vadd.f32 %v1043_v13, %v538_v5  ;;  %v539_v17 = vmul.f32 %v867_v6, %v1030_v2  ;;  %v868_v18 = vunpack.c.h.bf16 %v895_v54  ;;  %v370_v6 = vld [vmem:[%s1015_s7 + $0xf8] sm:$0xff] }
  0x39   : > { %v638_v15 = vmax.f32 %v606_v3, 0.0  ;;  %670 = vst.msk [vmem:[%s1073_s19 + $0x90] sm:$0xff] %vm651_vm0, %v637_v9  ;;  %v607_v19 = vadd.f32 %v575_v10, %v435_v56  ;;  %v438_v20 = vadd.f32 %v1025_v1, %v400_v12  ;;  %v401_v21 = vmul.f32 %v1008_v0, %v363_v7 }
  0x3a   : > { %v871_v22 = vunpack.c.l.bf16 %v896_v8  ;;  %v608_v23 = vadd.f32 %v576_v16, %v436_v4  ;;  %v577_v24 = vadd.f32 %v1043_v13, %v539_v17  ;;  %v540_v25 = vmul.f32 %v868_v18, %v1030_v2 }
  0x3b   : > { %671 = vst.msk [vmem:[%s1073_s19 + $0x98] sm:$0xff] %vm651_vm0, %v638_v15  ;;  %v402_v26 = vmul.f32 %v1008_v0, %v364_v14  ;;  %v639_v29 = vmax.f32 %v607_v19, 0.0  ;;  %v439_v30 = vadd.f32 %v1025_v1, %v401_v21  ;;  %v872_v32 = vunpack.c.h.bf16 %v896_v8 }
  0x3c   : > { %v541_v31 = vmul.f32 %v871_v22, %v1030_v2  ;;  %v640_v34 = vmax.f32 %v608_v23, 0.0  ;;  %v609_v35 = vadd.f32 %v577_v24, %v437_v11  ;;  %v578_v36 = vadd.f32 %v1043_v13, %v540_v25 }
  0x3d   : > { %v440_v37 = vadd.f32 %v1025_v1, %v402_v26  ;;  %672 = vst.msk [vmem:[%s1073_s19 + $0xa0] sm:$0xff] %vm651_vm0, %v639_v29  ;;  %v542_v39 = vmul.f32 %v872_v32, %v1030_v2  ;;  %v403_v40 = vmul.f32 %v1008_v0, %v365_v27  ;;  %v875_v41 = vunpack.c.l.bf16 %v897_v28 }
  0x3e   : > { %v579_v38 = vadd.f32 %v1043_v13, %v541_v31  ;;  %673 = vst.msk [vmem:[%s1073_s19 + $0xa8] sm:$0xff] %vm651_vm0, %v640_v34  ;;  %v641_v43 = vmax.f32 %v609_v35, 0.0  ;;  %v610_v44 = vadd.f32 %v578_v36, %v438_v20  ;;  %v404_v45 = vmul.f32 %v1008_v0, %v366_v33 }
  0x3f   : > { %v876_v46 = vunpack.c.h.bf16 %v897_v28  ;;  %v580_v49 = vadd.f32 %v1043_v13, %v542_v39  ;;  %v441_v50 = vadd.f32 %v1025_v1, %v403_v40  ;;  %v543_v51 = vmul.f32 %v875_v41, %v1030_v2 }
  0x40   : > { %v611_v48 = vadd.f32 %v579_v38, %v439_v30  ;;  %674 = vst.msk [vmem:[%s1073_s19 + $0xb0] sm:$0xff] %vm651_vm0, %v641_v43  ;;  %v642_v53 = vmax.f32 %v610_v44, 0.0  ;;  %v442_v54 = vadd.f32 %v1025_v1, %v404_v45  ;;  %v405_v56 = vmul.f32 %v1008_v0, %v367_v42 }
  0x41   : > { %v544_v55 = vmul.f32 %v876_v46, %v1030_v2  ;;  %v612_v59 = vadd.f32 %v580_v49, %v440_v37  ;;  %v581_v60 = vadd.f32 %v1043_v13, %v543_v51  ;;  %v879_v61 = vunpack.c.l.bf16 %v898_v47 }
  0x42   : > { %v643_v58 = vmax.f32 %v611_v48, 0.0  ;;  %675 = vst.msk [vmem:[%s1073_s19 + $0xb8] sm:$0xff] %vm651_vm0, %v642_v53  ;;  %v443_v3 = vadd.f32 %v1025_v1, %v405_v56  ;;  %v406_v4 = vmul.f32 %v1008_v0, %v368_v52  ;;  %v880_v5 = vunpack.c.h.bf16 %v898_v47 }
  0x43   : > { %v582_v63 = vadd.f32 %v1043_v13, %v544_v55  ;;  %v644_v7 = vmax.f32 %v612_v59, 0.0  ;;  %v613_v8 = vadd.f32 %v581_v60, %v441_v50  ;;  %v545_v9 = vmul.f32 %v879_v61, %v1030_v2 }
  0x44   : > { %676 = vst.msk [vmem:[%s1073_s19 + $0xc0] sm:$0xff] %vm651_vm0, %v643_v58  ;;  %v407_v10 = vmul.f32 %v1008_v0, %v369_v57  ;;  %v444_v12 = vadd.f32 %v1025_v1, %v406_v4  ;;  %v546_v14 = vmul.f32 %v880_v5, %v1030_v2  ;;  %v883_v15 = vunpack.c.l.bf16 %v899_v62 }
  0x45   : > { %v614_v11 = vadd.f32 %v582_v63, %v442_v54  ;;  %677 = vst.msk [vmem:[%s1073_s19 + $0xc8] sm:$0xff] %vm651_vm0, %v644_v7  ;;  %v645_v16 = vmax.f32 %v613_v8, 0.0  ;;  %v583_v17 = vadd.f32 %v1043_v13, %v545_v9  ;;  %v408_v19 = vmul.f32 %v1008_v0, %v370_v6 }
  0x46   : > { %v445_v18 = vadd.f32 %v1025_v1, %v407_v10  ;;  %v584_v21 = vadd.f32 %v1043_v13, %v546_v14  ;;  %v547_v22 = vmul.f32 %v883_v15, %v1030_v2  ;;  %v884_v23 = vunpack.c.h.bf16 %v899_v62 }
  0x47   : > { %v646_v20 = vmax.f32 %v614_v11, 0.0  ;;  %678 = vst.msk [vmem:[%s1073_s19 + $0xd0] sm:$0xff] %vm651_vm0, %v645_v16  ;;  %v615_v24 = vadd.f32 %v583_v17, %v443_v3  ;;  %v446_v0 = vadd.f32 %v1025_v1, %v408_v19 }
  0x48   : > { %v616_v25 = vadd.f32 %v584_v21, %v444_v12  ;;  %v585_v26 = vadd.f32 %v1043_v13, %v547_v22  ;;  %v548_v27 = vmul.f32 %v884_v23, %v1030_v2 }
  0x49   : > { %679 = vst.msk [vmem:[%s1073_s19 + $0xd8] sm:$0xff] %vm651_vm0, %v646_v20  ;;  %v647_v28 = vmax.f32 %v615_v24, 0.0 }
  0x4a   : > { %v648_v29 = vmax.f32 %v616_v25, 0.0  ;;  %v617_v30 = vadd.f32 %v585_v26, %v445_v18  ;;  %v586_v31 = vadd.f32 %v1043_v13, %v548_v27 }
  0x4b   : > { %680 = vst.msk [vmem:[%s1073_s19 + $0xe0] sm:$0xff] %vm651_vm0, %v647_v28 }
  0x4c   : > { %681 = vst.msk [vmem:[%s1073_s19 + $0xe8] sm:$0xff] %vm651_vm0, %v648_v29  ;;  %v649_v32 = vmax.f32 %v617_v30, 0.0  ;;  %v618_v33 = vadd.f32 %v586_v31, %v446_v0 }
  0x4e   : > { %682 = vst.msk [vmem:[%s1073_s19 + $0xf0] sm:$0xff] %vm651_vm0, %v649_v32  ;;  %v650_v34 = vmax.f32 %v618_v33, 0.0 }
  0x50   : > { %683 = vst.msk [vmem:[%s1073_s19 + $0xf8] sm:$0xff] %vm651_vm0, %v650_v34 }
  0x51 PF: > { %s16_s23 = sadd.s32 1, %s946_s23   ;;  %s1300_s21 = smov %s942_s22 }
  0x52   : > { %p13_p5 = scmp.ge.s32.totalorder %s16_s23, 4   ;;  %s1301_s22 = smov %s1303_s24 }
  0x54   :  { %15 = sbr.rel (!%p13_p5) target bundleno = 2 (0x2), region = 77 }

// kernel: residual_block.3
= control target key start
LH: loop header
LB: loop body
LE: loop exit
PB: predicated region body
PF: predicated region fallthrough
CT: control target
= control target key end

     0   :  { %s5422_s21 = smov 0   ;;  %s5424_s22 = smov 0   ;;  %s7422_s0 = inlined_call_operand.vmem [shape: bf16[2,1,20,18,4], index: 0, kind: input, shape index: {}]   ;;  %s7423_s1 = inlined_call_operand.vmem [shape: bf16[36,128], index: 1, kind: input, shape index: {}]   ;;  %s7424_s2 = inlined_call_operand.vmem [shape: bf16[4,128], index: 2, kind: input, shape index: {}]   ;;  %s7425_s3 = inlined_call_operand.vmem [shape: bf16[2,1,18,16,128], index: 3, kind: output, shape index: {0}]   ;;  %s7426_s4 = inlined_call_operand.vmem [shape: f32[2,1,2,128], index: 4, kind: output, shape index: {1}]   ;;  %s7427_s5 = inlined_call_operand.vmem [shape: bf16[2,16,16,128], index: 5, kind: output, shape index: {2}]   ;;  %s7428_s6 = inlined_call_operand.vmem [shape: f32[2,1,2,128], index: 6, kind: output, shape index: {3}]  }
   0x1   :  { %s5426_s23 = smov 0  }
   0x2 LB: > { %s29_s24 = sadd.s32 1, %s5373_s22  ;;  %p4285_p0 = scmp.ge.s32.totalorder %s5377_s23, 1  ;;  %s5377_s23 = sphi %s5426_s23, %s17_s23   ;;  %s5373_s22 = sphi %s5424_s22, %s7561_s22   ;;  %s5369_s21 = sphi %s5422_s21, %s7560_s21  }
   0x3   : > { %p31_p1 = scmp.ge.s32.totalorder %s29_s24, 2  ;;  %p245_p2 = scmp.lt.s32.totalorder %s5377_s23, 3 }
   0x5   : > { %s7563_s24 = smov (%p31_p1, %s29_s24), 0  ;;  %p246_p3 = pnand %p4285_p0, %p245_p2 }
   0x7   : > { %249 = sbr.rel (%p246_p3) target bundleno = 661 (0x295), region = 32 }
   0xe   : > { %p307_p4 = scmp.lt.s32.totalorder %s5369_s21, 1  ;;  %vm1020_vm0 = vcmask 1046528   ;;  %s5379_s29 = smov 12   ;;  %vm713_vm1 = vsmask.f32 7424  ;;  %v5268_v57 = vld [vmem:[%s7423_s1] sm:$0xff]  }
   0xf   : > { %s5380_s30 = smov 20   ;;  %s5381_s7 = smov 8   ;;  %5078 = vmatprep.subr.bf16.mxu0 %v5268_v57  ;;  %vm2616_vm2 = vcmask 1041408   ;;  %vm2263_vm3 = vcmask 31744   ;;  %vm2300_vm4 = vcmask 64512   ;;  %vm2337_vm5 = vcmask 97280  }
  0x10   : > { %s7565_s21 = smov (!%p307_p4, %s5369_s21), 1  ;;  %s5382_s10 = smov 4   ;;  %5079 = vmatpush3.bf16.msra.mxu0 %v5268_v57  ;;  %vm2374_vm6 = vcmask 130048   ;;  %vm2411_vm7 = vcmask 162816   ;;  %vm2448_vm8 = vcmask 195584   ;;  %vm2485_vm9 = vcmask 228352  }
  0x11   : > { %s5156_s25 = smul.u32 240, %s7565_s21  ;;  %s5383_s13 = smov 16   ;;  %vm2522_vm10 = vcmask 261120   ;;  %vm2579_vm11 = vcmask 293888   ;;  %vm3134_vm12 = vsmask.f32 3328 }
  0x12   : > { %s5384_s14 = smov 24   ;;  %s5385_s15 = smov 28   ;;  %vm3135_vm13 = vsmask.f32 7440  ;;  %vm3083_vm15 = vcmask 1040384  }
  0x13   : > { %s5446_s28 = scalar_lea.vmem %s7422_s0, %s5156_s25  ;;  %s5386_s16 = smov 32   ;;  %vm6901_vm14 = vmor %vm3134_vm12, %vm3135_vm13 }
  0x14   : > { %v4294_v0 = vld [vmem:[%s5446_s28 + $0x18] sm:$0xf]  ;;  %v4295_v1 = vld [vmem:[%s5446_s28 + $0x1c] sm:$0xf]  ;;  %v4292_v5 = vld [vmem:[%s5446_s28 + $0xc] sm:$0xf] }
  0x15   : > { %v4347_v2 = vld [vmem:[%s5446_s28 + $0x18] sm:$0xe]  ;;  %v5451_v3 = vcombine.low %v4294_v0, %v4295_v1  ;;  %v4293_v6 = vld [vmem:[%s5446_s28 + $0x10] sm:$0xf]  ;;  %v4346_v7 = vld [vmem:[%s5446_s28 + $0xc] sm:$0xe] }
  0x16   : > { %v4527_v4 = vcombine.low %v4347_v2, %v4295_v1  ;;  %v5456_v8 = vcombine.low %v4292_v5, %v4293_v6  ;;  %v4526_v9 = vcombine.low %v4346_v7, %v4293_v6  ;;  %v5459_v10 = vld [vmem:[%s5446_s28 + $0x14] ss:$0 sps:$4 sm:$0x11]   ;;  %v352_v12 = vld [vmem:[%s5446_s28 + $0x4] sm:$0xf]  ;;  %s5157_s25 = smul.u32 144, %s7565_s21 }
  0x17   : > { %1203 = vrot.lane.b32.xlu1 %v5451_v3, %s5379_s29  ;;  %v1306_v11 = vshll.u32 %v5451_v3, 16  ;;  %v1598_v15 = vrot.slane %v5459_v10, 1  ;;  %v405_v16 = vld [vmem:[%s5446_s28] sm:$0xe]  ;;  %v1304_v21 = vshrl.u32 %v5451_v3, 16  ;;  %v1299_v60 = vshll.u32 %v5459_v10, 16 }
  0x18   : > { %1201 = vrot.lane.b32.xlu0 %v5456_v8, %s5379_s29  ;;  %v1294_v13 = vshll.u32 %v5456_v8, 16  ;;  %v1597_v14 = vrot.slane %v4526_v9, 1  ;;  %v1600_v17 = vrot.slane %v4527_v4, 1  ;;  %v5195_v18 = vld [vmem:[%s5446_s28 + $0x8] ss:$0 sps:$4 sm:$0x11]   ;;  %v4472_v19 = vcombine.low %v405_v16, %v352_v12 }
  0x19   : > { %v351_v20 = vld [vmem:[%s5446_s28] sm:$0xf]  ;;  %v353_v24 = vld [vmem:[%s5446_s28 + $0xc] sm:$0xf]  ;;  %v354_v25 = vld [vmem:[%s5446_s28 + $0x10] sm:$0xf] }
  0x1a   : > { %v1599_v22 = vsel %vm1020_vm0, %v1597_v14, %v1598_v15  ;;  %v5474_v23 = vcombine.low %v351_v20, %v352_v12  ;;  %v1021_v26 = vrot.slane %v4472_v19, 1  ;;  %v1022_v27 = vrot.slane %v5195_v18, 1  ;;  %v406_v28 = vld [vmem:[%s5446_s28 + $0xc] sm:$0xe]  ;;  %v4366_v43 = vld [vmem:[%s5446_s28 + $0x24] sm:$0xf] }
  0x1b   : > { %v5479_v29 = vcombine.low %v353_v24, %v354_v25  ;;  %v722_v30 = vshll.u32 %v5195_v18, 16  ;;  %v5199_v31 = vld [vmem:[%s5446_s28 + $0x14] ss:$0 sps:$4 sm:$0x11]   ;;  %v4473_v32 = vcombine.low %v406_v28, %v354_v25  ;;  %v1308_v35 = vrot.slane %v1306_v11, 1  ;;  %v5273_v12 = vld [vmem:[%s7423_s1 + $0x8] sm:$0xff]  }
  0x1c   : > { %1651 = vrot.lane.b32.xlu0 %v1599_v22, %s5380_s30  ;;  %v715_v33 = vshrl.u32 %v5474_v23, 16  ;;  %v717_v34 = vshll.u32 %v5474_v23, 16  ;;  %v1023_v36 = vsel %vm1020_vm0, %v1021_v26, %v1022_v27  ;;  %v5201_v38 = vld [vmem:[%s5446_s28 + $0x20] ss:$0 sps:$4 sm:$0x11]   ;;  %v1025_v40 = vrot.slane %v5199_v31, 1  ;;  %5080 = vmatprep.subr.bf16.mxu0 %v5273_v12 }
  0x1d   : > { %v724_v37 = vrot.slane %v722_v30, 1  ;;  %1075 = vrot.lane.b32.xlu1 %v1023_v36, %s5381_s7  ;;  %v1024_v39 = vrot.slane %v4473_v32, 1  ;;  %v727_v42 = vshrl.u32 %v5479_v29, 16  ;;  %v1601_v44 = vrot.slane %v5201_v38, 1  ;;  %v5492_v48 = vld [vmem:[%s5446_s28 + $0x28] sm:$0xf]  ;;  %5081 = vmatpush3.bf16.msra.mxu0 %v5273_v12 }
  0x1e   : > { %v719_v41 = vrot.slane %v717_v34, 1  ;;  %v729_v45 = vshll.u32 %v5479_v29, 16  ;;  %v734_v46 = vshll.u32 %v5199_v31, 16  ;;  %v1311_v47 = vshll.u32 %v5201_v38, 16  ;;  %v4364_v53 = vld [vmem:[%s5446_s28 + $0x18] sm:$0xf] }
  0x1f   : > { %v1026_v49 = vsel %vm1020_vm0, %v1024_v39, %v1025_v40  ;;  %v1292_v51 = vshrl.u32 %v5456_v8, 16  ;;  %v1296_v52 = vrot.slane %v1294_v13, 1  ;;  %v4365_v56 = vld [vmem:[%s5446_s28 + $0x1c] sm:$0xf]  ;;  %v1309_v59 = vor.u32 %v1308_v35, %v1304_v21  ;;  %v4418_v6 = vld [vmem:[%s5446_s28 + $0x18] sm:$0xe] }
  0x20   : > { %v720_v50 = vor.u32 %v719_v41, %v715_v33  ;;  %v731_v54 = vrot.slane %v729_v45, 1  ;;  %v736_v55 = vrot.slane %v734_v46, 1  ;;  %v4545_v61 = vcombine.low %v4366_v43, %v5492_v48  ;;  %v5508_v2 = vld [vmem:[%s5446_s28 + $0x2c] ss:$0 sps:$4 sm:$0x11]   ;;  %s4288_s9 = sshll.u32 %s7565_s21, 1 }
  0x21   : > { %1077 = vrot.lane.b32.xlu1 %v1026_v49, %s5381_s7  ;;  %v1602_v62 = vsel %vm1020_vm0, %v1600_v17, %v1601_v44  ;;  %v1313_v0 = vrot.slane %v1311_v47, 1  ;;  %v4544_v1 = vcombine.low %v4364_v53, %v4365_v56  ;;  %v1297_v3 = vor.u32 %v1296_v52, %v1292_v51  ;;  %v5512_v7 = vld [vmem:[%s5446_s28 + $0x20] ss:$0 sps:$4 sm:$0x11]   ;;  %v355_v11 = vld [vmem:[%s5446_s28 + $0x18] sm:$0xf]  ;;  %s349_s12 = scalar_lea.vmem %s7428_s6, %s4288_s9 }
  0x22   : > { %v725_v58 = vsel %vm713_vm1, %v720_v50, %v724_v37  ;;  %v732_v63 = vor.u32 %v731_v54, %v727_v42  ;;  %v1301_v4 = vrot.slane %v1299_v60, 1  ;;  %v1882_v5 = vshll.u32 %v4545_v61, 16  ;;  %v5522_v15 = vld [vmem:[%s5446_s28 + $0x1c] sm:$0xf]  ;;  %v357_v24 = vld [vmem:[%s5446_s28 + $0x24] sm:$0xf] }
  0x23   : > { %930 = vrot.lane.b32.xlu0 %v725_v58, %s5382_s10  ;;  %v1870_v9 = vshll.u32 %v4544_v1, 16  ;;  %v1880_v10 = vshrl.u32 %v4545_v61, 16  ;;  %v1887_v14 = vshll.u32 %v5508_v2, 16  ;;  %v1314_v16 = vsel %vm713_vm1, %v1309_v59, %v1313_v0  ;;  %v5530_v19 = vld [vmem:[%s5446_s28 + $0x20] ss:$0 sps:$4 sm:$0x11]  }
  0x24   : > { %v737_v8 = vsel %vm713_vm1, %v732_v63, %v736_v55  ;;  %v1884_v13 = vrot.slane %v1882_v5, 1  ;;  %v1868_v17 = vshrl.u32 %v4544_v1, 16  ;;  %v5527_v18 = vcombine.low %v355_v11, %v5522_v15  ;;  %v358_v25 = vld [vmem:[%s5446_s28 + $0x28] sm:$0xf]  ;;  %v4419_v39 = vld [vmem:[%s5446_s28 + $0x24] sm:$0xe] }
  0x25   : > { %1653 = vrot.lane.b32.xlu1 %v1602_v62, %s5380_s30  ;;  %v1302_v20 = vsel %vm713_vm1, %v1297_v3, %v1301_v4  ;;  %v1872_v21 = vrot.slane %v1870_v9, 1  ;;  %v1875_v22 = vshll.u32 %v5512_v7, 16  ;;  %v4580_v26 = vcombine.low %v4418_v6, %v4365_v56  ;;  %v5211_v35 = vld [vmem:[%s5446_s28 + $0x2c] ss:$0 sps:$4 sm:$0x11]  }
  0x26   : > { %7456 = vst [vmem:[#allocation2_spill] sm:$0xff] %v5527_v18  ;;  %v741_v27 = vshll.u32 %v5527_v18, 16  ;;  %v1885_v28 = vor.u32 %v1884_v13, %v1880_v10  ;;  %v1889_v30 = vrot.slane %v1887_v14, 1  ;;  %v746_v31 = vshll.u32 %v5530_v19, 16  ;;  %v408_v44 = vld [vmem:[%s5446_s28 + $0x24] sm:$0xe] }
  0x27   : > { %932 = vrot.lane.b32.xlu0 %v737_v8, %s5382_s10  ;;  %v5539_v32 = vcombine.low %v357_v24, %v358_v25  ;;  %v739_v33 = vshrl.u32 %v5527_v18, 16  ;;  %v1873_v36 = vor.u32 %v1872_v21, %v1868_v17  ;;  %v1877_v37 = vrot.slane %v1875_v22, 1  ;;  %v407_v50 = vld [vmem:[%s5446_s28 + $0x18] sm:$0xe]  ;;  %v4298_v53 = vld [vmem:[%s5446_s28 + $0x30] sm:$0xf] }
  0x28   : > { %v743_v34 = vrot.slane %v741_v27, 1  ;;  %v1890_v40 = vsel %vm713_vm1, %v1885_v28, %v1889_v30  ;;  %v748_v41 = vrot.slane %v746_v31, 1  ;;  %v2173_v42 = vrot.slane %v4580_v26, 1  ;;  %v4299_v54 = vld [vmem:[%s5446_s28 + $0x34] sm:$0xf] }
  0x29   : > { %1509 = vrot.lane.b32.xlu1 %v1314_v16, %s5383_s13  ;;  %7457 = vst [vmem:[#allocation3_spill] sm:$0xff] %v5539_v32  ;;  %v753_v38 = vshll.u32 %v5539_v32, 16  ;;  %v2174_v43 = vrot.slane %v5512_v7, 1  ;;  %v751_v46 = vshrl.u32 %v5539_v32, 16  ;;  %v758_v49 = vshll.u32 %v5211_v35, 16 }
  0x2a   : > { %v744_v45 = vor.u32 %v743_v34, %v739_v33  ;;  %v4581_v51 = vcombine.low %v4419_v39, %v5492_v48  ;;  %v1878_v52 = vsel %vm713_vm1, %v1873_v36, %v1877_v37  ;;  %v4296_v55 = vld [vmem:[%s5446_s28 + $0x24] sm:$0xf]  ;;  %v4297_v56 = vld [vmem:[%s5446_s28 + $0x28] sm:$0xf]  ;;  %v4475_v58 = vcombine.low %v408_v44, %v358_v25  ;;  %v4349_v12 = vld [vmem:[%s5446_s28 + $0x30] sm:$0xe] }
  0x2b   : > { %1507 = vrot.lane.b32.xlu0 %v1302_v20, %s5383_s13  ;;  %v755_v47 = vrot.slane %v753_v38, 1  ;;  %v2175_v57 = vsel %vm1020_vm0, %v2173_v42, %v2174_v43  ;;  %v4493_v48 = vcombine.low %v4298_v53, %v4299_v54  ;;  %v2177_v63 = vrot.slane %v5508_v2, 1  ;;  %v5218_v7 = vld [vmem:[%s5446_s28 + $0x38] ss:$0 sps:$4 sm:$0x11]  }
  0x2c   : > { %v749_v59 = vsel %vm713_vm1, %v744_v45, %v748_v41  ;;  %v2176_v62 = vrot.slane %v4581_v51, 1  ;;  %v4474_v0 = vcombine.low %v407_v50, %v5522_v15  ;;  %v1030_v3 = vrot.slane %v4475_v58, 1  ;;  %v5219_v11 = vld [vmem:[%s5446_s28 + $0x2c] ss:$0 sps:$4 sm:$0x11]  }
  0x2d   : > { %1779 = vrot.lane.b32.xlu1 %v4545_v61, %s5384_s14  ;;  %v756_v60 = vor.u32 %v755_v47, %v751_v46  ;;  %v760_v61 = vrot.slane %v758_v49, 1  ;;  %v1031_v4 = vrot.slane %v5211_v35, 1  ;;  %v1330_v6 = vshll.u32 %v4493_v48, 16  ;;  %v4348_v13 = vld [vmem:[%s5446_s28 + $0x24] sm:$0xe] }
  0x2e   : > { %v2178_v2 = vsel %vm1020_vm0, %v2176_v62, %v2177_v63  ;;  %v1027_v8 = vrot.slane %v4474_v0, 1  ;;  %v1028_v9 = vrot.slane %v5530_v19, 1  ;;  %v1328_v14 = vshrl.u32 %v4493_v48, 16  ;;  %v4370_v20 = vld [vmem:[%s5446_s28 + $0x3c] sm:$0xf] }
  0x2f   : > { %1777 = vrot.lane.b32.xlu0 %v4544_v1, %s5384_s14  ;;  %v4492_v1 = vcombine.low %v4296_v55, %v4297_v56  ;;  %v761_v5 = vsel %vm713_vm1, %v756_v60, %v760_v61  ;;  %v1032_v15 = vsel %vm1020_vm0, %v1030_v3, %v1031_v4  ;;  %v1332_v16 = vrot.slane %v1330_v6, 1  ;;  %v5579_v21 = vld [vmem:[%s5446_s28 + $0x40] sm:$0xf]  ;;  %v4368_v27 = vld [vmem:[%s5446_s28 + $0x30] sm:$0xf] }
  0x30   : > { %v1335_v17 = vshll.u32 %v5218_v7, 16  ;;  %v1029_v19 = vsel %vm1020_vm0, %v1027_v8, %v1028_v9  ;;  %v1323_v25 = vshll.u32 %v5219_v11, 16  ;;  %v4529_v26 = vcombine.low %v4349_v12, %v4299_v54  ;;  %v4369_v28 = vld [vmem:[%s5446_s28 + $0x34] sm:$0xf]  ;;  %v359_v38 = vld [vmem:[%s5446_s28 + $0x30] sm:$0xf] }
  0x31   : > { %2085 = vrot.lane.b32.xlu1 %v1890_v40, %s5385_s15  ;;  %v1318_v10 = vshll.u32 %v4492_v1, 16  ;;  %v1316_v22 = vshrl.u32 %v4492_v1, 16  ;;  %v4528_v30 = vcombine.low %v4348_v13, %v4297_v56  ;;  %v4547_v31 = vcombine.low %v4370_v20, %v5579_v21  ;;  %v5589_v39 = vld [vmem:[%s5446_s28 + $0x34] sm:$0xf]  ;;  %v361_v49 = vld [vmem:[%s5446_s28 + $0x3c] sm:$0xf] }
  0x32   : > { %v1333_v33 = vor.u32 %v1332_v16, %v1328_v14  ;;  %v1337_v34 = vrot.slane %v1335_v17, 1  ;;  %v1325_v36 = vrot.slane %v1323_v25, 1  ;;  %v4546_v37 = vcombine.low %v4368_v27, %v4369_v28  ;;  %v5593_v45 = vld [vmem:[%s5446_s28 + $0x44] ss:$0 sps:$4 sm:$0x11]  }
  0x33   : > { %2083 = vrot.lane.b32.xlu0 %v1878_v52, %s5385_s15  ;;  %v1320_v24 = vrot.slane %v1318_v10, 1  ;;  %v1606_v40 = vrot.slane %v4529_v26, 1  ;;  %v1607_v41 = vrot.slane %v5218_v7, 1  ;;  %v1603_v42 = vrot.slane %v4528_v30, 1  ;;  %v5602_v50 = vld [vmem:[%s5446_s28 + $0x40] sm:$0xf] }
  0x34   : > { %v1604_v43 = vrot.slane %v5219_v11, 1  ;;  %v1906_v44 = vshll.u32 %v4547_v31, 16  ;;  %v1338_v46 = vsel %vm713_vm1, %v1333_v33, %v1337_v34  ;;  %v5598_v47 = vcombine.low %v359_v38, %v5589_v39  ;;  %v5606_v53 = vld [vmem:[%s5446_s28 + $0x38] ss:$0 sps:$4 sm:$0x11]  }
  0x35   : > { %934 = vrot.lane.b32.xlu1 %v749_v59, %s5382_s10  ;;  %v1321_v35 = vor.u32 %v1320_v24, %v1316_v22  ;;  %v1894_v52 = vshll.u32 %v4546_v37, 16  ;;  %v1904_v54 = vshrl.u32 %v4547_v31, 16  ;;  %v1911_v56 = vshll.u32 %v5593_v45, 16  ;;  %v4420_v59 = vld [vmem:[%s5446_s28 + $0x30] sm:$0xe] }
  0x36   : > { %7458 = vst [vmem:[#allocation4_spill] sm:$0xff] %v5598_v47  ;;  %v1908_v55 = vrot.slane %v1906_v44, 1  ;;  %v1608_v58 = vsel %vm1020_vm0, %v1606_v40, %v1607_v41  ;;  %v5617_v60 = vld [vmem:[%s5446_s28 + $0x38] ss:$0 sps:$4 sm:$0x11]   ;;  %v765_v61 = vshll.u32 %v5598_v47, 16  ;;  %v4582_v4 = vcombine.low %v4420_v59, %v4369_v28 }
  0x37   : > { %2227 = vrot.lane.b32.xlu0 %v2175_v57, %s5386_s16  ;;  %v1326_v51 = vsel %vm713_vm1, %v1321_v35, %v1325_v36  ;;  %v5611_v57 = vcombine.low %v361_v49, %v5602_v50  ;;  %v4421_v62 = vld [vmem:[%s5446_s28 + $0x3c] sm:$0xe]  ;;  %v1892_v63 = vshrl.u32 %v4546_v37, 16  ;;  %v1896_v0 = vrot.slane %v1894_v52, 1  ;;  %v4302_v13 = vld [vmem:[%s5446_s28 + $0x48] sm:$0xf] }
  0x38   : > { %v5624_v3 = vld [vmem:[%s5446_s28 + $0x44] ss:$0 sps:$4 sm:$0x11]   ;;  %v1913_v6 = vrot.slane %v1911_v56, 1  ;;  %v767_v8 = vrot.slane %v765_v61, 1  ;;  %v770_v9 = vshll.u32 %v5617_v60, 16  ;;  %v4583_v10 = vcombine.low %v4421_v62, %v5579_v21 }
  0x39   : > { %936 = vrot.lane.b32.xlu1 %v761_v5, %s5382_s10  ;;  %7459 = vst [vmem:[#allocation5_spill] sm:$0xff] %v5611_v57  ;;  %v1909_v5 = vor.u32 %v1908_v55, %v1904_v54  ;;  %v777_v7 = vshll.u32 %v5611_v57, 16  ;;  %v1897_v11 = vor.u32 %v1896_v0, %v1892_v63  ;;  %v4303_v14 = vld [vmem:[%s5446_s28 + $0x4c] sm:$0xf]  ;;  %v410_v16 = vld [vmem:[%s5446_s28 + $0x3c] sm:$0xe] }
  0x3a   : > { %v2179_v20 = vrot.slane %v4582_v4, 1  ;;  %v409_v21 = vld [vmem:[%s5446_s28 + $0x30] sm:$0xe]  ;;  %v772_v25 = vrot.slane %v770_v9, 1  ;;  %v2180_v26 = vrot.slane %v5606_v53, 1  ;;  %v5642_v27 = vcombine.low %v4302_v13, %v4303_v14 }
  0x3b   : > { %2229 = vrot.lane.b32.xlu0 %v2178_v2, %s5386_s16  ;;  %v763_v2 = vshrl.u32 %v5598_v47, 16  ;;  %v1914_v17 = vsel %vm713_vm1, %v1909_v5, %v1913_v6  ;;  %v779_v22 = vrot.slane %v777_v7, 1  ;;  %v4300_v28 = vld [vmem:[%s5446_s28 + $0x3c] sm:$0xf]  ;;  %v4301_v30 = vld [vmem:[%s5446_s28 + $0x40] sm:$0xf]  ;;  %v4477_v35 = vcombine.low %v410_v16, %v5602_v50 }
  0x3c   : > { %v2182_v33 = vrot.slane %v4583_v10, 1  ;;  %v2183_v34 = vrot.slane %v5593_v45, 1  ;;  %v4351_v36 = vld [vmem:[%s5446_s28 + $0x48] sm:$0xe]  ;;  %v4476_v38 = vcombine.low %v409_v21, %v5589_v39  ;;  %v4374_v41 = vld [vmem:[%s5446_s28 + $0x54] sm:$0xf] }
  0x3d   : > { %1081 = vrot.lane.b32.xlu1 %v1032_v15, %s5381_s7  ;;  %v782_v15 = vshll.u32 %v5624_v3, 16  ;;  %v768_v24 = vor.u32 %v767_v8, %v763_v2  ;;  %v5652_v40 = vld [vmem:[%s5446_s28 + $0x50] ss:$0 sps:$4 sm:$0x11]   ;;  %v5659_v44 = vld [vmem:[%s5446_s28 + $0x58] sm:$0xf]  ;;  %v4531_v39 = vcombine.low %v4351_v36, %v4303_v14 }
  0x3e   : > { %v4373_v45 = vld [vmem:[%s5446_s28 + $0x4c] sm:$0xf]  ;;  %v1354_v50 = vshll.u32 %v5642_v27, 16  ;;  %v5668_v52 = vld [vmem:[%s5446_s28 + $0x44] ss:$0 sps:$4 sm:$0x11]   ;;  %v5675_v61 = vcombine.low %v4374_v41, %v5659_v44  ;;  %v2184_v2 = vsel %vm1020_vm0, %v2182_v33, %v2183_v34 }
  0x3f   : > { %1079 = vrot.lane.b32.xlu0 %v1029_v19, %s5381_s7  ;;  %v775_v19 = vshrl.u32 %v5611_v57, 16  ;;  %v773_v49 = vsel %vm713_vm1, %v768_v24, %v772_v25  ;;  %v1036_v54 = vrot.slane %v4477_v35, 1  ;;  %v1037_v55 = vrot.slane %v5624_v3, 1  ;;  %v5680_v62 = vld [vmem:[%s5446_s28 + $0x5c] ss:$0 sps:$4 sm:$0x11]  }
  0x40   : > { %v1034_v56 = vrot.slane %v5617_v60, 1  ;;  %v1352_v59 = vshrl.u32 %v5642_v27, 16  ;;  %v1356_v3 = vrot.slane %v1354_v50, 1  ;;  %v1347_v5 = vshll.u32 %v5668_v52, 16  ;;  %v4422_v7 = vld [vmem:[%s5446_s28 + $0x48] sm:$0xe] }
  0x41   : > { %1207 = vrot.lane.b32.xlu1 %v4493_v48, %s5379_s29  ;;  %v1605_v48 = vsel %vm1020_vm0, %v1603_v42, %v1604_v43  ;;  %v780_v42 = vor.u32 %v779_v22, %v775_v19  ;;  %v5656_v43 = vcombine.low %v4300_v28, %v4301_v30  ;;  %v5689_v6 = vrot.slane %v4531_v39, 1  ;;  %v4423_v8 = vld [vmem:[%s5446_s28 + $0x54] sm:$0xe]  ;;  %v363_v9 = vld [vmem:[%s5446_s28 + $0x48] sm:$0xf] }
  0x42   : > { %v5696_v10 = vld [vmem:[%s5446_s28 + $0x4c] sm:$0xf]  ;;  %v1930_v13 = vshll.u32 %v5675_v61, 16  ;;  %v1935_v19 = vshll.u32 %v5680_v62, 16  ;;  %v365_v22 = vld [vmem:[%s5446_s28 + $0x54] sm:$0xf]  ;;  %v4585_v33 = vcombine.low %v4423_v8, %v5659_v44 }
  0x43   : > { %1205 = vrot.lane.b32.xlu0 %v4492_v1, %s5379_s29  ;;  %v1899_v1 = vshll.u32 %v5606_v53, 16  ;;  %v2181_v53 = vsel %vm1020_vm0, %v2179_v20, %v2180_v26  ;;  %v1342_v60 = vshll.u32 %v5656_v43, 16  ;;  %v1340_v4 = vshrl.u32 %v5656_v43, 16  ;;  %v366_v21 = vld [vmem:[%s5446_s28 + $0x58] sm:$0xf] }
  0x44   : > { %v4584_v20 = vcombine.low %v4422_v7, %v4373_v45  ;;  %v1610_v26 = vrot.slane %v5668_v52, 1  ;;  %v5713_v28 = vcombine.low %v363_v9, %v5696_v10  ;;  %v1928_v34 = vshrl.u32 %v5675_v61, 16  ;;  %v4307_v52 = vld [vmem:[%s5446_s28 + $0x64] sm:$0xf]  ;;  %v4386_v32 = vld [vmem:[%s5446_s28 + $0x9c] sm:$0xf] }
  0x45   : > { %1513 = vrot.lane.b32.xlu1 %v1338_v46, %s5383_s13  ;;  %v1901_v12 = vrot.slane %v1899_v1, 1  ;;  %v4372_v46 = vld [vmem:[%s5446_s28 + $0x48] sm:$0xf]  ;;  %v1359_v1 = vshll.u32 %v5652_v40, 16  ;;  %v5721_v36 = vrot.slane %v1930_v13, 1  ;;  %v5726_v41 = vcombine.low %v365_v22, %v366_v21 }
  0x46   : > { %7460 = vst [vmem:[#allocation6_spill] sm:$0xff] %v5713_v28  ;;  %v789_v50 = vshll.u32 %v5713_v28, 16  ;;  %v787_v7 = vshrl.u32 %v5713_v28, 16  ;;  %v6128_v18 = vld [vmem:[%s5446_s28 + $0xa0] sm:$0xf] }
  0x47   : > { %1511 = vrot.lane.b32.xlu0 %v1326_v51, %s5383_s13  ;;  %v4350_v51 = vld [vmem:[%s5446_s28 + $0x3c] sm:$0xe]  ;;  %v1361_v24 = vrot.slane %v1359_v1, 1  ;;  %7461 = vst [vmem:[#allocation7_spill] sm:$0xff] %v5726_v41  ;;  %v4353_v1 = vld [vmem:[%s5446_s28 + $0x60] sm:$0xe] }
  0x48   : > { %v4530_v0 = vcombine.low %v4350_v51, %v4301_v30  ;;  %v5716_v30 = vld [vmem:[%s5446_s28 + $0x50] ss:$0 sps:$4 sm:$0x11]   ;;  %v4306_v51 = vld [vmem:[%s5446_s28 + $0x60] sm:$0xf]  ;;  %v799_v9 = vshrl.u32 %v5726_v41, 16 }
  0x49   : > { %1657 = vrot.lane.b32.xlu1 %v1608_v58, %s5380_s30  ;;  %v1033_v58 = vrot.slane %v4476_v38, 1  ;;  %v794_v39 = vshll.u32 %v5716_v30, 16 }
  0x4a   : > { %v1609_v25 = vrot.slane %v4530_v0, 1 }
  0x4b   : > { %1655 = vrot.lane.b32.xlu0 %v1605_v48, %s5380_s30  ;;  %v5677_v48 = vcombine.low %v4372_v46, %v4373_v45  ;;  %v1035_v16 = vsel %vm1020_vm0, %v1033_v58, %v1034_v56  ;;  %v5729_v46 = vrot.slane %v1935_v19, 1  ;;  %v5731_v45 = vrot.slane %v4584_v20, 1  ;;  %v4352_v20 = vld [vmem:[%s5446_s28 + $0x54] sm:$0xe] }
  0x4c   : > { %v801_v56 = vshll.u32 %v5726_v41, 16  ;;  %v5746_v58 = vrot.slane %v4585_v33, 1  ;;  %v5761_v8 = vrot.slane %v794_v39, 1  ;;  %v5786_v33 = vld [vmem:[%s5446_s28 + $0x68] ss:$0 sps:$4 sm:$0x11]  }
  0x4d   : > { %1783 = vrot.lane.b32.xlu1 %v4547_v31, %s5384_s14  ;;  %v1902_v31 = vsel %vm713_vm1, %v1897_v11, %v1901_v12  ;;  %v1038_v11 = vsel %vm1020_vm0, %v1036_v54, %v1037_v55  ;;  %v1613_v12 = vrot.slane %v5652_v40, 1  ;;  %v1918_v14 = vshll.u32 %v5677_v48, 16  ;;  %v5741_v54 = vld [vmem:[%s5446_s28 + $0x5c] ss:$0 sps:$4 sm:$0x11]  }
  0x4e   : > { %v1916_v35 = vshrl.u32 %v5677_v48, 16  ;;  %v803_v22 = vrot.slane %v801_v56, 1  ;;  %v4376_v39 = vld [vmem:[%s5446_s28 + $0x60] sm:$0xf] }
  0x4f   : > { %1781 = vrot.lane.b32.xlu0 %v4546_v37, %s5384_s14  ;;  %v784_v37 = vrot.slane %v782_v15, 1  ;;  %v5703_v15 = vld [vmem:[%s5446_s28 + $0x50] ss:$0 sps:$4 sm:$0x11]  }
  0x50   : > { %v1923_v38 = vshll.u32 %v5703_v15, 16 }
  0x51   : > { %2089 = vrot.lane.b32.xlu1 %v1914_v17, %s5385_s15  ;;  %v785_v63 = vsel %vm713_vm1, %v780_v42, %v784_v37  ;;  %v1344_v17 = vrot.slane %v1342_v60, 1  ;;  %v5723_v37 = vrot.slane %v1918_v14, 1  ;;  %v1357_v42 = vor.u32 %v1356_v3, %v1352_v59 }
  0x52   : > { %v5743_v55 = vrot.slane %v1923_v38, 1  ;;  %v5754_v3 = vcombine.low %v4306_v51, %v4307_v52  ;;  %v1040_v14 = vrot.slane %v5716_v30, 1  ;;  %v5789_v38 = vld [vmem:[%s5446_s28 + $0x5c] ss:$0 sps:$4 sm:$0x11]  }
  0x53   : > { %2087 = vrot.lane.b32.xlu0 %v1902_v31, %s5385_s15  ;;  %v1349_v31 = vrot.slane %v1347_v5, 1  ;;  %v1345_v44 = vor.u32 %v1344_v17, %v1340_v4  ;;  %v1362_v60 = vsel %vm713_vm1, %v1357_v42, %v1361_v24  ;;  %v4304_v4 = vld [vmem:[%s5446_s28 + $0x54] sm:$0xf]  ;;  %v4305_v5 = vld [vmem:[%s5446_s28 + $0x58] sm:$0xf]  ;;  %v4533_v17 = vcombine.low %v4353_v1, %v4307_v52 }
  0x54   : > { %v5772_v19 = vcombine.low %v4304_v4, %v4305_v5  ;;  %v4378_v24 = vld [vmem:[%s5446_s28 + $0x6c] sm:$0xf]  ;;  %v1611_v42 = vsel %vm1020_vm0, %v1609_v25, %v1610_v26  ;;  %v4377_v51 = vld [vmem:[%s5446_s28 + $0x64] sm:$0xf]  ;;  %v1376_v52 = vshrl.u32 %v5754_v3, 16  ;;  %v1933_v25 = vor.u32 %v5721_v36, %v1928_v34 }
  0x55   : > { %938 = vrot.lane.b32.xlu1 %v773_v49, %s5382_s10  ;;  %v412_v49 = vld [vmem:[%s5446_s28 + $0x54] sm:$0xe]  ;;  %v1350_v0 = vsel %vm713_vm1, %v1345_v44, %v1349_v31  ;;  %v5778_v31 = vld [vmem:[%s5446_s28 + $0x70] sm:$0xf]  ;;  %v1921_v1 = vor.u32 %v5723_v37, %v1916_v35  ;;  %v1371_v36 = vshll.u32 %v5789_v38, 16 }
  0x56   : > { %v4479_v59 = vcombine.low %v412_v49, %v366_v21  ;;  %v1378_v21 = vshll.u32 %v5754_v3, 16  ;;  %v1366_v40 = vshll.u32 %v5772_v19, 16  ;;  %v1364_v56 = vshrl.u32 %v5772_v19, 16  ;;  %v4425_v37 = vld [vmem:[%s5446_s28 + $0x6c] sm:$0xe] }
  0x57   : > { %2231 = vrot.lane.b32.xlu0 %v2181_v53, %s5386_s16  ;;  %v2186_v53 = vrot.slane %v5703_v15, 1  ;;  %v1938_v35 = vsel %vm713_vm1, %v1933_v25, %v5729_v46  ;;  %v5854_v46 = vld [vmem:[%s5446_s28 + $0x68] ss:$0 sps:$4 sm:$0x11]   ;;  %v370_v25 = vld [vmem:[%s5446_s28 + $0x70] sm:$0xf] }
  0x58   : > { %v5809_v26 = vrot.slane %v1378_v21, 1  ;;  %v5276_v21 = vld [vmem:[%s7423_s1 + $0x10] ss:$0 sps:$4 sm:$0x33]  }
  0x59   : > { %940 = vrot.lane.b32.xlu1 %v785_v63, %s5382_s10  ;;  %v411_v63 = vld [vmem:[%s5446_s28 + $0x48] sm:$0xe]  ;;  %5154 = vmatprep.subr.msk.bf16.mxu0 %vm2616_vm2, %v5276_v21  ;;  %v2618_v4 = vsel %vm2616_vm2, %v5276_v21, 0 }
  0x5a   : > { %v4478_v13 = vcombine.low %v411_v63, %v5696_v10  ;;  %v1614_v10 = vsel %vm1020_vm0, %v5689_v6, %v1613_v12  ;;  %v5800_v6 = vrot.slane %v4533_v17, 1  ;;  %v5803_v12 = vcombine.low %v4378_v24, %v5778_v31  ;;  %5083 = vmatpush3.bf16.msra.mxu0 %v2618_v4  ;;  %v414_v4 = vld [vmem:[%s5446_s28 + $0x6c] sm:$0xe]  ;;  %v4355_v24 = vld [vmem:[%s5446_s28 + $0x78] sm:$0xe] }
  0x5b   : > { %2233 = vrot.lane.b32.xlu0 %v2184_v2, %s5386_s16  ;;  %v791_v2 = vrot.slane %v789_v50, 1  ;;  %v4532_v50 = vcombine.low %v4352_v20, %v4305_v5  ;;  %v1383_v63 = vshll.u32 %v5786_v33, 16  ;;  %v367_v5 = vld [vmem:[%s5446_s28 + $0x60] sm:$0xf] }
  0x5c   : > { %v5794_v49 = vrot.slane %v4478_v13, 1  ;;  %v5829_v13 = vrot.slane %v1366_v40, 1  ;;  %v1954_v20 = vshll.u32 %v5803_v12, 16  ;;  %v369_v40 = vld [vmem:[%s5446_s28 + $0x6c] sm:$0xf] }
  0x5d   : > { %1085 = vrot.lane.b32.xlu1 %v1038_v11, %s5381_s7  ;;  %v806_v11 = vshll.u32 %v5741_v54, 16  ;;  %v792_v34 = vor.u32 %v791_v2, %v787_v7  ;;  %v5831_v17 = vrot.slane %v4532_v50, 1  ;;  %v5843_v2 = vld [vmem:[%s5446_s28 + $0x68] ss:$0 sps:$4 sm:$0x11]   ;;  %v1926_v50 = vsel %vm713_vm1, %v1921_v1, %v5743_v55 }
  0x5e   : > { %v804_v55 = vor.u32 %v803_v22, %v799_v9  ;;  %v5885_v21 = vcombine.low %v369_v40, %v370_v25  ;;  %v2187_v9 = vsel %vm1020_vm0, %v5731_v45, %v2186_v53  ;;  %v818_v22 = vshll.u32 %v5854_v46, 16  ;;  %v413_v45 = vld [vmem:[%s5446_s28 + $0x60] sm:$0xe] }
  0x5f   : > { %1083 = vrot.lane.b32.xlu0 %v1035_v16, %s5381_s7  ;;  %v1043_v16 = vrot.slane %v5741_v54, 1  ;;  %v5792_v44 = vrot.slane %v806_v11, 1  ;;  %v5827_v11 = vld [vmem:[%s5446_s28 + $0x64] sm:$0xf]  ;;  %v1381_v54 = vor.u32 %v5809_v26, %v1376_v52 }
  0x60   : > { %7463 = vst [vmem:[#allocation9_spill] sm:$0xff] %v5885_v21  ;;  %v825_v40 = vshll.u32 %v5885_v21, 16 }
  0x61   : > { %1211 = vrot.lane.b32.xlu1 %v5642_v27, %s5379_s29  ;;  %v2189_v27 = vrot.slane %v5680_v62, 1  ;;  %v809_v53 = vsel %vm713_vm1, %v804_v55, %v5792_v44  ;;  %v5923_v62 = vrot.slane %v818_v22, 1  ;;  %v4382_v22 = vld [vmem:[%s5446_s28 + $0x84] sm:$0xf] }
  0x63   : > { %1209 = vrot.lane.b32.xlu0 %v5656_v43, %s5379_s29  ;;  %v5768_v43 = vrot.slane %v4479_v59, 1  ;;  %v4424_v59 = vld [vmem:[%s5446_s28 + $0x60] sm:$0xe] }
  0x64   : > { %v4586_v7 = vcombine.low %v4424_v59, %v4377_v51  ;;  %v1952_v59 = vshrl.u32 %v5803_v12, 16 }
  0x65   : > { %1517 = vrot.lane.b32.xlu1 %v1362_v60, %s5383_s13  ;;  %v5815_v60 = vcombine.low %v4376_v39, %v4377_v51  ;;  %v797_v39 = vsel %vm713_vm1, %v792_v34, %v5761_v8  ;;  %v5863_v51 = vrot.slane %v1371_v36, 1  ;;  %v4587_v8 = vcombine.low %v4425_v37, %v5778_v31  ;;  %v5893_v31 = vld [vmem:[%s5446_s28 + $0x74] ss:$0 sps:$4 sm:$0x11]   ;;  %v4311_v37 = vld [vmem:[%s5446_s28 + $0x7c] sm:$0xf] }
  0x66   : > { %v5877_v1 = vrot.slane %v4586_v7, 1  ;;  %v830_v15 = vshll.u32 %v5893_v31, 16  ;;  %v1044_v55 = vsel %vm1020_vm0, %v5768_v43, %v1043_v16  ;;  %v827_v43 = vrot.slane %v825_v40, 1  ;;  %v4380_v40 = vld [vmem:[%s5446_s28 + $0x78] sm:$0xf] }
  0x67   : > { %1515 = vrot.lane.b32.xlu0 %v1350_v0, %s5383_s13  ;;  %v5818_v0 = vld [vmem:[%s5446_s28 + $0x74] ss:$0 sps:$4 sm:$0x11]   ;;  %v4381_v16 = vld [vmem:[%s5446_s28 + $0x7c] sm:$0xf] }
  0x69   : > { %1661 = vrot.lane.b32.xlu1 %v1614_v10, %s5380_s30  ;;  %v1942_v10 = vshll.u32 %v5815_v60, 16 }
  0x6b   : > { %1659 = vrot.lane.b32.xlu0 %v1611_v42, %s5380_s30  ;;  %v1959_v42 = vshll.u32 %v5818_v0, 16  ;;  %v5882_v36 = vrot.slane %v1942_v10, 1  ;;  %v4481_v10 = vcombine.low %v414_v4, %v370_v25  ;;  %v6000_v25 = vld [vmem:[%s5446_s28 + $0x7c] sm:$0xf] }
  0x6d   : > { %1787 = vrot.lane.b32.xlu1 %v5675_v61, %s5384_s14  ;;  %v5851_v61 = vcombine.low %v367_v5, %v5827_v11  ;;  %v5868_v5 = vrot.slane %v1954_v20, 1  ;;  %v5880_v34 = vrot.slane %v1959_v42, 1  ;;  %v5903_v42 = vrot.slane %v4587_v8, 1  ;;  %v4308_v8 = vld [vmem:[%s5446_s28 + $0x6c] sm:$0xf] }
  0x6f   : > { %1785 = vrot.lane.b32.xlu0 %v5677_v48, %s5384_s14  ;;  %7462 = vst [vmem:[#allocation8_spill] sm:$0xff] %v5851_v61  ;;  %v5861_v48 = vrot.slane %v1383_v63, 1  ;;  %v1947_v63 = vshll.u32 %v5843_v2, 16  ;;  %v813_v20 = vshll.u32 %v5851_v61, 16 }
  0x71   : > { %2093 = vrot.lane.b32.xlu1 %v1938_v35, %s5385_s15  ;;  %v4310_v35 = vld [vmem:[%s5446_s28 + $0x78] sm:$0xf]  ;;  %v5899_v7 = vrot.slane %v1947_v63, 1  ;;  %v4309_v63 = vld [vmem:[%s5446_s28 + $0x70] sm:$0xf] }
  0x72   : > { %v5921_v44 = vcombine.low %v4310_v35, %v4311_v37  ;;  %v5936_v4 = vcombine.low %v4308_v8, %v4309_v63  ;;  %v5939_v35 = vld [vmem:[%s5446_s28 + $0x74] ss:$0 sps:$4 sm:$0x11]  }
  0x73   : > { %2091 = vrot.lane.b32.xlu0 %v1926_v50, %s5385_s15  ;;  %v2190_v50 = vsel %vm1020_vm0, %v5746_v58, %v2189_v27  ;;  %v4480_v58 = vcombine.low %v413_v45, %v5827_v11  ;;  %v5927_v27 = vld [vmem:[%s5446_s28 + $0x80] ss:$0 sps:$4 sm:$0x11]   ;;  %v1041_v11 = vsel %vm1020_vm0, %v5794_v49, %v1040_v14  ;;  %v5952_v45 = vld [vmem:[%s5446_s28 + $0x88] sm:$0xf]  ;;  %v4535_v49 = vcombine.low %v4355_v24, %v4311_v37 }
  0x74   : > { %v1402_v8 = vshll.u32 %v5921_v44, 16  ;;  %v1407_v26 = vshll.u32 %v5927_v27, 16  ;;  %v4426_v24 = vld [vmem:[%s5446_s28 + $0x78] sm:$0xe]  ;;  %v1369_v37 = vor.u32 %v5829_v13, %v1364_v56 }
  0x75   : > { %942 = vrot.lane.b32.xlu1 %v797_v39, %s5382_s10  ;;  %v5913_v39 = vrot.slane %v813_v20, 1  ;;  %v4354_v20 = vld [vmem:[%s5446_s28 + $0x6c] sm:$0xe]  ;;  %v5960_v14 = vrot.slane %v4480_v58, 1  ;;  %v5970_v58 = vcombine.low %v4382_v22, %v5952_v45  ;;  %v1386_v22 = vsel %vm713_vm1, %v1381_v54, %v5861_v48 }
  0x76   : > { %v4534_v52 = vcombine.low %v4354_v20, %v4309_v63  ;;  %v1395_v63 = vshll.u32 %v5939_v35, 16  ;;  %v5981_v20 = vrot.slane %v1402_v8, 1  ;;  %v5994_v56 = vrot.slane %v1407_v26, 1  ;;  %v371_v8 = vld [vmem:[%s5446_s28 + $0x78] sm:$0xf] }
  0x77   : > { %2235 = vrot.lane.b32.xlu0 %v2187_v9, %s5386_s16  ;;  %7464 = vst [vmem:[#allocation10_spill] sm:$0xff] %v5970_v58  ;;  %v5986_v9 = vld [vmem:[%s5446_s28 + $0x80] ss:$0 sps:$4 sm:$0x11]   ;;  %v5996_v13 = vrot.slane %v4535_v49, 1  ;;  %v1374_v54 = vsel %vm713_vm1, %v1369_v37, %v5863_v51  ;;  %v6029_v51 = vcombine.low %v371_v8, %v6000_v25 }
  0x78   : > { %v6007_v48 = vrot.slane %v4534_v52, 1  ;;  %v6017_v49 = vrot.slane %v1395_v63, 1  ;;  %v4427_v26 = vld [vmem:[%s5446_s28 + $0x84] sm:$0xe]  ;;  %v7467_v52 = vshrl.u32 %v5815_v60, 16  ;;  %v7469_v63 = vrot.slane %v5789_v38, 1 }
  0x79   : > { %944 = vrot.lane.b32.xlu1 %v809_v53, %s5382_s10  ;;  %v5954_v53 = vrot.slane %v830_v15, 1  ;;  %v1390_v15 = vshll.u32 %v5936_v4, 16  ;;  %7468 = vst [vmem:[#allocation12_spill] sm:$0xff] %v6029_v51  ;;  %v373_v37 = vld [vmem:[%s5446_s28 + $0x84] sm:$0xf]  ;;  %v4589_v38 = vcombine.low %v4427_v26, %v5952_v45 }
  0x7a   : > { %v1617_v8 = vsel %vm1020_vm0, %v5831_v17, %v7469_v63  ;;  %v416_v17 = vld [vmem:[%s5446_s28 + $0x84] sm:$0xe] }
  0x7b   : > { %2237 = vrot.lane.b32.xlu0 %v2190_v50, %s5386_s16  ;;  %v5956_v50 = vrot.slane %v4481_v10, 1  ;;  %v5983_v10 = vcombine.low %v4380_v40, %v4381_v16  ;;  %v6004_v40 = vrot.slane %v1390_v15, 1  ;;  %v4588_v15 = vcombine.low %v4426_v24, %v4381_v16  ;;  %v6052_v16 = vld [vmem:[%s5446_s28 + $0x8c] ss:$0 sps:$4 sm:$0x11]  }
  0x7c   : > { %v415_v24 = vld [vmem:[%s5446_s28 + $0x78] sm:$0xe] }
  0x7d   : > { %1089 = vrot.lane.b32.xlu1 %v1044_v55, %s5381_s7  ;;  %v5979_v55 = vld [vmem:[%s5446_s28 + $0x8c] ss:$0 sps:$4 sm:$0x11]   ;;  %7465 = vst [vmem:[#allocation11_spill] sm:$0xff] %v5983_v10 }
  0x7e   : > { %v1983_v41 = vshll.u32 %v5979_v55, 16 }
  0x7f   : > { %1087 = vrot.lane.b32.xlu0 %v1041_v11, %s5381_s7  ;;  %v7466_v11 = vrot.slane %v5786_v33, 1  ;;  %v1945_v33 = vor.u32 %v5882_v36, %v7467_v52  ;;  %v1971_v36 = vshll.u32 %v5986_v9, 16  ;;  %v7470_v52 = vshrl.u32 %v5851_v61, 16 }
  0x81   : > { %v1620_v30 = vsel %vm1020_vm0, %v5800_v6, %v7466_v11  ;;  %1215 = vrot.lane.b32.xlu1 %v5754_v3, %s5379_s29  ;;  %v1978_v6 = vshll.u32 %v5970_v58, 16  ;;  %v1957_v3 = vor.u32 %v5868_v5, %v1952_v59  ;;  %v6021_v11 = vld [vmem:[%s5446_s28 + $0x80] ss:$0 sps:$4 sm:$0x11]   ;;  %v6033_v59 = vld [vmem:[%s5446_s28 + $0x88] sm:$0xf]  ;;  %v816_v28 = vor.u32 %v5913_v39, %v7470_v52 }
  0x82   : > { %v7471_v5 = vshrl.u32 %v5885_v21, 16  ;;  %v6060_v63 = vcombine.low %v373_v37, %v6033_v59  ;;  %v4314_v39 = vld [vmem:[%s5446_s28 + $0x90] sm:$0xf]  ;;  %v4315_v52 = vld [vmem:[%s5446_s28 + $0x94] sm:$0xf]  ;;  %v1950_v26 = vsel %vm713_vm1, %v1945_v33, %v5899_v7 }
  0x83   : > { %1213 = vrot.lane.b32.xlu0 %v5772_v19, %s5379_s29  ;;  %v1966_v19 = vshll.u32 %v5983_v10, 16  ;;  %v6049_v47 = vrot.slane %v1978_v6, 1  ;;  %v1962_v45 = vsel %vm713_vm1, %v1957_v3, %v5880_v34  ;;  %v4312_v33 = vld [vmem:[%s5446_s28 + $0x84] sm:$0xf] }
  0x84   : > { %v828_v57 = vor.u32 %v827_v43, %v7471_v5  ;;  %7472 = vst [vmem:[#allocation13_spill] sm:$0xff] %v6060_v63  ;;  %v6064_v43 = vrot.slane %v1983_v41, 1  ;;  %v837_v5 = vshll.u32 %v6029_v51, 16 }
  0x85   : > { %1521 = vrot.lane.b32.xlu1 %v1386_v22, %s5383_s13  ;;  %v6056_v22 = vrot.slane %v4588_v15, 1  ;;  %v1968_v6 = vrot.slane %v1966_v19, 1  ;;  %v7473_v15 = vrot.slane %v5843_v2, 1  ;;  %v7474_v19 = vrot.slane %v5818_v0, 1 }
  0x86   : > { %v6093_v2 = vsel %vm713_vm1, %v816_v28, %v5923_v62  ;;  %v6097_v0 = vsel %vm713_vm1, %v828_v57, %v5954_v53  ;;  %v6111_v28 = vrot.slane %v1971_v36, 1  ;;  %v849_v57 = vshll.u32 %v6060_v63, 16 }
  0x87   : > { %1519 = vrot.lane.b32.xlu0 %v1374_v54, %s5383_s13  ;;  %v842_v54 = vshll.u32 %v6021_v11, 16  ;;  %v6076_v41 = vsel %vm1020_vm0, %v5877_v1, %v7473_v15  ;;  %v6082_v37 = vsel %vm1020_vm0, %v5903_v42, %v7474_v19  ;;  %v7475_v1 = vrot.slane %v5893_v31, 1  ;;  %v4357_v42 = vld [vmem:[%s5446_s28 + $0x90] sm:$0xe]  ;;  %v4313_v15 = vld [vmem:[%s5446_s28 + $0x88] sm:$0xf] }
  0x88   : > { %v854_v62 = vshll.u32 %v6052_v16, 16  ;;  %v6115_v31 = vrot.slane %v4589_v38, 1  ;;  %v835_v53 = vshrl.u32 %v6029_v51, 16  ;;  %v4482_v19 = vcombine.low %v415_v24, %v6000_v25  ;;  %v6210_v51 = vld [vmem:[%s5446_s28 + $0x94] sm:$0xf] }
  0x89   : > { %1665 = vrot.lane.b32.xlu1 %v1620_v30, %s5380_s30  ;;  %v6087_v34 = vpop.permute.xlu1 %1203  ;;  %v6103_v7 = vsel %vm1020_vm0, %v5956_v50, %v7475_v1  ;;  %v6106_v30 = vcombine.low %v4314_v39, %v4315_v52  ;;  %v4483_v39 = vcombine.low %v416_v17, %v6033_v59  ;;  %v4356_v1 = vld [vmem:[%s5446_s28 + $0x84] sm:$0xe]  ;;  %v839_v21 = vrot.slane %v837_v5, 1 }
  0x8a   : > { %v6089_v3 = vpop.permute.xlu0 %1201  ;;  %v4537_v36 = vcombine.low %v4357_v42, %v4315_v52  ;;  %v6124_v61 = vcombine.low %v4312_v33, %v4313_v15  ;;  %v7478_v38 = vshrl.u32 %v5921_v44, 16  ;;  %v847_v25 = vshrl.u32 %v6060_v63, 16  ;;  %v6139_v52 = vld [vmem:[%s5446_s28 + $0x98] ss:$0 sps:$4 sm:$0x11]  }
  0x8b   : > { %7476 = vst [vmem:[#allocation14_spill] sm:$0xff] %v6106_v30  ;;  %1663 = vrot.lane.b32.xlu0 %v1617_v8, %s5380_s30  ;;  %v6122_v8 = vrot.slane %v842_v54, 1  ;;  %v1426_v17 = vshll.u32 %v6106_v30, 16  ;;  %v851_v54 = vrot.slane %v849_v57, 1  ;;  %v4536_v33 = vcombine.low %v4356_v1, %v4313_v15  ;;  %v6184_v42 = vld [vmem:[%s5446_s28 + $0x94] sm:$0xf] }
  0x8c   : > { %7477 = vst [vmem:[#allocation15_spill] sm:$0xff] %v6124_v61  ;;  %v1405_v59 = vor.u32 %v5981_v20, %v7478_v38  ;;  %v6150_v38 = vrot.slane %v4483_v39, 1  ;;  %v6152_v24 = vrot.slane %v4482_v19, 1  ;;  %v6156_v63 = vld [vmem:[%s5446_s28 + $0x8c] ss:$0 sps:$4 sm:$0x11]  }
  0x8d   : > { %1791 = vrot.lane.b32.xlu1 %v5803_v12, %s5384_s14  ;;  %v6145_v12 = vrot.slane %v854_v62, 1  ;;  %v7480_v57 = vrot.slane %v5854_v46, 1  ;;  %v7481_v62 = vshrl.u32 %v5936_v4, 16  ;;  %v1414_v19 = vshll.u32 %v6124_v61, 16 }
  0x8e   : > { %v6143_v5 = vpop.permute.xlu0 %1651  ;;  %v6171_v1 = vrot.slane %v4537_v36, 1  ;;  %v7483_v50 = vshrl.u32 %v5983_v10, 16  ;;  %v1412_v36 = vshrl.u32 %v6124_v61, 16 }
  0x8f   : > { %1789 = vrot.lane.b32.xlu0 %v5815_v60, %s5384_s14  ;;  %v6148_v20 = vpop.permute.xlu1 %1075  ;;  %v6159_v60 = vcombine.low %v4386_v32, %v6128_v18  ;;  %v6165_v15 = vsel %vm1020_vm0, %v5960_v14, %v7480_v57  ;;  %v1393_v39 = vor.u32 %v6004_v40, %v7481_v62  ;;  %v7482_v32 = vshrl.u32 %v5970_v58, 16  ;;  %v4384_v62 = vld [vmem:[%s5446_s28 + $0x90] sm:$0xf]  ;;  %v6232_v58 = vld [vmem:[%s5446_s28 + $0x98] ss:$0 sps:$4 sm:$0x11]  }
  0x90   : > { %v1969_v14 = vor.u32 %v1968_v6, %v7483_v50  ;;  %v6179_v57 = vrot.slane %v1426_v17, 1  ;;  %v1431_v40 = vshll.u32 %v6139_v52, 16  ;;  %v6192_v6 = vld [vmem:[%s5446_s28 + $0xa4] ss:$0 sps:$4 sm:$0x11]   ;;  %v6198_v17 = vsel %vm713_vm1, %v1405_v59, %v5994_v56 }
  0x91   : > { %7479 = vst [vmem:[#allocation16_spill] sm:$0xff] %v6159_v60  ;;  %2097 = vrot.lane.b32.xlu1 %v1962_v45, %s5385_s15  ;;  %v1981_v46 = vor.u32 %v6049_v47, %v7482_v32  ;;  %v840_v45 = vor.u32 %v839_v21, %v835_v53  ;;  %v6189_v47 = vrot.slane %v4536_v33, 1  ;;  %v7484_v32 = vrot.slane %v5927_v27, 1  ;;  %v375_v33 = vld [vmem:[%s5446_s28 + $0x90] sm:$0xf] }
  0x92   : > { %v2002_v53 = vshll.u32 %v6159_v60, 16  ;;  %v6214_v56 = vsel %vm713_vm1, %v1393_v39, %v6017_v49  ;;  %v7486_v27 = vrot.slane %v5939_v35, 1  ;;  %v7487_v59 = vrot.slane %v5986_v9, 1  ;;  %v4428_v39 = vld [vmem:[%s5446_s28 + $0x90] sm:$0xe] }
  0x93   : > { %2095 = vrot.lane.b32.xlu0 %v1950_v26, %s5385_s15  ;;  %v6194_v50 = vpop.permute.xlu1 %1077  ;;  %v6204_v21 = vsel %vm1020_vm0, %v5996_v13, %v7484_v32  ;;  %v1419_v26 = vshll.u32 %v6156_v63, 16  ;;  %v6229_v10 = vcombine.low %v4384_v62, %v6184_v42  ;;  %v6241_v35 = vsel %vm713_vm1, %v1981_v46, %v6064_v43  ;;  %v377_v62 = vld [vmem:[%s5446_s28 + $0x9c] sm:$0xf] }
  0x94   : > { %7485 = vst [vmem:[#allocation17_spill] sm:$0xff] %v6204_v21  ;;  %v6220_v13 = vsel %vm1020_vm0, %v6007_v48, %v7486_v27  ;;  %v6226_v32 = vsel %vm1020_vm0, %v6056_v22, %v7487_v59  ;;  %v6235_v21 = vld [vmem:[%s5446_s28 + $0x98] ss:$0 sps:$4 sm:$0x11]   ;;  %v6245_v9 = vsel %vm713_vm1, %v1969_v14, %v6111_v28  ;;  %v852_v48 = vor.u32 %v851_v54, %v847_v25  ;;  %v6256_v27 = vld [vmem:[%s5446_s28 + $0xa0] sm:$0xf] }
  0x95   : > { %v931_v61 = vpop.permute.xlu0 %930  ;;  %7488 = vst [vmem:[#allocation18_spill] sm:$0xff] %v6229_v10  ;;  %946 = vrot.lane.b32.xlu1 %v6093_v2, %s5382_s10  ;;  %v7489_v49 = vrot.slane %v5979_v55, 1  ;;  %v6262_v43 = vsel %vm713_vm1, %v840_v45, %v6122_v8  ;;  %v6264_v2 = vrot.slane %v1431_v40, 1  ;;  %v2007_v55 = vshll.u32 %v6192_v6, 16  ;;  %v4429_v40 = vld [vmem:[%s5446_s28 + $0x9c] sm:$0xe] }
  0x96   : > { %v6268_v28 = vcombine.low %v375_v33, %v6210_v51  ;;  %v1416_v25 = vrot.slane %v1414_v19, 1  ;;  %v2004_v46 = vrot.slane %v2002_v53, 1  ;;  %v6274_v8 = vrot.slane %v1419_v26, 1  ;;  %v4318_v54 = vld [vmem:[%s5446_s28 + $0xa8] sm:$0xf] }
  0x97   : > { %v6251_v22 = vsel %vm1020_vm0, %v6115_v31, %v7489_v49  ;;  %2239 = vrot.lane.b32.xlu0 %v6076_v41, %s5386_s16  ;;  %v6270_v31 = vpop.permute.xlu1 %1653  ;;  %v2000_v41 = vshrl.u32 %v6159_v60, 16  ;;  %v1990_v45 = vshll.u32 %v6229_v10, 16  ;;  %v4590_v33 = vcombine.low %v4428_v39, %v6184_v42  ;;  %v6302_v39 = vld [vmem:[%s5446_s28 + $0xa4] ss:$0 sps:$4 sm:$0x11]  }
  0x98   : > { %7490 = vst [vmem:[#allocation19_spill] sm:$0xff] %v6268_v28  ;;  %v6280_v59 = vcombine.low %v377_v62, %v6256_v27  ;;  %v6286_v19 = vsel %vm713_vm1, %v852_v48, %v6145_v12  ;;  %v7492_v53 = vrot.slane %v6052_v16, 1  ;;  %v7494_v49 = vrot.slane %v6021_v11, 1 }
  0x99   : > { %v933_v14 = vpop.permute.xlu0 %932  ;;  %948 = vrot.lane.b32.xlu1 %v6097_v0, %s5382_s10  ;;  %v1995_v0 = vshll.u32 %v6232_v58, 16  ;;  %v6306_v16 = vrot.slane %v2007_v55, 1  ;;  %v1988_v12 = vshrl.u32 %v6229_v10, 16  ;;  %v866_v11 = vshll.u32 %v6235_v21, 16  ;;  %v6326_v10 = vld [vmem:[%s5446_s28 + $0xac] sm:$0xf] }
  0x9a   : > { %7491 = vst [vmem:[#allocation20_spill] sm:$0xff] %v6280_v59  ;;  %v6292_v26 = vsel %vm1020_vm0, %v6150_v38, %v7492_v53  ;;  %v6298_v42 = vsel %vm1020_vm0, %v6152_v24, %v7494_v49  ;;  %v861_v38 = vshll.u32 %v6268_v28, 16  ;;  %v7496_v24 = vshrl.u32 %v6106_v30, 16  ;;  %v418_v49 = vld [vmem:[%s5446_s28 + $0x9c] sm:$0xe] }
  0x9b   : > { %7493 = vst [vmem:[#allocation21_spill] sm:$0xff] %v6292_v26  ;;  %7495 = vst [vmem:[#allocation22_spill] sm:$0xff] %v6298_v42  ;;  %2241 = vrot.lane.b32.xlu0 %v6082_v37, %s5386_s16  ;;  %v6311_v48 = vpop.permute.xlu1 %1509  ;;  %v6318_v53 = vor.u32 %v1416_v25, %v1412_v36  ;;  %v4591_v37 = vcombine.low %v4429_v40, %v6128_v18  ;;  %v6321_v55 = vor.u32 %v2004_v46, %v2000_v41  ;;  %v417_v36 = vld [vmem:[%s5446_s28 + $0x90] sm:$0xe] }
  0x9c   : > { %v6316_v62 = vor.u32 %v6179_v57, %v7496_v24  ;;  %v2265_v60 = vsel %vm2263_vm3, %v5474_v23, %v931_v61  ;;  %v1992_v26 = vrot.slane %v1990_v45, 1  ;;  %v6330_v30 = vrot.slane %v4590_v33, 1 }
  0x9d   : > { %v1508_v42 = vpop.permute.xlu0 %1507  ;;  %v873_v57 = vshll.u32 %v6280_v59, 16  ;;  %1093 = vrot.lane.b32.xlu1 %v6103_v7, %s5381_s7  ;;  %v1997_v18 = vrot.slane %v1995_v0, 1  ;;  %v859_v25 = vshrl.u32 %v6268_v28, 16  ;;  %v2204_v41 = vrot.slane %v6232_v58, 1 }
  0x9e   : > { %v878_v23 = vshll.u32 %v6302_v39, 16  ;;  %v2267_v61 = vsel %vm2263_vm3, %v5479_v29, %v933_v14  ;;  %v6343_v46 = vrot.slane %v861_v38, 1  ;;  %v4485_v7 = vcombine.low %v418_v49, %v6256_v27  ;;  %v4316_v14 = vld [vmem:[%s5446_s28 + $0x9c] sm:$0xf]  ;;  %v6360_v38 = vld [vmem:[%s5446_s28 + $0xa0] sm:$0xf] }
  0x9f   : > { %1091 = vrot.lane.b32.xlu0 %v6165_v15, %s5381_s7  ;;  %v6347_v40 = vcombine.low %v4318_v54, %v6326_v10  ;;  %v2302_v45 = vsel %vm2300_vm4, %v2265_v60, %v6148_v20  ;;  %v6351_v33 = vpop.permute.xlu1 %1779  ;;  %v6353_v0 = vrot.slane %v866_v11, 1  ;;  %v6355_v29 = vrot.slane %v4591_v37, 1  ;;  %v6365_v60 = vld [vmem:[%s5446_s28 + $0xb0] ss:$0 sps:$4 sm:$0x11]  }
  0xa0   : > { %v4484_v15 = vcombine.low %v417_v36, %v6210_v51  ;;  %v1993_v24 = vor.u32 %v1992_v26, %v1988_v12  ;;  %v871_v54 = vshrl.u32 %v6280_v59, 16  ;;  %v875_v49 = vrot.slane %v873_v57, 1  ;;  %v4359_v12 = vld [vmem:[%s5446_s28 + $0xa8] sm:$0xe]  ;;  %v4322_v59 = vld [vmem:[%s5446_s28 + $0xc0] sm:$0xf] }
  0xa1   : > { %v1778_v27 = vpop.permute.xlu0 %1777  ;;  %v2207_v20 = vrot.slane %v6192_v6, 1  ;;  %v2304_v11 = vsel %vm2300_vm4, %v2267_v61, %v6194_v50  ;;  %1219 = vrot.lane.b32.xlu1 %v5921_v44, %s5379_s29  ;;  %v6371_v51 = vrot.slane %v878_v23, 1  ;;  %v2339_v57 = vsel %vm2337_vm5, %v2302_v45, %v6089_v3 }
  0xa2   : > { %v6380_v50 = vrot.slane %v4485_v7, 1  ;;  %v6383_v36 = vcombine.low %v4316_v14, %v6360_v38  ;;  %v1450_v44 = vshll.u32 %v6347_v40, 16  ;;  %v2376_v23 = vsel %vm2374_vm6, %v2339_v57, %v1508_v42  ;;  %v6402_v14 = vld [vmem:[%s5446_s28 + $0xa4] ss:$0 sps:$4 sm:$0x11]  }
  0xa3   : > { %1217 = vrot.lane.b32.xlu0 %v5936_v4, %s5379_s29  ;;  %v2086_v61 = vpop.permute.xlu1 %2085  ;;  %v7497_v26 = vrot.slane %v6139_v52, 1  ;;  %v7498_v45 = vrot.slane %v6156_v63, 1  ;;  %v6399_v7 = vrot.slane %v4484_v15, 1  ;;  %v2341_v52 = vsel %vm2337_vm5, %v2304_v11, %v6087_v34  ;;  %v4358_v57 = vld [vmem:[%s5446_s28 + $0x9c] sm:$0xe] }
  0xa4   : > { %v4539_v63 = vcombine.low %v4359_v12, %v6326_v10  ;;  %v6416_v15 = vsel %vm713_vm1, %v6316_v62, %v6264_v2  ;;  %v6421_v34 = vsel %vm713_vm1, %v6318_v53, %v6274_v8  ;;  %v6426_v10 = vsel %vm713_vm1, %v6321_v55, %v6306_v16  ;;  %v4388_v12 = vld [vmem:[%s5446_s28 + $0xa8] sm:$0xf]  ;;  %v6436_v2 = vld [vmem:[%s5446_s28 + $0xac] sm:$0xf] }
  0xa5   : > { %v6391_v3 = vsel %vm1020_vm0, %v6171_v1, %v7497_v26  ;;  %v6397_v4 = vsel %vm1020_vm0, %v6189_v47, %v7498_v45  ;;  %v2084_v42 = vpop.permute.xlu0 %2083  ;;  %v1455_v26 = vshll.u32 %v6365_v60, 16  ;;  %v4390_v47 = vld [vmem:[%s5446_s28 + $0xb4] sm:$0xf]  ;;  %1525 = vrot.lane.b32.xlu1 %v6198_v17, %s5383_s13  ;;  %v6429_v11 = vsel %vm713_vm1, %v1993_v24, %v1997_v18  ;;  %v6432_v17 = vld [vmem:[%s5446_s28 + $0xb8] sm:$0xf] }
  0xa6   : > { %v2413_v62 = vsel %vm2411_vm7, %v2376_v23, %v6143_v5  ;;  %v1452_v8 = vrot.slane %v1450_v44, 1  ;;  %v1438_v53 = vshll.u32 %v6383_v36, 16  ;;  %v6445_v55 = vld [vmem:[%s5446_s28 + $0xbc] ss:$0 sps:$4 sm:$0x11]   ;;  %v2378_v18 = vsel %vm2374_vm6, %v2341_v52, %v6311_v48 }
  0xa7   : > { %1523 = vrot.lane.b32.xlu0 %v6214_v56, %s5383_s13  ;;  %v2450_v24 = vsel %vm2448_vm8, %v2413_v62, %v1778_v27  ;;  %v6450_v45 = vpop.permute.xlu1 %934  ;;  %v1443_v5 = vshll.u32 %v6402_v14, 16  ;;  %v4538_v56 = vcombine.low %v4358_v57, %v6360_v38  ;;  %v379_v44 = vld [vmem:[%s5446_s28 + $0xa8] sm:$0xf]  ;;  %v6456_v23 = vld [vmem:[%s5446_s28 + $0xac] sm:$0xf]  ;;  %v1636_v37 = vrot.slane %v4539_v63, 1 }
  0xa8   : > { %v2487_v16 = vsel %vm2485_vm9, %v2450_v24, %v2084_v42  ;;  %v6460_v48 = vcombine.low %v4390_v47, %v6432_v17  ;;  %v6463_v27 = vcombine.low %v4388_v12, %v6436_v2  ;;  %v7501_v52 = vld [vmem:[#allocation17_spill] sm:$0xff]  ;;  %v864_v57 = vor.u32 %v6343_v46, %v859_v25  ;;  %v6478_v47 = vld [vmem:[%s5446_s28 + $0xb0] ss:$0 sps:$4 sm:$0x11]  }
  0xa9   : > { %v2228_v1 = vpop.permute.xlu0 %2227  ;;  %1669 = vrot.lane.b32.xlu1 %v7501_v52, %s5380_s30  ;;  %v6475_v42 = vsel %vm1020_vm0, %v6330_v30, %v2204_v41  ;;  %v876_v63 = vor.u32 %v875_v49, %v871_v54  ;;  %v6481_v12 = vld [vmem:[%s5446_s28 + $0xb0] ss:$0 sps:$4 sm:$0x11]   ;;  %v2415_v62 = vsel %vm2411_vm7, %v2378_v18, %v6270_v31  ;;  %v1457_v25 = vrot.slane %v1455_v26, 1  ;;  %v381_v30 = vld [vmem:[%s5446_s28 + $0xb4] sm:$0xf] }
  0xaa   : > { %7499 = vst [vmem:[#allocation23_spill] sm:$0xff] %v6460_v48  ;;  %7500 = vst [vmem:[#allocation24_spill] sm:$0xff] %v6463_v27  ;;  %v2524_v38 = vsel %vm2522_vm10, %v2487_v16, %v2228_v1  ;;  %v1637_v58 = vrot.slane %v6365_v60, 1  ;;  %v6490_v46 = vcombine.low %v379_v44, %v6456_v23  ;;  %v6494_v41 = vld [vmem:[%s5446_s28 + $0xb8] sm:$0xf]  ;;  %v2452_v54 = vsel %vm2448_vm8, %v2415_v62, %v6351_v33  ;;  %v7503_v33 = vld [vmem:[#allocation10_spill] sm:$0xff] }
  0xab   : > { %1667 = vrot.lane.b32.xlu0 %v6220_v13, %s5380_s30  ;;  %5084 = vmatprep.mubr.msk.bf16.mxu0 %vm2579_vm11, %v2524_v38  ;;  %v6498_v49 = vpop.permute.xlu1 %936  ;;  %v1440_v31 = vrot.slane %v1438_v53, 1  ;;  %v6500_v1 = vrot.slane %v1443_v5, 1  ;;  %v1633_v13 = vrot.slane %v4538_v56, 1  ;;  %v2489_v16 = vsel %vm2485_vm9, %v2452_v54, %v2086_v61  ;;  %v7505_v56 = vld [vmem:[#allocation11_spill] sm:$0xff] }
  0xac   : > { %7502 = vst [vmem:[#allocation17_spill] sm:$0xff] %v6490_v46  ;;  %v2026_v60 = vshll.u32 %v6460_v48, 16  ;;  %v2031_v18 = vshll.u32 %v6445_v55, 16  ;;  %v2014_v24 = vshll.u32 %v6463_v27, 16  ;;  %v1634_v53 = vrot.slane %v6402_v14, 1 }
  0xad   : > { %v2230_v26 = vpop.permute.xlu0 %2229  ;;  %1795 = vrot.lane.b32.xlu1 %v7503_v33, %s5384_s14  ;;  %v6511_v5 = vcombine.low %v381_v30, %v6494_v41  ;;  %v2024_v52 = vshrl.u32 %v6460_v48, 16  ;;  %v2019_v38 = vshll.u32 %v6478_v47, 16  ;;  %v885_v62 = vshll.u32 %v6490_v46, 16  ;;  %v4430_v54 = vld [vmem:[%s5446_s28 + $0xa8] sm:$0xe] }
  0xae   : > { %v2526_v44 = vsel %vm2522_vm10, %v2489_v16, %v2230_v26  ;;  %v890_v14 = vshll.u32 %v6481_v12, 16  ;;  %v6526_v30 = vsel %vm713_vm1, %v864_v57, %v6353_v0  ;;  %v6532_v26 = vsel %vm1020_vm0, %v6355_v29, %v2207_v20  ;;  %v6544_v0 = vld [vmem:[%s5446_s28 + $0xc4] sm:$0xf] }
  0xaf   : > { %7504 = vst [vmem:[#allocation10_spill] sm:$0xff] %v6511_v5  ;;  %1793 = vrot.lane.b32.xlu0 %v7505_v56, %s5384_s14  ;;  %5085 = vmatmul.mubr.msk.bf16.vlgmr.msra.gmra.mrb[0].mxu0 %vm2579_vm11, %v2526_v44  ;;  %v6522_v16 = vpop.permute.xlu1 %1081  ;;  %v7506_v44 = vrot.slane %v6302_v39, 1  ;;  %v7507_v56 = vshrl.u32 %v6347_v40, 16  ;;  %v2028_v6 = vrot.slane %v2026_v60, 1  ;;  %v2033_v28 = vrot.slane %v2031_v18, 1 }
  0xb0   : > { %v2012_v29 = vshrl.u32 %v6463_v27, 16  ;;  %v2016_v20 = vrot.slane %v2014_v24, 1  ;;  %v4431_v39 = vld [vmem:[%s5446_s28 + $0xb4] sm:$0xe]  ;;  %v6563_v60 = vsel %vm1020_vm0, %v1636_v37, %v1637_v58  ;;  %v897_v24 = vshll.u32 %v6511_v5, 16 }
  0xb1   : > { %v6538_v33 = vsel %vm1020_vm0, %v6380_v50, %v7506_v44  ;;  %v1453_v61 = vor.u32 %v1452_v8, %v7507_v56  ;;  %v6546_v57 = vpop.permute.xlu0 %1079  ;;  %2101 = vrot.lane.b32.xlu1 %v6241_v35, %s5385_s15  ;;  %v6554_v50 = vsel %vm713_vm1, %v876_v63, %v6371_v51  ;;  %v7508_v8 = vrot.slane %v6235_v21, 1  ;;  %7509 = vst [vmem:[#allocation11_spill] sm:$0xff] %v6563_v60  ;;  %v6566_v18 = vld [vmem:[%s5446_s28 + $0xbc] ss:$0 sps:$4 sm:$0x11]  }
  0xb2   : > { %v420_v35 = vld [vmem:[%s5446_s28 + $0xb4] sm:$0xe]  ;;  %v2021_v51 = vrot.slane %v2019_v38, 1  ;;  %v883_v21 = vshrl.u32 %v6490_v46, 16  ;;  %v419_v63 = vld [vmem:[%s5446_s28 + $0xa8] sm:$0xe]  ;;  %v6576_v56 = vcombine.low %v4322_v59, %v6544_v0 }
  0xb3   : > { %v6560_v44 = vsel %vm1020_vm0, %v6399_v7, %v7508_v8  ;;  %2099 = vrot.lane.b32.xlu0 %v6245_v9, %s5385_s15  ;;  %v4592_v7 = vcombine.low %v4430_v54, %v6436_v2  ;;  %v6578_v37 = vpop.permute.xlu1 %1207  ;;  %v6581_v58 = vsel %vm713_vm1, %v1453_v61, %v1457_v25  ;;  %v887_v8 = vrot.slane %v885_v62, 1  ;;  %v4320_v38 = vld [vmem:[%s5446_s28 + $0xb4] sm:$0xf]  ;;  %v6586_v46 = vld [vmem:[%s5446_s28 + $0xb8] sm:$0xf] }
  0xb4   : > { %7510 = vst [vmem:[#allocation25_spill] sm:$0xff] %v6576_v56  ;;  %7511 = vst [vmem:[#allocation26_spill] sm:$0xff] %v6581_v58  ;;  %v892_v27 = vrot.slane %v890_v14, 1  ;;  %v4593_v9 = vcombine.low %v4431_v39, %v6432_v17  ;;  %v7512_v2 = vshrl.u32 %v6383_v36, 16  ;;  %v2029_v54 = vor.u32 %v2028_v6, %v2024_v52  ;;  %v4394_v58 = vld [vmem:[%s5446_s28 + $0xcc] sm:$0xf] }
  0xb5   : > { %v6588_v48 = vpop.permute.xlu0 %1205  ;;  %v895_v60 = vshrl.u32 %v6511_v5, 16  ;;  %v4487_v25 = vcombine.low %v420_v35, %v6494_v41  ;;  %v6595_v61 = vld [vmem:[%s5446_s28 + $0xc8] ss:$0 sps:$4 sm:$0x11]   ;;  %950 = vrot.lane.b32.xlu1 %v6262_v43, %s5382_s10  ;;  %v6600_v17 = vsel %vm1020_vm0, %v1633_v13, %v1634_v53  ;;  %v2017_v62 = vor.u32 %v2016_v20, %v2012_v29 }
  0xb6   : > { %v1441_v59 = vor.u32 %v1440_v31, %v7512_v2  ;;  %v899_v14 = vrot.slane %v897_v24, 1  ;;  %v902_v39 = vshll.u32 %v6566_v18, 16  ;;  %v6605_v31 = vld [vmem:[%s5446_s28 + $0xd0] sm:$0xf]  ;;  %v2209_v41 = vrot.slane %v4592_v7, 1 }
  0xb7   : > { %2243 = vrot.lane.b32.xlu0 %v6226_v32, %s5386_s16  ;;  %v2210_v52 = vrot.slane %v6478_v47, 1  ;;  %v6611_v43 = vcombine.low %v4320_v38, %v6586_v46  ;;  %v1474_v13 = vshll.u32 %v6576_v56, 16  ;;  %v6614_v53 = vpop.permute.xlu1 %1513  ;;  %v888_v6 = vor.u32 %v887_v8, %v883_v21  ;;  %v6628_v38 = vld [vmem:[%s5446_s28 + $0xbc] ss:$0 sps:$4 sm:$0x11]  }
  0xb8   : > { %v2212_v29 = vrot.slane %v4593_v9, 1  ;;  %v1067_v20 = vrot.slane %v6566_v18, 1  ;;  %v4486_v24 = vcombine.low %v419_v63, %v6456_v23  ;;  %v6622_v47 = vsel %vm713_vm1, %v1441_v59, %v6500_v1  ;;  %v4361_v21 = vld [vmem:[%s5446_s28 + $0xc0] sm:$0xe]  ;;  %v6643_v2 = vld [vmem:[%s5446_s28 + $0xc4] sm:$0xf] }
  0xb9   : > { %7513 = vst [vmem:[#allocation27_spill] sm:$0xff] %v6611_v43  ;;  %v6618_v32 = vpop.permute.xlu0 %1511  ;;  %v6625_v35 = vsel %vm713_vm1, %v2029_v54, %v2033_v28  ;;  %v1066_v7 = vrot.slane %v4487_v25, 1  ;;  %v6632_v8 = vcombine.low %v4394_v58, %v6605_v31  ;;  %952 = vrot.lane.b32.xlu1 %v6286_v19, %s5382_s10  ;;  %v6637_v23 = vsel %vm713_vm1, %v2017_v62, %v2021_v51  ;;  %v4360_v28 = vld [vmem:[%s5446_s28 + $0xb4] sm:$0xe]  ;;  %v4392_v9 = vld [vmem:[%s5446_s28 + $0xc0] sm:$0xf] }
  0xba   : > { %v900_v18 = vor.u32 %v899_v14, %v895_v60  ;;  %v904_v1 = vrot.slane %v902_v39, 1  ;;  %v1479_v63 = vshll.u32 %v6595_v61, 16  ;;  %v1064_v58 = vrot.slane %v6481_v12, 1  ;;  %v6660_v14 = vld [vmem:[%s5446_s28 + $0xd4] ss:$0 sps:$4 sm:$0x11]  }
  0xbb   : > { %7514 = vst [vmem:[#allocation28_spill] sm:$0xff] %v6632_v8  ;;  %2245 = vrot.lane.b32.xlu0 %v6251_v22, %s5386_s16  ;;  %v1472_v19 = vshrl.u32 %v6576_v56, 16  ;;  %v1476_v51 = vrot.slane %v1474_v13, 1  ;;  %v1462_v60 = vshll.u32 %v6611_v43, 16  ;;  %v6650_v59 = vpop.permute.xlu1 %1657  ;;  %v6653_v54 = vsel %vm713_vm1, %v888_v6, %v892_v27  ;;  %v7515_v12 = vld [vmem:[#allocation2_spill] sm:$0xff]  ;;  %v7519_v6 = vld [vmem:[#allocation21_spill] sm:$0xff] }
  0xbc   : > { %v6656_v25 = vsel %vm1020_vm0, %v2209_v41, %v2210_v52  ;;  %v1063_v62 = vrot.slane %v4486_v24, 1  ;;  %v4541_v22 = vcombine.low %v4361_v21, %v6544_v0  ;;  %v2269_v39 = vsel %vm2263_vm3, %v7515_v12, %v6450_v45  ;;  %v383_v0 = vld [vmem:[%s5446_s28 + $0xc0] sm:$0xf]  ;;  %v6676_v52 = vld [vmem:[%s5446_s28 + $0xc4] sm:$0xf] }
  0xbd   : > { %v1656_v13 = vpop.permute.xlu0 %1655  ;;  %v7516_v5 = vrot.slane %v6445_v55, 1  ;;  %v6671_v27 = vsel %vm1020_vm0, %v1066_v7, %v1067_v20  ;;  %v2050_v41 = vshll.u32 %v6632_v8, 16  ;;  %1097 = vrot.lane.b32.xlu1 %v7519_v6, %s5381_s7  ;;  %v6681_v45 = vsel %vm713_vm1, %v900_v18, %v904_v1  ;;  %v6688_v20 = vld [vmem:[%s5446_s28 + $0xc8] ss:$0 sps:$4 sm:$0x11]   ;;  %v7522_v24 = vld [vmem:[#allocation22_spill] sm:$0xff] }
  0xbe   : > { %7518 = vst [vmem:[#allocation29_spill] sm:$0xff] %v6671_v27  ;;  %7520 = vst [vmem:[#allocation21_spill] sm:$0xff] %v6681_v45  ;;  %v1481_v55 = vrot.slane %v1479_v63, 1  ;;  %v1477_v7 = vor.u32 %v1476_v51, %v1472_v19  ;;  %v1460_v21 = vshrl.u32 %v6611_v43, 16  ;;  %v1464_v12 = vrot.slane %v1462_v60, 1  ;;  %v7525_v43 = vld [vmem:[#allocation3_spill] sm:$0xff] }
  0xbf   : > { %v6668_v56 = vsel %vm1020_vm0, %v2212_v29, %v7516_v5  ;;  %v1467_v5 = vshll.u32 %v6628_v38, 16  ;;  %v6685_v29 = vcombine.low %v4392_v9, %v6643_v2  ;;  %1095 = vrot.lane.b32.xlu0 %v7522_v24, %s5381_s7  ;;  %v4540_v6 = vcombine.low %v4360_v28, %v6586_v46  ;;  %v385_v27 = vld [vmem:[%s5446_s28 + $0xcc] sm:$0xf]  ;;  %v6696_v18 = vld [vmem:[%s5446_s28 + $0xd0] sm:$0xf]  ;;  %v6698_v1 = vpop.permute.xlu1 %1783 }
  0xc0   : > { %7517 = vst [vmem:[#allocation2_spill] sm:$0xff] %v6668_v56  ;;  %v6701_v63 = vsel %vm1020_vm0, %v1063_v62, %v1064_v58  ;;  %v1642_v9 = vrot.slane %v4541_v22, 1  ;;  %v1643_v56 = vrot.slane %v6595_v61, 1  ;;  %v6705_v24 = vcombine.low %v383_v0, %v6676_v52  ;;  %v7526_v58 = vld [vmem:[#allocation14_spill] sm:$0xff] }
  0xc1   : > { %7521 = vst [vmem:[#allocation30_spill] sm:$0xff] %v6685_v29  ;;  %7523 = vst [vmem:[#allocation22_spill] sm:$0xff] %v6701_v63  ;;  %v1782_v19 = vpop.permute.xlu0 %1781  ;;  %v2048_v46 = vshrl.u32 %v6632_v8, 16  ;;  %v2052_v28 = vrot.slane %v2050_v41, 1  ;;  %v2055_v60 = vshll.u32 %v6660_v14, 16  ;;  %v2271_v45 = vsel %vm2263_vm3, %v7525_v43, %v6498_v49  ;;  %1223 = vrot.lane.b32.xlu1 %v7526_v58, %s5379_s29  ;;  %v7527_v41 = vld [vmem:[#allocation15_spill] sm:$0xff] }
  0xc2   : > { %7524 = vst [vmem:[#allocation31_spill] sm:$0xff] %v6705_v24  ;;  %v6715_v61 = vrot.slane %v1467_v5, 1  ;;  %v2038_v62 = vshll.u32 %v6685_v29, 16  ;;  %v6719_v22 = vld [vmem:[%s5446_s28 + $0xc8] ss:$0 sps:$4 sm:$0x11]   ;;  %v6722_v0 = vcombine.low %v385_v27, %v6696_v18  ;;  %v6727_v51 = vsel %vm713_vm1, %v1477_v7, %v1481_v55 }
  0xc3   : > { %1221 = vrot.lane.b32.xlu0 %v7527_v41, %s5379_s29  ;;  %v6729_v49 = vor.u32 %v1464_v12, %v1460_v21  ;;  %v6731_v43 = vrot.slane %v4540_v6, 1  ;;  %v2043_v5 = vshll.u32 %v6688_v20, 16  ;;  %v2306_v58 = vsel %vm2300_vm4, %v2269_v39, %v6546_v57  ;;  %v2090_v8 = vpop.permute.xlu1 %2089  ;;  %v4432_v55 = vld [vmem:[%s5446_s28 + $0xc0] sm:$0xe] }
  0xc4   : > { %v6737_v27 = vsel %vm1020_vm0, %v1642_v9, %v1643_v56  ;;  %v2036_v41 = vshrl.u32 %v6685_v29, 16  ;;  %v909_v63 = vshll.u32 %v6705_v24, 16  ;;  %v2308_v7 = vsel %vm2300_vm4, %v2271_v45, %v6522_v16  ;;  %v6751_v39 = vld [vmem:[%s5446_s28 + $0xd4] ss:$0 sps:$4 sm:$0x11]  }
  0xc5   : > { %v2343_v21 = vsel %vm2337_vm5, %v2306_v58, %v6588_v48  ;;  %v2088_v12 = vpop.permute.xlu0 %2087  ;;  %v6746_v6 = vor.u32 %v2052_v28, %v2048_v46  ;;  %v6748_v57 = vrot.slane %v2055_v60, 1  ;;  %1529 = vrot.lane.b32.xlu1 %v6416_v15, %s5383_s13  ;;  %v2040_v9 = vrot.slane %v2038_v62, 1  ;;  %v4433_v45 = vld [vmem:[%s5446_s28 + $0xcc] sm:$0xe] }
  0xc6   : > { %v2380_v56 = vsel %vm2374_vm6, %v2343_v21, %v6618_v32  ;;  %v914_v16 = vshll.u32 %v6719_v22, 16  ;;  %v921_v48 = vshll.u32 %v6722_v0, 16  ;;  %v2045_v28 = vrot.slane %v2043_v5, 1  ;;  %v422_v15 = vld [vmem:[%s5446_s28 + $0xcc] sm:$0xe] }
  0xc7   : > { %v2417_v46 = vsel %vm2411_vm7, %v2380_v56, %v1656_v13  ;;  %1527 = vrot.lane.b32.xlu0 %v6421_v34, %s5383_s13  ;;  %v907_v32 = vshrl.u32 %v6705_v24, 16  ;;  %v4594_v60 = vcombine.low %v4432_v55, %v6643_v2  ;;  %v2345_v62 = vsel %vm2337_vm5, %v2308_v7, %v6578_v37  ;;  %v6769_v21 = vpop.permute.xlu1 %938  ;;  %v421_v34 = vld [vmem:[%s5446_s28 + $0xc0] sm:$0xe]  ;;  %v4326_v37 = vld [vmem:[%s5446_s28 + $0xd8] sm:$0xf] }
  0xc8   : > { %v2454_v58 = vsel %vm2448_vm8, %v2417_v46, %v1782_v19  ;;  %v911_v13 = vrot.slane %v909_v63, 1  ;;  %v2216_v56 = vrot.slane %v6688_v20, 1  ;;  %v919_v24 = vshrl.u32 %v6722_v0, 16  ;;  %v6779_v19 = vld [vmem:[%s5446_s28 + $0xdc] sm:$0xf] }
  0xc9   : > { %v2491_v5 = vsel %vm2485_vm9, %v2454_v58, %v2088_v12  ;;  %v2232_v29 = vpop.permute.xlu0 %2231  ;;  %v926_v2 = vshll.u32 %v6751_v39, 16  ;;  %v4595_v55 = vcombine.low %v4433_v45, %v6605_v31  ;;  %v2382_v63 = vsel %vm2374_vm6, %v2345_v62, %v6614_v53  ;;  %1673 = vrot.lane.b32.xlu1 %v6391_v3, %s5380_s30  ;;  %v4324_v46 = vld [vmem:[%s5446_s28 + $0xcc] sm:$0xf]  ;;  %v6795_v62 = vld [vmem:[%s5446_s28 + $0xd0] sm:$0xf] }
  0xca   : > { %v2528_v20 = vsel %vm2522_vm10, %v2491_v5, %v2232_v29  ;;  %v923_v7 = vrot.slane %v921_v48, 1  ;;  %v4489_v12 = vcombine.low %v422_v15, %v6696_v18  ;;  %v2419_v31 = vsel %vm2411_vm7, %v2382_v63, %v6650_v59  ;;  %v6798_v3 = vld [vmem:[%s5446_s28 + $0xe0] ss:$0 sps:$4 sm:$0x11]   ;;  %v7528_v63 = vld [vmem:[#allocation16_spill] sm:$0xff] }
  0xcb   : > { %1671 = vrot.lane.b32.xlu0 %v6397_v4, %s5380_s30  ;;  %5088 = vmatprep.mubr.msk.bf16.mxu0 %vm2579_vm11, %v2528_v20  ;;  %v2041_v45 = vor.u32 %v2040_v9, %v2036_v41  ;;  %v916_v53 = vrot.slane %v914_v16, 1  ;;  %v4488_v29 = vcombine.low %v421_v34, %v6676_v52  ;;  %v2456_v18 = vsel %vm2448_vm8, %v2419_v31, %v6698_v1  ;;  %v941_v48 = vpop.permute.xlu1 %940  ;;  %v6807_v4 = vld [vmem:[%s5446_s28 + $0xd4] ss:$0 sps:$4 sm:$0x11]  }
  0xcc   : > { %v2215_v15 = vrot.slane %v4594_v60, 1  ;;  %v2219_v59 = vrot.slane %v6660_v14, 1  ;;  %v6804_v58 = vcombine.low %v4326_v37, %v6779_v19  ;;  %v2493_v41 = vsel %vm2485_vm9, %v2456_v18, %v2090_v8  ;;  %v7529_v37 = vld [vmem:[#allocation18_spill] sm:$0xff]  ;;  %v7532_v18 = vld [vmem:[#allocation5_spill] sm:$0xff] }
  0xcd   : > { %v2234_v9 = vpop.permute.xlu0 %2233  ;;  %v912_v52 = vor.u32 %v911_v13, %v907_v32  ;;  %v928_v16 = vrot.slane %v926_v2, 1  ;;  %v2218_v34 = vrot.slane %v4595_v55, 1  ;;  %1799 = vrot.lane.b32.xlu1 %v7528_v63, %s5384_s14  ;;  %v924_v1 = vor.u32 %v923_v7, %v919_v24 }
  0xce   : > { %v2530_v5 = vsel %vm2522_vm10, %v2493_v41, %v2234_v9  ;;  %v1072_v60 = vrot.slane %v4489_v12, 1  ;;  %v1073_v14 = vrot.slane %v6751_v39, 1  ;;  %v1069_v20 = vrot.slane %v4488_v29, 1  ;;  %v4655_v9 = vld [vmem:[%s5446_s28 + $0x18] sm:$0xf] }
  0xcf   : > { %1797 = vrot.lane.b32.xlu0 %v7529_v37, %s5384_s14  ;;  %5089 = vmatmul.mubr.msk.bf16.gmra.mrb[4].mxu0 %vm2579_vm11, %v2530_v5  ;;  %v1070_v8 = vrot.slane %v6719_v22, 1  ;;  %v6819_v32 = vcombine.low %v4324_v46, %v6795_v62  ;;  %v1503_v13 = vshll.u32 %v6798_v3, 16  ;;  %v1086_v2 = vpop.permute.xlu1 %1085  ;;  %v6825_v24 = vsel %vm713_vm1, %v6729_v49, %v6715_v61 }
  0xd0   : > { %v7530_v39 = vrot.slane %v6628_v38, 1  ;;  %v1498_v7 = vshll.u32 %v6804_v58, 16  ;;  %v1491_v22 = vshll.u32 %v6807_v4, 16  ;;  %v6838_v46 = vsel %vm713_vm1, %v6746_v6, %v6748_v57 }
  0xd1   : > { %v1084_v12 = vpop.permute.xlu0 %1083  ;;  %v6841_v31 = vsel %vm713_vm1, %v2041_v45, %v2045_v28  ;;  %v6844_v61 = vsel %vm713_vm1, %v912_v52, %v916_v53  ;;  %v6847_v38 = vsel %vm1020_vm0, %v2215_v15, %v2216_v56  ;;  %2105 = vrot.lane.b32.xlu1 %v6426_v10, %s5385_s15  ;;  %v6852_v49 = vsel %vm713_vm1, %v924_v1, %v928_v16  ;;  %v7531_v53 = vld [vmem:[#allocation4_spill] sm:$0xff]  ;;  %v4656_v52 = vld [vmem:[%s5446_s28 + $0x1c] sm:$0xf] }
  0xd2   : > { %v6831_v55 = vsel %vm1020_vm0, %v6731_v43, %v7530_v39  ;;  %v6855_v43 = vsel %vm1020_vm0, %v2218_v34, %v2219_v59  ;;  %v6858_v6 = vsel %vm1020_vm0, %v1072_v60, %v1073_v14  ;;  %v6864_v28 = vsel %vm1020_vm0, %v1069_v20, %v1070_v8  ;;  %v4658_v60 = vld [vmem:[%s5446_s28 + $0x24] sm:$0xf]  ;;  %v4659_v14 = vld [vmem:[%s5446_s28 + $0x28] sm:$0xf] }
  0xd3   : > { %2103 = vrot.lane.b32.xlu0 %v6429_v11, %s5385_s15  ;;  %v6866_v10 = vrot.slane %v1503_v13, 1  ;;  %v1486_v45 = vshll.u32 %v6819_v32, 16  ;;  %v2273_v29 = vsel %vm2263_vm3, %v7531_v53, %v6769_v21  ;;  %v2275_v15 = vsel %vm2263_vm3, %v7532_v18, %v941_v48  ;;  %v1212_v59 = vpop.permute.xlu1 %1211 }
  0xd4   : > { %v6875_v11 = vrot.slane %v1498_v7, 1  ;;  %v6877_v41 = vrot.slane %v1491_v22, 1  ;;  %v2312_v16 = vsel %vm2300_vm4, %v2275_v15, %v1086_v2  ;;  %v3138_v5 = vshrl.u32 %v4655_v9, 16  ;;  %v4657_v22 = vld [vmem:[%s5446_s28 + $0x20] sm:$0x1] }
  0xd5   : > { %v1210_v34 = vpop.permute.xlu0 %1209  ;;  %v3141_v63 = vshll.u32 %v4655_v9, 16  ;;  %v3147_v1 = vshll.u32 %v4656_v52, 16  ;;  %v2310_v21 = vsel %vm2300_vm4, %v2273_v29, %v1084_v12  ;;  %954 = vrot.lane.b32.xlu1 %v6526_v30, %s5382_s10  ;;  %v3151_v48 = vshrl.u32 %v4656_v52, 16 }
  0xd6   : > { %v3162_v37 = vshrl.u32 %v4658_v60, 16  ;;  %v3165_v20 = vshll.u32 %v4658_v60, 16  ;;  %v3140_v8 = vrot.slane %v3138_v5, 4  ;;  %v3171_v39 = vshll.u32 %v4659_v14, 16  ;;  %v4660_v60 = vld [vmem:[%s5446_s28 + $0x2c] sm:$0x1] }
  0xd7   : > { %2247 = vrot.lane.b32.xlu0 %v6475_v42, %s5386_s16  ;;  %v3143_v13 = vrot.slane %v3141_v63, 5  ;;  %v3149_v2 = vrot.slane %v3147_v1, 5  ;;  %v1518_v7 = vpop.permute.xlu1 %1517  ;;  %v3153_v53 = vrot.slane %v3151_v48, 4  ;;  %v3175_v29 = vshrl.u32 %v4659_v14, 16  ;;  %v3521_v42 = vld [vmem:[%s7424_s2] sm:$0x3] }
  0xd8   : > { %v3164_v18 = vrot.slane %v3162_v37, 4  ;;  %v3167_v12 = vrot.slane %v3165_v20, 5  ;;  %v2349_v30 = vsel %vm2337_vm5, %v2312_v16, %v1212_v59  ;;  %v3157_v52 = vshll.u32 %v4657_v22, 16  ;;  %5155 = vmatprep.subr.msk.bf16.mxu1 %vm2616_vm2, %v3521_v42  ;;  %v4661_v20 = vld [vmem:[%s5446_s28 + $0x30] sm:$0xf] }
  0xd9   : > { %v1516_v15 = vpop.permute.xlu0 %1515  ;;  %v3144_v9 = vor.u32 %v3143_v13, %v3140_v8  ;;  %v3173_v56 = vrot.slane %v3171_v39, 5  ;;  %v2347_v57 = vsel %vm2337_vm5, %v2310_v21, %v1210_v34  ;;  %956 = vrot.lane.b32.xlu1 %v6554_v50, %s5382_s10  ;;  %v3154_v5 = vor.u32 %v3153_v53, %v3149_v2  ;;  %v4662_v22 = vld [vmem:[%s5446_s28 + $0x34] sm:$0xf] }
  0xda   : > { %v3168_v63 = vor.u32 %v3167_v12, %v3164_v18  ;;  %v3177_v1 = vrot.slane %v3175_v29, 4  ;;  %v3159_v16 = vrot.slane %v3157_v52, 5  ;;  %v3181_v37 = vshll.u32 %v4660_v60, 16  ;;  %v4664_v18 = vld [vmem:[%s5446_s28 + $0x3c] sm:$0xf] }
  0xdb   : > { %2249 = vrot.lane.b32.xlu0 %v6532_v26, %s5386_s16  ;;  %v3145_v59 = vrot.slane %v3144_v9, 4  ;;  %v1662_v50 = vpop.permute.xlu1 %1661  ;;  %v3155_v21 = vrot.slane %v3154_v5, 4  ;;  %v2386_v26 = vsel %vm2374_vm6, %v2349_v30, %v1518_v7  ;;  %v3619_v13 = vsel %vm2616_vm2, %v3521_v42, 0  ;;  %v4663_v60 = vld [vmem:[%s5446_s28 + $0x38] sm:$0x1] }
  0xdc   : > { %v3169_v48 = vrot.slane %v3168_v63, 4  ;;  %v3178_v14 = vor.u32 %v3177_v1, %v3173_v56  ;;  %v3186_v53 = vshrl.u32 %v4661_v20, 16  ;;  %v2384_v12 = vsel %vm2374_vm6, %v2347_v57, %v1516_v15  ;;  %5121 = vmatpush3.bf16.msra.mxu1 %v3619_v13 }
  0xdd   : > { %v1660_v8 = vpop.permute.xlu0 %1659  ;;  %v3150_v39 = vsel %vm6901_vm14, %v3145_v59, %v3149_v2  ;;  %1101 = vrot.lane.b32.xlu1 %v6538_v33, %s5381_s7  ;;  %v3160_v29 = vsel %vm6901_vm14, %v3155_v21, %v3159_v16  ;;  %v3183_v9 = vrot.slane %v3181_v37, 5  ;;  %v3189_v57 = vshll.u32 %v4661_v20, 16  ;;  %v4665_v21 = vld [vmem:[%s5446_s28 + $0x40] sm:$0xf] }
  0xde   : > { %v3174_v7 = vsel %vm6901_vm14, %v3169_v48, %v3173_v56  ;;  %v3179_v30 = vrot.slane %v3178_v14, 4  ;;  %v4703_v2 = vcombine.low %v3150_v39, %v3160_v29  ;;  %v3188_v52 = vrot.slane %v3186_v53, 4  ;;  %v4666_v48 = vld [vmem:[%s5446_s28 + $0x44] sm:$0x1] }
  0xdf   : > { %1099 = vrot.lane.b32.xlu0 %v6560_v44, %s5381_s7  ;;  %v1788_v15 = vpop.permute.xlu1 %1787  ;;  %v3195_v33 = vshll.u32 %v4662_v22, 16  ;;  %v3199_v42 = vshrl.u32 %v4662_v22, 16  ;;  %v3210_v5 = vshrl.u32 %v4664_v18, 16  ;;  %v3213_v63 = vshll.u32 %v4664_v18, 16 }
  0xe0   : > { %v2423_v1 = vsel %vm2411_vm7, %v2386_v26, %v1662_v50  ;;  %5122 = vmatprep.mubr.msk.bf16.mxu1 %vm2263_vm3, %v4703_v2  ;;  %v3184_v44 = vsel %vm6901_vm14, %v3179_v30, %v3183_v9  ;;  %v3191_v56 = vrot.slane %v3189_v57, 5  ;;  %v3205_v16 = vshll.u32 %v4663_v60, 16  ;;  %v4667_v30 = vld [vmem:[%s5446_s28 + $0x48] sm:$0xf]  ;;  %v7535_v60 = vld [vmem:[#allocation26_spill] sm:$0xff] }
  0xe1   : > { %v1786_v59 = vpop.permute.xlu0 %1785  ;;  %v2421_v14 = vsel %vm2411_vm7, %v2384_v12, %v1660_v8  ;;  %1227 = vrot.lane.b32.xlu1 %v6347_v40, %s5379_s29  ;;  %v4704_v37 = vcombine.low %v3174_v7, %v3184_v44  ;;  %v3197_v20 = vrot.slane %v3195_v33, 5  ;;  %v3201_v13 = vrot.slane %v3199_v42, 4 }
  0xe2   : > { %v3192_v50 = vor.u32 %v3191_v56, %v3188_v52  ;;  %v3207_v26 = vrot.slane %v3205_v16, 5  ;;  %v3212_v39 = vrot.slane %v3210_v5, 4  ;;  %v3215_v22 = vrot.slane %v3213_v63, 5 }
  0xe3   : > { %1225 = vrot.lane.b32.xlu0 %v6383_v36, %s5379_s29  ;;  %v2094_v53 = vpop.permute.xlu1 %2093  ;;  %5123 = vmatmul.mubr.msk.bf16.vlgmr.msra.gmra.mrb[0].mxu1 %vm2263_vm3, %v4704_v37  ;;  %v3202_v18 = vor.u32 %v3201_v13, %v3197_v20  ;;  %v3219_v8 = vshll.u32 %v4665_v21, 16  ;;  %v3223_v12 = vshrl.u32 %v4665_v21, 16  ;;  %v3229_v29 = vshll.u32 %v4666_v48, 16  ;;  %v4668_v36 = vld [vmem:[%s5446_s28 + $0x4c] sm:$0xf] }
  0xe4   : > { %v2460_v40 = vsel %vm2448_vm8, %v2423_v1, %v1788_v15  ;;  %v3193_v2 = vrot.slane %v3192_v50, 4  ;;  %v3216_v9 = vor.u32 %v3215_v22, %v3212_v39  ;;  %v3234_v57 = vshrl.u32 %v4667_v30, 16  ;;  %v4669_v21 = vld [vmem:[%s5446_s28 + $0x50] sm:$0x1]  ;;  %v4670_v37 = vld [vmem:[%s5446_s28 + $0x54] sm:$0xf] }
  0xe5   : > { %v2092_v7 = vpop.permute.xlu0 %2091  ;;  %v2458_v52 = vsel %vm2448_vm8, %v2421_v14, %v1786_v59  ;;  %1533 = vrot.lane.b32.xlu1 %v7535_v60, %s5383_s13  ;;  %v3203_v33 = vrot.slane %v3202_v18, 4  ;;  %v3221_v42 = vrot.slane %v3219_v8, 5  ;;  %v3225_v5 = vrot.slane %v3223_v12, 4  ;;  %v4671_v22 = vld [vmem:[%s5446_s28 + $0x58] sm:$0xf]  ;;  %v7536_v8 = vld [vmem:[#allocation11_spill] sm:$0xff] }
  0xe6   : > { %v3198_v15 = vsel %vm6901_vm14, %v3193_v2, %v3197_v20  ;;  %v3217_v63 = vrot.slane %v3216_v9, 4  ;;  %v3231_v1 = vrot.slane %v3229_v29, 5  ;;  %v3236_v44 = vrot.slane %v3234_v57, 4  ;;  %v4672_v60 = vld [vmem:[%s5446_s28 + $0x5c] sm:$0x1] }
  0xe7   : > { %1531 = vrot.lane.b32.xlu0 %v6622_v47, %s5383_s13  ;;  %v943_v56 = vpop.permute.xlu1 %942  ;;  %v3208_v59 = vsel %vm6901_vm14, %v3203_v33, %v3207_v26  ;;  %v3226_v16 = vor.u32 %v3225_v5, %v3221_v42  ;;  %v3237_v48 = vshll.u32 %v4667_v30, 16  ;;  %v3243_v14 = vshll.u32 %v4668_v36, 16 }
  0xe8   : > { %v2495_v13 = vsel %vm2485_vm9, %v2458_v52, %v2092_v7  ;;  %v4705_v47 = vcombine.low %v3198_v15, %v3208_v59  ;;  %v3222_v20 = vsel %vm6901_vm14, %v3217_v63, %v3221_v42  ;;  %v3247_v39 = vshrl.u32 %v4668_v36, 16 }
  0xe9   : > { %v2236_v50 = vpop.permute.xlu0 %2235  ;;  %1677 = vrot.lane.b32.xlu1 %v7536_v8, %s5380_s30  ;;  %v3227_v26 = vrot.slane %v3226_v16, 4  ;;  %v3239_v12 = vrot.slane %v3237_v48, 5  ;;  %v3245_v29 = vrot.slane %v3243_v14, 5  ;;  %v3253_v7 = vshll.u32 %v4669_v21, 16  ;;  %v4673_v16 = vld [vmem:[%s5446_s28 + $0x60] sm:$0xf] }
  0xea   : > { %v2532_v18 = vsel %vm2522_vm10, %v2495_v13, %v2236_v50  ;;  %v3249_v30 = vrot.slane %v3247_v39, 4  ;;  %v3258_v2 = vshrl.u32 %v4670_v37, 16  ;;  %v3261_v9 = vshll.u32 %v4670_v37, 16  ;;  %5126 = vmatprep.mubr.msk.bf16.mxu1 %vm2263_vm3, %v4705_v47  ;;  %v7537_v48 = vld [vmem:[#allocation23_spill] sm:$0xff] }
  0xeb   : > { %1675 = vrot.lane.b32.xlu0 %v6600_v17, %s5380_s30  ;;  %5092 = vmatprep.mubr.msk.bf16.mxu0 %vm2579_vm11, %v2532_v18  ;;  %v945_v36 = vpop.permute.xlu1 %944  ;;  %v3232_v57 = vsel %vm6901_vm14, %v3227_v26, %v3231_v1  ;;  %v3240_v52 = vor.u32 %v3239_v12, %v3236_v44  ;;  %v3267_v33 = vshll.u32 %v4671_v22, 16  ;;  %v3271_v42 = vshrl.u32 %v4671_v22, 16  ;;  %v7538_v44 = vld [vmem:[#allocation24_spill] sm:$0xff]  ;;  %v4674_v22 = vld [vmem:[%s5446_s28 + $0x64] sm:$0xf] }
  0xec   : > { %v2497_v5 = vsel %vm2485_vm9, %v2460_v40, %v2094_v53  ;;  %v4706_v15 = vcombine.low %v3222_v20, %v3232_v57  ;;  %v3250_v63 = vor.u32 %v3249_v30, %v3245_v29  ;;  %v3255_v59 = vrot.slane %v3253_v7, 5  ;;  %v7539_v26 = vld [vmem:[#allocation6_spill] sm:$0xff]  ;;  %v4675_v57 = vld [vmem:[%s5446_s28 + $0x68] sm:$0x1] }
  0xed   : > { %v2238_v17 = vpop.permute.xlu0 %2237  ;;  %1803 = vrot.lane.b32.xlu1 %v7537_v48, %s5384_s14  ;;  %v3241_v14 = vrot.slane %v3240_v52, 4  ;;  %v3260_v37 = vrot.slane %v3258_v2, 4  ;;  %v3263_v1 = vrot.slane %v3261_v9, 5  ;;  %v3269_v40 = vrot.slane %v3267_v33, 5  ;;  %v4676_v52 = vld [vmem:[%s5446_s28 + $0x6c] sm:$0xf] }
  0xee   : > { %v2534_v21 = vsel %vm2522_vm10, %v2497_v5, %v2238_v17  ;;  %v3251_v53 = vrot.slane %v3250_v63, 4  ;;  %v3273_v13 = vrot.slane %v3271_v42, 4  ;;  %v3277_v50 = vshll.u32 %v4672_v60, 16  ;;  %5127 = vmatmul.mubr.msk.bf16.gmra.mrb[4].mxu1 %vm2263_vm3, %v4706_v15  ;;  %v7540_v60 = vld [vmem:[#allocation7_spill] sm:$0xff] }
  0xef   : > { %1801 = vrot.lane.b32.xlu0 %v7538_v44, %s5384_s14  ;;  %5093 = vmatmul.mubr.msk.bf16.gmra.mrb[8].mxu0 %vm2579_vm11, %v2534_v21  ;;  %v1090_v47 = vpop.permute.xlu1 %1089  ;;  %v3246_v20 = vsel %vm6901_vm14, %v3241_v14, %v3245_v29  ;;  %v3264_v39 = vor.u32 %v3263_v1, %v3260_v37  ;;  %v3282_v18 = vshrl.u32 %v4673_v16, 16  ;;  %v3285_v8 = vshll.u32 %v4673_v16, 16 }
  0xf0   : > { %v2277_v12 = vsel %vm2263_vm3, %v7539_v26, %v943_v56  ;;  %v3256_v7 = vsel %vm6901_vm14, %v3251_v53, %v3255_v59  ;;  %v3274_v2 = vor.u32 %v3273_v13, %v3269_v40  ;;  %v3279_v9 = vrot.slane %v3277_v50, 5  ;;  %v4678_v53 = vld [vmem:[%s5446_s28 + $0x74] sm:$0x1]  ;;  %v4679_v13 = vld [vmem:[%s5446_s28 + $0x78] sm:$0xf] }
  0xf1   : > { %v1088_v30 = vpop.permute.xlu0 %1087  ;;  %v2279_v33 = vsel %vm2263_vm3, %v7540_v60, %v945_v36  ;;  %2109 = vrot.lane.b32.xlu1 %v6625_v35, %s5385_s15  ;;  %v4707_v29 = vcombine.low %v3246_v20, %v3256_v7  ;;  %v3265_v42 = vrot.slane %v3264_v39, 4  ;;  %v3284_v5 = vrot.slane %v3282_v18, 4  ;;  %v4677_v35 = vld [vmem:[%s5446_s28 + $0x70] sm:$0xf] }
  0xf2   : > { %v3275_v56 = vrot.slane %v3274_v2, 4  ;;  %v3287_v17 = vrot.slane %v3285_v8, 5  ;;  %v3291_v15 = vshll.u32 %v4674_v22, 16  ;;  %v3295_v63 = vshrl.u32 %v4674_v22, 16 }
  0xf3   : > { %2107 = vrot.lane.b32.xlu0 %v6637_v23, %s5385_s15  ;;  %v1216_v59 = vpop.permute.xlu1 %1215  ;;  %5130 = vmatprep.mubr.msk.bf16.mxu1 %vm2263_vm3, %v4707_v29  ;;  %v3270_v36 = vsel %vm6901_vm14, %v3265_v42, %v3269_v40  ;;  %v3301_v16 = vshll.u32 %v4675_v57, 16  ;;  %v3306_v21 = vshrl.u32 %v4676_v52, 16  ;;  %v3309_v48 = vshll.u32 %v4676_v52, 16  ;;  %v7541_v29 = vld [vmem:[#allocation21_spill] sm:$0xff] }
  0xf4   : > { %v2316_v14 = vsel %vm2300_vm4, %v2279_v33, %v1090_v47  ;;  %v3280_v23 = vsel %vm6901_vm14, %v3275_v56, %v3279_v9  ;;  %v3288_v1 = vor.u32 %v3287_v17, %v3284_v5  ;;  %v3293_v44 = vrot.slane %v3291_v15, 5  ;;  %v4681_v33 = vld [vmem:[%s5446_s28 + $0x80] sm:$0x1] }
  0xf5   : > { %v1214_v37 = vpop.permute.xlu0 %1213  ;;  %v2314_v50 = vsel %vm2300_vm4, %v2277_v12, %v1088_v30  ;;  %958 = vrot.lane.b32.xlu1 %v6653_v54, %s5382_s10  ;;  %v4708_v40 = vcombine.low %v3270_v36, %v3280_v23  ;;  %v3297_v20 = vrot.slane %v3295_v63, 4  ;;  %v3303_v39 = vrot.slane %v3301_v16, 5  ;;  %v4680_v30 = vld [vmem:[%s5446_s28 + $0x7c] sm:$0xf]  ;;  %v7542_v15 = vld [vmem:[#allocation2_spill] sm:$0xff] }
  0xf6   : > { %v3289_v47 = vrot.slane %v3288_v1, 4  ;;  %v3308_v22 = vrot.slane %v3306_v21, 4  ;;  %v3311_v18 = vrot.slane %v3309_v48, 5  ;;  %v3315_v8 = vshll.u32 %v4677_v35, 16  ;;  %v4682_v23 = vld [vmem:[%s5446_s28 + $0x84] sm:$0xf] }
  0xf7   : > { %2251 = vrot.lane.b32.xlu0 %v6656_v25, %s5386_s16  ;;  %v1522_v26 = vpop.permute.xlu1 %1521  ;;  %5131 = vmatmul.mubr.msk.bf16.gmra.mrb[8].mxu1 %vm2263_vm3, %v4708_v40  ;;  %v3298_v7 = vor.u32 %v3297_v20, %v3293_v44  ;;  %v3319_v2 = vshrl.u32 %v4677_v35, 16  ;;  %v3325_v12 = vshll.u32 %v4678_v53, 16  ;;  %v3330_v9 = vshrl.u32 %v4679_v13, 16  ;;  %v4683_v20 = vld [vmem:[%s5446_s28 + $0x88] sm:$0xf] }
  0xf8   : > { %v2353_v54 = vsel %vm2337_vm5, %v2316_v14, %v1216_v59  ;;  %v2351_v57 = vsel %vm2337_vm5, %v2314_v50, %v1214_v37  ;;  %v3312_v60 = vor.u32 %v3311_v18, %v3308_v22  ;;  %v3317_v25 = vrot.slane %v3315_v8, 5  ;;  %v7544_v8 = vld [vmem:[#allocation22_spill] sm:$0xff] }
  0xf9   : > { %v1520_v52 = vpop.permute.xlu0 %1519  ;;  %960 = vrot.lane.b32.xlu1 %v7541_v29, %s5382_s10  ;;  %v3294_v42 = vsel %vm6901_vm14, %v3289_v47, %v3293_v44  ;;  %v3299_v5 = vrot.slane %v3298_v7, 4  ;;  %v3321_v56 = vrot.slane %v3319_v2, 4  ;;  %v3327_v17 = vrot.slane %v3325_v12, 5 }
  0xfa   : > { %v3313_v63 = vrot.slane %v3312_v60, 4  ;;  %v3332_v59 = vrot.slane %v3330_v9, 4  ;;  %v3333_v36 = vshll.u32 %v4679_v13, 16  ;;  %v3339_v16 = vshll.u32 %v4680_v30, 16  ;;  %v7543_v13 = vld [vmem:[#allocation29_spill] sm:$0xff] }
  0xfb   : > { %2253 = vrot.lane.b32.xlu0 %v7542_v15, %s5386_s16  ;;  %v1666_v35 = vpop.permute.xlu1 %1665  ;;  %v3304_v21 = vsel %vm6901_vm14, %v3299_v5, %v3303_v39  ;;  %v3322_v48 = vor.u32 %v3321_v56, %v3317_v25  ;;  %v3343_v14 = vshrl.u32 %v4680_v30, 16  ;;  %v3349_v37 = vshll.u32 %v4681_v33, 16  ;;  %v4686_v15 = vld [vmem:[%s5446_s28 + $0x94] sm:$0xf] }
  0xfc   : > { %v2390_v1 = vsel %vm2374_vm6, %v2353_v54, %v1522_v26  ;;  %v2388_v44 = vsel %vm2374_vm6, %v2351_v57, %v1520_v52  ;;  %v4709_v50 = vcombine.low %v3294_v42, %v3304_v21  ;;  %v3335_v40 = vrot.slane %v3333_v36, 5  ;;  %v4684_v57 = vld [vmem:[%s5446_s28 + $0x8c] sm:$0x1] }
  0xfd   : > { %v1664_v53 = vpop.permute.xlu0 %1663  ;;  %1105 = vrot.lane.b32.xlu1 %v7543_v13, %s5381_s7  ;;  %v3318_v47 = vsel %vm6901_vm14, %v3313_v63, %v3317_v25  ;;  %v3323_v39 = vrot.slane %v3322_v48, 4  ;;  %v3341_v22 = vrot.slane %v3339_v16, 5  ;;  %v3345_v18 = vrot.slane %v3343_v14, 4  ;;  %v4685_v25 = vld [vmem:[%s5446_s28 + $0x90] sm:$0xf]  ;;  %v7546_v21 = vld [vmem:[#allocation27_spill] sm:$0xff] }
  0xfe   : > { %5134 = vmatprep.mubr.msk.bf16.mxu1 %vm2263_vm3, %v4709_v50  ;;  %v3336_v26 = vor.u32 %v3335_v40, %v3332_v59  ;;  %v3351_v7 = vrot.slane %v3349_v37, 5  ;;  %v3354_v2 = vshrl.u32 %v4682_v23, 16  ;;  %v3357_v12 = vshll.u32 %v4682_v23, 16  ;;  %v7545_v59 = vld [vmem:[#allocation25_spill] sm:$0xff] }
  0xff   : > { %1103 = vrot.lane.b32.xlu0 %v7544_v8, %s5381_s7  ;;  %v1792_v30 = vpop.permute.xlu1 %1791  ;;  %v3328_v9 = vsel %vm6901_vm14, %v3323_v39, %v3327_v17  ;;  %v3346_v54 = vor.u32 %v3345_v18, %v3341_v22  ;;  %v3363_v52 = vshll.u32 %v4683_v20, 16  ;;  %v3367_v60 = vshrl.u32 %v4683_v20, 16  ;;  %v4688_v8 = vld [vmem:[%s5446_s28 + $0x9c] sm:$0xf] }
 0x100   : > { %v2427_v33 = vsel %vm2411_vm7, %v2390_v1, %v1666_v35  ;;  %v4710_v42 = vcombine.low %v3318_v47, %v3328_v9  ;;  %v3337_v5 = vrot.slane %v3336_v26, 4  ;;  %v3356_v56 = vrot.slane %v3354_v2, 4 }
 0x101   : > { %v1790_v29 = vpop.permute.xlu0 %1789  ;;  %v2425_v63 = vsel %vm2411_vm7, %v2388_v44, %v1664_v53  ;;  %1231 = vrot.lane.b32.xlu1 %v7545_v59, %s5379_s29  ;;  %v3347_v36 = vrot.slane %v3346_v54, 4  ;;  %v3359_v17 = vrot.slane %v3357_v12, 5  ;;  %v3365_v16 = vrot.slane %v3363_v52, 5  ;;  %v4687_v53 = vld [vmem:[%s5446_s28 + $0x98] sm:$0x1] }
 0x102   : > { %5135 = vmatmul.mubr.msk.bf16.gmra.mrb[12].mxu1 %vm2263_vm3, %v4710_v42  ;;  %v3342_v35 = vsel %vm6901_vm14, %v3337_v5, %v3341_v22  ;;  %v3369_v48 = vrot.slane %v3367_v60, 4  ;;  %v3373_v14 = vshll.u32 %v4684_v57, 16  ;;  %v3378_v37 = vshrl.u32 %v4685_v25, 16  ;;  %v4689_v60 = vld [vmem:[%s5446_s28 + $0xa0] sm:$0xf] }
 0x103   : > { %1229 = vrot.lane.b32.xlu0 %v7546_v21, %s5379_s29  ;;  %v2098_v23 = vpop.permute.xlu1 %2097  ;;  %v3352_v1 = vsel %vm6901_vm14, %v3347_v36, %v3351_v7  ;;  %v3360_v44 = vor.u32 %v3359_v17, %v3356_v56  ;;  %v3381_v50 = vshll.u32 %v4685_v25, 16  ;;  %v3387_v40 = vshll.u32 %v4686_v15, 16 }
 0x104   : > { %v2464_v20 = vsel %vm2448_vm8, %v2427_v33, %v1792_v30  ;;  %v4711_v47 = vcombine.low %v3342_v35, %v3352_v1  ;;  %v3370_v39 = vor.u32 %v3369_v48, %v3365_v16  ;;  %v3375_v18 = vrot.slane %v3373_v14, 5 }
 0x105   : > { %v2096_v13 = vpop.permute.xlu0 %2095  ;;  %v2462_v22 = vsel %vm2448_vm8, %v2425_v63, %v1790_v29  ;;  %1537 = vrot.lane.b32.xlu1 %v6727_v51, %s5383_s13  ;;  %v3361_v26 = vrot.slane %v3360_v44, 4  ;;  %v3380_v2 = vrot.slane %v3378_v37, 4  ;;  %v3383_v7 = vrot.slane %v3381_v50, 5  ;;  %v4690_v63 = vld [vmem:[%s5446_s28 + $0xa4] sm:$0x1] }
 0x106   : > { %5138 = vmatprep.mubr.msk.bf16.mxu1 %vm2263_vm3, %v4711_v47  ;;  %v3371_v12 = vrot.slane %v3370_v39, 4  ;;  %v3389_v30 = vrot.slane %v3387_v40, 5  ;;  %v3391_v9 = vshrl.u32 %v4686_v15, 16  ;;  %v3397_v54 = vshll.u32 %v4687_v53, 16  ;;  %v4691_v15 = vld [vmem:[%s5446_s28 + $0xa8] sm:$0xf] }
 0x107   : > { %1535 = vrot.lane.b32.xlu0 %v6825_v24, %s5383_s13  ;;  %v7049_v57 = vpop.permute.xlu1 %946  ;;  %v3366_v52 = vsel %vm6901_vm14, %v3361_v26, %v3365_v16  ;;  %v3384_v51 = vor.u32 %v3383_v7, %v3380_v2  ;;  %v3402_v25 = vshrl.u32 %v4688_v8, 16  ;;  %v3405_v33 = vshll.u32 %v4688_v8, 16  ;;  %v4692_v44 = vld [vmem:[%s5446_s28 + $0xac] sm:$0xf]  ;;  %v7548_v7 = vld [vmem:[#allocation30_spill] sm:$0xff] }
 0x108   : > { %v2499_v29 = vsel %vm2485_vm9, %v2462_v22, %v2096_v13  ;;  %v3376_v42 = vsel %vm6901_vm14, %v3371_v12, %v3375_v18  ;;  %v3393_v5 = vrot.slane %v3391_v9, 4  ;;  %v3399_v56 = vrot.slane %v3397_v54, 5  ;;  %v4693_v18 = vld [vmem:[%s5446_s28 + $0xb0] sm:$0x1] }
 0x109   : > { %v2240_v24 = vpop.permute.xlu0 %2239  ;;  %1681 = vrot.lane.b32.xlu1 %v6737_v27, %s5380_s30  ;;  %v4712_v36 = vcombine.low %v3366_v52, %v3376_v42  ;;  %v3385_v17 = vrot.slane %v3384_v51, 4  ;;  %v3404_v16 = vrot.slane %v3402_v25, 4  ;;  %v3407_v35 = vrot.slane %v3405_v33, 5 }
 0x10a   : > { %v2536_v59 = vsel %vm2522_vm10, %v2499_v29, %v2240_v24  ;;  %v3394_v21 = vor.u32 %v3393_v5, %v3389_v30  ;;  %v3411_v48 = vshll.u32 %v4689_v60, 16  ;;  %v3415_v14 = vshrl.u32 %v4689_v60, 16  ;;  %v4694_v29 = vld [vmem:[%s5446_s28 + $0xb4] sm:$0xf]  ;;  %v4695_v24 = vld [vmem:[%s5446_s28 + $0xb8] sm:$0xf] }
 0x10b   : > { %1679 = vrot.lane.b32.xlu0 %v6831_v55, %s5380_s30  ;;  %5096 = vmatprep.mubr.msk.bf16.mxu0 %vm2579_vm11, %v2536_v59  ;;  %v2501_v37 = vsel %vm2485_vm9, %v2464_v20, %v2098_v23  ;;  %v7066_v1 = vpop.permute.xlu1 %948  ;;  %v3421_v27 = vshll.u32 %v4690_v63, 16  ;;  %v3426_v53 = vshrl.u32 %v4691_v15, 16  ;;  %v3429_v50 = vshll.u32 %v4691_v15, 16  ;;  %v7547_v23 = vld [vmem:[#allocation28_spill] sm:$0xff]  ;;  %v7077_v20 = vld [vmem:[%s5446_s28 + $0xd8] sm:$0xe] }
 0x10c   : > { %5139 = vmatmul.mubr.msk.bf16.gmra.mrb[16].mxu1 %vm2263_vm3, %v4712_v36  ;;  %v3390_v55 = vsel %vm6901_vm14, %v3385_v17, %v3389_v30  ;;  %v3395_v13 = vrot.slane %v3394_v21, 4  ;;  %v3408_v47 = vor.u32 %v3407_v35, %v3404_v16  ;;  %v3413_v39 = vrot.slane %v3411_v48, 5  ;;  %v4696_v35 = vld [vmem:[%s5446_s28 + $0xbc] sm:$0x1] }
 0x10d   : > { %v2242_v40 = vpop.permute.xlu0 %2241  ;;  %1807 = vrot.lane.b32.xlu1 %v7547_v23, %s5384_s14  ;;  %v3417_v22 = vrot.slane %v3415_v14, 4  ;;  %v3423_v26 = vrot.slane %v3421_v27, 5  ;;  %v3428_v2 = vrot.slane %v3426_v53, 4  ;;  %v3431_v9 = vrot.slane %v3429_v50, 5 }
 0x10e   : > { %v2538_v8 = vsel %vm2522_vm10, %v2501_v37, %v2242_v40  ;;  %v3400_v12 = vsel %vm6901_vm14, %v3395_v13, %v3399_v56  ;;  %v3409_v30 = vrot.slane %v3408_v47, 4  ;;  %v3435_v54 = vshll.u32 %v4692_v44, 16  ;;  %v7094_v56 = vld [vmem:[%s5446_s28 + $0xcc] sm:$0xe]  ;;  %v4697_v40 = vld [vmem:[%s5446_s28 + $0xc0] sm:$0xf] }
 0x10f   : > { %1805 = vrot.lane.b32.xlu0 %v7548_v7, %s5384_s14  ;;  %5097 = vmatmul.mubr.msk.bf16.gmra.mrb[12].mxu0 %vm2579_vm11, %v2538_v8  ;;  %v7084_v52 = vpop.permute.xlu1 %1093  ;;  %v4713_v51 = vcombine.low %v3390_v55, %v3400_v12  ;;  %v3418_v60 = vor.u32 %v3417_v22, %v3413_v39  ;;  %v3439_v25 = vshrl.u32 %v4692_v44, 16  ;;  %v3445_v33 = vshll.u32 %v4693_v18, 16  ;;  %v4698_v18 = vld [vmem:[%s5446_s28 + $0xc4] sm:$0xf] }
 0x110   : > { %v4543_v5 = vcombine.low %v7077_v20, %v6779_v19  ;;  %v1649_v63 = vrot.slane %v6798_v3, 1  ;;  %v3432_v15 = vor.u32 %v3431_v9, %v3428_v2  ;;  %v3437_v59 = vrot.slane %v3435_v54, 5 }
 0x111   : > { %v7088_v42 = vpop.permute.xlu0 %1091  ;;  %2113 = vrot.lane.b32.xlu1 %v6838_v46, %s5385_s15  ;;  %v7100_v36 = vrot.slane %v1486_v45, 1  ;;  %5142 = vmatprep.mubr.msk.bf16.mxu1 %vm2263_vm3, %v4713_v51  ;;  %v3414_v17 = vsel %vm6901_vm14, %v3409_v30, %v3413_v39  ;;  %v3419_v16 = vrot.slane %v3418_v60, 4  ;;  %v3441_v21 = vrot.slane %v3439_v25, 4  ;;  %v4699_v51 = vld [vmem:[%s5446_s28 + $0xc8] sm:$0x1] }
 0x112   : > { %v3433_v48 = vrot.slane %v3432_v15, 4  ;;  %v3450_v14 = vshrl.u32 %v4694_v29, 16  ;;  %v3453_v46 = vshll.u32 %v4694_v29, 16  ;;  %v3459_v37 = vshll.u32 %v4695_v24, 16 }
 0x113   : > { %2111 = vrot.lane.b32.xlu0 %v6841_v31, %s5385_s15  ;;  %v7108_v27 = vpop.permute.xlu1 %1219  ;;  %v3424_v45 = vsel %vm6901_vm14, %v3419_v16, %v3423_v26  ;;  %v3442_v44 = vor.u32 %v3441_v21, %v3437_v59  ;;  %v3447_v53 = vrot.slane %v3445_v33, 5  ;;  %v3463_v50 = vshrl.u32 %v4695_v24, 16 }
 0x114   : > { %v4542_v13 = vcombine.low %v7094_v56, %v6795_v62  ;;  %v4714_v31 = vcombine.low %v3414_v17, %v3424_v45  ;;  %v3452_v47 = vrot.slane %v3450_v14, 4  ;;  %v3469_v39 = vshll.u32 %v4696_v35, 16  ;;  %v4701_v17 = vld [vmem:[%s5446_s28 + $0xd0] sm:$0xf]  ;;  %v4398_v35 = vld [vmem:[%s5446_s28 + $0xe4] sm:$0xf] }
 0x115   : > { %v7113_v55 = vpop.permute.xlu0 %1217  ;;  %962 = vrot.lane.b32.xlu1 %v6844_v61, %s5382_s10  ;;  %v3438_v8 = vsel %vm6901_vm14, %v3433_v48, %v3437_v59  ;;  %v3443_v23 = vrot.slane %v3442_v44, 4  ;;  %v3455_v22 = vrot.slane %v3453_v46, 5  ;;  %v3461_v26 = vrot.slane %v3459_v37, 5  ;;  %v7144_v37 = vld [vmem:[%s5446_s28 + $0xe8] sm:$0xf] }
 0x116   : > { %v1646_v2 = vrot.slane %v6807_v4, 1  ;;  %5143 = vmatmul.mubr.msk.bf16.gmra.mrb[20].mxu1 %vm2263_vm3, %v4714_v31  ;;  %v3465_v7 = vrot.slane %v3463_v50, 4  ;;  %v3474_v12 = vshrl.u32 %v4697_v40, 16  ;;  %v3477_v30 = vshll.u32 %v4697_v40, 16 }
 0x117   : > { %2255 = vrot.lane.b32.xlu0 %v6847_v38, %s5386_s16  ;;  %v7126_v61 = vpop.permute.xlu1 %1525  ;;  %v3448_v9 = vsel %vm6901_vm14, %v3443_v23, %v3447_v53  ;;  %v3456_v54 = vor.u32 %v3455_v22, %v3452_v47  ;;  %v3483_v60 = vshll.u32 %v4698_v18, 16  ;;  %v3487_v25 = vshrl.u32 %v4698_v18, 16  ;;  %v4700_v38 = vld [vmem:[%s5446_s28 + $0xcc] sm:$0xf] }
 0x118   : > { %v4715_v29 = vcombine.low %v3438_v8, %v3448_v9  ;;  %v3466_v24 = vor.u32 %v3465_v7, %v3461_v26  ;;  %v3471_v15 = vrot.slane %v3469_v39, 5  ;;  %v3476_v59 = vrot.slane %v3474_v12, 4  ;;  %v7156_v8 = vld [vmem:[%s5446_s28 + $0xdc] sm:$0xf]  ;;  %v4702_v12 = vld [vmem:[%s5446_s28 + $0xd4] sm:$0x1] }
 0x119   : > { %v7132_v33 = vpop.permute.xlu0 %1523  ;;  %964 = vrot.lane.b32.xlu1 %v6852_v49, %s5382_s10  ;;  %v7549_v16 = vshrl.u32 %v6804_v58, 16  ;;  %v3457_v48 = vrot.slane %v3456_v54, 4  ;;  %v3479_v14 = vrot.slane %v3477_v30, 5  ;;  %v3485_v46 = vrot.slane %v3483_v60, 5 }
 0x11a   : > { %5146 = vmatprep.mubr.msk.bf16.mxu1 %vm2263_vm3, %v4715_v29  ;;  %v3467_v45 = vrot.slane %v3466_v24, 4  ;;  %v3489_v44 = vrot.slane %v3487_v25, 4  ;;  %v3493_v49 = vshll.u32 %v4699_v51, 16  ;;  %v3498_v53 = vshrl.u32 %v4700_v38, 16 }
 0x11b   : > { %v1501_v21 = vor.u32 %v6875_v11, %v7549_v16  ;;  %2257 = vrot.lane.b32.xlu0 %v6855_v43, %s5386_s16  ;;  %v7147_v50 = vpop.permute.xlu1 %1669  ;;  %v4396_v11 = vld [vmem:[%s5446_s28 + $0xd8] sm:$0xf]  ;;  %v3462_v40 = vsel %vm6901_vm14, %v3457_v48, %v3461_v26  ;;  %v3480_v31 = vor.u32 %v3479_v14, %v3476_v59  ;;  %v3501_v47 = vshll.u32 %v4700_v38, 16  ;;  %v7167_v30 = vld [vmem:[%s5446_s28 + $0xec] ss:$0 sps:$4 sm:$0x11]  }
 0x11c   : > { %v3507_v39 = vshll.u32 %v4701_v17, 16  ;;  %v1648_v18 = vrot.slane %v4543_v5, 1  ;;  %v3472_v23 = vsel %vm6901_vm14, %v3467_v45, %v3471_v15  ;;  %v3490_v22 = vor.u32 %v3489_v44, %v3485_v46  ;;  %v7551_v45 = vld [vmem:[#allocation8_spill] sm:$0xff]  ;;  %v7199_v56 = vld [vmem:[%s5446_s28 + $0xe0] ss:$0 sps:$4 sm:$0x11]  }
 0x11d   : > { %v1668_v43 = vpop.permute.xlu0 %1667  ;;  %v3495_v7 = vrot.slane %v3493_v49, 5  ;;  %1109 = vrot.lane.b32.xlu1 %v6858_v6, %s5381_s7  ;;  %v7164_v26 = vcombine.low %v4398_v35, %v7144_v37  ;;  %v4716_v9 = vcombine.low %v3462_v40, %v3472_v23  ;;  %v3481_v54 = vrot.slane %v3480_v31, 4 }
 0x11e   : > { %v3500_v19 = vrot.slane %v3498_v53, 4  ;;  %v3491_v20 = vrot.slane %v3490_v22, 4  ;;  %v3503_v5 = vrot.slane %v3501_v47, 5  ;;  %v3509_v51 = vrot.slane %v3507_v39, 5  ;;  %v7552_v47 = vld [vmem:[#allocation9_spill] sm:$0xff] }
 0x11f   : > { %1107 = vrot.lane.b32.xlu0 %v6864_v28, %s5381_s7  ;;  %v3511_v60 = vshrl.u32 %v4701_v17, 16  ;;  %v7171_v25 = vpop.permute.xlu1 %1795  ;;  %v7550_v38 = vshrl.u32 %v6819_v32, 16  ;;  %v7177_v29 = vcombine.low %v4396_v11, %v7156_v8  ;;  %5147 = vmatmul.mubr.msk.bf16.gmra.mrb[24].mxu1 %vm2263_vm3, %v4716_v9  ;;  %v3486_v24 = vsel %vm6901_vm14, %v3481_v54, %v3485_v46 }
 0x120   : > { %v3517_v28 = vshll.u32 %v4702_v12, 16  ;;  %v1645_v59 = vrot.slane %v4542_v13, 1  ;;  %v3496_v17 = vsel %vm6901_vm14, %v3491_v20, %v3495_v7  ;;  %v3504_v16 = vor.u32 %v3503_v5, %v3500_v19  ;;  %v4435_v12 = vld [vmem:[%s5446_s28 + $0xe4] sm:$0xe]  ;;  %v4434_v19 = vld [vmem:[%s5446_s28 + $0xd8] sm:$0xe]  ;;  %s7316_s28 = scalar_lea.vmem %s7425_s3, %s5157_s25 }
 0x121   : > { %v1489_v6 = vor.u32 %v7100_v36, %v7550_v38  ;;  %v1794_v15 = vpop.permute.xlu0 %1793  ;;  %v3513_v36 = vrot.slane %v3511_v60, 4  ;;  %1235 = vrot.lane.b32.xlu1 %v6804_v58, %s5379_s29  ;;  %v1506_v35 = vsel %vm713_vm1, %v1501_v21, %v6866_v10  ;;  %v2074_v48 = vshll.u32 %v7164_v26, 16 }
 0x122   : > { %v2079_v14 = vshll.u32 %v7167_v30, 16  ;;  %v4717_v46 = vcombine.low %v3486_v24, %v3496_v17  ;;  %v2281_v62 = vsel %vm2263_vm3, %v7551_v45, %v7049_v57  ;;  %v3505_v13 = vrot.slane %v3504_v16, 4 }
 0x123   : > { %1233 = vrot.lane.b32.xlu0 %v6819_v32, %s5379_s29  ;;  %v3514_v44 = vor.u32 %v3513_v36, %v3509_v51  ;;  %v3519_v58 = vrot.slane %v3517_v28, 5  ;;  %v2318_v10 = vsel %vm2300_vm4, %v2281_v62, %v7088_v42  ;;  %v2102_v21 = vpop.permute.xlu1 %2101  ;;  %v1494_v49 = vsel %vm713_vm1, %v1489_v6, %v6877_v41  ;;  %s4769_s29 = sshll.u32 %s7565_s21, 7 }
 0x124   : > { %v1650_v53 = vsel %vm1020_vm0, %v1648_v18, %v1649_v63  ;;  %v2062_v57 = vshll.u32 %v7177_v29, 16  ;;  %5150 = vmatprep.mubr.msk.bf16.mxu1 %vm2263_vm3, %v4717_v46  ;;  %v2355_v32 = vsel %vm2337_vm5, %v2318_v10, %v7113_v55  ;;  %v2072_v40 = vshrl.u32 %v7164_v26, 16  ;;  %s7362_s8 = scalar_lea.vmem %s7427_s5, %s4769_s29 }
 0x125   : > { %v2100_v11 = vpop.permute.xlu0 %2099  ;;  %v3510_v42 = vsel %vm6901_vm14, %v3505_v13, %v3509_v51  ;;  %v3515_v31 = vrot.slane %v3514_v44, 4  ;;  %v2392_v3 = vsel %vm2374_vm6, %v2355_v32, %v7132_v33  ;;  %1541 = vrot.lane.b32.xlu1 %v1506_v35, %s5383_s13  ;;  %v1647_v41 = vsel %vm1020_vm0, %v1645_v59, %v1646_v2  ;;  %v7553_v44 = vld [vmem:[#allocation12_spill] sm:$0xff]  ;;  %v7554_v32 = vld [vmem:[#allocation13_spill] sm:$0xff] }
 0x126   : > { %v2076_v63 = vrot.slane %v2074_v48, 1  ;;  %v2060_v55 = vshrl.u32 %v7177_v29, 16  ;;  %v2283_v39 = vsel %vm2263_vm3, %v7552_v47, %v7066_v1  ;;  %v2429_v18 = vsel %vm2411_vm7, %v2392_v3, %v1668_v43 }
 0x127   : > { %1539 = vrot.lane.b32.xlu0 %v1494_v49, %s5383_s13  ;;  %v2067_v33 = vshll.u32 %v7199_v56, 16  ;;  %v3520_v23 = vsel %vm6901_vm14, %v3515_v31, %v3519_v58  ;;  %v2320_v4 = vsel %vm2300_vm4, %v2283_v39, %v7084_v52  ;;  %v2466_v2 = vsel %vm2448_vm8, %v2429_v18, %v1794_v15  ;;  %v951_v22 = vpop.permute.xlu1 %950 }
 0x128   : > { %v2064_v7 = vrot.slane %v2062_v57, 1  ;;  %v4718_v9 = vcombine.low %v3510_v42, %v3520_v23  ;;  %v2357_v1 = vsel %vm2337_vm5, %v2320_v4, %v7108_v27  ;;  %v2503_v43 = vsel %vm2485_vm9, %v2466_v2, %v2100_v11 }
 0x129   : > { %v2244_v54 = vpop.permute.xlu0 %2243  ;;  %v2394_v34 = vsel %vm2374_vm6, %v2357_v1, %v7126_v61  ;;  %1685 = vrot.lane.b32.xlu1 %v1650_v53, %s5380_s30  ;;  %v2077_v27 = vor.u32 %v2076_v63, %v2072_v40  ;;  %v2081_v5 = vrot.slane %v2079_v14, 1  ;;  %v4597_v51 = vcombine.low %v4435_v12, %v7144_v37 }
 0x12a   : > { %v2540_v20 = vsel %vm2522_vm10, %v2503_v43, %v2244_v54  ;;  %5151 = vmatmul.mubr.msk.bf16.gmra.mrb[28].mxu1 %vm2263_vm3, %v4718_v9  ;;  %v2431_v52 = vsel %vm2411_vm7, %v2394_v34, %v7147_v50  ;;  %v2065_v38 = vor.u32 %v2064_v7, %v2060_v55  ;;  %v2069_v6 = vrot.slane %v2067_v33, 1 }
 0x12b   : > { %1683 = vrot.lane.b32.xlu0 %v1647_v41, %s5380_s30  ;;  %5100 = vmatprep.mubr.msk.bf16.mxu0 %vm2579_vm11, %v2540_v20  ;;  %v2468_v61 = vsel %vm2448_vm8, %v2431_v52, %v7171_v25  ;;  %v953_v60 = vpop.permute.xlu1 %952  ;;  %v4596_v24 = vcombine.low %v4434_v19, %v7156_v8  ;;  %v2082_v37 = vsel %vm713_vm1, %v2077_v27, %v2081_v5  ;;  %v2224_v25 = vrot.slane %v4597_v51, 1  ;;  %v7555_v27 = vld [vmem:[#allocation19_spill] sm:$0xff] }
 0x12c   : > { %v2505_v28 = vsel %vm2485_vm9, %v2468_v61, %v2102_v21  ;;  %v2225_v59 = vrot.slane %v7167_v30, 1  ;;  %v2070_v8 = vsel %vm713_vm1, %v2065_v38, %v2069_v6  ;;  %v2222_v36 = vrot.slane %v7199_v56, 1 }
 0x12d   : > { %v2246_v15 = vpop.permute.xlu0 %2245  ;;  %1811 = vrot.lane.b32.xlu1 %v7164_v26, %s5384_s14  ;;  %v2221_v16 = vrot.slane %v4596_v24, 1  ;;  %v2285_v58 = vsel %vm2263_vm3, %v7553_v44, %v951_v22  ;;  %v2287_v11 = vsel %vm2263_vm3, %v7554_v32, %v953_v60  ;;  %v7556_v24 = vld [vmem:[#allocation20_spill] sm:$0xff] }
 0x12e   : > { %v2542_v50 = vsel %vm2522_vm10, %v2505_v28, %v2246_v15  ;;  %v2226_v26 = vsel %vm1020_vm0, %v2224_v25, %v2225_v59 }
 0x12f   : > { %1809 = vrot.lane.b32.xlu0 %v7177_v29, %s5384_s14  ;;  %5101 = vmatmul.mubr.msk.bf16.gmra.mrb[16].mxu0 %vm2579_vm11, %v2542_v50  ;;  %v1098_v17 = vpop.permute.xlu1 %1097  ;;  %v2223_v48 = vsel %vm1020_vm0, %v2221_v16, %v2222_v36 }
 0x130   : > { %v2324_v42 = vsel %vm2300_vm4, %v2287_v11, %v1098_v17 }
 0x131   : > { %v1096_v35 = vpop.permute.xlu0 %1095  ;;  %2117 = vrot.lane.b32.xlu1 %v2082_v37, %s5385_s15 }
 0x132   : > { %v2322_v10 = vsel %vm2300_vm4, %v2285_v58, %v1096_v35 }
 0x133   : > { %2115 = vrot.lane.b32.xlu0 %v2070_v8, %s5385_s15  ;;  %v1224_v29 = vpop.permute.xlu1 %1223  ;;  %s331_s15 = scalar_lea.vmem %s7426_s4, %s4288_s9 }
 0x134   : > { %v2361_v41 = vsel %vm2337_vm5, %v2324_v42, %v1224_v29 }
 0x135   : > { %v1222_v14 = vpop.permute.xlu0 %1221  ;;  %2261 = vrot.lane.b32.xlu1 %v2226_v26, %s5386_s16 }
 0x136   : > { %v2359_v49 = vsel %vm2337_vm5, %v2322_v10, %v1222_v14 }
 0x137   : > { %2259 = vrot.lane.b32.xlu0 %v2223_v48, %s5386_s16  ;;  %v1530_v30 = vpop.permute.xlu1 %1529 }
 0x138   : > { %v2398_v47 = vsel %vm2374_vm6, %v2361_v41, %v1530_v30 }
 0x139   : > { %v1528_v46 = vpop.permute.xlu0 %1527 }
 0x13a   : > { %v2396_v57 = vsel %vm2374_vm6, %v2359_v49, %v1528_v46 }
 0x13b   : > { %v1674_v45 = vpop.permute.xlu1 %1673 }
 0x13c   : > { %v2435_v18 = vsel %vm2411_vm7, %v2398_v47, %v1674_v45 }
 0x13d   : > { %v1672_v62 = vpop.permute.xlu0 %1671 }
 0x13e   : > { %v2433_v40 = vsel %vm2411_vm7, %v2396_v57, %v1672_v62 }
 0x13f   : > { %v1800_v56 = vpop.permute.xlu1 %1799 }
 0x140   : > { %v2472_v33 = vsel %vm2448_vm8, %v2435_v18, %v1800_v56 }
 0x141   : > { %v1798_v13 = vpop.permute.xlu0 %1797 }
 0x142   : > { %v2470_v31 = vsel %vm2448_vm8, %v2433_v40, %v1798_v13 }
 0x143   : > { %v2106_v21 = vpop.permute.xlu1 %2105 }
 0x144   : > { %v2509_v4 = vsel %vm2485_vm9, %v2472_v33, %v2106_v21 }
 0x145   : > { %v2104_v53 = vpop.permute.xlu0 %2103 }
 0x146   : > { %v2507_v63 = vsel %vm2485_vm9, %v2470_v31, %v2104_v53  ;;  %v7557_v53 = vld [vmem:[#allocation17_spill] sm:$0xff] }
 0x147   : > { %v955_v3 = vpop.permute.xlu1 %954 }
 0x148   : > { %v2289_v5 = vsel %vm2263_vm3, %v7555_v27, %v955_v3 }
 0x149   : > { %v2248_v55 = vpop.permute.xlu0 %2247 }
 0x14a   : > { %v2544_v39 = vsel %vm2522_vm10, %v2507_v63, %v2248_v55 }
 0x14b   : > { %5104 = vmatprep.mubr.msk.bf16.mxu0 %vm2579_vm11, %v2544_v39  ;;  %v957_v23 = vpop.permute.xlu1 %956 }
 0x14c   : > { %v2291_v28 = vsel %vm2263_vm3, %v7556_v24, %v957_v23 }
 0x14d   : > { %v2250_v2 = vpop.permute.xlu0 %2249 }
 0x14e   : > { %v2546_v22 = vsel %vm2522_vm10, %v2509_v4, %v2250_v2  ;;  %v7558_v4 = vld [vmem:[#allocation10_spill] sm:$0xff] }
 0x14f   : > { %5105 = vmatmul.mubr.msk.bf16.gmra.mrb[20].mxu0 %vm2579_vm11, %v2546_v22  ;;  %v1102_v7 = vpop.permute.xlu1 %1101 }
 0x150   : > { %v2328_v50 = vsel %vm2300_vm4, %v2291_v28, %v1102_v7 }
 0x151   : > { %v1100_v12 = vpop.permute.xlu0 %1099 }
 0x152   : > { %v2326_v51 = vsel %vm2300_vm4, %v2289_v5, %v1100_v12 }
 0x153   : > { %v1228_v9 = vpop.permute.xlu1 %1227 }
 0x154   : > { %v2365_v59 = vsel %vm2337_vm5, %v2328_v50, %v1228_v9 }
 0x155   : > { %v1226_v1 = vpop.permute.xlu0 %1225 }
 0x156   : > { %v2363_v60 = vsel %vm2337_vm5, %v2326_v51, %v1226_v1 }
 0x157   : > { %v1534_v43 = vpop.permute.xlu1 %1533 }
 0x158   : > { %v2402_v16 = vsel %vm2374_vm6, %v2365_v59, %v1534_v43 }
 0x159   : > { %v1532_v54 = vpop.permute.xlu0 %1531 }
 0x15a   : > { %v2400_v6 = vsel %vm2374_vm6, %v2363_v60, %v1532_v54 }
 0x15b   : > { %v1678_v19 = vpop.permute.xlu1 %1677 }
 0x15c   : > { %v2439_v35 = vsel %vm2411_vm7, %v2402_v16, %v1678_v19 }
 0x15d   : > { %v1676_v34 = vpop.permute.xlu0 %1675 }
 0x15e   : > { %v2437_v15 = vsel %vm2411_vm7, %v2400_v6, %v1676_v34 }
 0x15f   : > { %v1804_v20 = vpop.permute.xlu1 %1803 }
 0x160   : > { %v2476_v26 = vsel %vm2448_vm8, %v2439_v35, %v1804_v20 }
 0x161   : > { %v1802_v52 = vpop.permute.xlu0 %1801 }
 0x162   : > { %v2474_v37 = vsel %vm2448_vm8, %v2437_v15, %v1802_v52 }
 0x163   : > { %v2110_v61 = vpop.permute.xlu1 %2109 }
 0x164   : > { %v2513_v48 = vsel %vm2485_vm9, %v2476_v26, %v2110_v61 }
 0x165   : > { %v2108_v38 = vpop.permute.xlu0 %2107 }
 0x166   : > { %v2511_v17 = vsel %vm2485_vm9, %v2474_v37, %v2108_v38 }
 0x167   : > { %v959_v25 = vpop.permute.xlu1 %958 }
 0x168   : > { %v2293_v57 = vsel %vm2263_vm3, %v7557_v53, %v959_v25 }
 0x169   : > { %v2252_v8 = vpop.permute.xlu0 %2251 }
 0x16a   : > { %v2548_v36 = vsel %vm2522_vm10, %v2511_v17, %v2252_v8  ;;  %v7559_v17 = vld [vmem:[#allocation31_spill] sm:$0xff] }
 0x16b   : > { %5108 = vmatprep.mubr.msk.bf16.mxu0 %vm2579_vm11, %v2548_v36  ;;  %v961_v29 = vpop.permute.xlu1 %960 }
 0x16c   : > { %v2295_v2 = vsel %vm2263_vm3, %v7558_v4, %v961_v29 }
 0x16d   : > { %v2254_v14 = vpop.permute.xlu0 %2253 }
 0x16e   : > { %v2550_v30 = vsel %vm2522_vm10, %v2513_v48, %v2254_v14 }
 0x16f   : > { %5109 = vmatmul.mubr.msk.bf16.gmra.mrb[24].mxu0 %vm2579_vm11, %v2550_v30  ;;  %v1106_v46 = vpop.permute.xlu1 %1105 }
 0x170   : > { %v2332_v12 = vsel %vm2300_vm4, %v2295_v2, %v1106_v46 }
 0x171   : > { %v1104_v45 = vpop.permute.xlu0 %1103 }
 0x172   : > { %v2330_v11 = vsel %vm2300_vm4, %v2293_v57, %v1104_v45 }
 0x173   : > { %v1232_v62 = vpop.permute.xlu1 %1231 }
 0x174   : > { %v2369_v43 = vsel %vm2337_vm5, %v2332_v12, %v1232_v62 }
 0x175   : > { %v1230_v56 = vpop.permute.xlu0 %1229 }
 0x176   : > { %v2367_v42 = vsel %vm2337_vm5, %v2330_v11, %v1230_v56 }
 0x177   : > { %v1538_v13 = vpop.permute.xlu1 %1537 }
 0x178   : > { %v2406_v34 = vsel %vm2374_vm6, %v2369_v43, %v1538_v13 }
 0x179   : > { %v1536_v44 = vpop.permute.xlu0 %1535 }
 0x17a   : > { %v2404_v33 = vsel %vm2374_vm6, %v2367_v42, %v1536_v44 }
 0x17b   : > { %v1682_v58 = vpop.permute.xlu1 %1681 }
 0x17c   : > { %v2443_v52 = vsel %vm2411_vm7, %v2406_v34, %v1682_v58 }
 0x17d   : > { %v1680_v10 = vpop.permute.xlu0 %1679 }
 0x17e   : > { %v2441_v22 = vsel %vm2411_vm7, %v2404_v33, %v1680_v10 }
 0x17f   : > { %v1808_v21 = vpop.permute.xlu1 %1807 }
 0x180   : > { %v2480_v27 = vsel %vm2448_vm8, %v2443_v52, %v1808_v21 }
 0x181   : > { %v1806_v49 = vpop.permute.xlu0 %1805 }
 0x182   : > { %v5086_v32 = vpop.f32.mrb[0].mxu0  ;;  %v2478_v9 = vsel %vm2448_vm8, %v2441_v22, %v1806_v49 }
 0x183   : > { %v2654_v40 = vpop.f32.mrb[1].mxu0  ;;  %v2114_v3 = vpop.permute.xlu1 %2113  ;;  %v3014_v41 = vmul.f32 %v5086_v32, %v5086_v32 }
 0x184   : > { %v5087_v31 = vpop.f32.mrb[2].mxu0  ;;  %v2517_v51 = vsel %vm2485_vm9, %v2480_v27, %v2114_v3 }
 0x185   : > { %v4846_v63 = vpack.c.bf16 %v5087_v31, %v5086_v32  ;;  %v2977_v55 = vadd.f32 %v5087_v31, %v5086_v32  ;;  %v3015_v47 = vmul.f32 %v5087_v31, %v5087_v31  ;;  %v2657_v39 = vpop.f32.mrb[3].mxu0  ;;  %v2112_v18 = vpop.permute.xlu0 %2111 }
 0x186   : > { %v4841_v23 = vpack.c.bf16 %v2657_v39, %v2654_v40  ;;  %v2515_v54 = vsel %vm2485_vm9, %v2478_v9, %v2112_v18 }
 0x187   : > { %5008 = vst [vmem:[%s7316_s28 + $0x8] sm:$0xff] %v4846_v63   ;;  %v3046_v7 = vadd.f32 %v3015_v47, %v3014_v41  ;;  %v963_v1 = vpop.permute.xlu1 %962 }
 0x188   : > { %4842 = vst [vmem:[%s7316_s28] sm:$0xff] %v4841_v23   ;;  %v2297_v8 = vsel %vm2263_vm3, %v7559_v17, %v963_v1 }
 0x189   : > { %v2256_v19 = vpop.permute.xlu0 %2255 }
 0x18a   : > { %v2552_v20 = vsel %vm2522_vm10, %v2515_v54, %v2256_v19 }
 0x18b   : > { %5112 = vmatprep.mubr.msk.bf16.mxu0 %vm2579_vm11, %v2552_v20  ;;  %v965_v5 = vpop.permute.xlu1 %964 }
 0x18c   : > { %v2299_v16 = vsel %vm2263_vm3, %v6722_v0, %v965_v5 }
 0x18d   : > { %v2258_v61 = vpop.permute.xlu0 %2257 }
 0x18e   : > { %v2554_v60 = vsel %vm2522_vm10, %v2517_v51, %v2258_v61 }
 0x18f   : > { %5113 = vmatmul.mubr.msk.bf16.gmra.mrb[28].mxu0 %vm2579_vm11, %v2554_v60  ;;  %v1110_v38 = vpop.permute.xlu1 %1109 }
 0x190   : > { %v2336_v35 = vsel %vm2300_vm4, %v2299_v16, %v1110_v38 }
 0x191   : > { %v1108_v6 = vpop.permute.xlu0 %1107 }
 0x192   : > { %v2334_v26 = vsel %vm2300_vm4, %v2297_v8, %v1108_v6 }
 0x193   : > { %v1236_v24 = vpop.permute.xlu1 %1235 }
 0x194   : > { %v2373_v48 = vsel %vm2337_vm5, %v2336_v35, %v1236_v24 }
 0x195   : > { %v1234_v28 = vpop.permute.xlu0 %1233 }
 0x196   : > { %v2371_v14 = vsel %vm2337_vm5, %v2334_v26, %v1234_v28 }
 0x197   : > { %v1542_v15 = vpop.permute.xlu1 %1541 }
 0x198   : > { %v2410_v46 = vsel %vm2374_vm6, %v2373_v48, %v1542_v15 }
 0x199   : > { %v1540_v50 = vpop.permute.xlu0 %1539 }
 0x19a   : > { %v2408_v45 = vsel %vm2374_vm6, %v2371_v14, %v1540_v50 }
 0x19b   : > { %v1686_v37 = vpop.permute.xlu1 %1685 }
 0x19c   : > { %v2447_v44 = vsel %vm2411_vm7, %v2410_v46, %v1686_v37 }
 0x19d   : > { %v1684_v25 = vpop.permute.xlu0 %1683 }
 0x19e   : > { %v2445_v58 = vsel %vm2411_vm7, %v2408_v45, %v1684_v25 }
 0x19f   : > { %v1812_v59 = vpop.permute.xlu1 %1811 }
 0x1a0   : > { %v2484_v40 = vsel %vm2448_vm8, %v2447_v44, %v1812_v59 }
 0x1a1   : > { %v1810_v36 = vpop.permute.xlu0 %1809 }
 0x1a2   : > { %v5090_v29 = vpop.f32.mrb[4].mxu0  ;;  %v2482_v42 = vsel %vm2448_vm8, %v2445_v58, %v1810_v36 }
 0x1a3   : > { %v2670_v30 = vpop.f32.mrb[5].mxu0  ;;  %v2118_v0 = vpop.permute.xlu1 %2117  ;;  %v3018_v31 = vmul.f32 %v5090_v29, %v5090_v29 }
 0x1a4   : > { %v2978_v62 = vadd.f32 %v2977_v55, %v2670_v30  ;;  %v3016_v56 = vmul.f32 %v2670_v30, %v2670_v30  ;;  %v5091_v13 = vpop.f32.mrb[6].mxu0  ;;  %v2521_v3 = vsel %vm2485_vm9, %v2484_v40, %v2118_v0 }
 0x1a5   : > { %v4856_v10 = vpack.c.bf16 %v5091_v13, %v5090_v29  ;;  %v2673_v21 = vpop.f32.mrb[7].mxu0  ;;  %v2116_v49 = vpop.permute.xlu0 %2115  ;;  %v3019_v33 = vmul.f32 %v5091_v13, %v5091_v13 }
 0x1a6   : > { %v3047_v53 = vadd.f32 %v3046_v7, %v3016_v56  ;;  %v4851_v57 = vpack.c.bf16 %v2673_v21, %v2670_v30  ;;  %v2979_v32 = vadd.f32 %v2978_v62, %v2673_v21  ;;  %v3017_v11 = vmul.f32 %v2673_v21, %v2673_v21 }
 0x1a7   : > { %5010 = vst [vmem:[%s7316_s28 + $0x18] sm:$0xff] %v4856_v10   ;;  %v2262_v55 = vpop.permute.xlu1 %2261  ;;  %v2519_v47 = vsel %vm2485_vm9, %v2482_v42, %v2116_v49 }
 0x1a8   : > { %5009 = vst [vmem:[%s7316_s28 + $0x10] sm:$0xff] %v4851_v57   ;;  %v2980_v41 = vadd.f32 %v5090_v29, %v2979_v32  ;;  %v3048_v63 = vadd.f32 %v3047_v53, %v3017_v11  ;;  %v2558_v39 = vsel %vm2522_vm10, %v2521_v3, %v2262_v55 }
 0x1a9   : > { %v2260_v18 = vpop.permute.xlu0 %2259 }
 0x1aa   : > { %v3049_v23 = vadd.f32 %v3048_v63, %v3018_v31  ;;  %v2556_v4 = vsel %vm2522_vm10, %v2519_v47, %v2260_v18  ;;  %v2981_v2 = vadd.f32 %v5091_v13, %v2980_v41 }
 0x1ab   : > { %5116 = vmatprep.mubr.msk.bf16.mxu0 %vm2579_vm11, %v2556_v4 }
 0x1ac   : > { %5117 = vmatmul.mubr.msk.bf16.gmra.mrb[32].mxu0 %vm2579_vm11, %v2558_v39  ;;  %v3050_v22 = vadd.f32 %v3049_v23, %v3019_v33 }
 0x1b6   : > { %v5124_v7 = vpop.f32.mrb[0].mxu1 }
 0x1b7   : > { %v3655_v12 = vpop.f32.mrb[1].mxu1  ;;  %v3981_v19 = vmul.f32 %v5124_v7, %v5124_v7 }
 0x1b8   : > { %v3979_v9 = vmul.f32 %v3655_v12, %v3655_v12  ;;  %v5125_v1 = vpop.f32.mrb[2].mxu1 }
 0x1b9   : > { %v4936_v43 = vpack.c.bf16 %v5125_v1, %v5124_v7  ;;  %v3658_v54 = vpop.f32.mrb[3].mxu1  ;;  %v3982_v27 = vmul.f32 %v5125_v1, %v5125_v1 }
 0x1ba   : > { %v4931_v34 = vpack.c.bf16 %v3658_v54, %v3655_v12  ;;  %v3942_v20 = vadd.f32 %v3658_v54, %v3655_v12  ;;  %v3980_v52 = vmul.f32 %v3658_v54, %v3658_v54 }
 0x1bb   : > { %5025 = vst [vmem:[%s7362_s8 + $0x8] sm:$0xff] %v4936_v43  }
 0x1bc   : > { %4932 = vst [vmem:[%s7362_s8] sm:$0xff] %v4931_v34   ;;  %v3943_v5 = vadd.f32 %v5124_v7, %v3942_v20  ;;  %v4011_v51 = vadd.f32 %v3980_v52, %v3979_v9 }
 0x1be   : > { %v4012_v61 = vadd.f32 %v4011_v51, %v3981_v19  ;;  %v3944_v60 = vadd.f32 %v5125_v1, %v3943_v5 }
 0x1c0   : > { %v4013_v38 = vadd.f32 %v4012_v61, %v3982_v27 }
 0x1c1   : > { %v5128_v28 = vpop.f32.mrb[4].mxu1 }
 0x1c2   : > { %v5094_v6 = vpop.f32.mrb[8].mxu0  ;;  %v3671_v25 = vpop.f32.mrb[5].mxu1  ;;  %v3985_v46 = vmul.f32 %v5128_v28, %v5128_v28 }
 0x1c3   : > { %v2686_v24 = vpop.f32.mrb[9].mxu0  ;;  %v3022_v59 = vmul.f32 %v5094_v6, %v5094_v6  ;;  %v3945_v16 = vadd.f32 %v3944_v60, %v3671_v25  ;;  %v3983_v36 = vmul.f32 %v3671_v25, %v3671_v25  ;;  %v5129_v35 = vpop.f32.mrb[6].mxu1 }
 0x1c4   : > { %v2982_v15 = vadd.f32 %v2981_v2, %v2686_v24  ;;  %v3020_v50 = vmul.f32 %v2686_v24, %v2686_v24  ;;  %v5095_v37 = vpop.f32.mrb[10].mxu0  ;;  %v3674_v30 = vpop.f32.mrb[7].mxu1  ;;  %v4946_v62 = vpack.c.bf16 %v5129_v35, %v5128_v28  ;;  %v3986_v21 = vmul.f32 %v5129_v35, %v5129_v35 }
 0x1c5   : > { %v4866_v17 = vpack.c.bf16 %v5095_v37, %v5094_v6  ;;  %v2689_v8 = vpop.f32.mrb[11].mxu0  ;;  %v4014_v45 = vadd.f32 %v4013_v38, %v3983_v36  ;;  %v4941_v56 = vpack.c.bf16 %v3674_v30, %v3671_v25  ;;  %v3946_v44 = vadd.f32 %v3945_v16, %v3674_v30 }
 0x1c6   : > { %v3051_v26 = vadd.f32 %v3050_v22, %v3020_v50  ;;  %v4861_v29 = vpack.c.bf16 %v2689_v8, %v2686_v24  ;;  %v2983_v48 = vadd.f32 %v2982_v15, %v2689_v8  ;;  %v3021_v14 = vmul.f32 %v2689_v8, %v2689_v8  ;;  %5027 = vst [vmem:[%s7362_s8 + $0x18] sm:$0xff] %v4946_v62  }
 0x1c7   : > { %5012 = vst [vmem:[%s7316_s28 + $0x28] sm:$0xff] %v4866_v17   ;;  %v3984_v58 = vmul.f32 %v3674_v30, %v3674_v30  ;;  %v3023_v10 = vmul.f32 %v5095_v37, %v5095_v37  ;;  %5026 = vst [vmem:[%s7362_s8 + $0x10] sm:$0xff] %v4941_v56   ;;  %v3947_v57 = vadd.f32 %v5128_v28, %v3946_v44 }
 0x1c8   : > { %5011 = vst [vmem:[%s7316_s28 + $0x20] sm:$0xff] %v4861_v29   ;;  %v2984_v13 = vadd.f32 %v5094_v6, %v2983_v48  ;;  %v3052_v0 = vadd.f32 %v3051_v26, %v3021_v14 }
 0x1c9   : > { %v4015_v32 = vadd.f32 %v4014_v45, %v3984_v58  ;;  %v3948_v3 = vadd.f32 %v5129_v35, %v3947_v57 }
 0x1ca   : > { %v3053_v49 = vadd.f32 %v3052_v0, %v3022_v59  ;;  %v2985_v53 = vadd.f32 %v5095_v37, %v2984_v13  ;;  %v5132_v11 = vpop.f32.mrb[8].mxu1 }
 0x1cb   : > { %v4016_v42 = vadd.f32 %v4015_v32, %v3985_v46  ;;  %v3687_v31 = vpop.f32.mrb[9].mxu1  ;;  %v3989_v4 = vmul.f32 %v5132_v11, %v5132_v11 }
 0x1cc   : > { %v7370_v40 = vadd.f32 %v3053_v49, %v3023_v10  ;;  %v3987_v41 = vmul.f32 %v3687_v31, %v3687_v31  ;;  %v5133_v63 = vpop.f32.mrb[10].mxu1  ;;  %v3949_v55 = vadd.f32 %v3948_v3, %v3687_v31 }
 0x1cd   : > { %v4017_v47 = vadd.f32 %v4016_v42, %v3986_v21  ;;  %v4956_v39 = vpack.c.bf16 %v5133_v63, %v5132_v11  ;;  %v3690_v18 = vpop.f32.mrb[11].mxu1  ;;  %v3990_v7 = vmul.f32 %v5133_v63, %v5133_v63 }
 0x1ce   : > { %v4951_v33 = vpack.c.bf16 %v3690_v18, %v3687_v31  ;;  %v3988_v23 = vmul.f32 %v3690_v18, %v3690_v18  ;;  %v3950_v22 = vadd.f32 %v3949_v55, %v3690_v18 }
 0x1cf   : > { %v4018_v2 = vadd.f32 %v4017_v47, %v3987_v41  ;;  %5029 = vst [vmem:[%s7362_s8 + $0x28] sm:$0xff] %v4956_v39  }
 0x1d0   : > { %5028 = vst [vmem:[%s7362_s8 + $0x20] sm:$0xff] %v4951_v33   ;;  %v3951_v12 = vadd.f32 %v5132_v11, %v3950_v22 }
 0x1d1   : > { %v4019_v9 = vadd.f32 %v4018_v2, %v3988_v23 }
 0x1d2   : > { %v3952_v43 = vadd.f32 %v5133_v63, %v3951_v12 }
 0x1d3   : > { %v4020_v1 = vadd.f32 %v4019_v9, %v3989_v4 }
 0x1d5   : > { %v5136_v54 = vpop.f32.mrb[12].mxu1  ;;  %v4021_v19 = vadd.f32 %v4020_v1, %v3990_v7 }
 0x1d6   : > { %v3703_v34 = vpop.f32.mrb[13].mxu1  ;;  %v3993_v5 = vmul.f32 %v5136_v54, %v5136_v54 }
 0x1d7   : > { %v3953_v20 = vadd.f32 %v3952_v43, %v3703_v34  ;;  %v3991_v52 = vmul.f32 %v3703_v34, %v3703_v34  ;;  %v5137_v27 = vpop.f32.mrb[14].mxu1 }
 0x1d8   : > { %v4966_v51 = vpack.c.bf16 %v5137_v27, %v5136_v54  ;;  %v3706_v61 = vpop.f32.mrb[15].mxu1  ;;  %v3994_v28 = vmul.f32 %v5137_v27, %v5137_v27 }
 0x1d9   : > { %v4022_v60 = vadd.f32 %v4021_v19, %v3991_v52  ;;  %v4961_v38 = vpack.c.bf16 %v3706_v61, %v3703_v34  ;;  %v3954_v6 = vadd.f32 %v3953_v20, %v3706_v61  ;;  %v3992_v24 = vmul.f32 %v3706_v61, %v3706_v61 }
 0x1da   : > { %5031 = vst [vmem:[%s7362_s8 + $0x38] sm:$0xff] %v4966_v51  }
 0x1db   : > { %5030 = vst [vmem:[%s7362_s8 + $0x30] sm:$0xff] %v4961_v38   ;;  %v3955_v15 = vadd.f32 %v5136_v54, %v3954_v6  ;;  %v4023_v50 = vadd.f32 %v4022_v60, %v3992_v24 }
 0x1dd   : > { %v4024_v37 = vadd.f32 %v4023_v50, %v3993_v5  ;;  %v3956_v25 = vadd.f32 %v5137_v27, %v3955_v15 }
 0x1df   : > { %v5140_v59 = vpop.f32.mrb[16].mxu1  ;;  %v4025_v8 = vadd.f32 %v4024_v37, %v3994_v28 }
 0x1e0   : > { %v3719_v17 = vpop.f32.mrb[17].mxu1  ;;  %v3997_v10 = vmul.f32 %v5140_v59, %v5140_v59 }
 0x1e1   : > { %v3957_v16 = vadd.f32 %v3956_v25, %v3719_v17  ;;  %v3995_v36 = vmul.f32 %v3719_v17, %v3719_v17  ;;  %v5141_v35 = vpop.f32.mrb[18].mxu1 }
 0x1e2   : > { %v5098_v26 = vpop.f32.mrb[12].mxu0  ;;  %v4976_v29 = vpack.c.bf16 %v5141_v35, %v5140_v59  ;;  %v3722_v48 = vpop.f32.mrb[19].mxu1  ;;  %v3998_v42 = vmul.f32 %v5141_v35, %v5141_v35 }
 0x1e3   : > { %v2702_v14 = vpop.f32.mrb[13].mxu0  ;;  %v4026_v30 = vadd.f32 %v4025_v8, %v3995_v36  ;;  %v4971_v46 = vpack.c.bf16 %v3722_v48, %v3719_v17  ;;  %v3958_v45 = vadd.f32 %v3957_v16, %v3722_v48  ;;  %v3996_v0 = vmul.f32 %v3722_v48, %v3722_v48 }
 0x1e4   : > { %v2986_v62 = vadd.f32 %v2985_v53, %v2702_v14  ;;  %v3024_v56 = vmul.f32 %v2702_v14, %v2702_v14  ;;  %v5099_v13 = vpop.f32.mrb[14].mxu0  ;;  %5033 = vst [vmem:[%s7362_s8 + $0x48] sm:$0xff] %v4976_v29   ;;  %v3026_v53 = vmul.f32 %v5098_v26, %v5098_v26 }
 0x1e5   : > { %v4876_v44 = vpack.c.bf16 %v5099_v13, %v5098_v26  ;;  %v2705_v58 = vpop.f32.mrb[15].mxu0  ;;  %5032 = vst [vmem:[%s7362_s8 + $0x40] sm:$0xff] %v4971_v46   ;;  %v3959_v21 = vadd.f32 %v5140_v59, %v3958_v45  ;;  %v4027_v31 = vadd.f32 %v4026_v30, %v3996_v0  ;;  %v3027_v47 = vmul.f32 %v5099_v13, %v5099_v13 }
 0x1e6   : > { %v3055_v49 = vadd.f32 %v7370_v40, %v3024_v56  ;;  %v4871_v57 = vpack.c.bf16 %v2705_v58, %v2702_v14  ;;  %v2987_v32 = vadd.f32 %v2986_v62, %v2705_v58  ;;  %v3025_v11 = vmul.f32 %v2705_v58, %v2705_v58 }
 0x1e7   : > { %5014 = vst [vmem:[%s7316_s28 + $0x38] sm:$0xff] %v4876_v44   ;;  %v3960_v3 = vadd.f32 %v5141_v35, %v3959_v21  ;;  %v4028_v55 = vadd.f32 %v4027_v31, %v3997_v10 }
 0x1e8   : > { %5013 = vst [vmem:[%s7316_s28 + $0x30] sm:$0xff] %v4871_v57   ;;  %v2988_v41 = vadd.f32 %v5098_v26, %v2987_v32  ;;  %v3056_v63 = vadd.f32 %v3055_v49, %v3025_v11 }
 0x1e9   : > { %v5144_v33 = vpop.f32.mrb[20].mxu1  ;;  %v4029_v40 = vadd.f32 %v4028_v55, %v3998_v42 }
 0x1ea   : > { %v3057_v39 = vadd.f32 %v3056_v63, %v3026_v53  ;;  %v2989_v18 = vadd.f32 %v5099_v13, %v2988_v41  ;;  %v3735_v23 = vpop.f32.mrb[21].mxu1  ;;  %v4001_v12 = vmul.f32 %v5144_v33, %v5144_v33 }
 0x1eb   : > { %v3961_v2 = vadd.f32 %v3960_v3, %v3735_v23  ;;  %v3999_v22 = vmul.f32 %v3735_v23, %v3735_v23  ;;  %v5145_v7 = vpop.f32.mrb[22].mxu1 }
 0x1ec   : > { %v7381_v4 = vadd.f32 %v3057_v39, %v3027_v47  ;;  %v4986_v9 = vpack.c.bf16 %v5145_v7, %v5144_v33  ;;  %v3738_v1 = vpop.f32.mrb[23].mxu1  ;;  %v4002_v20 = vmul.f32 %v5145_v7, %v5145_v7 }
 0x1ed   : > { %v4030_v43 = vadd.f32 %v4029_v40, %v3999_v22  ;;  %v4981_v54 = vpack.c.bf16 %v3738_v1, %v3735_v23  ;;  %v3962_v19 = vadd.f32 %v3961_v2, %v3738_v1  ;;  %v4000_v34 = vmul.f32 %v3738_v1, %v3738_v1 }
 0x1ee   : > { %5035 = vst [vmem:[%s7362_s8 + $0x58] sm:$0xff] %v4986_v9  }
 0x1ef   : > { %5034 = vst [vmem:[%s7362_s8 + $0x50] sm:$0xff] %v4981_v54   ;;  %v3963_v52 = vadd.f32 %v5144_v33, %v3962_v19  ;;  %v4031_v27 = vadd.f32 %v4030_v43, %v4000_v34 }
 0x1f1   : > { %v4032_v5 = vadd.f32 %v4031_v27, %v4001_v12  ;;  %v3964_v51 = vadd.f32 %v5145_v7, %v3963_v52 }
 0x1f2   : > { %v5148_v61 = vpop.f32.mrb[24].mxu1 }
 0x1f3   : > { %v3751_v60 = vpop.f32.mrb[25].mxu1  ;;  %v4033_v38 = vadd.f32 %v4032_v5, %v4002_v20  ;;  %v4005_v15 = vmul.f32 %v5148_v61, %v5148_v61 }
 0x1f4   : > { %v3965_v6 = vadd.f32 %v3964_v51, %v3751_v60  ;;  %v4003_v24 = vmul.f32 %v3751_v60, %v3751_v60  ;;  %v5149_v28 = vpop.f32.mrb[26].mxu1 }
 0x1f5   : > { %v4996_v50 = vpack.c.bf16 %v5149_v28, %v5148_v61  ;;  %v3754_v37 = vpop.f32.mrb[27].mxu1  ;;  %v4006_v16 = vmul.f32 %v5149_v28, %v5149_v28 }
 0x1f6   : > { %v4034_v25 = vadd.f32 %v4033_v38, %v4003_v24  ;;  %v4991_v59 = vpack.c.bf16 %v3754_v37, %v3751_v60  ;;  %v3966_v17 = vadd.f32 %v3965_v6, %v3754_v37  ;;  %v4004_v8 = vmul.f32 %v3754_v37, %v3754_v37 }
 0x1f7   : > { %5037 = vst [vmem:[%s7362_s8 + $0x68] sm:$0xff] %v4996_v50  }
 0x1f8   : > { %5036 = vst [vmem:[%s7362_s8 + $0x60] sm:$0xff] %v4991_v59   ;;  %v3967_v36 = vadd.f32 %v5148_v61, %v3966_v17  ;;  %v4035_v35 = vadd.f32 %v4034_v25, %v4004_v8 }
 0x1fa   : > { %v4036_v26 = vadd.f32 %v4035_v35, %v4005_v15  ;;  %v3968_v29 = vadd.f32 %v5149_v28, %v3967_v36 }
 0x1fc   : > { %v4037_v14 = vadd.f32 %v4036_v26, %v4006_v16 }
 0x1fd   : > { %v5152_v48 = vpop.f32.mrb[28].mxu1 }
 0x1fe   : > { %v3767_v30 = vpop.f32.mrb[29].mxu1  ;;  %v4009_v56 = vmul.f32 %v5152_v48, %v5152_v48 }
 0x1ff   : > { %v3969_v46 = vadd.f32 %v3968_v29, %v3767_v30  ;;  %v4007_v45 = vmul.f32 %v3767_v30, %v3767_v30  ;;  %v5153_v62 = vpop.f32.mrb[30].mxu1 }
 0x200   : > { %v5006_v13 = vpack.c.bf16 %v5153_v62, %v5152_v48  ;;  %v3770_v0 = vpop.f32.mrb[31].mxu1  ;;  %v4010_v32 = vmul.f32 %v5153_v62, %v5153_v62 }
 0x201   : > { %v4038_v44 = vadd.f32 %v4037_v14, %v4007_v45  ;;  %v5001_v58 = vpack.c.bf16 %v3770_v0, %v3767_v30  ;;  %v3970_v10 = vadd.f32 %v3969_v46, %v3770_v0  ;;  %v4008_v21 = vmul.f32 %v3770_v0, %v3770_v0 }
 0x202   : > { %v5102_v49 = vpop.f32.mrb[16].mxu0  ;;  %5039 = vst [vmem:[%s7362_s8 + $0x78] sm:$0xff] %v5006_v13  }
 0x203   : > { %v2718_v57 = vpop.f32.mrb[17].mxu0  ;;  %5038 = vst [vmem:[%s7362_s8 + $0x70] sm:$0xff] %v5001_v58   ;;  %v3971_v11 = vadd.f32 %v5152_v48, %v3970_v10  ;;  %v4039_v42 = vadd.f32 %v4038_v44, %v4008_v21  ;;  %v3030_v7 = vmul.f32 %v5102_v49, %v5102_v49 }
 0x204   : > { %v2990_v31 = vadd.f32 %v2989_v18, %v2718_v57  ;;  %v3028_v3 = vmul.f32 %v2718_v57, %v2718_v57  ;;  %v5103_v53 = vpop.f32.mrb[18].mxu0 }
 0x205   : > { %v4886_v41 = vpack.c.bf16 %v5103_v53, %v5102_v49  ;;  %v2721_v63 = vpop.f32.mrb[19].mxu0  ;;  %v3972_v55 = vadd.f32 %v5153_v62, %v3971_v11  ;;  %v4040_v47 = vadd.f32 %v4039_v42, %v4009_v56  ;;  %v3031_v43 = vmul.f32 %v5103_v53, %v5103_v53 }
 0x206   : > { %v3059_v39 = vadd.f32 %v7381_v4, %v3028_v3  ;;  %v4881_v33 = vpack.c.bf16 %v2721_v63, %v2718_v57  ;;  %v2991_v23 = vadd.f32 %v2990_v31, %v2721_v63  ;;  %v3029_v40 = vmul.f32 %v2721_v63, %v2721_v63 }
 0x207   : > { %5016 = vst [vmem:[%s7316_s28 + $0x48] sm:$0xff] %v4886_v41   ;;  %v3973_v2 = vrot.slane %v3972_v55, 4  ;;  %v4041_v22 = vadd.f32 %v4040_v47, %v4010_v32 }
 0x208   : > { %5015 = vst [vmem:[%s7316_s28 + $0x40] sm:$0xff] %v4881_v33   ;;  %v2992_v12 = vadd.f32 %v5102_v49, %v2991_v23  ;;  %v3060_v9 = vadd.f32 %v3059_v39, %v3029_v40 }
 0x209   : > { %v3974_v18 = vadd.f32 %v3973_v2, %v3972_v55  ;;  %v4042_v1 = vrot.slane %v4041_v22, 4 }
 0x20a   : > { %v3061_v54 = vadd.f32 %v3060_v9, %v3030_v7  ;;  %v2993_v19 = vadd.f32 %v5103_v53, %v2992_v12 }
 0x20b   : > { %v3975_v34 = vrot.slane %v3974_v18, 2  ;;  %v4043_v20 = vadd.f32 %v4042_v1, %v4041_v22 }
 0x20c   : > { %v3062_v4 = vadd.f32 %v3061_v54, %v3031_v43 }
 0x20d   : > { %v3976_v52 = vadd.f32 %v3975_v34, %v3974_v18  ;;  %v4044_v27 = vrot.slane %v4043_v20, 2 }
 0x20f   : > { %v3977_v5 = vrot.slane %v3976_v52, 1  ;;  %v4045_v51 = vadd.f32 %v4044_v27, %v4043_v20 }
 0x211   : > { %v3978_v61 = vadd.f32 %v3977_v5, %v3976_v52  ;;  %v4046_v60 = vrot.slane %v4045_v51, 1 }
 0x213   : > { %v4047_v38 = vadd.f32 %v4046_v60, %v4045_v51 }
 0x215   : > { %v4048_v6 = vsel %vm3083_vm15, %v3978_v61, %v4047_v38 }
 0x216   : > { %4049 = vst [vmem:[%s349_s12] sm:$0x3] %v4048_v6 }
 0x222   : > { %v5106_v24 = vpop.f32.mrb[20].mxu0 }
 0x223   : > { %v2734_v28 = vpop.f32.mrb[21].mxu0  ;;  %v3034_v35 = vmul.f32 %v5106_v24, %v5106_v24 }
 0x224   : > { %v2994_v15 = vadd.f32 %v2993_v19, %v2734_v28  ;;  %v3032_v50 = vmul.f32 %v2734_v28, %v2734_v28  ;;  %v5107_v37 = vpop.f32.mrb[22].mxu0 }
 0x225   : > { %v4896_v25 = vpack.c.bf16 %v5107_v37, %v5106_v24  ;;  %v2737_v59 = vpop.f32.mrb[23].mxu0  ;;  %v3035_v48 = vmul.f32 %v5107_v37, %v5107_v37 }
 0x226   : > { %v3063_v17 = vadd.f32 %v3062_v4, %v3032_v50  ;;  %v4891_v8 = vpack.c.bf16 %v2737_v59, %v2734_v28  ;;  %v2995_v16 = vadd.f32 %v2994_v15, %v2737_v59  ;;  %v3033_v36 = vmul.f32 %v2737_v59, %v2737_v59 }
 0x227   : > { %5018 = vst [vmem:[%s7316_s28 + $0x58] sm:$0xff] %v4896_v25  }
 0x228   : > { %5017 = vst [vmem:[%s7316_s28 + $0x50] sm:$0xff] %v4891_v8   ;;  %v2996_v26 = vadd.f32 %v5106_v24, %v2995_v16  ;;  %v3064_v29 = vadd.f32 %v3063_v17, %v3033_v36 }
 0x22a   : > { %v3065_v14 = vadd.f32 %v3064_v29, %v3034_v35  ;;  %v2997_v30 = vadd.f32 %v5107_v37, %v2996_v26 }
 0x22c   : > { %v3066_v46 = vadd.f32 %v3065_v14, %v3035_v48 }
 0x242   : > { %v5110_v45 = vpop.f32.mrb[24].mxu0 }
 0x243   : > { %v2750_v62 = vpop.f32.mrb[25].mxu0  ;;  %v3038_v32 = vmul.f32 %v5110_v45, %v5110_v45 }
 0x244   : > { %v2998_v56 = vadd.f32 %v2997_v30, %v2750_v62  ;;  %v3036_v13 = vmul.f32 %v2750_v62, %v2750_v62  ;;  %v5111_v0 = vpop.f32.mrb[26].mxu0 }
 0x245   : > { %v4906_v44 = vpack.c.bf16 %v5111_v0, %v5110_v45  ;;  %v2753_v58 = vpop.f32.mrb[27].mxu0  ;;  %v3039_v31 = vmul.f32 %v5111_v0, %v5111_v0 }
 0x246   : > { %v3067_v10 = vadd.f32 %v3066_v46, %v3036_v13  ;;  %v4901_v21 = vpack.c.bf16 %v2753_v58, %v2750_v62  ;;  %v2999_v49 = vadd.f32 %v2998_v56, %v2753_v58  ;;  %v3037_v57 = vmul.f32 %v2753_v58, %v2753_v58 }
 0x247   : > { %5020 = vst [vmem:[%s7316_s28 + $0x68] sm:$0xff] %v4906_v44  }
 0x248   : > { %5019 = vst [vmem:[%s7316_s28 + $0x60] sm:$0xff] %v4901_v21   ;;  %v3000_v11 = vadd.f32 %v5110_v45, %v2999_v49  ;;  %v3068_v42 = vadd.f32 %v3067_v10, %v3037_v57 }
 0x24a   : > { %v3069_v3 = vadd.f32 %v3068_v42, %v3038_v32  ;;  %v3001_v53 = vadd.f32 %v5111_v0, %v3000_v11 }
 0x24c   : > { %v3070_v41 = vadd.f32 %v3069_v3, %v3039_v31 }
 0x262   : > { %v5114_v63 = vpop.f32.mrb[28].mxu0 }
 0x263   : > { %v2766_v55 = vpop.f32.mrb[29].mxu0  ;;  %v3042_v9 = vmul.f32 %v5114_v63, %v5114_v63 }
 0x264   : > { %v3002_v47 = vadd.f32 %v3001_v53, %v2766_v55  ;;  %v3040_v39 = vmul.f32 %v2766_v55, %v2766_v55  ;;  %v5115_v33 = vpop.f32.mrb[30].mxu0 }
 0x265   : > { %v4916_v23 = vpack.c.bf16 %v5115_v33, %v5114_v63  ;;  %v2769_v40 = vpop.f32.mrb[31].mxu0  ;;  %v3043_v43 = vmul.f32 %v5115_v33, %v5115_v33 }
 0x266   : > { %v3071_v2 = vadd.f32 %v3070_v41, %v3040_v39  ;;  %v4911_v22 = vpack.c.bf16 %v2769_v40, %v2766_v55  ;;  %v3003_v7 = vadd.f32 %v3002_v47, %v2769_v40  ;;  %v3041_v12 = vmul.f32 %v2769_v40, %v2769_v40 }
 0x267   : > { %5022 = vst [vmem:[%s7316_s28 + $0x78] sm:$0xff] %v4916_v23  }
 0x268   : > { %5021 = vst [vmem:[%s7316_s28 + $0x70] sm:$0xff] %v4911_v22   ;;  %v3004_v18 = vadd.f32 %v5114_v63, %v3003_v7  ;;  %v3072_v1 = vadd.f32 %v3071_v2, %v3041_v12 }
 0x26a   : > { %v3073_v54 = vadd.f32 %v3072_v1, %v3042_v9  ;;  %v3005_v19 = vadd.f32 %v5115_v33, %v3004_v18 }
 0x26c   : > { %v3074_v34 = vadd.f32 %v3073_v54, %v3043_v43 }
 0x27f   : > { %v5118_v20 = vpop.f32.mrb[32].mxu0 }
 0x280   : > { %v2782_v4 = vpop.f32.mrb[33].mxu0 }
 0x281   : > { %v3006_v52 = vadd.f32 %v3005_v19, %v2782_v4  ;;  %v3044_v27 = vmul.f32 %v2782_v4, %v2782_v4  ;;  %v5119_v5 = vpop.f32.mrb[34].mxu0 }
 0x282   : > { %v4926_v51 = vpack.c.bf16 %v5119_v5, %v5118_v20  ;;  %v2785_v61 = vpop.f32.mrb[35].mxu0 }
 0x283   : > { %v3075_v60 = vadd.f32 %v3074_v34, %v3044_v27  ;;  %v4921_v38 = vpack.c.bf16 %v2785_v61, %v2782_v4  ;;  %v3007_v6 = vadd.f32 %v3006_v52, %v2785_v61  ;;  %v3045_v24 = vmul.f32 %v2785_v61, %v2785_v61 }
 0x284   : > { %5024 = vst [vmem:[%s7316_s28 + $0x88] sm:$0xff] %v4926_v51  }
 0x285   : > { %5023 = vst [vmem:[%s7316_s28 + $0x80] sm:$0xff] %v4921_v38   ;;  %v3008_v28 = vrot.slane %v3007_v6, 4  ;;  %v3076_v15 = vadd.f32 %v3075_v60, %v3045_v24 }
 0x287   : > { %v3009_v50 = vadd.f32 %v3008_v28, %v3007_v6  ;;  %v3077_v37 = vrot.slane %v3076_v15, 4 }
 0x289   : > { %v3010_v25 = vrot.slane %v3009_v50, 2  ;;  %v3078_v59 = vadd.f32 %v3077_v37, %v3076_v15 }
 0x28b   : > { %v3011_v17 = vadd.f32 %v3010_v25, %v3009_v50  ;;  %v3079_v8 = vrot.slane %v3078_v59, 2 }
 0x28d   : > { %v3012_v16 = vrot.slane %v3011_v17, 1  ;;  %v3080_v36 = vadd.f32 %v3079_v8, %v3078_v59 }
 0x28f   : > { %v3081_v35 = vrot.slane %v3080_v36, 1  ;;  %v3013_v26 = vadd.f32 %v3012_v16, %v3011_v17 }
 0x291   : > { %v3082_v29 = vadd.f32 %v3081_v35, %v3080_v36 }
 0x293   : > { %v3084_v48 = vsel %vm3083_vm15, %v3013_v26, %v3082_v29 }
 0x294   : > { %3085 = vst [vmem:[%s331_s15] sm:$0x3] %v3084_v48 }
 0x295 PF: > { %s17_s23 = sadd.s32 1, %s5377_s23   ;;  %s7560_s21 = smov %s5373_s22 }
 0x296   : > { %p14_p5 = scmp.ge.s32.totalorder %s17_s23, 4   ;;  %s7561_s22 = smov %s7563_s24 }
 0x298   :  { %16 = sbr.rel (!%p14_p5) target bundleno = 2 (0x2), region = 100 }

// kernel: residual_block.4
= control target key start
LH: loop header
LB: loop body
LE: loop exit
PB: predicated region body
PF: predicated region fallthrough
CT: control target
= control target key end

     0   :  { %s6195_s18 = smov 0   ;;  %s6197_s19 = smov 0   ;;  %s7662_s0 = inlined_call_operand.vmem [shape: bf16[2,1,18,16,128], index: 0, kind: input, shape index: {}]   ;;  %s7663_s1 = inlined_call_operand.vmem [shape: bf16[3,384,128], index: 1, kind: input, shape index: {}]   ;;  %s7664_s2 = inlined_call_operand.vmem [shape: f32[1,128], index: 2, kind: input, shape index: {}]   ;;  %s7665_s3 = inlined_call_operand.vmem [shape: f32[1,128], index: 3, kind: input, shape index: {}]   ;;  %s7666_s4 = inlined_call_operand.vmem [shape: f32[2,16,16,128], index: 4, kind: output, shape index: {0}]   ;;  %s7667_s5 = inlined_call_operand.vmem [shape: f32[2,1,2,128], index: 5, kind: output, shape index: {1}]  }
   0x1   :  { %s6199_s20 = smov 0  }
   0x2 LB: > { %s28_s21 = sadd.s32 1, %s6158_s19  ;;  %p4646_p0 = scmp.ge.s32.totalorder %s6162_s20, 1  ;;  %s6162_s20 = sphi %s6199_s20, %s16_s20   ;;  %s6158_s19 = sphi %s6197_s19, %s7683_s19   ;;  %s6154_s18 = sphi %s6195_s18, %s7682_s18  }
   0x3   : > { %p30_p1 = scmp.ge.s32.totalorder %s28_s21, 2  ;;  %p212_p2 = scmp.lt.s32.totalorder %s6162_s20, 3 }
   0x5   : > { %s7685_s21 = smov (%p30_p1, %s28_s21), 0  ;;  %p213_p3 = pnand %p4646_p0, %p212_p2 }
   0x7   : > { %216 = sbr.rel (%p213_p3) target bundleno = 659 (0x293), region = 36 }
   0xe   : > { %v6218_v0 = vld [vmem:[%s7663_s1 + $0x140] sm:$0xff]   ;;  %v6231_v3 = vld [vmem:[%s7663_s1 + $0x148] sm:$0xff]   ;;  %v6243_v6 = vld [vmem:[%s7663_s1 + $0x150] sm:$0xff]   ;;  %p256_p4 = scmp.lt.s32.totalorder %s6154_s18, 1  ;;  %vm949_vm0 = vcmask 1043456   ;;  %vm956_vm4 = vcmask 1040384  }
   0xf   : > { %v5884_v1 = vld [vmem:[%s7663_s1 + $0x100] sm:$0xff]   ;;  %5681 = vmatprep.subr.bf16.mxu1 %v6218_v0  ;;  %v5887_v4 = vld [vmem:[%s7663_s1 + $0x108] sm:$0xff]   ;;  %v5890_v7 = vld [vmem:[%s7663_s1 + $0x110] sm:$0xff]   ;;  %vm586_vm1 = vsmask.f32 256  ;;  %vm1665_vm9 = vcmask 1046528  }
  0x10   : > { %v5885_v2 = vld [vmem:[%s7663_s1 + $0xc0] sm:$0xff]   ;;  %5689 = vmatpush3.bf16.msra.mxu1 %v6218_v0  ;;  %5129 = vmatprep.subr.bf16.mxu0 %v5884_v1  ;;  %v5888_v5 = vld [vmem:[%s7663_s1 + $0xc8] sm:$0xff]   ;;  %v5891_v8 = vld [vmem:[%s7663_s1 + $0xd0] sm:$0xff]   ;;  %s7687_s18 = smov (!%p256_p4, %s6154_s18), 1  ;;  %vm587_vm2 = vsmask.f32 4368 }
  0x11   : > { %5130 = vmatpush3.bf16.msra.mxu0 %v5885_v2  ;;  %5682 = vmatprep.subr.bf16.mxu1 %v6231_v3  ;;  %v6257_v9 = vld [vmem:[%s7663_s1 + $0x158] sm:$0xff]   ;;  %v6270_v12 = vld [vmem:[%s7663_s1 + $0x160] sm:$0xff]   ;;  %v6286_v15 = vld [vmem:[%s7663_s1 + $0x168] sm:$0xff]   ;;  %s5857_s8 = smul.u32 144, %s7687_s18  ;;  %vm950_vm3 = vsmask.f32 7938 }
  0x12   : > { %5131 = vmatprep.subr.bf16.mxu0 %v5887_v4  ;;  %v5893_v10 = vld [vmem:[%s7663_s1 + $0x118] sm:$0xff]   ;;  %v5896_v13 = vld [vmem:[%s7663_s1 + $0x120] sm:$0xff]   ;;  %v5899_v16 = vld [vmem:[%s7663_s1 + $0x128] sm:$0xff]   ;;  %vm1408_vm10 = vsmask.f32 7424  ;;  %s5003_s25 = sshll.u32 %s7687_s18, 8 }
  0x13   : > { %v5894_v11 = vld [vmem:[%s7663_s1 + $0xd8] sm:$0xff]   ;;  %v5897_v14 = vld [vmem:[%s7663_s1 + $0xe0] sm:$0xff]   ;;  %v5900_v17 = vld [vmem:[%s7663_s1 + $0xe8] sm:$0xff]   ;;  %s6303_s17 = scalar_lea.vmem %s7662_s0, %s5857_s8  ;;  %s7582_s28 = scalar_lea.vmem %s7666_s4, %s5003_s25 }
  0x14   : > { %5690 = vmatpush3.bf16.msra.mxu1 %v6231_v3  ;;  %v5901_v18 = vld [vmem:[%s7663_s1 + $0x170] sm:$0xff]   ;;  %v6312_v20 = vld [vmem:[%s7664_s2] ss:$0 sm:$0xff]  ;;  %v5120_v21 = vld [vmem:[%s6303_s17 + $0x48] sm:$0xff]   ;;  %s4650_s29 = sshll.u32 %s7687_s18, 1 }
  0x15   : > { %5132 = vmatpush3.bf16.msra.mxu0 %v5888_v5  ;;  %5683 = vmatprep.subr.bf16.mxu1 %v6243_v6  ;;  %v5902_v19 = vld [vmem:[%s7663_s1 + $0x130] sm:$0xff]   ;;  %v5904_v23 = vld [vmem:[%s7663_s1 + $0x178] sm:$0xff]   ;;  %v5078_v24 = vunpack.c.l.bf16 %v5120_v21  ;;  %v5079_v25 = vunpack.c.h.bf16 %v5120_v21  ;;  %v6327_v27 = vld [vmem:[%s7665_s3] ss:$0 sm:$0xff]  ;;  %s282_s7 = scalar_lea.vmem %s7667_s5, %s4650_s29 }
  0x16   : > { %5133 = vmatprep.subr.bf16.mxu0 %v5890_v7  ;;  %v5903_v22 = vld [vmem:[%s7663_s1 + $0xf0] sm:$0xff]   ;;  %v5905_v26 = vld [vmem:[%s7663_s1 + $0x138] sm:$0xff]   ;;  %v5913_v36 = vld [vmem:[%s7663_s1 + $0x40] sm:$0xff]  }
  0x17   : > { %v382_v28 = vmul.f32 %v5078_v24, %v6312_v20  ;;  %v383_v29 = vmul.f32 %v5079_v25, %v6312_v20  ;;  %v5121_v30 = vld [vmem:[%s6303_s17 + $0x50] sm:$0xff]   ;;  %v5909_v33 = vld [vmem:[%s7663_s1 + $0xf8] sm:$0xff]   ;;  %v5112_v41 = vld [vmem:[%s6303_s17 + $0x8] sm:$0xff]  }
  0x18   : > { %5691 = vmatpush3.bf16.msra.mxu1 %v6243_v6  ;;  %v5082_v34 = vunpack.c.l.bf16 %v5121_v30  ;;  %v5083_v35 = vunpack.c.h.bf16 %v5121_v30  ;;  %v5046_v42 = vunpack.c.l.bf16 %v5112_v41  ;;  %v5047_v43 = vunpack.c.h.bf16 %v5112_v41  ;;  %v5122_v50 = vld [vmem:[%s6303_s17 + $0x58] sm:$0xff]   ;;  %vm6353_vm5 = vmor %vm586_vm1, %vm587_vm2  ;;  %v1017_v62 = vld [vmem:[#allocation2 + $0x6c] sm:$0xf] }
  0x19   : > { %5134 = vmatpush3.bf16.msra.mxu0 %v5891_v8  ;;  %5684 = vmatprep.subr.bf16.mxu1 %v6257_v9  ;;  %v424_v31 = vadd.f32 %v6327_v27, %v382_v28  ;;  %v425_v32 = vadd.f32 %v6327_v27, %v383_v29  ;;  %v1021_v63 = vld [vmem:[#allocation2 + $0x74] sm:$0x1]  ;;  %v5086_v1 = vunpack.c.l.bf16 %v5122_v50  ;;  %v5087_v2 = vunpack.c.h.bf16 %v5122_v50  ;;  %vm6359_vm6 = vmand %vm956_vm4, %vm586_vm1  ;;  %v1028_v28 = vld [vmem:[#allocation2 + $0x80] sm:$0x1] }
  0x1a   : > { %5135 = vmatprep.subr.bf16.mxu0 %v5893_v10  ;;  %v384_v39 = vmul.f32 %v5082_v34, %v6312_v20  ;;  %v385_v40 = vmul.f32 %v5083_v35, %v6312_v20  ;;  %v366_v48 = vmul.f32 %v5046_v42, %v6312_v20  ;;  %v367_v49 = vmul.f32 %v5047_v43, %v6312_v20  ;;  %vm6365_vm7 = vmand %vm949_vm0, %vm950_vm3  ;;  %v5123_v34 = vld [vmem:[%s6303_s17 + $0x60] sm:$0xff]  }
  0x1b   : > { %v460_v37 = vmax.f32 %v424_v31, 0.0  ;;  %v461_v38 = vmax.f32 %v425_v32, 0.0  ;;  %vm6389_vm8 = vmand %vm956_vm4, %vm950_vm3  ;;  %v6050_v4 = vld [vmem:[%s7663_s1 + $0x220] sm:$0xff]  }
  0x1c   : > { %5692 = vmatpush3.bf16.msra.mxu1 %v6257_v9  ;;  %v426_v46 = vadd.f32 %v6327_v27, %v384_v39  ;;  %v427_v47 = vadd.f32 %v6327_v27, %v385_v40  ;;  %v408_v57 = vadd.f32 %v6327_v27, %v366_v48  ;;  %v409_v58 = vadd.f32 %v6327_v27, %v367_v49 }
  0x1d   : > { %5136 = vmatpush3.bf16.msra.mxu0 %v5894_v11  ;;  %5685 = vmatprep.subr.bf16.mxu1 %v6270_v12  ;;  %v5022_v44 = vpack.c.bf16 %v460_v37, %v460_v37  ;;  %v5023_v45 = vpack.c.bf16 %v461_v38, %v461_v38  ;;  %v387_v37 = vmul.f32 %v5087_v2, %v6312_v20  ;;  %v5090_v38 = vunpack.c.l.bf16 %v5123_v34 }
  0x1e   : > { %5137 = vmatprep.subr.bf16.mxu0 %v5896_v13  ;;  %v462_v55 = vmax.f32 %v426_v46, 0.0  ;;  %v463_v56 = vmax.f32 %v427_v47, 0.0  ;;  %v444_v8 = vmax.f32 %v408_v57, 0.0  ;;  %v445_v10 = vmax.f32 %v409_v58, 0.0  ;;  %v5113_v47 = vld [vmem:[%s6303_s17 + $0x10] sm:$0xff]  }
  0x1f   : > { %v743_v51 = vshrl.u32 %v5022_v44, 16  ;;  %v746_v52 = vshll.u32 %v5022_v44, 16  ;;  %v751_v53 = vshrl.u32 %v5023_v45, 16  ;;  %v754_v54 = vshll.u32 %v5023_v45, 16  ;;  %v965_v57 = vld [vmem:[#allocation2 + $0x14] sm:$0x1] }
  0x20   : > { %5693 = vmatpush3.bf16.msra.mxu1 %v6270_v12  ;;  %v5024_v5 = vpack.c.bf16 %v462_v55, %v462_v55  ;;  %v5025_v7 = vpack.c.bf16 %v463_v56, %v463_v56  ;;  %v5006_v29 = vpack.c.bf16 %v444_v8, %v444_v8  ;;  %v5007_v32 = vpack.c.bf16 %v445_v10, %v445_v10 }
  0x21   : > { %5138 = vmatpush3.bf16.msra.mxu0 %v5897_v14  ;;  %5686 = vmatprep.subr.bf16.mxu1 %v6286_v15  ;;  %v745_v60 = vrot.slane %v743_v51, 7  ;;  %v753_v61 = vrot.slane %v751_v53, 7  ;;  %v961_v51 = vld [vmem:[#allocation2 + $0xc] sm:$0xf] }
  0x22   : > { %5139 = vmatprep.subr.bf16.mxu0 %v5899_v16  ;;  %v768_v21 = vshrl.u32 %v5025_v7, 16  ;;  %v607_v35 = vshrl.u32 %v5006_v29, 16  ;;  %v615_v44 = vshrl.u32 %v5007_v32, 16  ;;  %v618_v45 = vshll.u32 %v5007_v32, 16 }
  0x23   : > { %v748_v11 = vor.u32 %v746_v52, %v745_v60  ;;  %v749_v13 = vrot.slane %v745_v60, 4  ;;  %v756_v14 = vor.u32 %v754_v54, %v753_v61  ;;  %v758_v16 = vrot.slane %v753_v61, 4 }
  0x24   : > { %5694 = vmatpush3.bf16.msra.mxu1 %v6286_v15  ;;  %v770_v31 = vrot.slane %v768_v21, 7  ;;  %v609_v43 = vrot.slane %v607_v35, 7  ;;  %v429_v52 = vadd.f32 %v6327_v27, %v387_v37  ;;  %v617_v56 = vrot.slane %v615_v44, 7 }
  0x25   : > { %5140 = vmatpush3.bf16.msra.mxu0 %v5900_v17  ;;  %5687 = vmatprep.subr.bf16.mxu1 %v5901_v18  ;;  %v1018_v24 = vsel %vm6365_vm7, %v748_v11, %v1017_v62  ;;  %v1022_v25 = vsel %vm6359_vm6, %v758_v16, %v1021_v63  ;;  %v5091_v61 = vunpack.c.h.bf16 %v5123_v34  ;;  %v388_v62 = vmul.f32 %v5090_v38, %v6312_v20 }
  0x26   : > { %5141 = vmatprep.subr.bf16.mxu0 %v5902_v19  ;;  %v763_v19 = vshll.u32 %v5024_v5, 16  ;;  %1019 = vst [vmem:[#allocation2 + $0x6c] sm:$0xf] %v1018_v24  ;;  %1023 = vst [vmem:[#allocation2 + $0x74] sm:$0x1] %v1022_v25  ;;  %v775_v42 = vrot.slane %v770_v31, 4  ;;  %v5050_v63 = vunpack.c.l.bf16 %v5113_v47  ;;  %v5051_v11 = vunpack.c.h.bf16 %v5113_v47 }
  0x27   : > { %v613_v55 = vrot.slane %v609_v43, 4  ;;  %v465_v60 = vmax.f32 %v429_v52, 0.0 }
  0x28   : > { %5695 = vmatpush3.bf16.msra.mxu1 %v5901_v18  ;;  %v760_v18 = vshrl.u32 %v5024_v5, 16  ;;  %v1029_v50 = vsel %vm6359_vm6, %v775_v42, %v1028_v28  ;;  %v1031_v28 = vld [vmem:[#allocation2 + $0x84] sm:$0xf]  ;;  %v368_v34 = vmul.f32 %v5050_v63, %v6312_v20 }
  0x29   : > { %5142 = vmatpush3.bf16.msra.mxu0 %v5903_v22  ;;  %5688 = vmatprep.subr.bf16.mxu1 %v5904_v23  ;;  %v771_v22 = vshll.u32 %v5025_v7, 16  ;;  %1030 = vst [vmem:[#allocation2 + $0x80] sm:$0x1] %v1029_v50  ;;  %v620_v7 = vor.u32 %v618_v45, %v617_v56 }
  0x2a   : > { %5143 = vmatprep.subr.bf16.mxu0 %v5905_v26  ;;  %v1024_v26 = vld [vmem:[#allocation2 + $0x78] sm:$0xf]  ;;  %v762_v30 = vrot.slane %v760_v18, 7  ;;  %v622_v18 = vrot.slane %v617_v56, 4 }
  0x2b   : > { %v773_v41 = vor.u32 %v771_v22, %v770_v31  ;;  %v621_v21 = vsel %vm6353_vm5, %v613_v55, %v620_v7  ;;  %v410_v55 = vadd.f32 %v6327_v27, %v368_v34 }
  0x2c   : > { %5696 = vmatpush3.bf16.msra.mxu1 %v5904_v23  ;;  %v757_v23 = vsel %vm6353_vm5, %v749_v13, %v756_v14  ;;  %v765_v39 = vor.u32 %v763_v19, %v762_v30  ;;  %v766_v40 = vrot.slane %v762_v30, 4  ;;  %v5027_v19 = vpack.c.bf16 %v465_v60, %v465_v60  ;;  %964 = vst [vmem:[#allocation2 + $0x10] sm:$0xf] %v621_v21  ;;  %v5124_v30 = vld [vmem:[%s6303_s17 + $0x68] sm:$0xff]   ;;  %v1038_v21 = vld [vmem:[#allocation2 + $0x90] sm:$0xf] }
  0x2d   : > { %5144 = vmatpush3.bf16.msra.mxu0 %v5909_v33  ;;  %5265 = vmatprep.subr.bf16.mxu1 %v5913_v36  ;;  %1020 = vst [vmem:[#allocation2 + $0x70] sm:$0xf] %v757_v23  ;;  %v386_v33 = vmul.f32 %v5086_v1, %v6312_v20  ;;  %v610_v36 = vshll.u32 %v5006_v29, 16  ;;  %v1107_v1 = vld [vmem:[#allocation2 + $0x6c] sm:$0x1]  ;;  %v966_v25 = vsel %vm6359_vm6, %v622_v18, %v965_v57  ;;  %v5095_v45 = vunpack.c.h.bf16 %v5124_v30 }
  0x2e   : > { %5537 = vmatprep.subr.bf16.mxu0 %v6218_v0  ;;  %v774_v48 = vsel %vm6353_vm5, %v766_v40, %v773_v41  ;;  %v1025_v49 = vsel %vm6365_vm7, %v765_v39, %v1024_v26  ;;  %v1162_v2 = vld [vmem:[#allocation2 + $0x74] sm:$0x1]  ;;  %v1108_v13 = vsel %vm6359_vm6, 0, %v1107_v1  ;;  %v1835_v16 = vld [vmem:[#allocation2 + $0x6c] sm:$0xe]  ;;  %v785_v26 = vshrl.u32 %v5027_v19, 16 }
  0x2f   : > { %v428_v46 = vadd.f32 %v6327_v27, %v386_v33  ;;  %1026 = vst [vmem:[#allocation2 + $0x78] sm:$0xf] %v1025_v49  ;;  %1027 = vst [vmem:[#allocation2 + $0x7c] sm:$0xf] %v774_v48  ;;  %v612_v54 = vor.u32 %v610_v36, %v609_v43  ;;  %v1163_v14 = vsel %vm6389_vm8, 0, %v1162_v2  ;;  %v389_v29 = vmul.f32 %v5091_v61, %v6312_v20 }
  0x30   : > { %1109 = vst [vmem:[#allocation2 + $0x6c] sm:$0x1] %v1108_v13  ;;  %1164 = vst [vmem:[#allocation2 + $0x74] sm:$0x1] %v1163_v14  ;;  %v788_v32 = vshll.u32 %v5027_v19, 16  ;;  %v430_v33 = vadd.f32 %v6327_v27, %v388_v62  ;;  %v369_v39 = vmul.f32 %v5051_v11, %v6312_v20  ;;  %v5094_v40 = vunpack.c.l.bf16 %v5124_v30 }
  0x31   : > { %v464_v58 = vmax.f32 %v428_v46, 0.0  ;;  %v962_v8 = vsel %vm6365_vm7, %v612_v54, %v961_v51  ;;  %967 = vst [vmem:[#allocation2 + $0x14] sm:$0x1] %v966_v25  ;;  %v1165_v36 = vld [vmem:[#allocation2 + $0x80] sm:$0x1]  ;;  %v431_v38 = vadd.f32 %v6327_v27, %v389_v29  ;;  %v787_v47 = vrot.slane %v785_v26, 7 }
  0x32   : > { %963 = vst [vmem:[#allocation2 + $0xc] sm:$0xf] %v962_v8  ;;  %v1166_v42 = vsel %vm6389_vm8, 0, %v1165_v36  ;;  %v466_v48 = vmax.f32 %v430_v33, 0.0  ;;  %v411_v61 = vadd.f32 %v6327_v27, %v369_v39  ;;  %v390_v2 = vmul.f32 %v5094_v40, %v6312_v20 }
  0x33   : > { %v5026_v10 = vpack.c.bf16 %v464_v58, %v464_v58  ;;  %1167 = vst [vmem:[#allocation2 + $0x80] sm:$0x1] %v1166_v42  ;;  %v467_v49 = vmax.f32 %v431_v38, 0.0  ;;  %v790_v57 = vor.u32 %v788_v32, %v787_v47  ;;  %v1035_v58 = vld [vmem:[#allocation2 + $0x8c] sm:$0x1]  ;;  %v792_v63 = vrot.slane %v787_v47, 4 }
  0x34   : > { %v1796_v5 = vld [vmem:[#allocation2 + $0x70] sm:$0xf]  ;;  %v5028_v60 = vpack.c.bf16 %v466_v48, %v466_v48  ;;  %v446_v13 = vmax.f32 %v410_v55, 0.0  ;;  %v447_v25 = vmax.f32 %v411_v61, 0.0  ;;  %v6433_v33 = vadd.f32 %v6327_v27, %v390_v2 }
  0x35   : > { %v777_v22 = vshrl.u32 %v5026_v10, 16  ;;  %v780_v23 = vshll.u32 %v5026_v10, 16  ;;  %v4777_v24 = vcombine.low %v1835_v16, %v1796_v5  ;;  %v5029_v1 = vpack.c.bf16 %v467_v49, %v467_v49 }
  0x36   : > { %v1110_v35 = vld [vmem:[#allocation2 + $0x78] sm:$0x1]  ;;  %v1798_v37 = vld [vmem:[#allocation2 + $0x7c] sm:$0xf]  ;;  %v1836_v43 = vld [vmem:[#allocation2 + $0x78] sm:$0xe]  ;;  %v391_v5 = vmul.f32 %v5095_v45, %v6312_v20  ;;  %v1036_v18 = vsel %vm6359_vm6, %v792_v63, %v1035_v58  ;;  %v5008_v26 = vpack.c.bf16 %v446_v13, %v446_v13 }
  0x37   : > { %v779_v31 = vrot.slane %v777_v22, 7  ;;  %v1111_v41 = vsel %vm6359_vm6, 0, %v1110_v35  ;;  %v2267_v50 = vrot.slane %v4777_v24, 1  ;;  %v4778_v51 = vcombine.low %v1836_v43, %v1798_v37  ;;  %v5907_v62 = vld [vmem:[#allocation2 + $0x74] ss:$0 sps:$4 sm:$0x11]  }
  0x38   : > { %1112 = vst [vmem:[#allocation2 + $0x78] sm:$0x1] %v1111_v41  ;;  %v1138_v7 = vld [vmem:[#allocation2 + $0x14] sm:$0x1]  ;;  %v794_v10 = vshrl.u32 %v5028_v60, 16  ;;  %v797_v11 = vshll.u32 %v5028_v60, 16  ;;  %v5009_v37 = vpack.c.bf16 %v447_v25, %v447_v25  ;;  %v433_v38 = vadd.f32 %v6327_v27, %v391_v5 }
  0x39   : > { %v782_v44 = vor.u32 %v780_v23, %v779_v31  ;;  %v783_v46 = vrot.slane %v779_v31, 4  ;;  %v1083_v52 = vld [vmem:[#allocation2 + $0xc] sm:$0x1]  ;;  %v2268_v14 = vrot.slane %v5907_v62, 1  ;;  %v1139_v16 = vsel %vm6389_vm8, 0, %v1138_v7 }
  0x3a   : > { %v1084_v56 = vsel %vm6359_vm6, 0, %v1083_v52  ;;  %v802_v19 = vshrl.u32 %v5029_v1, 16  ;;  %1140 = vst [vmem:[#allocation2 + $0x14] sm:$0x1] %v1139_v16  ;;  %1037 = vst [vmem:[#allocation2 + $0x8c] sm:$0x1] %v1036_v18 }
  0x3b   : > { %v1032_v54 = vsel %vm6365_vm7, %v782_v44, %v1031_v28  ;;  %1085 = vst [vmem:[#allocation2 + $0xc] sm:$0x1] %v1084_v56  ;;  %v791_v8 = vsel %vm6353_vm5, %v783_v46, %v790_v57  ;;  %v796_v22 = vrot.slane %v794_v10, 7  ;;  %v805_v23 = vshll.u32 %v5029_v1, 16  ;;  %v1042_v24 = vld [vmem:[#allocation2 + $0x98] sm:$0x1] }
  0x3c   : > { %1033 = vst [vmem:[#allocation2 + $0x84] sm:$0xf] %v1032_v54  ;;  %1034 = vst [vmem:[#allocation2 + $0x88] sm:$0xf] %v791_v8  ;;  %v6429_v28 = vld [vmem:[%s6303_s17 + $0x70] sm:$0xff]   ;;  %v2269_v29 = vsel %vm1665_vm9, %v2267_v50, %v2268_v14  ;;  %v2270_v30 = vrot.slane %v4778_v51, 1 }
  0x3d   : > { %v1780_v31 = vld [vmem:[#allocation2 + $0x10] sm:$0xf]  ;;  %v804_v32 = vrot.slane %v802_v19, 7  ;;  %5569 = vmatprep.mubr.bf16.mxu1 %v2269_v29  ;;  %v5911_v34 = vld [vmem:[#allocation2 + $0x80] ss:$0 sps:$4 sm:$0x11]   ;;  %v799_v35 = vor.u32 %v797_v11, %v796_v22  ;;  %v5098_v44 = vunpack.c.l.bf16 %v6429_v28  ;;  %v5099_v13 = vunpack.c.h.bf16 %v6429_v28 }
  0x3e   : > { %v800_v36 = vrot.slane %v796_v22, 4  ;;  %v624_v43 = vshrl.u32 %v5008_v26, 16  ;;  %v2271_v45 = vrot.slane %v5911_v34, 1  ;;  %v5914_v46 = vld [vmem:[%s7663_s1] sm:$0xff]   ;;  %v627_v50 = vshll.u32 %v5008_v26, 16  ;;  %v5917_v54 = vld [vmem:[%s7663_s1 + $0x48] sm:$0xff]  }
  0x3f   : > { %v807_v41 = vor.u32 %v805_v23, %v804_v32  ;;  %v809_v42 = vrot.slane %v804_v32, 4  ;;  %v1039_v49 = vsel %vm6365_vm7, %v799_v35, %v1038_v21  ;;  %v968_v51 = vld [vmem:[#allocation2 + $0x18] sm:$0xf]  ;;  %v5918_v60 = vld [vmem:[%s7663_s1 + $0x8] sm:$0xff]   ;;  %v632_v62 = vshrl.u32 %v5009_v37, 16  ;;  %v5925_v8 = vld [vmem:[%s7663_s1 + $0x50] sm:$0xff]  }
  0x40   : > { %1040 = vst [vmem:[#allocation2 + $0x90] sm:$0xf] %v1039_v49  ;;  %v626_v57 = vrot.slane %v624_v43, 7  ;;  %v2272_v58 = vsel %vm1665_vm9, %v2270_v30, %v2271_v45  ;;  %v635_v63 = vshll.u32 %v5009_v37, 16  ;;  %v468_v1 = vmax.f32 %v6433_v33, 0.0  ;;  %v5114_v26 = vld [vmem:[%s6303_s17 + $0x18] sm:$0xff]  }
  0x41   : > { %v808_v55 = vsel %vm6353_vm5, %v800_v36, %v807_v41  ;;  %v1043_v56 = vsel %vm6359_vm6, %v809_v42, %v1042_v24  ;;  %5570 = vmatmul.mubr.bf16.vlgmr.msra.gmra.mrb[0].mxu1 %v2272_v58  ;;  %v5916_v2 = vld [vmem:[#allocation2 + $0x14] ss:$0 sps:$4 sm:$0x11]   ;;  %v972_v11 = vld [vmem:[#allocation2 + $0x20] sm:$0x1]  ;;  %v634_v19 = vrot.slane %v632_v62, 7  ;;  %v392_v36 = vmul.f32 %v5098_v44, %v6312_v20 }
  0x42   : > { %v1779_v47 = vld [vmem:[#allocation2 + $0xc] sm:$0xf]  ;;  %1041 = vst [vmem:[#allocation2 + $0x94] sm:$0xf] %v808_v55  ;;  %1044 = vst [vmem:[#allocation2 + $0x98] sm:$0x1] %v1043_v56  ;;  %v629_v10 = vor.u32 %v627_v50, %v626_v57  ;;  %5266 = vmatpush3.bf16.msra.mxu1 %v5914_v46  ;;  %v5030_v32 = vpack.c.bf16 %v468_v1, %v468_v1  ;;  %v393_v37 = vmul.f32 %v5099_v13, %v6312_v20 }
  0x43   : > { %v1113_v39 = vld [vmem:[#allocation2 + $0x84] sm:$0x1]  ;;  %v1837_v40 = vld [vmem:[#allocation2 + $0x84] sm:$0xe]  ;;  %v6444_v52 = vcombine.low %v1779_v47, %v1780_v31  ;;  %v1800_v61 = vld [vmem:[#allocation2 + $0x88] sm:$0xf]  ;;  %5267 = vmatprep.subr.bf16.mxu1 %v5917_v54  ;;  %v637_v30 = vor.u32 %v635_v63, %v634_v19  ;;  %v5054_v43 = vunpack.c.l.bf16 %v5114_v26  ;;  %v434_v49 = vadd.f32 %v6327_v27, %v392_v36 }
  0x44   : > { %v1114_v48 = vsel %vm6359_vm6, 0, %v1113_v39  ;;  %v4779_v7 = vcombine.low %v1837_v40, %v1800_v61  ;;  %v1168_v16 = vld [vmem:[#allocation2 + $0x8c] sm:$0x1]  ;;  %v630_v18 = vrot.slane %v626_v57, 4  ;;  %v469_v21 = vmax.f32 %v433_v38, 0.0  ;;  %v5926_v28 = vld [vmem:[%s7663_s1 + $0x10] sm:$0xff]  }
  0x45   : > { %1115 = vst [vmem:[#allocation2 + $0x84] sm:$0x1] %v1114_v48  ;;  %v1988_v5 = vshrl.u32 %v6444_v52, 16  ;;  %v1990_v14 = vshll.u32 %v6444_v52, 16  ;;  %v1995_v22 = vshll.u32 %v5916_v2, 16  ;;  %v1169_v23 = vsel %vm6389_vm8, 0, %v1168_v16 }
  0x46   : > { %v6466_v24 = vrot.slane %v4779_v7, 1  ;;  %v969_v25 = vsel %vm6365_vm7, %v629_v10, %v968_v51  ;;  %1170 = vst [vmem:[#allocation2 + $0x8c] sm:$0x1] %v1169_v23  ;;  %v639_v31 = vrot.slane %v634_v19, 4  ;;  %v5929_v34 = vld [vmem:[%s7663_s1 + $0x58] sm:$0xff]   ;;  %v5031_v35 = vpack.c.bf16 %v469_v21, %v469_v21  ;;  %5268 = vmatpush3.bf16.msra.mxu1 %v5918_v60  ;;  %v5937_v2 = vld [vmem:[%s7663_s1 + $0x60] sm:$0xff]  }
  0x47   : > { %v1992_v29 = vrot.slane %v1990_v14, 1  ;;  %970 = vst [vmem:[#allocation2 + $0x18] sm:$0xf] %v969_v25  ;;  %v1997_v33 = vrot.slane %v1995_v22, 1  ;;  %v1116_v39 = vld [vmem:[#allocation2 + $0x90] sm:$0x1]  ;;  %v638_v41 = vsel %vm6353_vm5, %v630_v18, %v637_v30  ;;  %5269 = vmatprep.subr.bf16.mxu1 %v5925_v8  ;;  %v435_v60 = vadd.f32 %v6327_v27, %v393_v37 }
  0x48   : > { %v1838_v40 = vld [vmem:[#allocation2 + $0x90] sm:$0xe]  ;;  %v973_v42 = vsel %vm6359_vm6, %v639_v31, %v972_v11  ;;  %v6484_v45 = vld [vmem:[%s6303_s17 + $0x78] sm:$0xff]   ;;  %v1117_v46 = vsel %vm6359_vm6, 0, %v1116_v39  ;;  %971 = vst [vmem:[#allocation2 + $0x1c] sm:$0xf] %v638_v41  ;;  %v370_v7 = vmul.f32 %v5054_v43, %v6312_v20 }
  0x49   : > { %v1993_v38 = vor.u32 %v1992_v29, %v1988_v5  ;;  %v1171_v47 = vld [vmem:[#allocation2 + $0x98] sm:$0x1]  ;;  %v1802_v44 = vld [vmem:[#allocation2 + $0x94] sm:$0xf]  ;;  %974 = vst [vmem:[#allocation2 + $0x20] sm:$0x1] %v973_v42  ;;  %v5055_v5 = vunpack.c.h.bf16 %v5114_v26  ;;  %v5102_v11 = vunpack.c.l.bf16 %v6484_v45  ;;  %v5103_v13 = vunpack.c.h.bf16 %v6484_v45 }
  0x4a   : > { %v811_v48 = vshrl.u32 %v5030_v32, 16  ;;  %1118 = vst [vmem:[#allocation2 + $0x90] sm:$0x1] %v1117_v46  ;;  %v1172_v51 = vsel %vm6389_vm8, 0, %v1171_v47  ;;  %v4780_v54 = vcombine.low %v1838_v40, %v1802_v44  ;;  %v814_v55 = vshll.u32 %v5030_v32, 16  ;;  %5270 = vmatpush3.bf16.msra.mxu1 %v5926_v28  ;;  %v5930_v62 = vld [vmem:[%s7663_s1 + $0x18] sm:$0xff]  }
  0x4b   : > { %v1998_v50 = vsel %vm1408_vm10, %v1993_v38, %v1997_v33  ;;  %1173 = vst [vmem:[#allocation2 + $0x98] sm:$0x1] %v1172_v51  ;;  %v819_v57 = vshrl.u32 %v5031_v35, 16  ;;  %v822_v58 = vshll.u32 %v5031_v35, 16  ;;  %v1045_v63 = vld [vmem:[#allocation2 + $0x9c] sm:$0xf]  ;;  %5271 = vmatprep.subr.bf16.mxu1 %v5929_v34  ;;  %v371_v22 = vmul.f32 %v5055_v5, %v6312_v20 }
  0x4c   : > { %2532 = vmatprep.mubr.bf16.mxu0 %v1998_v50  ;;  %v813_v56 = vrot.slane %v811_v48, 7  ;;  %v6494_v61 = vrot.slane %v4780_v54, 1  ;;  %v470_v1 = vmax.f32 %v434_v49, 0.0  ;;  %v1049_v18 = vld [vmem:[#allocation2 + $0xa4] sm:$0x1]  ;;  %v471_v19 = vmax.f32 %v435_v60, 0.0 }
  0x4d   : > { %2533 = vmatmul.mubr.bf16.vlgmr.msra.gmra.mrb[0].mxu0 %v6444_v52  ;;  %v5920_v8 = vld [vmem:[#allocation2 + $0x8c] ss:$0 sps:$4 sm:$0x11]   ;;  %v821_v16 = vrot.slane %v819_v57, 7  ;;  %v412_v26 = vadd.f32 %v6327_v27, %v370_v7  ;;  %v5938_v33 = vld [vmem:[%s7663_s1 + $0x20] sm:$0xff]   ;;  %v413_v37 = vadd.f32 %v6327_v27, %v371_v22  ;;  %v394_v49 = vmul.f32 %v5102_v11, %v6312_v20 }
  0x4e   : > { %5538 = vmatpush3.bf16.msra.mxu0 %v6218_v0  ;;  %v816_v52 = vor.u32 %v814_v55, %v813_v56  ;;  %v817_v10 = vrot.slane %v813_v56, 4  ;;  %v1086_v14 = vld [vmem:[#allocation2 + $0x18] sm:$0x1]  ;;  %v5032_v21 = vpack.c.bf16 %v470_v1, %v470_v1  ;;  %v2274_v23 = vrot.slane %v5920_v8, 1  ;;  %5272 = vmatpush3.bf16.msra.mxu1 %v5930_v62  ;;  %v5941_v38 = vld [vmem:[%s7663_s1 + $0x68] sm:$0xff]   ;;  %v5127_v50 = vld [vmem:[%s6303_s17 + $0x80] sm:$0xff]  }
  0x4f   : > { %5539 = vmatprep.subr.bf16.mxu0 %v6231_v3  ;;  %v1087_v0 = vsel %vm6359_vm6, 0, %v1086_v14  ;;  %v824_v28 = vor.u32 %v822_v58, %v821_v16  ;;  %v826_v30 = vrot.slane %v821_v16, 4  ;;  %v5033_v31 = vpack.c.bf16 %v471_v19, %v471_v19  ;;  %5273 = vmatprep.subr.bf16.mxu1 %v5937_v2  ;;  %v1052_v43 = vld [vmem:[#allocation2 + $0xa8] sm:$0xf]  ;;  %v1782_v51 = vld [vmem:[#allocation2 + $0x1c] sm:$0xf] }
  0x50   : > { %v1046_v25 = vsel %vm6365_vm7, %v816_v52, %v1045_v63  ;;  %1088 = vst [vmem:[#allocation2 + $0x18] sm:$0x1] %v1087_v0  ;;  %v1141_v29 = vld [vmem:[#allocation2 + $0x20] sm:$0x1]  ;;  %v828_v32 = vshrl.u32 %v5032_v21, 16  ;;  %v2275_v34 = vsel %vm1665_vm9, %v6466_v24, %v2274_v23  ;;  %v831_v36 = vshll.u32 %v5032_v21, 16 }
  0x51   : > { %1047 = vst [vmem:[#allocation2 + $0x9c] sm:$0xf] %v1046_v25  ;;  %v1142_v35 = vsel %vm6389_vm8, 0, %v1141_v29  ;;  %5573 = vmatprep.mubr.bf16.mxu1 %v2275_v34  ;;  %v825_v40 = vsel %vm6353_vm5, %v817_v10, %v824_v28  ;;  %v1050_v24 = vsel %vm6359_vm6, %v826_v30, %v1049_v18  ;;  %v839_v42 = vshll.u32 %v5033_v31, 16  ;;  %v5942_v48 = vld [vmem:[%s7663_s1 + $0x28] sm:$0xff]   ;;  %v5949_v58 = vld [vmem:[%s7663_s1 + $0x70] sm:$0xff]  }
  0x52   : > { %5540 = vmatpush3.bf16.msra.mxu0 %v6231_v3  ;;  %v5923_v39 = vld [vmem:[#allocation2 + $0x98] ss:$0 sps:$4 sm:$0x11]   ;;  %1143 = vst [vmem:[#allocation2 + $0x20] sm:$0x1] %v1142_v35  ;;  %v830_v41 = vrot.slane %v828_v32, 7  ;;  %5274 = vmatpush3.bf16.msra.mxu1 %v5938_v33  ;;  %v395_v57 = vmul.f32 %v5103_v13, %v6312_v20  ;;  %v5106_v1 = vunpack.c.l.bf16 %v5127_v50  ;;  %v5107_v10 = vunpack.c.h.bf16 %v5127_v50 }
  0x53   : > { %5541 = vmatprep.subr.bf16.mxu0 %v6243_v6  ;;  %1048 = vst [vmem:[#allocation2 + $0xa0] sm:$0xf] %v825_v40  ;;  %1051 = vst [vmem:[#allocation2 + $0xa4] sm:$0x1] %v1050_v24  ;;  %v836_v3 = vshrl.u32 %v5033_v31, 16  ;;  %v448_v45 = vmax.f32 %v412_v26, 0.0  ;;  %5275 = vmatprep.subr.bf16.mxu1 %v5941_v38 }
  0x54   : > { %v449_v46 = vmax.f32 %v413_v37, 0.0  ;;  %v2277_v47 = vrot.slane %v5923_v39, 1  ;;  %v833_v44 = vor.u32 %v831_v36, %v830_v41  ;;  %v834_v54 = vrot.slane %v830_v41, 4  ;;  %v1056_v63 = vld [vmem:[#allocation2 + $0xb0] sm:$0x1]  ;;  %v6545_v2 = vld [vmem:[%s6303_s17 + $0x20] sm:$0xff]  }
  0x55   : > { %v838_v55 = vrot.slane %v836_v3, 7  ;;  %v5010_v56 = vpack.c.bf16 %v448_v45, %v448_v45  ;;  %v5953_v19 = vld [vmem:[%s7663_s1 + $0x78] sm:$0xff]   ;;  %v437_v0 = vadd.f32 %v6327_v27, %v395_v57  ;;  %v5058_v25 = vunpack.c.l.bf16 %v6545_v2  ;;  %v975_v32 = vld [vmem:[#allocation2 + $0x24] sm:$0xf] }
  0x56   : > { %5542 = vmatpush3.bf16.msra.mxu0 %v6243_v6  ;;  %v2278_v60 = vsel %vm1665_vm9, %v6494_v61, %v2277_v47  ;;  %v1053_v62 = vsel %vm6365_vm7, %v833_v44, %v1052_v43  ;;  %v6548_v52 = vpack.c.bf16 %v449_v46, %v449_v46  ;;  %v436_v6 = vadd.f32 %v6327_v27, %v394_v49  ;;  %v5950_v61 = vld [vmem:[%s7663_s1 + $0x30] sm:$0xff]   ;;  %v5954_v37 = vld [vmem:[%s7663_s1 + $0x38] sm:$0xff]   ;;  %v6098_v43 = vld [vmem:[%s7663_s1 + $0x160] sm:$0xff]  }
  0x57   : > { %5543 = vmatprep.subr.bf16.mxu0 %v6257_v9  ;;  %5574 = vmatmul.mubr.bf16.gmra.mrb[4].mxu1 %v2278_v60  ;;  %v1781_v5 = vld [vmem:[#allocation2 + $0x18] sm:$0xf]  ;;  %v841_v8 = vor.u32 %v839_v42, %v838_v55  ;;  %1054 = vst [vmem:[#allocation2 + $0xa8] sm:$0xf] %v1053_v62  ;;  %v843_v16 = vrot.slane %v838_v55, 4  ;;  %v641_v18 = vshrl.u32 %v5010_v56, 16  ;;  %v396_v33 = vmul.f32 %v5106_v1, %v6312_v20 }
  0x58   : > { %v1119_v7 = vld [vmem:[#allocation2 + $0x9c] sm:$0x1]  ;;  %v6554_v11 = vcombine.low %v1781_v5, %v1782_v51  ;;  %v1839_v14 = vld [vmem:[#allocation2 + $0x9c] sm:$0xe]  ;;  %5276 = vmatpush3.bf16.msra.mxu1 %v5942_v48  ;;  %v644_v23 = vshll.u32 %v5010_v56, 16  ;;  %v397_v36 = vmul.f32 %v5107_v10, %v6312_v20  ;;  %v649_v39 = vshrl.u32 %v6548_v52, 16 }
  0x59   : > { %v1120_v13 = vsel %vm6359_vm6, 0, %v1119_v7  ;;  %v5928_v21 = vld [vmem:[#allocation2 + $0x20] ss:$0 sps:$4 sm:$0x11]   ;;  %v842_v22 = vsel %vm6353_vm5, %v834_v54, %v841_v8  ;;  %5277 = vmatprep.subr.bf16.mxu1 %v5949_v58  ;;  %v1057_v31 = vsel %vm6359_vm6, %v843_v16, %v1056_v63  ;;  %v652_v40 = vshll.u32 %v6548_v52, 16 }
  0x5a   : > { %1121 = vst [vmem:[#allocation2 + $0x9c] sm:$0x1] %v1120_v13  ;;  %5544 = vmatpush3.bf16.msra.mxu0 %v6257_v9  ;;  %v2000_v26 = vshrl.u32 %v6554_v11, 16  ;;  %v2002_v29 = vshll.u32 %v6554_v11, 16  ;;  %v1174_v28 = vld [vmem:[#allocation2 + $0xa4] sm:$0x1]  ;;  %v438_v54 = vadd.f32 %v6327_v27, %v396_v33  ;;  %v5059_v55 = vunpack.c.h.bf16 %v6545_v2 }
  0x5b   : > { %v1804_v30 = vld [vmem:[#allocation2 + $0xa0] sm:$0xf]  ;;  %1055 = vst [vmem:[#allocation2 + $0xac] sm:$0xf] %v842_v22  ;;  %5545 = vmatprep.subr.bf16.mxu0 %v6270_v12  ;;  %v2007_v34 = vshll.u32 %v5928_v21, 16  ;;  %v1175_v35 = vsel %vm6389_vm8, 0, %v1174_v28  ;;  %v439_v5 = vadd.f32 %v6327_v27, %v397_v36 }
  0x5c   : > { %1058 = vst [vmem:[#allocation2 + $0xb0] sm:$0x1] %v1057_v31  ;;  %v643_v9 = vrot.slane %v641_v18, 7  ;;  %v2004_v38 = vrot.slane %v2002_v29, 1  ;;  %1176 = vst [vmem:[#allocation2 + $0xa4] sm:$0x1] %v1175_v35  ;;  %5278 = vmatpush3.bf16.msra.mxu1 %v5950_v61  ;;  %v4781_v41 = vcombine.low %v1839_v14, %v1804_v30 }
  0x5d   : > { %v472_v24 = vmax.f32 %v436_v6, 0.0  ;;  %v2009_v12 = vrot.slane %v2007_v34, 1  ;;  %5279 = vmatprep.subr.bf16.mxu1 %v5953_v19  ;;  %v6583_v20 = vld [vmem:[%s7663_s1 + $0x80] sm:$0xff]   ;;  %v651_v47 = vrot.slane %v649_v39, 7  ;;  %v473_v44 = vmax.f32 %v437_v0, 0.0  ;;  %v6100_v21 = vld [vmem:[%s7663_s1 + $0x168] sm:$0xff]  }
  0x5e   : > { %v646_v3 = vor.u32 %v644_v23, %v643_v9  ;;  %v647_v42 = vrot.slane %v643_v9, 4  ;;  %5546 = vmatpush3.bf16.msra.mxu0 %v6098_v43  ;;  %v2005_v45 = vor.u32 %v2004_v38, %v2000_v26  ;;  %v1122_v46 = vld [vmem:[#allocation2 + $0xa8] sm:$0x1]  ;;  %v979_v51 = vld [vmem:[#allocation2 + $0x2c] sm:$0x1]  ;;  %v474_v7 = vmax.f32 %v438_v54, 0.0 }
  0x5f   : > { %v5034_v48 = vpack.c.bf16 %v472_v24, %v472_v24  ;;  %5547 = vmatprep.subr.bf16.mxu0 %v6286_v15  ;;  %v1123_v49 = vsel %vm6359_vm6, 0, %v1122_v46  ;;  %v1840_v57 = vld [vmem:[#allocation2 + $0xa8] sm:$0xe]  ;;  %v654_v58 = vor.u32 %v652_v40, %v651_v47  ;;  %v656_v60 = vrot.slane %v651_v47, 4  ;;  %v1059_v27 = vld [vmem:[#allocation2 + $0xb4] sm:$0xf] }
  0x60   : > { %v976_v50 = vsel %vm6365_vm7, %v646_v3, %v975_v32  ;;  %v2010_v56 = vsel %vm1408_vm10, %v2005_v45, %v2009_v12  ;;  %1124 = vst [vmem:[#allocation2 + $0xa8] sm:$0x1] %v1123_v49  ;;  %v5035_v62 = vpack.c.bf16 %v473_v44, %v473_v44  ;;  %5280 = vmatpush3.bf16.msra.mxu1 %v5954_v37  ;;  %v2279_v15 = vrot.slane %v4781_v41, 1  ;;  %v1063_v26 = vld [vmem:[#allocation2 + $0xbc] sm:$0x1]  ;;  %v6101_v28 = vld [vmem:[%s7663_s1 + $0x170] sm:$0xff]  }
  0x61   : > { %977 = vst [vmem:[#allocation2 + $0x24] sm:$0xf] %v976_v50  ;;  %2540 = vmatprep.mubr.bf16.mxu0 %v2010_v56  ;;  %v845_v1 = vshrl.u32 %v5034_v48, 16  ;;  %5585 = vmatprep.subr.bf16.mxu1 %v6583_v20  ;;  %v655_v52 = vsel %vm6353_vm5, %v647_v42, %v654_v58  ;;  %v980_v6 = vsel %vm6359_vm6, %v656_v60, %v979_v51  ;;  %v848_v10 = vshll.u32 %v5034_v48, 16  ;;  %v6624_v39 = vld [vmem:[%s7665_s3] ss:$0 sm:$0xff] }
  0x62   : > { %v1806_v63 = vld [vmem:[#allocation2 + $0xac] sm:$0xf]  ;;  %2541 = vmatmul.mubr.bf16.gmra.mrb[4].mxu0 %v6554_v11  ;;  %v853_v61 = vshrl.u32 %v5035_v62, 16  ;;  %978 = vst [vmem:[#allocation2 + $0x28] sm:$0xf] %v655_v52  ;;  %v5036_v18 = vpack.c.bf16 %v474_v7, %v474_v7  ;;  %v856_v0 = vshll.u32 %v5035_v62, 16 }
  0x63   : > { %v1177_v8 = vld [vmem:[#allocation2 + $0xb0] sm:$0x1]  ;;  %v5932_v13 = vld [vmem:[#allocation2 + $0xa4] ss:$0 sps:$4 sm:$0x11]   ;;  %v4782_v16 = vcombine.low %v1840_v57, %v1806_v63  ;;  %5548 = vmatpush3.bf16.msra.mxu0 %v6100_v21  ;;  %v847_v22 = vrot.slane %v845_v1, 7 }
  0x64   : > { %v1178_v14 = vsel %vm6389_vm8, 0, %v1177_v8  ;;  %981 = vst [vmem:[#allocation2 + $0x2c] sm:$0x1] %v980_v6  ;;  %v6608_v11 = vld [vmem:[%s7664_s2] ss:$0 sm:$0xff]  ;;  %v855_v23 = vrot.slane %v853_v61, 7  ;;  %5549 = vmatprep.subr.bf16.mxu0 %v6101_v28 }
  0x65   : > { %v372_v19 = vmul.f32 %v6608_v11, %v5058_v25  ;;  %1179 = vst [vmem:[#allocation2 + $0xb0] sm:$0x1] %v1178_v14  ;;  %v373_v29 = vmul.f32 %v6608_v11, %v5059_v55  ;;  %v2280_v2 = vrot.slane %v5932_v13, 1  ;;  %v475_v25 = vmax.f32 %v439_v5, 0.0  ;;  %v5041_v24 = vld [vmem:[%s6303_s17] sm:$0xff]   ;;  %v5116_v43 = vld [vmem:[%s6303_s17 + $0x28] sm:$0xff]  }
  0x66   : > { %v862_v30 = vshrl.u32 %v5036_v18, 16  ;;  %v865_v31 = vshll.u32 %v5036_v18, 16  ;;  %v850_v32 = vor.u32 %v848_v10, %v847_v22  ;;  %v851_v33 = vrot.slane %v847_v22, 4  ;;  %v1066_v42 = vld [vmem:[#allocation2 + $0xc0] sm:$0xf]  ;;  %v6103_v45 = vld [vmem:[%s7663_s1 + $0x178] sm:$0xff]  }
  0x67   : > { %v858_v34 = vor.u32 %v856_v0, %v855_v23  ;;  %v860_v35 = vrot.slane %v855_v23, 4  ;;  %v2281_v9 = vsel %vm1665_vm9, %v2279_v15, %v2280_v2  ;;  %v5037_v37 = vpack.c.bf16 %v475_v25, %v475_v25  ;;  %5550 = vmatpush3.bf16.msra.mxu0 %v6101_v28  ;;  %v1070_v52 = vld [vmem:[#allocation2 + $0xc8] sm:$0x1] }
  0x68   : > { %v1089_v36 = vld [vmem:[#allocation2 + $0x24] sm:$0x1]  ;;  %v864_v38 = vrot.slane %v862_v30, 7  ;;  %v414_v40 = vadd.f32 %v6624_v39, %v372_v19  ;;  %5577 = vmatprep.mubr.bf16.mxu1 %v2281_v9  ;;  %v1060_v3 = vsel %vm6365_vm7, %v850_v32, %v1059_v27  ;;  %5551 = vmatprep.subr.bf16.mxu0 %v6103_v45  ;;  %v2282_v46 = vrot.slane %v4782_v16, 1 }
  0x69   : > { %v1090_v12 = vsel %vm6359_vm6, 0, %v1089_v36  ;;  %v859_v41 = vsel %vm6353_vm5, %v851_v33, %v858_v34  ;;  %1061 = vst [vmem:[#allocation2 + $0xb4] sm:$0xf] %v1060_v3  ;;  %v1064_v47 = vsel %vm6359_vm6, %v860_v35, %v1063_v26  ;;  %v870_v48 = vshrl.u32 %v5037_v37, 16  ;;  %v1784_v8 = vld [vmem:[#allocation2 + $0x28] sm:$0xf] }
  0x6a   : > { %1091 = vst [vmem:[#allocation2 + $0x24] sm:$0x1] %v1090_v12  ;;  %1062 = vst [vmem:[#allocation2 + $0xb8] sm:$0xf] %v859_v41  ;;  %v867_v44 = vor.u32 %v865_v31, %v864_v38  ;;  %v873_v50 = vshll.u32 %v5037_v37, 16  ;;  %v415_v51 = vadd.f32 %v6624_v39, %v373_v29  ;;  %v450_v54 = vmax.f32 %v414_v40, 0.0 }
  0x6b   : > { %v1144_v49 = vld [vmem:[#allocation2 + $0x2c] sm:$0x1]  ;;  %1065 = vst [vmem:[#allocation2 + $0xbc] sm:$0x1] %v1064_v47  ;;  %v5042_v55 = vunpack.c.l.bf16 %v5041_v24  ;;  %v5043_v60 = vunpack.c.h.bf16 %v5041_v24  ;;  %v5062_v62 = vunpack.c.l.bf16 %v5116_v43  ;;  %5552 = vmatpush3.bf16.msra.mxu0 %v6103_v45  ;;  %v868_v15 = vrot.slane %v864_v38, 4 }
  0x6c   : > { %v5935_v56 = vld [vmem:[#allocation2 + $0xb0] ss:$0 sps:$4 sm:$0x11]   ;;  %v1145_v57 = vsel %vm6389_vm8, 0, %v1144_v49  ;;  %v1067_v58 = vsel %vm6365_vm7, %v867_v44, %v1066_v42  ;;  %v872_v63 = vrot.slane %v870_v48, 7  ;;  %v451_v1 = vmax.f32 %v415_v51, 0.0 }
  0x6d   : > { %1146 = vst [vmem:[#allocation2 + $0x2c] sm:$0x1] %v1145_v57  ;;  %1068 = vst [vmem:[#allocation2 + $0xc0] sm:$0xf] %v1067_v58  ;;  %v5012_v5 = vpack.c.bf16 %v450_v54, %v450_v54  ;;  %v2283_v7 = vrot.slane %v5935_v56, 1  ;;  %v364_v6 = vmul.f32 %v6608_v11, %v5042_v55  ;;  %v365_v10 = vmul.f32 %v6608_v11, %v5043_v60 }
  0x6e   : > { %v5063_v61 = vunpack.c.h.bf16 %v5116_v43  ;;  %v875_v13 = vor.u32 %v873_v50, %v872_v63  ;;  %v877_v14 = vrot.slane %v872_v63, 4  ;;  %v5013_v16 = vpack.c.bf16 %v451_v1, %v451_v1  ;;  %v982_v35 = vld [vmem:[#allocation2 + $0x30] sm:$0xf]  ;;  %v986_v50 = vld [vmem:[#allocation2 + $0x38] sm:$0x1] }
  0x6f   : > { %v658_v27 = vshrl.u32 %v5012_v5, 16  ;;  %v2284_v18 = vsel %vm1665_vm9, %v2282_v46, %v2283_v7  ;;  %v661_v19 = vshll.u32 %v5012_v5, 16  ;;  %v374_v21 = vmul.f32 %v6608_v11, %v5062_v62 }
  0x70   : > { %5578 = vmatmul.mubr.bf16.gmra.mrb[8].mxu1 %v2284_v18  ;;  %v1125_v23 = vld [vmem:[#allocation2 + $0xb4] sm:$0x1]  ;;  %v876_v26 = vsel %vm6353_vm5, %v868_v15, %v875_v13  ;;  %v1071_v29 = vsel %vm6359_vm6, %v877_v14, %v1070_v52  ;;  %v375_v28 = vmul.f32 %v6608_v11, %v5063_v61  ;;  %v1841_v31 = vld [vmem:[#allocation2 + $0xb4] sm:$0xe]  ;;  %v666_v34 = vshrl.u32 %v5013_v16, 16 }
  0x71   : > { %v1783_v22 = vld [vmem:[#allocation2 + $0x24] sm:$0xf]  ;;  %v1808_v0 = vld [vmem:[#allocation2 + $0xb8] sm:$0xf]  ;;  %v1126_v25 = vsel %vm6359_vm6, 0, %v1125_v23  ;;  %v660_v32 = vrot.slane %v658_v27, 7  ;;  %v406_v9 = vadd.f32 %v6624_v39, %v364_v6  ;;  %v407_v36 = vadd.f32 %v6624_v39, %v365_v10 }
  0x72   : > { %v6654_v2 = vcombine.low %v1783_v22, %v1784_v8  ;;  %v1180_v30 = vld [vmem:[#allocation2 + $0xbc] sm:$0x1]  ;;  %1069 = vst [vmem:[#allocation2 + $0xc4] sm:$0xf] %v876_v26  ;;  %1072 = vst [vmem:[#allocation2 + $0xc8] sm:$0x1] %v1071_v29  ;;  %v416_v24 = vadd.f32 %v6624_v39, %v374_v21  ;;  %v4783_v3 = vcombine.low %v1841_v31, %v1808_v0 }
  0x73   : > { %1127 = vst [vmem:[#allocation2 + $0xb4] sm:$0x1] %v1126_v25  ;;  %v1181_v33 = vsel %vm6389_vm8, 0, %v1180_v30  ;;  %v663_v38 = vor.u32 %v661_v19, %v660_v32  ;;  %v669_v40 = vshll.u32 %v5013_v16, 16  ;;  %v417_v43 = vadd.f32 %v6624_v39, %v375_v28  ;;  %v6671_v8 = vld [vmem:[%s6303_s17 + $0x30] sm:$0xff]  }
  0x74   : > { %v5940_v37 = vld [vmem:[#allocation2 + $0x2c] ss:$0 sps:$4 sm:$0x11]   ;;  %1182 = vst [vmem:[#allocation2 + $0xbc] sm:$0x1] %v1181_v33  ;;  %v2012_v12 = vshrl.u32 %v6654_v2, 16 }
  0x75   : > { %v2014_v41 = vshll.u32 %v6654_v2, 16  ;;  %v1128_v42 = vld [vmem:[#allocation2 + $0xc0] sm:$0x1]  ;;  %v2019_v45 = vshll.u32 %v5940_v37, 16  ;;  %v664_v47 = vrot.slane %v660_v32, 4  ;;  %v668_v44 = vrot.slane %v666_v34, 7 }
  0x76   : > { %v1129_v46 = vsel %vm6359_vm6, 0, %v1128_v42  ;;  %v983_v49 = vsel %vm6365_vm7, %v663_v38, %v982_v35  ;;  %v442_v51 = vmax.f32 %v406_v9, 0.0  ;;  %v443_v54 = vmax.f32 %v407_v36, 0.0  ;;  %v1842_v56 = vld [vmem:[#allocation2 + $0xc0] sm:$0xe] }
  0x77   : > { %v2016_v48 = vrot.slane %v2014_v41, 1  ;;  %1130 = vst [vmem:[#allocation2 + $0xc0] sm:$0x1] %v1129_v46  ;;  %v2021_v55 = vrot.slane %v2019_v45, 1  ;;  %v671_v57 = vor.u32 %v669_v40, %v668_v44  ;;  %v673_v58 = vrot.slane %v668_v44, 4 }
  0x78   : > { %984 = vst [vmem:[#allocation2 + $0x30] sm:$0xf] %v983_v49  ;;  %v452_v60 = vmax.f32 %v416_v24, 0.0  ;;  %v5004_v1 = vpack.c.bf16 %v442_v51, %v442_v51  ;;  %v5005_v5 = vpack.c.bf16 %v443_v54, %v443_v54  ;;  %v453_v7 = vmax.f32 %v417_v43, 0.0  ;;  %v1202_v13 = vld [vmem:[#allocation2 + $0xc] sm:$0xf] }
  0x79   : > { %v2017_v62 = vor.u32 %v2016_v48, %v2012_v12  ;;  %v1183_v15 = vld [vmem:[#allocation2 + $0xc8] sm:$0x1]  ;;  %v1810_v63 = vld [vmem:[#allocation2 + $0xc4] sm:$0xf]  ;;  %v2285_v52 = vrot.slane %v4783_v3, 1  ;;  %v672_v10 = vsel %vm6353_vm5, %v664_v47, %v671_v57  ;;  %v987_v61 = vsel %vm6359_vm6, %v673_v58, %v986_v50 }
  0x7a   : > { %v1184_v6 = vsel %vm6389_vm8, 0, %v1183_v15  ;;  %v1203_v14 = vld [vmem:[#allocation2 + $0x10] sm:$0xf]  ;;  %985 = vst [vmem:[#allocation2 + $0x34] sm:$0xf] %v672_v10  ;;  %v590_v18 = vshrl.u32 %v5004_v1, 16  ;;  %v5014_v19 = vpack.c.bf16 %v452_v60, %v452_v60  ;;  %v4784_v21 = vcombine.low %v1842_v56, %v1810_v63 }
  0x7b   : > { %v2022_v16 = vsel %vm1408_vm10, %v2017_v62, %v2021_v55  ;;  %v5944_v27 = vld [vmem:[#allocation2 + $0xbc] ss:$0 sps:$4 sm:$0x11]   ;;  %1185 = vst [vmem:[#allocation2 + $0xc8] sm:$0x1] %v1184_v6  ;;  %v593_v22 = vshll.u32 %v5004_v1, 16  ;;  %v5015_v28 = vpack.c.bf16 %v453_v7, %v453_v7  ;;  %v6681_v34 = vcombine.low %v1202_v13, %v1203_v14 }
  0x7c   : > { %988 = vst [vmem:[#allocation2 + $0x38] sm:$0x1] %v987_v61  ;;  %2548 = vmatprep.mubr.bf16.mxu0 %v2022_v16  ;;  %v598_v23 = vshrl.u32 %v5005_v5, 16  ;;  %v601_v0 = vshll.u32 %v5005_v5, 16  ;;  %v2286_v26 = vrot.slane %v5944_v27, 1  ;;  %v592_v29 = vrot.slane %v590_v18, 7 }
  0x7d   : > { %2549 = vmatmul.mubr.bf16.gmra.mrb[8].mxu0 %v6654_v2  ;;  %v675_v25 = vshrl.u32 %v5014_v19, 16  ;;  %v952_v31 = vld [vmem:[#allocation2] sm:$0xf]  ;;  %v958_v32 = vld [vmem:[#allocation2 + $0x8] sm:$0x1]  ;;  %v678_v33 = vshll.u32 %v5014_v19, 16  ;;  %v5066_v35 = vunpack.c.l.bf16 %v6671_v8  ;;  %v5067_v2 = vunpack.c.h.bf16 %v6671_v8 }
  0x7e   : > { %v600_v30 = vrot.slane %v598_v23, 7  ;;  %v2287_v9 = vsel %vm1665_vm9, %v2285_v52, %v2286_v26  ;;  %v595_v37 = vor.u32 %v593_v22, %v592_v29  ;;  %v596_v38 = vrot.slane %v592_v29, 4  ;;  %v5961_v40 = vld [vmem:[#allocation2 + $0x14] ss:$0 sps:$4 sm:$0x11]   ;;  %v5118_v61 = vld [vmem:[%s6303_s17 + $0x38] sm:$0xff]  }
  0x7f   : > { %v1092_v36 = vld [vmem:[#allocation2 + $0x30] sm:$0x1]  ;;  %5581 = vmatprep.mubr.bf16.mxu1 %v2287_v9  ;;  %v677_v3 = vrot.slane %v675_v25, 7  ;;  %v989_v42 = vld [vmem:[#allocation2 + $0x3c] sm:$0xf]  ;;  %v2288_v43 = vrot.slane %v4784_v21, 1  ;;  %v376_v62 = vmul.f32 %v6608_v11, %v5066_v35  ;;  %v377_v8 = vmul.f32 %v6608_v11, %v5067_v2 }
  0x80   : > { %v1093_v24 = vsel %vm6359_vm6, 0, %v1092_v36  ;;  %v603_v12 = vor.u32 %v601_v0, %v600_v30  ;;  %v605_v41 = vrot.slane %v600_v30, 4  ;;  %v953_v45 = vsel %vm6365_vm7, %v595_v37, %v952_v31  ;;  %v1204_v44 = vld [vmem:[#allocation2 + $0x18] sm:$0xf]  ;;  %v1205_v48 = vld [vmem:[#allocation2 + $0x1c] sm:$0xf] }
  0x81   : > { %1094 = vst [vmem:[#allocation2 + $0x30] sm:$0x1] %v1093_v24  ;;  %v683_v46 = vshrl.u32 %v5015_v28, 16  ;;  %v686_v47 = vshll.u32 %v5015_v28, 16  ;;  %954 = vst [vmem:[#allocation2] sm:$0xf] %v953_v45  ;;  %v680_v54 = vor.u32 %v678_v33, %v677_v3  ;;  %v418_v10 = vadd.f32 %v6624_v39, %v376_v62 }
  0x82   : > { %v5947_v49 = vld [vmem:[#allocation2 + $0xc8] ss:$0 sps:$4 sm:$0x11]   ;;  %v604_v50 = vsel %vm6353_vm5, %v596_v38, %v603_v12  ;;  %v959_v51 = vsel %vm6359_vm6, %v605_v41, %v958_v32  ;;  %v1424_v55 = vshll.u32 %v6681_v34, 16  ;;  %v681_v57 = vrot.slane %v677_v3, 4  ;;  %v5996_v25 = vld [vmem:[%s7663_s1 + $0x1c0] sm:$0xff]  }
  0x83   : > { %v1147_v56 = vld [vmem:[#allocation2 + $0x38] sm:$0x1]  ;;  %955 = vst [vmem:[#allocation2 + $0x4] sm:$0xf] %v604_v50  ;;  %960 = vst [vmem:[#allocation2 + $0x8] sm:$0x1] %v959_v51  ;;  %v990_v5 = vsel %vm6365_vm7, %v680_v54, %v989_v42  ;;  %v419_v16 = vadd.f32 %v6624_v39, %v377_v8  ;;  %v6706_v27 = vcombine.low %v1204_v44, %v1205_v48  ;;  %v5070_v28 = vunpack.c.l.bf16 %v5118_v61 }
  0x84   : > { %v685_v58 = vrot.slane %v683_v46, 7  ;;  %v1429_v60 = vshll.u32 %v5961_v40, 16  ;;  %v2289_v15 = vrot.slane %v5947_v49, 1  ;;  %v1148_v63 = vsel %vm6389_vm8, 0, %v1147_v56  ;;  %v993_v7 = vld [vmem:[#allocation2 + $0x44] sm:$0x1]  ;;  %5401 = vmatprep.subr.bf16.mxu0 %v5996_v25 }
  0x85   : > { %v6164_v1 = vmov 0   ;;  %1149 = vst [vmem:[#allocation2 + $0x38] sm:$0x1] %v1148_v63  ;;  %991 = vst [vmem:[#allocation2 + $0x3c] sm:$0xf] %v990_v5  ;;  %v1422_v21 = vshrl.u32 %v6681_v34, 16  ;;  %v5071_v35 = vunpack.c.h.bf16 %v5118_v61  ;;  %v378_v45 = vmul.f32 %v6608_v11, %v5070_v28 }
  0x86   : > { %1194 = vst [vmem:[#allocation2 + $0x4] sm:$0xf] %v6164_v1  ;;  %v688_v52 = vor.u32 %v686_v47, %v685_v58  ;;  %v690_v6 = vrot.slane %v685_v58, 4  ;;  %v2290_v13 = vsel %vm1665_vm9, %v2288_v43, %v2289_v15  ;;  %v1786_v14 = vld [vmem:[#allocation2 + $0x34] sm:$0xf]  ;;  %v454_v22 = vmax.f32 %v418_v10, 0.0 }
  0x87   : > { %5582 = vmatmul.mubr.bf16.gmra.mrb[12].mxu1 %v2290_v13  ;;  %v6713_v0 = vrot.slane %v1424_v55, 1  ;;  %v6715_v26 = vrot.slane %v1429_v60, 1  ;;  %v455_v29 = vmax.f32 %v419_v16, 0.0  ;;  %v1434_v33 = vshrl.u32 %v6706_v27, 16  ;;  %v996_v42 = vld [vmem:[#allocation2 + $0x48] sm:$0xf] }
  0x88   : > { %v689_v18 = vsel %vm6353_vm5, %v681_v57, %v688_v52  ;;  %v994_v19 = vsel %vm6359_vm6, %v690_v6, %v993_v7  ;;  %v1785_v23 = vld [vmem:[#allocation2 + $0x30] sm:$0xf]  ;;  %v1080_v31 = vld [vmem:[#allocation2] sm:$0x1]  ;;  %v5016_v32 = vpack.c.bf16 %v454_v22, %v454_v22  ;;  %v1436_v38 = vshll.u32 %v6706_v27, 16 }
  0x89   : > { %992 = vst [vmem:[#allocation2 + $0x40] sm:$0xf] %v689_v18  ;;  %995 = vst [vmem:[#allocation2 + $0x44] sm:$0x1] %v994_v19  ;;  %v6720_v30 = vcombine.low %v1785_v23, %v1786_v14  ;;  %v1081_v9 = vsel %vm6359_vm6, 0, %v1080_v31  ;;  %v5017_v37 = vpack.c.bf16 %v455_v29, %v455_v29  ;;  %v379_v46 = vmul.f32 %v6608_v11, %v5071_v35  ;;  %v5119_v28 = vld [vmem:[%s6303_s17 + $0x40] sm:$0xff]  }
  0x8a   : > { %v1135_v36 = vld [vmem:[#allocation2 + $0x8] sm:$0x1]  ;;  %1082 = vst [vmem:[#allocation2] sm:$0x1] %v1081_v9  ;;  %v692_v12 = vshrl.u32 %v5016_v32, 16  ;;  %v695_v3 = vshll.u32 %v5016_v32, 16  ;;  %v420_v56 = vadd.f32 %v6624_v39, %v378_v45 }
  0x8b   : > { %v2024_v40 = vshrl.u32 %v6720_v30, 16  ;;  %v2026_v2 = vshll.u32 %v6720_v30, 16  ;;  %v1136_v24 = vsel %vm6389_vm8, 0, %v1135_v36  ;;  %1193 = vst [vmem:[#allocation2] sm:$0xf] %v6164_v1  ;;  %v700_v49 = vshrl.u32 %v5017_v37, 16 }
  0x8c   : > { %v5952_v41 = vld [vmem:[#allocation2 + $0x38] ss:$0 sps:$4 sm:$0x11]   ;;  %1137 = vst [vmem:[#allocation2 + $0x8] sm:$0x1] %v1136_v24  ;;  %v694_v48 = vrot.slane %v692_v12, 7  ;;  %v421_v57 = vadd.f32 %v6624_v39, %v379_v46 }
  0x8d   : > { %v6731_v43 = vld [vmem:[#allocation2 + $0x20] ss:$0 sps:$4 sm:$0x11]   ;;  %v2028_v47 = vrot.slane %v2026_v2, 1  ;;  %1195 = vst [vmem:[#allocation2 + $0x8] sm:$0x1] %v6164_v1 }
  0x8e   : > { %v1095_v44 = vld [vmem:[#allocation2 + $0x3c] sm:$0x1]  ;;  %v703_v50 = vshll.u32 %v5017_v37, 16  ;;  %v2031_v51 = vshll.u32 %v5952_v41, 16  ;;  %v1000_v55 = vld [vmem:[#allocation2 + $0x50] sm:$0x1]  ;;  %v697_v62 = vor.u32 %v695_v3, %v694_v48  ;;  %v5074_v3 = vunpack.c.l.bf16 %v5119_v28 }
  0x8f   : > { %v1096_v54 = vsel %vm6359_vm6, 0, %v1095_v44  ;;  %v2029_v58 = vor.u32 %v2028_v47, %v2024_v40  ;;  %v698_v15 = vrot.slane %v694_v48, 4  ;;  %v702_v63 = vrot.slane %v700_v49, 7  ;;  %v1207_v5 = vld [vmem:[#allocation2 + $0x28] sm:$0xf] }
  0x90   : > { %1097 = vst [vmem:[#allocation2 + $0x3c] sm:$0x1] %v1096_v54  ;;  %v1150_v60 = vld [vmem:[#allocation2 + $0x44] sm:$0x1]  ;;  %v2033_v7 = vrot.slane %v2031_v51, 1  ;;  %v456_v52 = vmax.f32 %v420_v56, 0.0  ;;  %v997_v16 = vsel %vm6365_vm7, %v697_v62, %v996_v42 }
  0x91   : > { %v1151_v8 = vsel %vm6389_vm8, 0, %v1150_v60  ;;  %v457_v6 = vmax.f32 %v421_v57, 0.0  ;;  %v1206_v10 = vld [vmem:[#allocation2 + $0x24] sm:$0xf]  ;;  %v705_v13 = vor.u32 %v703_v50, %v702_v63  ;;  %v707_v14 = vrot.slane %v702_v63, 4 }
  0x92   : > { %v1201_v61 = vld [vmem:[#allocation2 + $0x4] sm:$0xf]  ;;  %1152 = vst [vmem:[#allocation2 + $0x44] sm:$0x1] %v1151_v8  ;;  %v6744_v18 = vrot.slane %v1436_v38, 1  ;;  %v2034_v19 = vsel %vm1408_vm10, %v2029_v58, %v2033_v7  ;;  %v1441_v22 = vshll.u32 %v6731_v43, 16  ;;  %v5018_v23 = vpack.c.bf16 %v456_v52, %v456_v52 }
  0x93   : > { %998 = vst [vmem:[#allocation2 + $0x48] sm:$0xf] %v997_v16  ;;  %v5019_v29 = vpack.c.bf16 %v457_v6, %v457_v6  ;;  %2556 = vmatprep.mubr.bf16.mxu0 %v2034_v19  ;;  %v1200_v25 = vld [vmem:[#allocation2] sm:$0xf]  ;;  %v706_v32 = vsel %vm6353_vm5, %v698_v15, %v705_v13  ;;  %v1001_v35 = vsel %vm6359_vm6, %v707_v14, %v1000_v55  ;;  %v1003_v41 = vld [vmem:[#allocation2 + $0x54] sm:$0xf] }
  0x94   : > { %v6749_v31 = vld [vmem:[#allocation2 + $0x40] sm:$0xf]  ;;  %v6755_v9 = vcombine.low %v1206_v10, %v1207_v5  ;;  %2557 = vmatmul.mubr.bf16.gmra.mrb[12].mxu0 %v6720_v30  ;;  %v4689_v36 = vcombine.low %v1200_v25, %v1201_v61  ;;  %v5956_v37 = vld [vmem:[#allocation2 + $0x8] ss:$0 sps:$4 sm:$0x11]   ;;  %v1427_v38 = vor.u32 %v6713_v0, %v1422_v21  ;;  %v709_v40 = vshrl.u32 %v5018_v23, 16 }
  0x95   : > { %999 = vst [vmem:[#allocation2 + $0x4c] sm:$0xf] %v706_v32  ;;  %1002 = vst [vmem:[#allocation2 + $0x50] sm:$0x1] %v1001_v35  ;;  %v712_v2 = vshll.u32 %v5018_v23, 16  ;;  %v717_v24 = vshrl.u32 %v5019_v29, 16  ;;  %v5075_v21 = vunpack.c.h.bf16 %v5119_v28  ;;  %v380_v8 = vmul.f32 %v6608_v11, %v5074_v3 }
  0x96   : > { %v720_v12 = vshll.u32 %v5019_v29, 16  ;;  %v1410_v42 = vshrl.u32 %v4689_v36, 16  ;;  %v1412_v45 = vshll.u32 %v4689_v36, 16  ;;  %v1417_v46 = vshll.u32 %v5956_v37, 16  ;;  %v1007_v49 = vld [vmem:[#allocation2 + $0x5c] sm:$0x1] }
  0x97   : > { %v1787_v47 = vld [vmem:[#allocation2 + $0x3c] sm:$0xf]  ;;  %v711_v44 = vrot.slane %v709_v40, 7  ;;  %v719_v48 = vrot.slane %v717_v24, 7  ;;  %v1448_v50 = vshll.u32 %v6755_v9, 16  ;;  %v1432_v63 = vsel %vm1408_vm10, %v1427_v38, %v6715_v26  ;;  %v5968_v19 = vld [vmem:[%s7663_s1 + $0x88] sm:$0xff]  }
  0x98   : > { %v4741_v30 = vcombine.low %v1787_v47, %v6749_v31  ;;  %v1414_v0 = vrot.slane %v1412_v45, 1  ;;  %v1419_v51 = vrot.slane %v1417_v46, 1  ;;  %v381_v23 = vmul.f32 %v6608_v11, %v5075_v21  ;;  %v5970_v25 = vld [vmem:[#allocation2 + $0x2c] ss:$0 sps:$4 sm:$0x11]   ;;  %v5980_v47 = vld [vmem:[%s7663_s1 + $0x98] sm:$0xff]  }
  0x99   : > { %v714_v54 = vor.u32 %v712_v2, %v711_v44  ;;  %v715_v55 = vrot.slane %v711_v44, 4  ;;  %v6763_v56 = vld [vmem:[#allocation2 + $0x44] ss:$0 sps:$4 sm:$0x11]   ;;  %v722_v60 = vor.u32 %v720_v12, %v719_v48  ;;  %v724_v62 = vrot.slane %v719_v48, 4 }
  0x9a   : > { %v2036_v57 = vshrl.u32 %v4741_v30, 16  ;;  %v2038_v58 = vshll.u32 %v4741_v30, 16  ;;  %v1415_v15 = vor.u32 %v1414_v0, %v1410_v42  ;;  %v1098_v5 = vld [vmem:[#allocation2 + $0x48] sm:$0x1]  ;;  %v2043_v6 = vshll.u32 %v6763_v56, 16 }
  0x9b   : > { %v1004_v7 = vsel %vm6365_vm7, %v714_v54, %v1003_v41  ;;  %v1099_v10 = vsel %vm6359_vm6, 0, %v1098_v5  ;;  %v723_v13 = vsel %vm6353_vm5, %v715_v55, %v722_v60  ;;  %v1008_v16 = vsel %vm6359_vm6, %v724_v62, %v1007_v49  ;;  %v1208_v2 = vld [vmem:[#allocation2 + $0x30] sm:$0xf]  ;;  %v1209_v24 = vld [vmem:[#allocation2 + $0x34] sm:$0xf] }
  0x9c   : > { %v2040_v52 = vrot.slane %v2038_v58, 1  ;;  %v1153_v61 = vld [vmem:[#allocation2 + $0x50] sm:$0x1]  ;;  %1005 = vst [vmem:[#allocation2 + $0x54] sm:$0xf] %v1004_v7  ;;  %v1420_v14 = vsel %vm1408_vm10, %v1415_v15, %v1419_v51  ;;  %v2045_v28 = vrot.slane %v2043_v6, 1  ;;  %v422_v32 = vadd.f32 %v6624_v39, %v380_v8 }
  0x9d   : > { %1100 = vst [vmem:[#allocation2 + $0x48] sm:$0x1] %v1099_v10  ;;  %v1154_v26 = vsel %vm6389_vm8, 0, %v1153_v61  ;;  %1006 = vst [vmem:[#allocation2 + $0x58] sm:$0xf] %v723_v13  ;;  %2998 = vmatprep.mubr.bf16.mxu1 %v1420_v14  ;;  %v423_v35 = vadd.f32 %v6624_v39, %v381_v23  ;;  %v1439_v11 = vor.u32 %v6744_v18, %v1434_v33  ;;  %v1443_v38 = vrot.slane %v1441_v22, 1 }
  0x9e   : > { %v2041_v29 = vor.u32 %v2040_v52, %v2036_v57  ;;  %1155 = vst [vmem:[#allocation2 + $0x50] sm:$0x1] %v1154_v26  ;;  %1009 = vst [vmem:[#allocation2 + $0x5c] sm:$0x1] %v1008_v16  ;;  %2999 = vmatmul.mubr.bf16.vlgmr.msra.gmra.mrb[16].mxu1 %v4689_v36  ;;  %v458_v40 = vmax.f32 %v422_v32, 0.0  ;;  %v1446_v36 = vshrl.u32 %v6755_v9, 16  ;;  %v6808_v21 = vcombine.low %v1208_v2, %v1209_v24 }
  0x9f   : > { %5586 = vmatpush3.bf16.msra.mxu1 %v6583_v20  ;;  %3006 = vmatprep.mubr.bf16.mxu1 %v1432_v63  ;;  %v1450_v39 = vrot.slane %v1448_v50, 1  ;;  %v459_v12 = vmax.f32 %v423_v35, 0.0  ;;  %v5975_v20 = vld [vmem:[%s7663_s1 + $0x90] sm:$0xff]   ;;  %v6797_v41 = vld [vmem:[#allocation2 + $0x4c] sm:$0xf]  ;;  %v1453_v33 = vshll.u32 %v5970_v25, 16  ;;  %v1444_v42 = vsel %vm1408_vm10, %v1439_v11, %v1443_v38 }
  0xa0   : > { %v2046_v37 = vsel %vm1408_vm10, %v2041_v29, %v2045_v28  ;;  %5587 = vmatprep.subr.bf16.mxu1 %v5968_v19  ;;  %v5020_v18 = vpack.c.bf16 %v458_v40, %v458_v40  ;;  %v1010_v50 = vld [vmem:[#allocation2 + $0x60] sm:$0xf]  ;;  %v5974_v58 = vld [vmem:[#allocation2 + $0x38] ss:$0 sps:$4 sm:$0x11]  }
  0xa1   : > { %2564 = vmatprep.mubr.bf16.mxu0 %v2046_v37  ;;  %v5021_v22 = vpack.c.bf16 %v459_v12, %v459_v12  ;;  %v1451_v48 = vor.u32 %v1450_v39, %v1446_v36  ;;  %v1455_v51 = vrot.slane %v1453_v33, 1  ;;  %v1014_v5 = vld [vmem:[#allocation2 + $0x68] sm:$0x1]  ;;  %v6814_v6 = vld [vmem:[#allocation2 + $0x40] sm:$0xf]  ;;  %v1458_v37 = vshrl.u32 %v6808_v21, 16 }
  0xa2   : > { %2565 = vmatmul.mubr.bf16.gmra.mrb[16].mxu0 %v4741_v30  ;;  %v726_v46 = vshrl.u32 %v5020_v18, 16  ;;  %v729_v49 = vshll.u32 %v5020_v18, 16  ;;  %v1210_v13 = vld [vmem:[#allocation2 + $0x3c] sm:$0xf]  ;;  %v5985_v14 = vld [vmem:[%s7663_s1 + $0xa0] sm:$0xff]   ;;  %v1465_v11 = vshll.u32 %v5974_v58, 16 }
  0xa3   : > { %v1101_v43 = vld [vmem:[#allocation2 + $0x54] sm:$0x1]  ;;  %5588 = vmatpush3.bf16.msra.mxu1 %v5968_v19  ;;  %v734_v55 = vshrl.u32 %v5021_v22, 16  ;;  %v737_v57 = vshll.u32 %v5021_v22, 16  ;;  %v1456_v28 = vsel %vm1408_vm10, %v1451_v48, %v1455_v51  ;;  %v6833_v24 = vcombine.low %v1210_v13, %v6814_v6  ;;  %v5990_v36 = vld [vmem:[%s7663_s1 + $0xa8] sm:$0xff]  }
  0xa4   : > { %v1789_v3 = vld [vmem:[#allocation2 + $0x48] sm:$0xf]  ;;  %v1102_v45 = vsel %vm6359_vm6, 0, %v1101_v43  ;;  %5589 = vmatprep.subr.bf16.mxu1 %v5975_v20  ;;  %v728_v54 = vrot.slane %v726_v46, 7  ;;  %v6820_v26 = vld [vmem:[#allocation2 + $0x58] sm:$0xf] }
  0xa5   : > { %v4742_v44 = vcombine.low %v1789_v3, %v6797_v41  ;;  %v6806_v30 = vld [vmem:[#allocation2 + $0x50] ss:$0 sps:$4 sm:$0x11]   ;;  %1103 = vst [vmem:[#allocation2 + $0x54] sm:$0x1] %v1102_v45  ;;  %v736_v52 = vrot.slane %v734_v55, 7 }
  0xa6   : > { %v1156_v0 = vld [vmem:[#allocation2 + $0x5c] sm:$0x1]  ;;  %3007 = vmatmul.mubr.bf16.gmra.mrb[20].mxu1 %v6681_v34  ;;  %v2055_v15 = vshll.u32 %v6806_v30, 16  ;;  %v731_v7 = vor.u32 %v729_v49, %v728_v54  ;;  %v732_v8 = vrot.slane %v728_v54, 4  ;;  %v1460_v34 = vshll.u32 %v6808_v21, 16 }
  0xa7   : > { %v2048_v60 = vshrl.u32 %v4742_v44, 16  ;;  %v2050_v62 = vshll.u32 %v4742_v44, 16  ;;  %v1157_v63 = vsel %vm6389_vm8, 0, %v1156_v0  ;;  %3014 = vmatprep.mubr.bf16.mxu1 %v1444_v42  ;;  %5590 = vmatpush3.bf16.msra.mxu1 %v5975_v20  ;;  %v739_v16 = vor.u32 %v737_v57, %v736_v52  ;;  %v6838_v39 = vld [vmem:[#allocation2 + $0x44] ss:$0 sps:$4 sm:$0x11]  }
  0xa8   : > { %1158 = vst [vmem:[#allocation2 + $0x5c] sm:$0x1] %v1157_v63  ;;  %v2057_v61 = vrot.slane %v2055_v15, 1  ;;  %5591 = vmatprep.subr.bf16.mxu1 %v5980_v47  ;;  %v741_v19 = vrot.slane %v736_v52, 4  ;;  %v1011_v23 = vsel %vm6365_vm7, %v731_v7, %v1010_v50  ;;  %v1462_v2 = vrot.slane %v1460_v34, 1 }
  0xa9   : > { %v2052_v10 = vrot.slane %v2050_v62, 1  ;;  %1012 = vst [vmem:[#allocation2 + $0x60] sm:$0xf] %v1011_v23  ;;  %v740_v32 = vsel %vm6353_vm5, %v732_v8, %v739_v16  ;;  %v1795_v20 = vld [vmem:[#allocation2 + $0x6c] sm:$0xf]  ;;  %v1467_v3 = vrot.slane %v1465_v11, 1 }
  0xaa   : > { %v1015_v35 = vsel %vm6359_vm6, %v741_v19, %v1014_v5  ;;  %1013 = vst [vmem:[#allocation2 + $0x64] sm:$0xf] %v740_v32  ;;  %v1463_v22 = vor.u32 %v1462_v2, %v1458_v37  ;;  %v1472_v42 = vshll.u32 %v6833_v24, 16  ;;  %v6845_v45 = vld [vmem:[#allocation2 + $0x4c] sm:$0xf]  ;;  %v1470_v55 = vshrl.u32 %v6833_v24, 16 }
  0xab   : > { %v2053_v29 = vor.u32 %v2052_v10, %v2048_v60  ;;  %5592 = vmatpush3.bf16.msra.mxu1 %v5980_v47  ;;  %1016 = vst [vmem:[#allocation2 + $0x68] sm:$0x1] %v1015_v35  ;;  %v6104_v48 = vld [vmem:[#allocation2 + $0x70] sm:$0xf]  ;;  %v1477_v57 = vshll.u32 %v6838_v39, 16  ;;  %v6012_v5 = vld [vmem:[%s7663_s1 + $0xb8] sm:$0xff]  }
  0xac   : > { %v1791_v25 = vld [vmem:[#allocation2 + $0x54] sm:$0xf]  ;;  %5593 = vmatprep.subr.bf16.mxu1 %v5985_v14  ;;  %v6850_v49 = vcombine.low %v1795_v20, %v6104_v48  ;;  %v1468_v60 = vsel %vm1408_vm10, %v1463_v22, %v1467_v3  ;;  %v1474_v62 = vrot.slane %v1472_v42, 1  ;;  %v1797_v7 = vld [vmem:[#allocation2 + $0x78] sm:$0xf] }
  0xad   : > { %v2058_v38 = vsel %vm1408_vm10, %v2053_v29, %v2057_v61  ;;  %v4743_v40 = vcombine.low %v1791_v25, %v6820_v26  ;;  %v6868_v52 = vld [vmem:[#allocation2 + $0x50] ss:$0 sps:$4 sm:$0x11]   ;;  %v1479_v34 = vrot.slane %v1477_v57, 1  ;;  %v1214_v16 = vld [vmem:[#allocation2 + $0x54] sm:$0xf] }
  0xae   : > { %2572 = vmatprep.mubr.bf16.mxu0 %v2058_v38  ;;  %3015 = vmatmul.mubr.bf16.gmra.mrb[24].mxu1 %v6706_v27  ;;  %v5995_v27 = vld [vmem:[%s7663_s1 + $0xb0] sm:$0xff]   ;;  %v2086_v8 = vshll.u32 %v6850_v49, 16  ;;  %v1475_v61 = vor.u32 %v1474_v62, %v1470_v55  ;;  %v6105_v19 = vld [vmem:[#allocation2 + $0x7c] sm:$0xf]  ;;  %v1489_v38 = vshll.u32 %v6868_v52, 16 }
  0xaf   : > { %2573 = vmatmul.mubr.bf16.gmra.mrb[20].mxu0 %v4742_v44  ;;  %v6841_v12 = vld [vmem:[#allocation2 + $0x5c] ss:$0 sps:$4 sm:$0x11]   ;;  %v2060_v33 = vshrl.u32 %v4743_v40, 16  ;;  %v2062_v18 = vshll.u32 %v4743_v40, 16  ;;  %3022 = vmatprep.mubr.bf16.mxu1 %v1456_v28  ;;  %v6880_v23 = vcombine.low %v1797_v7, %v6105_v19  ;;  %v2084_v28 = vshrl.u32 %v6850_v49, 16 }
  0xb0   : > { %5594 = vmatpush3.bf16.msra.mxu1 %v5985_v14  ;;  %v2067_v43 = vshll.u32 %v6841_v12, 16  ;;  %v1104_v47 = vld [vmem:[#allocation2 + $0x60] sm:$0x1]  ;;  %v1212_v44 = vld [vmem:[#allocation2 + $0x48] sm:$0xf]  ;;  %v2088_v25 = vrot.slane %v2086_v8, 1  ;;  %v1480_v2 = vsel %vm1408_vm10, %v1475_v61, %v1479_v34 }
  0xb1   : > { %5595 = vmatprep.subr.bf16.mxu1 %v5990_v36  ;;  %v2064_v46 = vrot.slane %v2062_v18, 1  ;;  %v1105_v0 = vsel %vm6359_vm6, 0, %v1104_v47  ;;  %v6860_v15 = vcombine.low %v1212_v44, %v6845_v45  ;;  %v6870_v10 = vld [vmem:[#allocation2 + $0x64] sm:$0xf]  ;;  %v6873_v14 = vld [vmem:[#allocation2 + $0x58] sm:$0xf] }
  0xb2   : > { %v2069_v50 = vrot.slane %v2067_v43, 1  ;;  %1106 = vst [vmem:[#allocation2 + $0x60] sm:$0x1] %v1105_v0  ;;  %v1159_v54 = vld [vmem:[#allocation2 + $0x68] sm:$0x1]  ;;  %v6890_v20 = vcombine.low %v1214_v16, %v6873_v14  ;;  %v2098_v42 = vshll.u32 %v6880_v23, 16 }
  0xb3   : > { %v2065_v51 = vor.u32 %v2064_v46, %v2060_v33  ;;  %v1160_v58 = vsel %vm6389_vm8, 0, %v1159_v54  ;;  %v1484_v13 = vshll.u32 %v6860_v15, 16  ;;  %v6106_v32 = vld [vmem:[#allocation2 + $0x74] ss:$0 sps:$4 sm:$0x11]   ;;  %v1482_v11 = vshrl.u32 %v6860_v15, 16 }
  0xb4   : > { %5596 = vmatpush3.bf16.msra.mxu1 %v5990_v36  ;;  %1161 = vst [vmem:[#allocation2 + $0x68] sm:$0x1] %v1160_v58  ;;  %v2091_v35 = vshll.u32 %v6106_v32, 16  ;;  %v1799_v43 = vld [vmem:[#allocation2 + $0x84] sm:$0xf]  ;;  %v2089_v46 = vor.u32 %v2088_v25, %v2084_v28  ;;  %v1496_v0 = vshll.u32 %v6890_v20, 16 }
  0xb5   : > { %5597 = vmatprep.subr.bf16.mxu1 %v5995_v27  ;;  %v2070_v63 = vsel %vm1408_vm10, %v2065_v51, %v2069_v50  ;;  %v1486_v36 = vrot.slane %v1484_v13, 1  ;;  %v6896_v47 = vld [vmem:[#allocation2 + $0x5c] ss:$0 sps:$4 sm:$0x11]   ;;  %v1491_v50 = vrot.slane %v1489_v38, 1  ;;  %v2100_v7 = vrot.slane %v2098_v42, 1 }
  0xb6   : > { %2580 = vmatprep.mubr.bf16.mxu0 %v2070_v63  ;;  %3023 = vmatmul.mubr.bf16.gmra.mrb[28].mxu1 %v6755_v9  ;;  %v6878_v9 = vld [vmem:[%s7663_s1 + $0x200] sm:$0xff]   ;;  %v2093_v3 = vrot.slane %v2091_v35, 1  ;;  %v6107_v57 = vld [vmem:[#allocation2 + $0x88] sm:$0xf]  ;;  %v1494_v8 = vshrl.u32 %v6890_v20, 16  ;;  %v1498_v34 = vrot.slane %v1496_v0, 1 }
  0xb7   : > { %2581 = vmatmul.mubr.bf16.gmra.mrb[24].mxu0 %v4743_v40  ;;  %3030 = vmatprep.mubr.bf16.mxu1 %v1468_v60  ;;  %v1487_v48 = vor.u32 %v1486_v36, %v1482_v11  ;;  %v6899_v55 = vld [vmem:[#allocation2 + $0x64] sm:$0xf]  ;;  %v6901_v58 = vcombine.low %v1799_v43, %v6107_v57  ;;  %v6108_v60 = vld [vmem:[#allocation2 + $0x80] ss:$0 sps:$4 sm:$0x11]   ;;  %v1501_v13 = vshll.u32 %v6896_v47, 16 }
  0xb8   : > { %5598 = vmatpush3.bf16.msra.mxu1 %v5995_v27  ;;  %v2103_v62 = vshll.u32 %v6108_v60, 16  ;;  %v1801_v19 = vld [vmem:[#allocation2 + $0x90] sm:$0xf]  ;;  %v1218_v28 = vld [vmem:[#allocation2 + $0x6c] sm:$0xf]  ;;  %v1499_v11 = vor.u32 %v1498_v34, %v1494_v8 }
  0xb9   : > { %5599 = vmatprep.subr.bf16.mxu1 %v6012_v5  ;;  %v1793_v29 = vld [vmem:[#allocation2 + $0x60] sm:$0xf]  ;;  %v1492_v61 = vsel %vm1408_vm10, %v1487_v48, %v1491_v50  ;;  %v6914_v35 = vld [vmem:[#allocation2 + $0x70] sm:$0xf]  ;;  %v1503_v38 = vrot.slane %v1501_v13, 1 }
  0xba   : > { %v4744_v37 = vcombine.low %v1793_v29, %v6870_v10  ;;  %v1216_v54 = vld [vmem:[#allocation2 + $0x60] sm:$0xf]  ;;  %v2110_v29 = vshll.u32 %v6901_v58, 16  ;;  %v2105_v32 = vrot.slane %v2103_v62, 1  ;;  %v6924_v42 = vcombine.low %v1218_v28, %v6914_v35 }
  0xbb   : > { %v6886_v40 = vld [vmem:[#allocation2 + $0x68] ss:$0 sps:$4 sm:$0x11]   ;;  %v6910_v16 = vcombine.low %v1216_v54, %v6899_v55  ;;  %v6110_v43 = vld [vmem:[#allocation2 + $0x8c] ss:$0 sps:$4 sm:$0x11]  }
  0xbc   : > { %5600 = vmatpush3.bf16.msra.mxu1 %v6012_v5  ;;  %v2072_v33 = vshrl.u32 %v4744_v37, 16  ;;  %v2074_v18 = vshll.u32 %v4744_v37, 16  ;;  %v2079_v22 = vshll.u32 %v6886_v40, 16  ;;  %v2094_v5 = vsel %vm1408_vm10, %v2089_v46, %v2093_v3  ;;  %v1803_v46 = vld [vmem:[#allocation2 + $0x9c] sm:$0xf] }
  0xbd   : > { %5633 = vmatprep.subr.bf16.mxu1 %v6878_v9  ;;  %v1508_v36 = vshll.u32 %v6910_v16, 16  ;;  %v1506_v48 = vshrl.u32 %v6910_v16, 16  ;;  %v1220_v54 = vld [vmem:[#allocation2 + $0x78] sm:$0xf]  ;;  %v1520_v8 = vshll.u32 %v6924_v42, 16 }
  0xbe   : > { %3031 = vmatmul.mubr.bf16.gmra.mrb[32].mxu1 %v6808_v21  ;;  %v2076_v27 = vrot.slane %v2074_v18, 1  ;;  %v2081_v44 = vrot.slane %v2079_v22, 1  ;;  %v2096_v21 = vshrl.u32 %v6880_v23, 16  ;;  %v2115_v22 = vshll.u32 %v6110_v43, 16  ;;  %v6111_v28 = vld [vmem:[#allocation2 + $0xa0] sm:$0xf] }
  0xbf   : > { %3038 = vmatprep.mubr.bf16.mxu1 %v1480_v2  ;;  %v6916_v2 = vld [vmem:[#allocation2 + $0x68] ss:$0 sps:$4 sm:$0x11]   ;;  %v1510_v50 = vrot.slane %v1508_v36, 1  ;;  %v2262_v43 = vrot.slane %v6841_v12, 1 }
  0xc0   : > { %v2077_v51 = vor.u32 %v2076_v27, %v2072_v33  ;;  %v2101_v25 = vor.u32 %v2100_v7, %v2096_v21  ;;  %v6109_v33 = vld [vmem:[#allocation2 + $0x94] sm:$0xf]  ;;  %v1831_v27 = vld [vmem:[#allocation2 + $0x3c] sm:$0xe]  ;;  %v1513_v0 = vshll.u32 %v6916_v2, 16  ;;  %v2117_v21 = vrot.slane %v2115_v22, 1 }
  0xc1   : > { %v6919_v18 = vcombine.low %v1801_v19, %v6109_v33  ;;  %v6932_v62 = vld [vmem:[#allocation2 + $0x74] ss:$0 sps:$4 sm:$0x11]   ;;  %v1833_v19 = vld [vmem:[#allocation2 + $0x54] sm:$0xe] }
  0xc2   : > { %v2082_v63 = vsel %vm1408_vm10, %v2077_v51, %v2081_v44  ;;  %v2106_v3 = vsel %vm1408_vm10, %v2101_v25, %v2105_v32  ;;  %v1504_v44 = vsel %vm1408_vm10, %v1499_v11, %v1503_v38  ;;  %v1832_v51 = vld [vmem:[#allocation2 + $0x48] sm:$0xe]  ;;  %v1515_v34 = vrot.slane %v1513_v0, 1 }
  0xc3   : > { %2588 = vmatprep.mubr.bf16.mxu0 %v2082_v63  ;;  %v2122_v60 = vshll.u32 %v6919_v18, 16  ;;  %v6934_v63 = vld [vmem:[#allocation2 + $0x7c] sm:$0xf]  ;;  %v2120_v7 = vshrl.u32 %v6919_v18, 16  ;;  %v6941_v25 = vcombine.low %v1803_v46, %v6111_v28  ;;  %v2259_v11 = vrot.slane %v6806_v30, 1 }
  0xc4   : > { %2589 = vmatmul.mubr.bf16.gmra.mrb[28].mxu0 %v4744_v37  ;;  %v2108_v37 = vshrl.u32 %v6901_v58, 16  ;;  %v6944_v32 = vcombine.low %v1220_v54, %v6934_v63  ;;  %v1518_v30 = vshrl.u32 %v6924_v42, 16  ;;  %v1525_v46 = vshll.u32 %v6932_v62, 16  ;;  %v1805_v0 = vld [vmem:[#allocation2 + $0xa8] sm:$0xf] }
  0xc5   : > { %2596 = vmatprep.mubr.bf16.mxu0 %v2094_v5  ;;  %v4773_v5 = vcombine.low %v1831_v27, %v6749_v31  ;;  %v2124_v36 = vrot.slane %v2122_v60, 1  ;;  %v1522_v27 = vrot.slane %v1520_v8, 1  ;;  %v2134_v12 = vshll.u32 %v6941_v25, 16  ;;  %v6113_v60 = vld [vmem:[#allocation2 + $0xac] sm:$0xf] }
  0xc6   : > { %3039 = vmatmul.mubr.bf16.gmra.mrb[36].mxu1 %v6833_v24  ;;  %v2112_v24 = vrot.slane %v2110_v29, 1  ;;  %v1834_v29 = vld [vmem:[#allocation2 + $0x60] sm:$0xe]  ;;  %v1532_v54 = vshll.u32 %v6944_v32, 16  ;;  %v6975_v8 = vld [vmem:[#allocation2 + $0x88] sm:$0xf] }
  0xc7   : > { %3046 = vmatprep.mubr.bf16.mxu1 %v1492_v61  ;;  %v4774_v61 = vcombine.low %v1832_v51, %v6797_v41  ;;  %v2255_v13 = vrot.slane %v4773_v5, 1  ;;  %v4776_v22 = vcombine.low %v1834_v29, %v6870_v10  ;;  %v2125_v10 = vor.u32 %v2124_v36, %v2120_v7  ;;  %v6964_v51 = vld [vmem:[#allocation2 + $0x80] ss:$0 sps:$4 sm:$0x11]  }
  0xc8   : > { %v2113_v57 = vor.u32 %v2112_v24, %v2108_v37  ;;  %v4775_v24 = vcombine.low %v1833_v19, %v6820_v26  ;;  %v6973_v5 = vcombine.low %v1805_v0, %v6113_v60  ;;  %v2132_v7 = vshrl.u32 %v6941_v25, 16  ;;  %v6115_v0 = vld [vmem:[#allocation2 + $0xb8] sm:$0xf] }
  0xc9   : > { %v2258_v31 = vrot.slane %v4774_v61, 1  ;;  %v6114_v61 = vld [vmem:[#allocation2 + $0xa4] ss:$0 sps:$4 sm:$0x11]   ;;  %v1530_v19 = vshrl.u32 %v6944_v32, 16  ;;  %v1534_v29 = vrot.slane %v1532_v54, 1 }
  0xca   : > { %v2118_v38 = vsel %vm1408_vm10, %v2113_v57, %v2117_v21  ;;  %v1527_v21 = vrot.slane %v1525_v46, 1  ;;  %v1537_v28 = vshll.u32 %v6964_v51, 16  ;;  %v2146_v36 = vshll.u32 %v6973_v5, 16  ;;  %v6991_v46 = vld [vmem:[#allocation2 + $0x94] sm:$0xf] }
  0xcb   : > { %v6952_v37 = vsel %vm1665_vm9, %v2258_v31, %v2259_v11  ;;  %v1807_v31 = vld [vmem:[#allocation2 + $0xb4] sm:$0xf] }
  0xcc   : > { %2597 = vmatmul.mubr.bf16.gmra.mrb[32].mxu0 %v6850_v49  ;;  %v2256_v49 = vrot.slane %v6763_v56, 1  ;;  %v6112_v56 = vld [vmem:[#allocation2 + $0x98] ss:$0 sps:$4 sm:$0x11]  }
  0xcd   : > { %2604 = vmatprep.mubr.bf16.mxu0 %v2106_v3  ;;  %v2127_v33 = vshll.u32 %v6112_v56, 16 }
  0xce   : > { %3047 = vmatmul.mubr.bf16.gmra.mrb[40].mxu1 %v6860_v15  ;;  %v1511_v15 = vor.u32 %v1510_v50, %v1506_v48  ;;  %v6949_v41 = vsel %vm1665_vm9, %v2255_v13, %v2256_v49  ;;  %v2264_v48 = vrot.slane %v4776_v22, 1  ;;  %v2265_v50 = vrot.slane %v6886_v40, 1  ;;  %v1224_v22 = vld [vmem:[#allocation2 + $0x90] sm:$0xf] }
  0xcf   : > { %3054 = vmatprep.mubr.bf16.mxu1 %v1504_v44  ;;  %v2261_v44 = vrot.slane %v4775_v24, 1  ;;  %v2129_v26 = vrot.slane %v2127_v33, 1  ;;  %v1523_v40 = vor.u32 %v1522_v27, %v1518_v30  ;;  %v2136_v49 = vrot.slane %v2134_v12, 1 }
  0xd0   : > { %v1516_v3 = vsel %vm1408_vm10, %v1511_v15, %v1515_v34  ;;  %v2139_v15 = vshll.u32 %v6114_v61, 16  ;;  %v1253_v34 = vld [vmem:[#allocation2 + $0x3c] sm:$0xe]  ;;  %v1535_v30 = vor.u32 %v1534_v29, %v1530_v19  ;;  %v1539_v27 = vrot.slane %v1537_v28, 1  ;;  %v1809_v28 = vld [vmem:[#allocation2 + $0xc0] sm:$0xf] }
  0xd1   : > { %v6968_v57 = vsel %vm1665_vm9, %v2261_v44, %v2262_v43  ;;  %v2130_v13 = vsel %vm1408_vm10, %v2125_v10, %v2129_v26  ;;  %v1528_v11 = vsel %vm1408_vm10, %v1523_v40, %v1527_v21  ;;  %v4726_v56 = vcombine.low %v1253_v34, %v6814_v6  ;;  %v6989_v43 = vld [vmem:[#allocation2 + $0x8c] ss:$0 sps:$4 sm:$0x11]   ;;  %v6116_v10 = vld [vmem:[#allocation2 + $0xb0] ss:$0 sps:$4 sm:$0x11]  }
  0xd2   : > { %v2137_v33 = vor.u32 %v2136_v49, %v2132_v7  ;;  %v2141_v24 = vrot.slane %v2139_v15, 1  ;;  %v6997_v26 = vcombine.low %v1807_v31, %v6115_v0  ;;  %v2148_v12 = vrot.slane %v2146_v36, 1  ;;  %v1256_v15 = vld [vmem:[#allocation2 + $0x60] sm:$0xe] }
  0xd3   : > { %v1681_v44 = vrot.slane %v4726_v56, 1  ;;  %v2151_v54 = vshll.u32 %v6116_v10, 16  ;;  %v1688_v61 = vrot.slane %v6896_v47, 1  ;;  %v4729_v29 = vcombine.low %v1256_v15, %v6899_v55  ;;  %v7018_v31 = vld [vmem:[#allocation2 + $0x98] ss:$0 sps:$4 sm:$0x11]  }
  0xd4   : > { %2605 = vmatmul.mubr.bf16.gmra.mrb[36].mxu0 %v6880_v23  ;;  %v6971_v23 = vsel %vm1665_vm9, %v2264_v48, %v2265_v50  ;;  %v2144_v48 = vshrl.u32 %v6973_v5, 16  ;;  %v1255_v50 = vld [vmem:[#allocation2 + $0x54] sm:$0xe]  ;;  %v2142_v21 = vsel %vm1408_vm10, %v2137_v33, %v2141_v24  ;;  %v1691_v56 = vrot.slane %v6916_v2, 1  ;;  %v1226_v55 = vld [vmem:[#allocation2 + $0x9c] sm:$0xf] }
  0xd5   : > { %2612 = vmatprep.mubr.bf16.mxu0 %v2118_v38  ;;  %v4728_v49 = vcombine.low %v1255_v50, %v6873_v14  ;;  %v2153_v47 = vrot.slane %v2151_v54, 1  ;;  %v1690_v36 = vrot.slane %v4729_v29, 1  ;;  %v1227_v24 = vld [vmem:[#allocation2 + $0xa0] sm:$0xf]  ;;  %v6118_v2 = vld [vmem:[#allocation2 + $0xc4] sm:$0xf] }
  0xd6   : > { %3055 = vmatmul.mubr.bf16.gmra.mrb[44].mxu1 %v6890_v20  ;;  %v1222_v20 = vld [vmem:[#allocation2 + $0x84] sm:$0xf]  ;;  %v2149_v14 = vor.u32 %v2148_v12, %v2144_v48  ;;  %v1561_v12 = vshll.u32 %v7018_v31, 16  ;;  %v1700_v54 = vrot.slane %v6989_v43, 1 }
  0xd7   : > { %3062 = vmatprep.mubr.bf16.mxu1 %v1516_v3  ;;  %v6983_v38 = vcombine.low %v1222_v20, %v6975_v8  ;;  %v1254_v3 = vld [vmem:[#allocation2 + $0x48] sm:$0xe]  ;;  %v1685_v20 = vrot.slane %v6868_v52, 1  ;;  %v2158_v52 = vshll.u32 %v6997_v26, 16  ;;  %v1259_v48 = vld [vmem:[#allocation2 + $0x84] sm:$0xe] }
  0xd8   : > { %v4732_v10 = vcombine.low %v1259_v48, %v6975_v8  ;;  %v1231_v48 = vld [vmem:[#allocation2 + $0xb8] sm:$0xf] }
  0xd9   : > { %v1544_v6 = vshll.u32 %v6983_v38, 16  ;;  %v1542_v7 = vshrl.u32 %v6983_v38, 16 }
  0xdb   : > { %v1546_v34 = vrot.slane %v1544_v6, 1  ;;  %v7030_v6 = vcombine.low %v1809_v28, %v6118_v2  ;;  %v1563_v28 = vrot.slane %v1561_v12, 1 }
  0xdc   : > { %2613 = vmatmul.mubr.bf16.gmra.mrb[40].mxu0 %v6901_v58  ;;  %v1682_v58 = vrot.slane %v6838_v39, 1  ;;  %v7004_v39 = vcombine.low %v1224_v22, %v6991_v46 }
  0xdd   : > { %2620 = vmatprep.mubr.bf16.mxu0 %v2130_v13  ;;  %v1549_v13 = vshll.u32 %v6989_v43, 16  ;;  %v1547_v22 = vor.u32 %v1546_v34, %v1542_v7  ;;  %v2168_v15 = vshrl.u32 %v7030_v6, 16  ;;  %v2170_v8 = vshll.u32 %v7030_v6, 16 }
  0xde   : > { %3063 = vmatmul.mubr.bf16.gmra.mrb[48].mxu1 %v6910_v16  ;;  %v4727_v16 = vcombine.low %v1254_v3, %v6845_v45  ;;  %v7000_v40 = vsel %vm1665_vm9, %v1681_v44, %v1682_v58  ;;  %v1540_v45 = vsel %vm1408_vm10, %v1535_v30, %v1539_v27  ;;  %v1556_v33 = vshll.u32 %v7004_v39, 16  ;;  %v6117_v44 = vld [vmem:[#allocation2 + $0xbc] ss:$0 sps:$4 sm:$0x11]  }
  0xdf   : > { %3070 = vmatprep.mubr.bf16.mxu1 %v1528_v11  ;;  %v1687_v11 = vrot.slane %v4728_v49, 1  ;;  %v1551_v3 = vrot.slane %v1549_v13, 1  ;;  %v7027_v30 = vsel %vm1665_vm9, %v1690_v36, %v1691_v56  ;;  %v2160_v27 = vrot.slane %v2158_v52, 1  ;;  %v1261_v13 = vld [vmem:[#allocation2 + $0x9c] sm:$0xe] }
  0xe0   : > { %v1684_v60 = vrot.slane %v4727_v16, 1  ;;  %v2163_v58 = vshll.u32 %v6117_v44, 16  ;;  %v2154_v16 = vsel %vm1408_vm10, %v2149_v14, %v2153_v47  ;;  %v1554_v50 = vshrl.u32 %v7004_v39, 16  ;;  %v1229_v52 = vld [vmem:[#allocation2 + $0xac] sm:$0xf] }
  0xe1   : > { %v1558_v0 = vrot.slane %v1556_v33, 1  ;;  %v1699_v49 = vrot.slane %v4732_v10, 1  ;;  %v1703_v34 = vrot.slane %v7018_v31, 1  ;;  %v4734_v47 = vcombine.low %v1261_v13, %v1227_v24  ;;  %v7050_v36 = vld [vmem:[#allocation2 + $0xbc] ss:$0 sps:$4 sm:$0x11]  }
  0xe2   : > { %v7013_v19 = vsel %vm1665_vm9, %v1684_v60, %v1685_v20  ;;  %v7038_v60 = vcombine.low %v1226_v55, %v1227_v24  ;;  %v6000_v20 = vld [vmem:[#allocation2 + $0xa4] ss:$0 sps:$4 sm:$0x11]   ;;  %v2165_v7 = vrot.slane %v2163_v58, 1  ;;  %v1262_v58 = vld [vmem:[#allocation2 + $0xa8] sm:$0xe] }
  0xe3   : > { %v1559_v29 = vor.u32 %v1558_v0, %v1554_v50  ;;  %v7047_v14 = vsel %vm1665_vm9, %v1699_v49, %v1700_v54  ;;  %v1706_v33 = vrot.slane %v6000_v20, 1  ;;  %v6119_v31 = vld [vmem:[#allocation2 + $0xc8] ss:$0 sps:$4 sm:$0x11]   ;;  %v1263_v0 = vld [vmem:[#allocation2 + $0xb4] sm:$0xe] }
  0xe4   : > { %2621 = vmatmul.mubr.bf16.gmra.mrb[44].mxu0 %v6919_v18  ;;  %v7024_v18 = vsel %vm1665_vm9, %v1687_v11, %v1688_v61  ;;  %v1260_v61 = vld [vmem:[#allocation2 + $0x90] sm:$0xe]  ;;  %v6008_v11 = vld [vmem:[#allocation2 + $0xb0] ss:$0 sps:$4 sm:$0x11]   ;;  %v2175_v55 = vshll.u32 %v6119_v31, 16  ;;  %v4736_v54 = vcombine.low %v1263_v0, %v1231_v48 }
  0xe5   : > { %2628 = vmatprep.mubr.bf16.mxu0 %v2142_v21  ;;  %v1552_v21 = vsel %vm1408_vm10, %v1547_v22, %v1551_v3  ;;  %v4733_v43 = vcombine.low %v1260_v61, %v6991_v46  ;;  %v1705_v22 = vrot.slane %v4734_v47, 1  ;;  %v2172_v3 = vrot.slane %v2170_v8, 1  ;;  %v1827_v8 = vld [vmem:[#allocation2 + $0xc] sm:$0xe] }
  0xe6   : > { %3071 = vmatmul.mubr.bf16.gmra.mrb[52].mxu1 %v6924_v42  ;;  %v2156_v42 = vshrl.u32 %v6997_v26, 16  ;;  %v1564_v24 = vsel %vm1408_vm10, %v1559_v29, %v1563_v28  ;;  %v1709_v50 = vrot.slane %v6008_v11, 1  ;;  %v2177_v49 = vrot.slane %v2175_v55, 1  ;;  %v1828_v55 = vld [vmem:[#allocation2 + $0x18] sm:$0xe] }
  0xe7   : > { %3078 = vmatprep.mubr.bf16.mxu1 %v1540_v45  ;;  %v1702_v56 = vrot.slane %v4733_v43, 1  ;;  %v7059_v2 = vsel %vm1665_vm9, %v1705_v22, %v1706_v33  ;;  %v1829_v22 = vld [vmem:[#allocation2 + $0x24] sm:$0xe]  ;;  %v1597_v0 = vshll.u32 %v7050_v36, 16 }
  0xe8   : > { %v2161_v45 = vor.u32 %v2160_v27, %v2156_v42  ;;  %v1566_v42 = vshrl.u32 %v7038_v60, 16  ;;  %v1573_v27 = vshll.u32 %v6000_v20, 16 }
  0xe9   : > { %v7055_v44 = vsel %vm1665_vm9, %v1702_v56, %v1703_v34 }
  0xea   : > { %v2166_v46 = vsel %vm1408_vm10, %v2161_v45, %v2165_v7  ;;  %v1711_v45 = vrot.slane %v4736_v54, 1  ;;  %v2173_v7 = vor.u32 %v2172_v3, %v2168_v15  ;;  %v1575_v34 = vrot.slane %v1573_v27, 1  ;;  %v6124_v54 = vld [vmem:[#allocation2 + $0x20] ss:$0 sps:$4 sm:$0x11]  }
  0xec   : > { %2629 = vmatmul.mubr.bf16.gmra.mrb[48].mxu0 %v6941_v25  ;;  %v1228_v25 = vld [vmem:[#allocation2 + $0xa8] sm:$0xf]  ;;  %v2178_v28 = vsel %vm1408_vm10, %v2173_v7, %v2177_v49  ;;  %v1830_v49 = vld [vmem:[#allocation2 + $0x30] sm:$0xe] }
  0xed   : > { %2636 = vmatprep.mubr.bf16.mxu0 %v2154_v16  ;;  %v4735_v16 = vcombine.low %v1262_v58, %v1229_v52  ;;  %v7061_v10 = vcombine.low %v1228_v25, %v1229_v52  ;;  %v6120_v25 = vld [vmem:[#allocation2 + $0x10] sm:$0xf]  ;;  %v6122_v58 = vld [vmem:[#allocation2 + $0x1c] sm:$0xf] }
  0xee   : > { %3079 = vmatmul.mubr.bf16.gmra.mrb[56].mxu1 %v6944_v32  ;;  %v1568_v32 = vshll.u32 %v7038_v60, 16 }
  0xef   : > { %3086 = vmatprep.mubr.bf16.mxu1 %v1552_v21  ;;  %v1712_v21 = vrot.slane %v7050_v36, 1  ;;  %v1708_v20 = vrot.slane %v4735_v16, 1  ;;  %v1580_v13 = vshll.u32 %v7061_v10, 16  ;;  %v1578_v52 = vshrl.u32 %v7061_v10, 16  ;;  %v5998_v36 = vld [vmem:[%s7663_s1 + $0x180] sm:$0xff]  }
  0xf0   : > { %v1570_v12 = vrot.slane %v1568_v32, 1  ;;  %v1585_v32 = vshll.u32 %v6008_v11, 16 }
  0xf1   : > { %v7067_v61 = vsel %vm1665_vm9, %v1708_v20, %v1709_v50  ;;  %v7071_v29 = vsel %vm1665_vm9, %v1711_v45, %v1712_v21  ;;  %v1582_v47 = vrot.slane %v1580_v13, 1  ;;  %v2247_v21 = vrot.slane %v6124_v54, 1  ;;  %v6125_v45 = vld [vmem:[#allocation2 + $0x2c] ss:$0 sps:$4 sm:$0x11]  }
  0xf2   : > { %v1571_v43 = vor.u32 %v1570_v12, %v1566_v42  ;;  %v1587_v42 = vrot.slane %v1585_v32, 1  ;;  %v2250_v7 = vrot.slane %v6125_v45, 1  ;;  %v6126_v13 = vld [vmem:[#allocation2 + $0x34] sm:$0xf]  ;;  %v1250_v54 = vld [vmem:[#allocation2 + $0x18] sm:$0xe] }
  0xf3   : > { %v1583_v3 = vor.u32 %v1582_v47, %v1578_v52  ;;  %v6127_v47 = vld [vmem:[#allocation2 + $0x4] sm:$0xf] }
  0xf4   : > { %2637 = vmatmul.mubr.bf16.gmra.mrb[52].mxu0 %v6973_v5  ;;  %v1230_v5 = vld [vmem:[#allocation2 + $0xb4] sm:$0xf]  ;;  %v1576_v15 = vsel %vm1408_vm10, %v1571_v43, %v1575_v34  ;;  %v1599_v34 = vrot.slane %v1597_v0, 1 }
  0xf5   : > { %2644 = vmatprep.mubr.bf16.mxu0 %v2166_v46  ;;  %v7077_v56 = vcombine.low %v1230_v5, %v1231_v48  ;;  %v6121_v46 = vld [vmem:[#allocation2 + $0x14] ss:$0 sps:$4 sm:$0x11]   ;;  %v1588_v16 = vsel %vm1408_vm10, %v1583_v3, %v1587_v42  ;;  %v4772_v5 = vcombine.low %v1830_v49, %v6126_v13  ;;  %v6132_v49 = vld [vmem:[#allocation2 + $0x10] sm:$0xf] }
  0xf6   : > { %3087 = vmatmul.mubr.bf16.gmra.mrb[60].mxu1 %v6983_v38  ;;  %v4769_v38 = vcombine.low %v1827_v8, %v6120_v25  ;;  %v2244_v31 = vrot.slane %v6121_v46, 1  ;;  %v5128_v8 = vld [vmem:[%s6303_s17 + $0x88] sm:$0xff]   ;;  %v6004_v42 = vld [vmem:[%s7663_s1 + $0x1d0] sm:$0xff]  }
  0xf7   : > { %3094 = vmatprep.mubr.bf16.mxu1 %v1564_v24  ;;  %v1592_v27 = vshll.u32 %v7077_v56, 16  ;;  %v4770_v24 = vcombine.low %v1828_v55, %v6122_v58  ;;  %v5110_v25 = vunpack.c.l.bf16 %v5128_v8  ;;  %v2252_v46 = vrot.slane %v4772_v5, 1  ;;  %v3289_v58 = vld [vmem:[#allocation2 + $0x18] sm:$0xf] }
  0xf8   : > { %v2243_v33 = vrot.slane %v4769_v38, 1 }
  0xf9   : > { %v1594_v50 = vrot.slane %v1592_v27, 1  ;;  %v2246_v12 = vrot.slane %v4770_v24, 1  ;;  %v7107_v24 = vld [vmem:[#allocation2 + $0x1c] sm:$0xf] }
  0xfa   : > { %v2245_v11 = vsel %vm1665_vm9, %v2243_v33, %v2244_v31  ;;  %v6002_v33 = vld [vmem:[%s7663_s1 + $0x188] sm:$0xff]   ;;  %v6128_v31 = vld [vmem:[#allocation2 + $0x38] ss:$0 sps:$4 sm:$0x11]   ;;  %v7120_v45 = vcombine.low %v3289_v58, %v7107_v24 }
  0xfb   : > { %v2253_v55 = vrot.slane %v6128_v31, 1 }
  0xfc   : > { %2645 = vmatmul.mubr.bf16.gmra.mrb[56].mxu0 %v6997_v26  ;;  %v6123_v26 = vld [vmem:[#allocation2 + $0x28] sm:$0xf] }
  0xfd   : > { %2652 = vmatprep.mubr.bf16.mxu0 %v2178_v28  ;;  %v4771_v48 = vcombine.low %v1829_v22, %v6123_v26  ;;  %v1248_v28 = vld [vmem:[#allocation2] sm:$0xe]  ;;  %v6129_v22 = vld [vmem:[%s7664_s2] ss:$0 sm:$0xff] }
  0xfe   : > { %3095 = vmatmul.mubr.bf16.gmra.mrb[64].mxu1 %v7004_v39  ;;  %v1590_v39 = vshrl.u32 %v7077_v56, 16  ;;  %v4721_v32 = vcombine.low %v1248_v28, %v6127_v47  ;;  %v398_v3 = vmul.f32 %v6129_v22, %v5110_v25  ;;  %v6010_v28 = vld [vmem:[%s7663_s1 + $0x198] sm:$0xff]   ;;  %v6013_v25 = vld [vmem:[%s7663_s1 + $0x1e0] sm:$0xff]  }
  0xff   : > { %3102 = vmatprep.mubr.bf16.mxu1 %v1576_v15  ;;  %v2249_v20 = vrot.slane %v4771_v48, 1  ;;  %v5111_v15 = vunpack.c.h.bf16 %v5128_v8 }
 0x100   : > { %v1595_v43 = vor.u32 %v1594_v50, %v1590_v39  ;;  %v1666_v48 = vrot.slane %v4721_v32, 1  ;;  %v1249_v50 = vld [vmem:[#allocation2 + $0xc] sm:$0xe]  ;;  %v6015_v32 = vld [vmem:[%s7663_s1 + $0x1a0] sm:$0xff]  }
 0x101   : > { %v2251_v38 = vsel %vm1665_vm9, %v2249_v20, %v2250_v7  ;;  %v399_v27 = vmul.f32 %v6129_v22, %v5111_v15  ;;  %v6009_v20 = vld [vmem:[%s7663_s1 + $0x1d8] sm:$0xff]   ;;  %v4722_v8 = vcombine.low %v1249_v50, %v6132_v49  ;;  %v3500_v15 = vshll.u32 %v7120_v45, 16  ;;  %v1077_v49 = vld [vmem:[#allocation2 + $0xd4] sm:$0x1] }
 0x102   : > { %v1600_v52 = vsel %vm1408_vm10, %v1595_v43, %v1599_v34  ;;  %v7123_v34 = vld [vmem:[#allocation2 + $0x20] ss:$0 sps:$4 sm:$0x11]  }
 0x103   : > { %v3505_v22 = vshll.u32 %v7123_v34, 16  ;;  %v3502_v50 = vrot.slane %v3500_v15, 1 }
 0x104   : > { %2653 = vmatmul.mubr.bf16.gmra.mrb[60].mxu0 %v7030_v6  ;;  %v2248_v6 = vsel %vm1665_vm9, %v2246_v12, %v2247_v21  ;;  %v2254_v12 = vsel %vm1665_vm9, %v2252_v46, %v2253_v55 }
 0x105   : > { %5553 = vmatprep.mubr.bf16.mxu0 %v2245_v11  ;;  %v6130_v11 = vld [vmem:[%s7665_s3] ss:$0 sm:$0xff] }
 0x106   : > { %3103 = vmatmul.mubr.bf16.gmra.mrb[68].mxu1 %v7038_v60  ;;  %v6001_v60 = vld [vmem:[%s7663_s1 + $0x1c8] sm:$0xff]   ;;  %v440_v26 = vadd.f32 %v6130_v11, %v398_v3  ;;  %v441_v0 = vadd.f32 %v6130_v11, %v399_v27  ;;  %v6135_v3 = vld [vmem:[#allocation2 + $0x20] ss:$0 sps:$4 sm:$0x11]   ;;  %v1251_v27 = vld [vmem:[#allocation2 + $0x24] sm:$0xe] }
 0x107   : > { %3110 = vmatprep.mubr.bf16.mxu1 %v1588_v16  ;;  %v6131_v16 = vld [vmem:[#allocation2 + $0x8] ss:$0 sps:$4 sm:$0x11]   ;;  %v3498_v11 = vshrl.u32 %v7120_v45, 16 }
 0x108   : > { %v1667_v39 = vrot.slane %v6131_v16, 1  ;;  %v476_v21 = vmax.f32 %v440_v26, 0.0  ;;  %v477_v7 = vmax.f32 %v441_v0, 0.0  ;;  %v1252_v26 = vld [vmem:[#allocation2 + $0x30] sm:$0xe] }
 0x109   : > { %v1073_v16 = vld [vmem:[#allocation2 + $0xcc] sm:$0xf]  ;;  %v3503_v17 = vor.u32 %v3502_v50, %v3498_v11  ;;  %v6025_v11 = vld [vmem:[%s7663_s1 + $0x1f8] sm:$0xff]  }
 0x10a   : > { %v1668_v43 = vsel %vm1665_vm9, %v1666_v48, %v1667_v39  ;;  %v5038_v13 = vpack.c.bf16 %v476_v21, %v476_v21  ;;  %v5039_v5 = vpack.c.bf16 %v477_v7, %v477_v7  ;;  %v6018_v39 = vld [vmem:[%s7663_s1 + $0x1e8] sm:$0xff]  }
 0x10b   : > { %v6136_v21 = vld [vmem:[#allocation2 + $0x28] sm:$0xf] }
 0x10c   : > { %5554 = vmatmul.mubr.bf16.vlgmr.msra.gmra.mrb[64].mxu0 %v2248_v6  ;;  %v6133_v6 = vld [vmem:[#allocation2 + $0x1c] sm:$0xf]  ;;  %v879_v47 = vshrl.u32 %v5038_v13, 16  ;;  %v882_v46 = vshll.u32 %v5038_v13, 16  ;;  %v887_v31 = vshrl.u32 %v5039_v5, 16  ;;  %v890_v55 = vshll.u32 %v5039_v5, 16 }
 0x10d   : > { %5402 = vmatpush3.bf16.msra.mxu0 %v5998_v36  ;;  %5557 = vmatprep.mubr.bf16.mxu0 %v2251_v38  ;;  %v4723_v36 = vcombine.low %v1250_v54, %v6133_v6  ;;  %v6137_v6 = vld [vmem:[#allocation2 + $0x34] sm:$0xf] }
 0x10e   : > { %5403 = vmatprep.subr.bf16.mxu0 %v6001_v60  ;;  %3111 = vmatmul.mubr.bf16.gmra.mrb[72].mxu1 %v7061_v10  ;;  %v6006_v10 = vld [vmem:[%s7663_s1 + $0x190] sm:$0xff]   ;;  %v881_v58 = vrot.slane %v879_v47, 7  ;;  %v889_v48 = vrot.slane %v887_v31, 7  ;;  %v6138_v47 = vld [vmem:[#allocation2 + $0x2c] ss:$0 sps:$4 sm:$0x11]  }
 0x10f   : > { %3118 = vmatprep.mubr.bf16.mxu1 %v1600_v52  ;;  %v6134_v60 = vld [vmem:[#allocation2 + $0x14] ss:$0 sps:$4 sm:$0x11]   ;;  %v3291_v52 = vld [vmem:[#allocation2 + $0x24] sm:$0xf] }
 0x110   : > { %v1670_v38 = vrot.slane %v6134_v60, 1  ;;  %v892_v7 = vor.u32 %v890_v55, %v889_v48  ;;  %v894_v13 = vrot.slane %v889_v48, 4  ;;  %v6021_v60 = vld [vmem:[%s7663_s1 + $0x1f0] sm:$0xff]   ;;  %v6139_v55 = vld [vmem:[#allocation2 + $0x38] ss:$0 sps:$4 sm:$0x11]  }
 0x111   : > { %5404 = vmatpush3.bf16.msra.mxu0 %v6002_v33  ;;  %v1669_v33 = vrot.slane %v4722_v8, 1 }
 0x112   : > { %5405 = vmatprep.subr.bf16.mxu0 %v6004_v42  ;;  %v1673_v42 = vrot.slane %v6135_v3, 1 }
 0x113   : > { %v1671_v54 = vsel %vm1665_vm9, %v1669_v33, %v1670_v38  ;;  %v3507_v38 = vrot.slane %v3505_v22, 1  ;;  %v7170_v33 = vld [vmem:[#allocation2 + $0x34] sm:$0xf]  ;;  %v1679_v22 = vrot.slane %v6139_v55, 1  ;;  %v1258_v55 = vld [vmem:[#allocation2 + $0x78] sm:$0xe] }
 0x114   : > { %5558 = vmatmul.mubr.bf16.gmra.mrb[68].mxu0 %v2254_v12  ;;  %v884_v12 = vor.u32 %v882_v46, %v881_v58 }
 0x115   : > { %5406 = vmatpush3.bf16.msra.mxu0 %v6006_v10  ;;  %5561 = vmatprep.mubr.bf16.mxu0 %v6949_v41  ;;  %v7137_v41 = vld [vmem:[#allocation2 + $0x28] sm:$0xf]  ;;  %v885_v10 = vrot.slane %v881_v58, 4 }
 0x116   : > { %5407 = vmatprep.subr.bf16.mxu0 %v6009_v20  ;;  %3119 = vmatmul.mubr.bf16.gmra.mrb[76].mxu1 %v7077_v56  ;;  %v1672_v56 = vrot.slane %v4723_v36, 1  ;;  %v7145_v0 = vcombine.low %v3291_v52, %v7137_v41  ;;  %v4724_v20 = vcombine.low %v1251_v27, %v6136_v21  ;;  %v4725_v36 = vcombine.low %v1252_v26, %v6137_v6  ;;  %v3293_v52 = vld [vmem:[#allocation2 + $0x30] sm:$0xf]  ;;  %v6045_v21 = vld [vmem:[%s7663_s1 + $0x218] sm:$0xff]  }
 0x117   : > { %5601 = vmatprep.mubr.bf16.mxu1 %v1668_v43  ;;  %v6035_v43 = vld [vmem:[%s7663_s1 + $0x208] sm:$0xff]   ;;  %v1074_v5 = vsel %vm6365_vm7, %v884_v12, %v1073_v16  ;;  %v3508_v26 = vsel %vm1408_vm10, %v3503_v17, %v3507_v38 }
 0x118   : > { %v1674_v8 = vsel %vm1665_vm9, %v1672_v56, %v1673_v42  ;;  %1075 = vst [vmem:[#allocation2 + $0xcc] sm:$0xf] %v1074_v5  ;;  %v3512_v15 = vshll.u32 %v7145_v0, 16  ;;  %v1675_v59 = vrot.slane %v4724_v20, 1  ;;  %v1678_v31 = vrot.slane %v4725_v36, 1  ;;  %v6040_v56 = vld [vmem:[%s7663_s1 + $0x210] sm:$0xff]  }
 0x119   : > { %5408 = vmatpush3.bf16.msra.mxu0 %v6010_v28  ;;  %v6019_v28 = vld [vmem:[%s7663_s1 + $0x1a8] sm:$0xff]   ;;  %v3510_v48 = vshrl.u32 %v7145_v0, 16  ;;  %v7206_v5 = vld [vmem:[#allocation2 + $0x40] sm:$0xf] }
 0x11a   : > { %5409 = vmatprep.subr.bf16.mxu0 %v6013_v25  ;;  %v893_v25 = vsel %vm6353_vm5, %v885_v10, %v892_v7  ;;  %v3514_v16 = vrot.slane %v3512_v15, 1  ;;  %v6027_v7 = vld [vmem:[%s7663_s1 + $0x1b8] sm:$0xff]   ;;  %v6055_v15 = vld [vmem:[%s7663_s1 + $0x228] sm:$0xff]  }
 0x11b   : > { %1076 = vst [vmem:[#allocation2 + $0xd0] sm:$0xf] %v893_v25 }
 0x11c   : > { %5562 = vmatmul.mubr.bf16.gmra.mrb[72].mxu0 %v6952_v37  ;;  %v7159_v37 = vld [vmem:[#allocation2 + $0x2c] ss:$0 sps:$4 sm:$0x11]   ;;  %1198 = vst [vmem:[#allocation2 + $0xd0] sm:$0xf] %v6164_v1 }
 0x11d   : > { %5410 = vmatpush3.bf16.msra.mxu0 %v6015_v32  ;;  %5565 = vmatprep.mubr.bf16.mxu0 %v6968_v57  ;;  %v1078_v57 = vsel %vm6359_vm6, %v894_v13, %v1077_v49  ;;  %v1676_v32 = vrot.slane %v6138_v47, 1  ;;  %v3517_v42 = vshll.u32 %v7159_v37, 16  ;;  %v7201_v49 = vld [vmem:[#allocation2 + $0x38] ss:$0 sps:$4 sm:$0x11]  }
 0x11e   : > { %5411 = vmatprep.subr.bf16.mxu0 %v6018_v39  ;;  %5602 = vmatmul.mubr.bf16.vlgmr.msra.gmra.mrb[80].mxu1 %v1671_v54  ;;  %1079 = vst [vmem:[#allocation2 + $0xd4] sm:$0x1] %v1078_v57  ;;  %v7188_v39 = vcombine.low %v3293_v52, %v7170_v33  ;;  %v1680_v54 = vsel %vm1665_vm9, %v1678_v31, %v1679_v22  ;;  %v3295_v13 = vld [vmem:[#allocation2 + $0x3c] sm:$0xf]  ;;  %v3529_v25 = vshll.u32 %v7201_v49, 16 }
 0x11f   : > { %5634 = vmatpush3.bf16.msra.mxu1 %v6878_v9  ;;  %5605 = vmatprep.mubr.bf16.mxu1 %v1674_v8  ;;  %v6023_v9 = vld [vmem:[%s7663_s1 + $0x1b0] sm:$0xff]   ;;  %v1677_v12 = vsel %vm1665_vm9, %v1675_v59, %v1676_v32  ;;  %v1131_v20 = vld [vmem:[#allocation2 + $0xcc] sm:$0x1]  ;;  %v7219_v53 = vcombine.low %v3295_v13, %v7206_v5  ;;  %v7225_v52 = vld [vmem:[#allocation2 + $0x44] ss:$0 sps:$4 sm:$0x11]  }
 0x120   : > { %v5145_v46 = vpop.f32.mrb[0].mxu0  ;;  %5635 = vmatprep.subr.bf16.mxu1 %v6035_v43  ;;  %v1132_v8 = vsel %vm6359_vm6, 0, %v1131_v20  ;;  %v3524_v6 = vshll.u32 %v7188_v39, 16  ;;  %v3522_v17 = vshrl.u32 %v7188_v39, 16  ;;  %v3531_v57 = vrot.slane %v3529_v25, 1 }
 0x121   : > { %v5146_v3 = vpop.f32.mrb[1].mxu0  ;;  %5412 = vmatpush3.bf16.msra.mxu0 %v6019_v28  ;;  %1133 = vst [vmem:[#allocation2 + $0xcc] sm:$0x1] %v1132_v8  ;;  %v3536_v59 = vshll.u32 %v7219_v53, 16  ;;  %v3297_v47 = vld [vmem:[#allocation2 + $0x48] sm:$0xf] }
 0x122   : > { %v7180_v27 = vadd.f32 %v5146_v3, %v5145_v46  ;;  %v5148_v58 = vpop.f32.mrb[2].mxu0  ;;  %5413 = vmatprep.subr.bf16.mxu0 %v6021_v60  ;;  %1197 = vst [vmem:[#allocation2 + $0xcc] sm:$0xf] %v6164_v1  ;;  %v3526_v38 = vrot.slane %v3524_v6, 1  ;;  %v7230_v32 = vld [vmem:[#allocation2 + $0x4c] sm:$0xf] }
 0x123   : > { %v5149_v50 = vpop.f32.mrb[3].mxu0  ;;  %5636 = vmatpush3.bf16.msra.mxu1 %v6035_v43  ;;  %v3519_v43 = vrot.slane %v3517_v42, 1  ;;  %v6060_v46 = vld [vmem:[%s7663_s1 + $0x230] sm:$0xff]   ;;  %v3541_v31 = vshll.u32 %v7225_v52, 16  ;;  %v3534_v22 = vshrl.u32 %v7219_v53, 16  ;;  %v6065_v42 = vld [vmem:[%s7663_s1 + $0x238] sm:$0xff]  }
 0x124   : > { %v7191_v10 = vadd.f32 %v5149_v50, %v5148_v58  ;;  %5566 = vmatmul.mubr.bf16.gmra.mrb[76].mxu0 %v6971_v23  ;;  %5637 = vmatprep.subr.bf16.mxu1 %v6040_v56  ;;  %v3515_v23 = vor.u32 %v3514_v16, %v3510_v48  ;;  %v7247_v58 = vld [vmem:[#allocation2 + $0x50] ss:$0 sps:$4 sm:$0x11]   ;;  %v3299_v50 = vld [vmem:[#allocation2 + $0x54] sm:$0xf] }
 0x125   : > { %5414 = vmatpush3.bf16.msra.mxu0 %v6023_v9  ;;  %4042 = vmatprep.mubr.bf16.mxu0 %v3508_v26  ;;  %v1186_v36 = vld [vmem:[#allocation2 + $0xd4] sm:$0x1]  ;;  %v4731_v9 = vcombine.low %v1258_v55, %v6934_v63  ;;  %v3543_v48 = vrot.slane %v3541_v31, 1  ;;  %v3303_v31 = vld [vmem:[#allocation2 + $0x6c] sm:$0xf] }
 0x126   : > { %5415 = vmatprep.subr.bf16.mxu0 %v6025_v11  ;;  %5606 = vmatmul.mubr.bf16.gmra.mrb[84].mxu1 %v1677_v12  ;;  %v1187_v28 = vsel %vm6389_vm8, 0, %v1186_v36  ;;  %v3520_v60 = vsel %vm1408_vm10, %v3515_v23, %v3519_v43  ;;  %v7253_v12 = vld [vmem:[#allocation2 + $0x58] sm:$0xf]  ;;  %v7282_v55 = vld [vmem:[#allocation2 + $0x70] sm:$0xf] }
 0x127   : > { %5609 = vmatprep.mubr.bf16.mxu1 %v1680_v54  ;;  %5638 = vmatpush3.bf16.msra.mxu1 %v6040_v56  ;;  %1188 = vst [vmem:[#allocation2 + $0xd4] sm:$0x1] %v1187_v28  ;;  %v3538_v56 = vrot.slane %v3536_v59, 1  ;;  %v1696_v20 = vrot.slane %v4731_v9, 1  ;;  %v4886_v6 = vcombine.low %v3299_v50, %v7253_v12 }
 0x128   : > { %5639 = vmatprep.subr.bf16.mxu1 %v6045_v21  ;;  %1199 = vst [vmem:[#allocation2 + $0xd4] sm:$0x1] %v6164_v1  ;;  %v3527_v1 = vor.u32 %v3526_v38, %v3522_v17  ;;  %v7269_v17 = vld [vmem:[#allocation2 + $0x64] sm:$0xf] }
 0x129   : > { %5416 = vmatpush3.bf16.msra.mxu0 %v6027_v7  ;;  %v3539_v26 = vor.u32 %v3538_v56, %v3534_v22  ;;  %v3560_v25 = vshll.u32 %v4886_v6, 16  ;;  %v3558_v38 = vshrl.u32 %v4886_v6, 16  ;;  %v3337_v22 = vld [vmem:[#allocation2 + $0x18] sm:$0xe] }
 0x12a   : > { %v4913_v9 = vcombine.low %v3337_v22, %v7107_v24 }
 0x12b   : > { %5640 = vmatpush3.bf16.msra.mxu1 %v6045_v21  ;;  %v3544_v23 = vsel %vm1408_vm10, %v3539_v26, %v3543_v48  ;;  %v3305_v48 = vld [vmem:[#allocation2 + $0x78] sm:$0xf] }
 0x12c   : > { %4043 = vmatmul.mubr.bf16.vlgmr.msra.gmra.mrb[80].mxu0 %v7120_v45  ;;  %5641 = vmatprep.subr.bf16.mxu1 %v6050_v4  ;;  %v1257_v45 = vld [vmem:[#allocation2 + $0x6c] sm:$0xe] }
 0x12d   : > { %4050 = vmatprep.mubr.bf16.mxu0 %v3520_v60  ;;  %v4730_v3 = vcombine.low %v1257_v45, %v6914_v35  ;;  %v1694_v35 = vrot.slane %v6932_v62, 1  ;;  %v3553_v62 = vshll.u32 %v7247_v58, 16  ;;  %v3301_v60 = vld [vmem:[#allocation2 + $0x60] sm:$0xf] }
 0x12e   : > { %5610 = vmatmul.mubr.bf16.gmra.mrb[88].mxu1 %v7000_v40  ;;  %v3532_v40 = vsel %vm1408_vm10, %v3527_v1, %v3531_v57  ;;  %v3562_v1 = vrot.slane %v3560_v25, 1  ;;  %v7278_v45 = vld [vmem:[#allocation2 + $0x68] ss:$0 sps:$4 sm:$0x11]  }
 0x12f   : > { %5613 = vmatprep.mubr.bf16.mxu1 %v7013_v19  ;;  %5642 = vmatpush3.bf16.msra.mxu1 %v6050_v4  ;;  %v7239_v19 = vcombine.low %v3297_v47, %v7230_v32  ;;  %v1693_v63 = vrot.slane %v4730_v3, 1  ;;  %v3555_v28 = vrot.slane %v3553_v62, 1  ;;  %v7267_v4 = vld [vmem:[#allocation2 + $0x5c] ss:$0 sps:$4 sm:$0x11]   ;;  %v3577_v3 = vshll.u32 %v7278_v45, 16 }
 0x130   : > { %5643 = vmatprep.subr.bf16.mxu1 %v6055_v15  ;;  %v3565_v57 = vshll.u32 %v7267_v4, 16  ;;  %v3563_v59 = vor.u32 %v3562_v1, %v3558_v38  ;;  %v3307_v38 = vld [vmem:[#allocation2 + $0x84] sm:$0xf]  ;;  %v3760_v1 = vrot.slane %v7201_v49, 1 }
 0x131   : > { %v3548_v16 = vshll.u32 %v7239_v19, 16  ;;  %v1695_v36 = vsel %vm1665_vm9, %v1693_v63, %v1694_v35  ;;  %v7297_v35 = vld [vmem:[#allocation2 + $0x7c] sm:$0xf]  ;;  %v3338_v63 = vld [vmem:[#allocation2 + $0x24] sm:$0xe] }
 0x132   : > { %v3567_v47 = vrot.slane %v3565_v57, 1  ;;  %v7306_v62 = vcombine.low %v3305_v48, %v7297_v35  ;;  %v3766_v48 = vrot.slane %v7247_v58, 1 }
 0x133   : > { %5644 = vmatpush3.bf16.msra.mxu1 %v6055_v15  ;;  %v3550_v43 = vrot.slane %v3548_v16, 1 }
 0x134   : > { %4051 = vmatmul.mubr.bf16.gmra.mrb[84].mxu0 %v7145_v0  ;;  %5645 = vmatprep.subr.bf16.mxu1 %v6060_v46  ;;  %v3568_v56 = vsel %vm1408_vm10, %v3563_v59, %v3567_v47  ;;  %v3596_v25 = vshll.u32 %v7306_v62, 16  ;;  %v3594_v57 = vshrl.u32 %v7306_v62, 16 }
 0x135   : > { %4058 = vmatprep.mubr.bf16.mxu0 %v3532_v40  ;;  %v5151_v11 = vpop.f32.mrb[4].mxu0 }
 0x136   : > { %5614 = vmatmul.mubr.bf16.gmra.mrb[92].mxu1 %v7024_v18  ;;  %v5152_v0 = vpop.f32.mrb[5].mxu0  ;;  %v1697_v18 = vrot.slane %v6964_v51, 1  ;;  %v3598_v47 = vrot.slane %v3596_v25, 1 }
 0x137   : > { %5617 = vmatprep.mubr.bf16.mxu1 %v7027_v30  ;;  %5646 = vmatpush3.bf16.msra.mxu1 %v6060_v46  ;;  %v7255_v54 = vadd.f32 %v5152_v0, %v5151_v11  ;;  %v5154_v21 = vpop.f32.mrb[6].mxu0  ;;  %v3546_v30 = vshrl.u32 %v7239_v19, 16  ;;  %v7293_v11 = vld [vmem:[#allocation2 + $0x74] ss:$0 sps:$4 sm:$0x11]   ;;  %v3753_v0 = vrot.slane %v4913_v9, 1 }
 0x138   : > { %5647 = vmatprep.subr.bf16.mxu1 %v6065_v42  ;;  %v5155_v7 = vpop.f32.mrb[7].mxu0  ;;  %v1698_v51 = vsel %vm1665_vm9, %v1696_v20, %v1697_v18 }
 0x139   : > { %v7259_v8 = vadd.f32 %v5155_v7, %v5154_v21  ;;  %v3551_v13 = vor.u32 %v3550_v43, %v3546_v30  ;;  %v4914_v30 = vcombine.low %v3338_v63, %v7137_v41  ;;  %v3757_v41 = vrot.slane %v7159_v37, 1 }
 0x13b   : > { %5648 = vmatpush3.bf16.msra.mxu1 %v6065_v42  ;;  %v3556_v15 = vsel %vm1408_vm10, %v3551_v13, %v3555_v28  ;;  %v3579_v42 = vrot.slane %v3577_v3, 1  ;;  %v7314_v28 = vld [vmem:[#allocation2 + $0x80] ss:$0 sps:$4 sm:$0x11]  }
 0x13c   : > { %4059 = vmatmul.mubr.bf16.gmra.mrb[88].mxu0 %v7188_v39  ;;  %v7274_v39 = vcombine.low %v3301_v60, %v7269_v17  ;;  %v3756_v60 = vrot.slane %v4914_v30, 1  ;;  %v7332_v3 = vld [vmem:[#allocation2 + $0x8c] ss:$0 sps:$4 sm:$0x11]   ;;  %v3769_v30 = vrot.slane %v7267_v4, 1 }
 0x13d   : > { %4066 = vmatprep.mubr.bf16.mxu0 %v3544_v23 }
 0x13e   : > { %5618 = vmatmul.mubr.bf16.gmra.mrb[0].mxu1 %v1695_v36  ;;  %v3572_v46 = vshll.u32 %v7274_v39, 16  ;;  %v3570_v40 = vshrl.u32 %v7274_v39, 16  ;;  %v3758_v37 = vsel %vm1665_vm9, %v3756_v60, %v3757_v41  ;;  %v3772_v60 = vrot.slane %v7278_v45, 1  ;;  %v3344_v41 = vld [vmem:[#allocation2 + $0x6c] sm:$0xe] }
 0x13f   : > { %5621 = vmatprep.mubr.bf16.mxu1 %v1698_v51 }
 0x144   : > { %4067 = vmatmul.mubr.bf16.gmra.mrb[92].mxu0 %v7219_v53  ;;  %v3574_v53 = vrot.slane %v3572_v46, 1  ;;  %v3601_v46 = vshll.u32 %v7314_v28, 16 }
 0x145   : > { %4074 = vmatprep.mubr.bf16.mxu0 %v3556_v15  ;;  %v7318_v15 = vld [vmem:[#allocation2 + $0x88] sm:$0xf] }
 0x146   : > { %5622 = vmatmul.mubr.bf16.gmra.mrb[4].mxu1 %v7047_v14  ;;  %v7288_v14 = vcombine.low %v3303_v31, %v7282_v55  ;;  %v7325_v31 = vcombine.low %v3307_v38, %v7318_v15 }
 0x147   : > { %5625 = vmatprep.mubr.bf16.mxu1 %v7055_v44  ;;  %v3575_v44 = vor.u32 %v3574_v53, %v3570_v40  ;;  %v3603_v53 = vrot.slane %v3601_v46, 1  ;;  %v4920_v46 = vcombine.low %v3344_v41, %v7282_v55  ;;  %v7376_v55 = vld [vmem:[#allocation2 + $0xac] sm:$0xf]  ;;  %v3315_v41 = vld [vmem:[#allocation2 + $0xb4] sm:$0xf] }
 0x148   : > { %v3584_v26 = vshll.u32 %v7288_v14, 16  ;;  %v3582_v50 = vshrl.u32 %v7288_v14, 16  ;;  %v3608_v9 = vshll.u32 %v7325_v31, 16 }
 0x149   : > { %v3580_v18 = vsel %vm1408_vm10, %v3575_v44, %v3579_v42  ;;  %v3763_v42 = vrot.slane %v7225_v52, 1 }
 0x14a   : > { %v3586_v7 = vrot.slane %v3584_v26, 1  ;;  %v3309_v26 = vld [vmem:[#allocation2 + $0x90] sm:$0xf]  ;;  %v3610_v63 = vrot.slane %v3608_v9, 1  ;;  %v3775_v9 = vrot.slane %v7293_v11, 1 }
 0x14c   : > { %4075 = vmatmul.mubr.bf16.gmra.mrb[96].mxu0 %v7239_v19  ;;  %v3754_v19 = vrot.slane %v7123_v34, 1  ;;  %v3587_v51 = vor.u32 %v3586_v7, %v3582_v50 }
 0x14d   : > { %4082 = vmatprep.mubr.bf16.mxu0 %v3568_v56  ;;  %v3599_v56 = vor.u32 %v3598_v47, %v3594_v57 }
 0x14e   : > { %5626 = vmatmul.mubr.bf16.gmra.mrb[8].mxu1 %v7059_v2  ;;  %v3339_v2 = vld [vmem:[#allocation2 + $0x30] sm:$0xe]  ;;  %v3755_v43 = vsel %vm1665_vm9, %v3753_v0, %v3754_v19  ;;  %v3343_v0 = vld [vmem:[#allocation2 + $0x60] sm:$0xe] }
 0x14f   : > { %5629 = vmatprep.mubr.bf16.mxu1 %v7067_v61  ;;  %v3589_v61 = vshll.u32 %v7293_v11, 16  ;;  %v4915_v36 = vcombine.low %v3339_v2, %v7170_v33  ;;  %v3340_v33 = vld [vmem:[#allocation2 + $0x3c] sm:$0xe]  ;;  %v3604_v19 = vsel %vm1408_vm10, %v3599_v56, %v3603_v53  ;;  %v3774_v53 = vrot.slane %v4920_v46, 1  ;;  %v3349_v46 = vld [vmem:[#allocation2 + $0xa8] sm:$0xe] }
 0x150   : > { %v5157_v16 = vpop.f32.mrb[8].mxu0  ;;  %v4916_v40 = vcombine.low %v3340_v33, %v7206_v5  ;;  %v7336_v5 = vld [vmem:[#allocation2 + $0x94] sm:$0xf] }
 0x151   : > { %v5158_v24 = vpop.f32.mrb[9].mxu0  ;;  %v3591_v13 = vrot.slane %v3589_v61, 1  ;;  %v7343_v50 = vcombine.low %v3309_v26, %v7336_v5  ;;  %v3778_v26 = vrot.slane %v7314_v28, 1  ;;  %v3776_v28 = vsel %vm1665_vm9, %v3774_v53, %v3775_v9 }
 0x152   : > { %v7301_v21 = vadd.f32 %v5158_v24, %v5157_v16  ;;  %v5160_v20 = vpop.f32.mrb[10].mxu0  ;;  %v3762_v44 = vrot.slane %v4916_v40, 1  ;;  %v3342_v16 = vld [vmem:[#allocation2 + $0x54] sm:$0xe]  ;;  %v3613_v24 = vshll.u32 %v7332_v3, 16 }
 0x153   : > { %v5161_v23 = vpop.f32.mrb[11].mxu0  ;;  %v3592_v59 = vsel %vm1408_vm10, %v3587_v51, %v3591_v13  ;;  %v4918_v2 = vcombine.low %v3342_v16, %v7253_v12  ;;  %v3311_v51 = vld [vmem:[#allocation2 + $0x9c] sm:$0xf]  ;;  %v7372_v40 = vld [vmem:[#allocation2 + $0xa4] ss:$0 sps:$4 sm:$0x11]  }
 0x154   : > { %v7309_v34 = vadd.f32 %v5161_v23, %v5160_v20  ;;  %4083 = vmatmul.mubr.bf16.gmra.mrb[100].mxu0 %v4886_v6  ;;  %v3759_v6 = vrot.slane %v4915_v36, 1  ;;  %v3764_v52 = vsel %vm1665_vm9, %v3762_v44, %v3763_v42  ;;  %v4919_v20 = vcombine.low %v3343_v0, %v7269_v17  ;;  %v3313_v44 = vld [vmem:[#allocation2 + $0xa8] sm:$0xf] }
 0x155   : > { %4090 = vmatprep.mubr.bf16.mxu0 %v3580_v18  ;;  %v7350_v18 = vld [vmem:[#allocation2 + $0x98] ss:$0 sps:$4 sm:$0x11]   ;;  %v3615_v61 = vrot.slane %v3613_v24, 1  ;;  %v3768_v12 = vrot.slane %v4918_v2, 1  ;;  %v3637_v16 = vshll.u32 %v7372_v40, 16  ;;  %v7385_v24 = vcombine.low %v3313_v44, %v7376_v55 }
 0x156   : > { %5630 = vmatmul.mubr.bf16.gmra.mrb[12].mxu1 %v7071_v29  ;;  %v3341_v29 = vld [vmem:[#allocation2 + $0x48] sm:$0xe]  ;;  %v3761_v49 = vsel %vm1665_vm9, %v3759_v6, %v3760_v1  ;;  %v3771_v25 = vrot.slane %v4919_v20, 1  ;;  %v3618_v6 = vshrl.u32 %v7343_v50, 16  ;;  %v3625_v4 = vshll.u32 %v7350_v18, 16 }
 0x157   : > { %5649 = vmatprep.mubr.bf16.mxu1 %v3755_v43  ;;  %v4917_v22 = vcombine.low %v3341_v29, %v7230_v32  ;;  %v3606_v32 = vshrl.u32 %v7325_v31, 16  ;;  %v3620_v43 = vshll.u32 %v7343_v50, 16  ;;  %v3345_v1 = vld [vmem:[#allocation2 + $0x78] sm:$0xe]  ;;  %v3770_v47 = vsel %vm1665_vm9, %v3768_v12, %v3769_v30 }
 0x158   : > { %v3773_v45 = vsel %vm1665_vm9, %v3771_v25, %v3772_v60  ;;  %v3781_v60 = vrot.slane %v7332_v3, 1 }
 0x159   : > { %v3611_v7 = vor.u32 %v3610_v63, %v3606_v32  ;;  %v3622_v29 = vrot.slane %v3620_v43, 1  ;;  %v3347_v32 = vld [vmem:[#allocation2 + $0x90] sm:$0xe] }
 0x15b   : > { %v3616_v33 = vsel %vm1408_vm10, %v3611_v7, %v3615_v61 }
 0x15c   : > { %4091 = vmatmul.mubr.bf16.gmra.mrb[104].mxu0 %v7274_v39  ;;  %v3765_v39 = vrot.slane %v4917_v22, 1  ;;  %v3627_v22 = vrot.slane %v3625_v4, 1  ;;  %v3784_v4 = vrot.slane %v7350_v18, 1 }
 0x15d   : > { %4098 = vmatprep.mubr.bf16.mxu0 %v3592_v59 }
 0x15e   : > { %5650 = vmatmul.mubr.bf16.vlgmr.msra.gmra.mrb[80].mxu1 %v3758_v37  ;;  %v3767_v58 = vsel %vm1665_vm9, %v3765_v39, %v3766_v48  ;;  %v4921_v37 = vcombine.low %v3345_v1, %v7297_v35  ;;  %v3346_v35 = vld [vmem:[#allocation2 + $0x84] sm:$0xe]  ;;  %v3348_v1 = vld [vmem:[#allocation2 + $0x9c] sm:$0xe] }
 0x15f   : > { %5653 = vmatprep.mubr.bf16.mxu1 %v3761_v49  ;;  %v3623_v49 = vor.u32 %v3622_v29, %v3618_v6  ;;  %v3642_v29 = vshrl.u32 %v7385_v24, 16 }
 0x160   : > { %v3777_v42 = vrot.slane %v4921_v37, 1 }
 0x161   : > { %v3628_v0 = vsel %vm1408_vm10, %v3623_v49, %v3627_v22 }
 0x162   : > { %v3779_v61 = vsel %vm1665_vm9, %v3777_v42, %v3778_v26  ;;  %v7420_v42 = vld [vmem:[#allocation2 + $0xbc] ss:$0 sps:$4 sm:$0x11]  }
 0x164   : > { %4099 = vmatmul.mubr.bf16.gmra.mrb[108].mxu0 %v7288_v14  ;;  %v7354_v14 = vld [vmem:[#allocation2 + $0xa0] sm:$0xf] }
 0x165   : > { %4106 = vmatprep.mubr.bf16.mxu0 %v3604_v19  ;;  %v7365_v59 = vcombine.low %v3311_v51, %v7354_v14  ;;  %v4924_v18 = vcombine.low %v3348_v1, %v7354_v14  ;;  %v6093_v1 = vld [vmem:[#allocation2 + $0xc8] ss:$0 sps:$4 sm:$0x11]  }
 0x166   : > { %5654 = vmatmul.mubr.bf16.gmra.mrb[84].mxu1 %v3764_v52 }
 0x167   : > { %v5163_v23 = vpop.f32.mrb[12].mxu0  ;;  %5657 = vmatprep.mubr.bf16.mxu1 %v3767_v58  ;;  %v3632_v56 = vshll.u32 %v7365_v59, 16  ;;  %v3630_v48 = vshrl.u32 %v7365_v59, 16  ;;  %v4922_v58 = vcombine.low %v3346_v35, %v7318_v15  ;;  %v3644_v15 = vshll.u32 %v7385_v24, 16 }
 0x168   : > { %v5164_v36 = vpop.f32.mrb[13].mxu0  ;;  %v3786_v14 = vrot.slane %v4924_v18, 1 }
 0x169   : > { %v7356_v13 = vadd.f32 %v5164_v36, %v5163_v23  ;;  %v5166_v17 = vpop.f32.mrb[14].mxu0  ;;  %v3634_v11 = vrot.slane %v3632_v56, 1  ;;  %v4923_v23 = vcombine.low %v3347_v32, %v7336_v5  ;;  %v7396_v36 = vld [vmem:[#allocation2 + $0xb0] ss:$0 sps:$4 sm:$0x11]   ;;  %v3780_v25 = vrot.slane %v4922_v58, 1 }
 0x16a   : > { %v5167_v38 = vpop.f32.mrb[15].mxu0  ;;  %v7402_v5 = vld [vmem:[#allocation2 + $0xb8] sm:$0xf]  ;;  %v3646_v3 = vrot.slane %v3644_v15, 1  ;;  %v3661_v58 = vshll.u32 %v7420_v42, 16 }
 0x16b   : > { %v7362_v57 = vadd.f32 %v5167_v38, %v5166_v17  ;;  %v3635_v51 = vor.u32 %v3634_v11, %v3630_v48  ;;  %v3639_v17 = vrot.slane %v3637_v16, 1  ;;  %v3783_v6 = vrot.slane %v4923_v23, 1  ;;  %v3317_v48 = vld [vmem:[#allocation2 + $0xc0] sm:$0xf]  ;;  %v3318_v16 = vld [vmem:[#allocation2 + $0xc4] sm:$0xf] }
 0x16c   : > { %4107 = vmatmul.mubr.bf16.gmra.mrb[112].mxu0 %v7306_v62  ;;  %v7411_v22 = vcombine.low %v3315_v41, %v7402_v5  ;;  %v3782_v53 = vsel %vm1665_vm9, %v3780_v25, %v3781_v60  ;;  %v3647_v26 = vor.u32 %v3646_v3, %v3642_v29  ;;  %v3790_v11 = vrot.slane %v7396_v36, 1 }
 0x16d   : > { %4114 = vmatprep.mubr.bf16.mxu0 %v3616_v33  ;;  %v3785_v44 = vsel %vm1665_vm9, %v3783_v6, %v3784_v4 }
 0x16e   : > { %5658 = vmatmul.mubr.bf16.gmra.mrb[88].mxu1 %v3770_v47  ;;  %v3649_v47 = vshll.u32 %v7396_v36, 16 }
 0x16f   : > { %5661 = vmatprep.mubr.bf16.mxu1 %v3773_v45  ;;  %v3640_v45 = vsel %vm1408_vm10, %v3635_v51, %v3639_v17 }
 0x170   : > { %v3651_v35 = vrot.slane %v3649_v47, 1  ;;  %v3663_v47 = vrot.slane %v3661_v58, 1 }
 0x171   : > { %v5281_v62 = vpop.f32.mrb[16].mxu1 }
 0x172   : > { %v5282_v39 = vpop.f32.mrb[17].mxu1 }
 0x173   : > { %v7382_v19 = vadd.f32 %v5282_v39, %v5281_v62  ;;  %v5284_v63 = vpop.f32.mrb[18].mxu1  ;;  %v4925_v62 = vcombine.low %v3349_v46, %v7376_v55  ;;  %v3656_v39 = vshll.u32 %v7411_v22, 16  ;;  %v3350_v55 = vld [vmem:[#allocation2 + $0xb4] sm:$0xe] }
 0x174   : > { %v5285_v2 = vpop.f32.mrb[19].mxu1  ;;  %4115 = vmatmul.mubr.bf16.gmra.mrb[116].mxu0 %v7325_v31  ;;  %v4926_v60 = vcombine.low %v3350_v55, %v7402_v5  ;;  %v3793_v5 = vrot.slane %v7420_v42, 1 }
 0x175   : > { %v5169_v52 = vpop.f32.mrb[16].mxu0  ;;  %v7390_v20 = vadd.f32 %v5285_v2, %v5284_v63  ;;  %4122 = vmatprep.mubr.bf16.mxu0 %v3628_v0  ;;  %v3789_v63 = vrot.slane %v4925_v62, 1  ;;  %v3658_v17 = vrot.slane %v3656_v39, 1 }
 0x176   : > { %v5170_v7 = vpop.f32.mrb[17].mxu0  ;;  %5662 = vmatmul.mubr.bf16.gmra.mrb[92].mxu1 %v3776_v28  ;;  %v3654_v28 = vshrl.u32 %v7411_v22, 16  ;;  %v3792_v46 = vrot.slane %v4926_v60, 1 }
 0x177   : > { %v7394_v30 = vadd.f32 %v5170_v7, %v5169_v52  ;;  %v5172_v43 = vpop.f32.mrb[18].mxu0  ;;  %5665 = vmatprep.mubr.bf16.mxu1 %v3779_v61  ;;  %v7427_v7 = vcombine.low %v3317_v48, %v3318_v16  ;;  %v3351_v61 = vld [vmem:[#allocation2 + $0xc0] sm:$0xe]  ;;  %v3791_v6 = vsel %vm1665_vm9, %v3789_v63, %v3790_v11  ;;  %v6096_v11 = vld [vmem:[#allocation2 + $0xd4] ss:$0 sps:$4 sm:$0x11]  }
 0x178   : > { %v5173_v12 = vpop.f32.mrb[19].mxu0  ;;  %v4927_v4 = vcombine.low %v3351_v61, %v3318_v16  ;;  %v3659_v29 = vor.u32 %v3658_v17, %v3654_v28  ;;  %v3794_v63 = vsel %vm1665_vm9, %v3792_v46, %v3793_v5  ;;  %v3799_v17 = vrot.slane %v6096_v11, 1 }
 0x179   : > { %v7399_v31 = vadd.f32 %v5173_v12, %v5172_v43  ;;  %v5287_v38 = vpop.f32.mrb[20].mxu1  ;;  %v3666_v62 = vshrl.u32 %v7427_v7, 16 }
 0x17a   : > { %v5288_v33 = vpop.f32.mrb[21].mxu1  ;;  %v3795_v3 = vrot.slane %v4927_v4, 1  ;;  %v3664_v48 = vsel %vm1408_vm10, %v3659_v29, %v3663_v47 }
 0x17b   : > { %v7408_v37 = vadd.f32 %v5288_v33, %v5287_v38  ;;  %v5290_v49 = vpop.f32.mrb[22].mxu1  ;;  %v3668_v33 = vshll.u32 %v7427_v7, 16 }
 0x17c   : > { %v5291_v56 = vpop.f32.mrb[23].mxu1  ;;  %4123 = vmatmul.mubr.bf16.gmra.mrb[120].mxu0 %v7343_v50  ;;  %v3787_v50 = vrot.slane %v7372_v40, 1  ;;  %v3652_v40 = vsel %vm1408_vm10, %v3647_v26, %v3651_v35  ;;  %v3673_v35 = vshll.u32 %v6093_v1, 16 }
 0x17d   : > { %v7416_v9 = vadd.f32 %v5291_v56, %v5290_v49  ;;  %4130 = vmatprep.mubr.bf16.mxu0 %v3640_v45  ;;  %v3319_v45 = vld [vmem:[#allocation2 + $0xcc] sm:$0xf]  ;;  %v3796_v56 = vrot.slane %v6093_v1, 1  ;;  %v3670_v26 = vrot.slane %v3668_v33, 1  ;;  %v3685_v1 = vshll.u32 %v6096_v11, 16 }
 0x17e   : > { %5666 = vmatmul.mubr.bf16.gmra.mrb[0].mxu1 %v3782_v53  ;;  %v3788_v25 = vsel %vm1665_vm9, %v3786_v14, %v3787_v50  ;;  %v3352_v53 = vld [vmem:[#allocation2 + $0xcc] sm:$0xe] }
 0x17f   : > { %5669 = vmatprep.mubr.bf16.mxu1 %v3785_v44  ;;  %v3797_v28 = vsel %vm1665_vm9, %v3795_v3, %v3796_v56  ;;  %v3671_v61 = vor.u32 %v3670_v26, %v3666_v62  ;;  %v3687_v5 = vrot.slane %v3685_v1, 1 }
 0x181   : > { %v5293_v0 = vpop.f32.mrb[24].mxu1 }
 0x182   : > { %v5175_v32 = vpop.f32.mrb[20].mxu0  ;;  %v5294_v2 = vpop.f32.mrb[25].mxu1 }
 0x183   : > { %v5176_v52 = vpop.f32.mrb[21].mxu0  ;;  %v7432_v12 = vadd.f32 %v5294_v2, %v5293_v0  ;;  %v5296_v51 = vpop.f32.mrb[26].mxu1 }
 0x184   : > { %v7429_v23 = vadd.f32 %v5176_v52, %v5175_v32  ;;  %v5178_v43 = vpop.f32.mrb[22].mxu0  ;;  %v5297_v15 = vpop.f32.mrb[27].mxu1  ;;  %4131 = vmatmul.mubr.bf16.gmra.mrb[124].mxu0 %v7365_v59  ;;  %v3320_v59 = vld [vmem:[#allocation2 + $0xd0] sm:$0xf] }
 0x185   : > { %v5179_v36 = vpop.f32.mrb[23].mxu0  ;;  %v7439_v38 = vadd.f32 %v5297_v15, %v5296_v51  ;;  %4138 = vmatprep.mubr.bf16.mxu0 %v3652_v40  ;;  %v4896_v50 = vcombine.low %v3319_v45, %v3320_v59  ;;  %v4928_v55 = vcombine.low %v3352_v53, %v3320_v59 }
 0x186   : > { %v7437_v41 = vadd.f32 %v5179_v36, %v5178_v43  ;;  %5670 = vmatmul.mubr.bf16.gmra.mrb[4].mxu1 %v3788_v25  ;;  %v3675_v43 = vrot.slane %v3673_v35, 1 }
 0x187   : > { %5673 = vmatprep.mubr.bf16.mxu1 %v3791_v6  ;;  %v3680_v40 = vshll.u32 %v4896_v50, 16  ;;  %v3798_v51 = vrot.slane %v4928_v55, 1  ;;  %v3678_v6 = vshrl.u32 %v4896_v50, 16 }
 0x188   : > { %v3676_v15 = vsel %vm1408_vm10, %v3671_v61, %v3675_v43 }
 0x189   : > { %v5299_v49 = vpop.f32.mrb[28].mxu1  ;;  %v3682_v4 = vrot.slane %v3680_v40, 1  ;;  %v3800_v29 = vsel %vm1665_vm9, %v3798_v51, %v3799_v17 }
 0x18a   : > { %v5181_v18 = vpop.f32.mrb[24].mxu0  ;;  %v5300_v44 = vpop.f32.mrb[29].mxu1 }
 0x18b   : > { %v5182_v39 = vpop.f32.mrb[25].mxu0  ;;  %v7446_v16 = vadd.f32 %v5300_v44, %v5299_v49  ;;  %v5302_v14 = vpop.f32.mrb[30].mxu1  ;;  %v3683_v46 = vor.u32 %v3682_v4, %v3678_v6 }
 0x18c   : > { %v7448_v42 = vadd.f32 %v5182_v39, %v5181_v18  ;;  %v5184_v32 = vpop.f32.mrb[26].mxu0  ;;  %v5303_v0 = vpop.f32.mrb[31].mxu1  ;;  %4139 = vmatmul.mubr.bf16.gmra.mrb[128].mxu0 %v7385_v24 }
 0x18d   : > { %v5185_v52 = vpop.f32.mrb[27].mxu0  ;;  %v7452_v2 = vadd.f32 %v5303_v0, %v5302_v14  ;;  %4146 = vmatprep.mubr.bf16.mxu0 %v3664_v48  ;;  %v3688_v44 = vsel %vm1408_vm10, %v3683_v46, %v3687_v5 }
 0x18e   : > { %v7455_v58 = vadd.f32 %v5185_v52, %v5184_v32  ;;  %5674 = vmatmul.mubr.bf16.gmra.mrb[8].mxu1 %v3794_v63 }
 0x18f   : > { %5677 = vmatprep.mubr.bf16.mxu1 %v3797_v28 }
 0x191   : > { %v5305_v36 = vpop.f32.mrb[32].mxu1 }
 0x192   : > { %v5306_v25 = vpop.f32.mrb[33].mxu1 }
 0x193   : > { %v7458_v24 = vadd.f32 %v5306_v25, %v5305_v36  ;;  %v5308_v60 = vpop.f32.mrb[34].mxu1 }
 0x194   : > { %v5309_v33 = vpop.f32.mrb[35].mxu1  ;;  %4147 = vmatmul.mubr.bf16.gmra.mrb[132].mxu0 %v7411_v22 }
 0x195   : > { %v7462_v47 = vadd.f32 %v5309_v33, %v5308_v60  ;;  %4154 = vmatprep.mubr.bf16.mxu0 %v3676_v15 }
 0x196   : > { %5678 = vmatmul.mubr.bf16.gmra.mrb[12].mxu1 %v3800_v29 }
 0x197   : > { %v5187_v45 = vpop.f32.mrb[28].mxu0 }
 0x198   : > { %v5188_v59 = vpop.f32.mrb[29].mxu0 }
 0x199   : > { %v5311_v49 = vpop.f32.mrb[36].mxu1  ;;  %v7464_v3 = vadd.f32 %v5188_v59, %v5187_v45  ;;  %v5190_v56 = vpop.f32.mrb[30].mxu0 }
 0x19a   : > { %v5312_v53 = vpop.f32.mrb[37].mxu1  ;;  %v5191_v18 = vpop.f32.mrb[31].mxu0 }
 0x19b   : > { %v7467_v62 = vadd.f32 %v5312_v53, %v5311_v49  ;;  %v5314_v26 = vpop.f32.mrb[38].mxu1  ;;  %v7469_v22 = vadd.f32 %v5191_v18, %v5190_v56 }
 0x19c   : > { %v5315_v35 = vpop.f32.mrb[39].mxu1  ;;  %4155 = vmatmul.mubr.bf16.gmra.mrb[136].mxu0 %v7427_v7 }
 0x19d   : > { %v7472_v39 = vadd.f32 %v5315_v35, %v5314_v26  ;;  %4162 = vmatprep.mubr.bf16.mxu0 %v3688_v44 }
 0x19f   : > { %v5193_v48 = vpop.f32.mrb[32].mxu0 }
 0x1a0   : > { %v5194_v14 = vpop.f32.mrb[33].mxu0 }
 0x1a1   : > { %v5317_v32 = vpop.f32.mrb[40].mxu1  ;;  %v5195_v0 = vadd.f32 %v5194_v14, %v5193_v48  ;;  %v5196_v63 = vpop.f32.mrb[34].mxu0 }
 0x1a2   : > { %v5318_v11 = vpop.f32.mrb[41].mxu1  ;;  %v5197_v55 = vpop.f32.mrb[35].mxu0 }
 0x1a3   : > { %v7474_v52 = vadd.f32 %v5318_v11, %v5317_v32  ;;  %v5320_v28 = vpop.f32.mrb[42].mxu1  ;;  %v5198_v61 = vadd.f32 %v5197_v55, %v5196_v63 }
 0x1a4   : > { %v5321_v43 = vpop.f32.mrb[43].mxu1  ;;  %4163 = vmatmul.mubr.bf16.gmra.mrb[140].mxu0 %v4896_v50 }
 0x1a5   : > { %v7476_v40 = vadd.f32 %v5321_v43, %v5320_v28 }
 0x1a7   : > { %v5199_v51 = vpop.f32.mrb[36].mxu0 }
 0x1a8   : > { %v5200_v7 = vpop.f32.mrb[37].mxu0 }
 0x1a9   : > { %v5323_v17 = vpop.f32.mrb[44].mxu1  ;;  %v5201_v36 = vadd.f32 %v5200_v7, %v5199_v51  ;;  %v5202_v15 = vpop.f32.mrb[38].mxu0 }
 0x1aa   : > { %v5324_v25 = vpop.f32.mrb[45].mxu1  ;;  %v5203_v60 = vpop.f32.mrb[39].mxu0 }
 0x1ab   : > { %v7478_v6 = vadd.f32 %v5324_v25, %v5323_v17  ;;  %v5326_v4 = vpop.f32.mrb[46].mxu1  ;;  %v5204_v1 = vadd.f32 %v5203_v60, %v5202_v15 }
 0x1ac   : > { %v5327_v33 = vpop.f32.mrb[47].mxu1 }
 0x1ad   : > { %v7480_v29 = vadd.f32 %v5327_v33, %v5326_v4 }
 0x1af   : > { %v5205_v46 = vpop.f32.mrb[40].mxu0 }
 0x1b0   : > { %v5206_v5 = vpop.f32.mrb[41].mxu0 }
 0x1b1   : > { %v5329_v45 = vpop.f32.mrb[48].mxu1  ;;  %v5207_v50 = vadd.f32 %v5206_v5, %v5205_v46  ;;  %v5208_v59 = vpop.f32.mrb[42].mxu0 }
 0x1b2   : > { %v5330_v49 = vpop.f32.mrb[49].mxu1  ;;  %v5209_v56 = vpop.f32.mrb[43].mxu0 }
 0x1b3   : > { %v5331_v53 = vadd.f32 %v5330_v49, %v5329_v45  ;;  %v5332_v18 = vpop.f32.mrb[50].mxu1  ;;  %v5210_v44 = vadd.f32 %v5209_v56, %v5208_v59 }
 0x1b4   : > { %v5333_v26 = vpop.f32.mrb[51].mxu1 }
 0x1b5   : > { %v7482_v35 = vadd.f32 %v5331_v53, %v5195_v0  ;;  %v5334_v48 = vadd.f32 %v5333_v26, %v5332_v18 }
 0x1b7   : > { %v7484_v14 = vadd.f32 %v5334_v48, %v5198_v61  ;;  %v5211_v32 = vpop.f32.mrb[44].mxu0 }
 0x1b8   : > { %v5212_v63 = vpop.f32.mrb[45].mxu0 }
 0x1b9   : > { %v5335_v11 = vpop.f32.mrb[52].mxu1  ;;  %v5213_v55 = vadd.f32 %v5212_v63, %v5211_v32  ;;  %v5214_v28 = vpop.f32.mrb[46].mxu0 }
 0x1ba   : > { %v5336_v43 = vpop.f32.mrb[53].mxu1  ;;  %v5215_v51 = vpop.f32.mrb[47].mxu0 }
 0x1bb   : > { %v5337_v7 = vadd.f32 %v5336_v43, %v5335_v11  ;;  %v5338_v17 = vpop.f32.mrb[54].mxu1  ;;  %v5216_v15 = vadd.f32 %v5215_v51, %v5214_v28 }
 0x1bc   : > { %v5339_v25 = vpop.f32.mrb[55].mxu1 }
 0x1bd   : > { %v7486_v60 = vadd.f32 %v5337_v7, %v5201_v36  ;;  %v5340_v4 = vadd.f32 %v5339_v25, %v5338_v17 }
 0x1bf   : > { %v7488_v33 = vadd.f32 %v5340_v4, %v5204_v1  ;;  %v5217_v0 = vpop.f32.mrb[48].mxu0 }
 0x1c0   : > { %v5218_v46 = vpop.f32.mrb[49].mxu0 }
 0x1c1   : > { %v5341_v61 = vpop.f32.mrb[56].mxu1  ;;  %v5219_v5 = vadd.f32 %v5218_v46, %v5217_v0  ;;  %v5220_v45 = vpop.f32.mrb[50].mxu0 }
 0x1c2   : > { %v5342_v59 = vpop.f32.mrb[57].mxu1  ;;  %v5221_v49 = vpop.f32.mrb[51].mxu0 }
 0x1c3   : > { %v5343_v56 = vadd.f32 %v5342_v59, %v5341_v61  ;;  %v5344_v53 = vpop.f32.mrb[58].mxu1  ;;  %v5222_v18 = vadd.f32 %v5221_v49, %v5220_v45 }
 0x1c4   : > { %v5345_v26 = vpop.f32.mrb[59].mxu1 }
 0x1c5   : > { %v7490_v48 = vadd.f32 %v5343_v56, %v5207_v50  ;;  %v5346_v32 = vadd.f32 %v5345_v26, %v5344_v53 }
 0x1c7   : > { %v7492_v63 = vadd.f32 %v5346_v32, %v5210_v44  ;;  %v5223_v36 = vpop.f32.mrb[52].mxu0 }
 0x1c8   : > { %v5224_v11 = vpop.f32.mrb[53].mxu0 }
 0x1c9   : > { %7676 = vst [vmem:[#allocation3_spill] sm:$0xff] %v7492_v63  ;;  %v5347_v1 = vpop.f32.mrb[60].mxu1  ;;  %v5225_v28 = vadd.f32 %v5224_v11, %v5223_v36  ;;  %v5226_v43 = vpop.f32.mrb[54].mxu0 }
 0x1ca   : > { %v5348_v51 = vpop.f32.mrb[61].mxu1  ;;  %v5227_v7 = vpop.f32.mrb[55].mxu0 }
 0x1cb   : > { %v5349_v17 = vadd.f32 %v5348_v51, %v5347_v1  ;;  %v5350_v25 = vpop.f32.mrb[62].mxu1  ;;  %v5228_v4 = vadd.f32 %v5227_v7, %v5226_v43 }
 0x1cc   : > { %v5351_v0 = vpop.f32.mrb[63].mxu1 }
 0x1cd   : > { %v7494_v46 = vadd.f32 %v5349_v17, %v5213_v55  ;;  %v5352_v61 = vadd.f32 %v5351_v0, %v5350_v25 }
 0x1cf   : > { %7677 = vst [vmem:[#allocation4_spill] sm:$0xff] %v7494_v46  ;;  %v7496_v45 = vadd.f32 %v5352_v61, %v5216_v15  ;;  %v5229_v50 = vpop.f32.mrb[56].mxu0 }
 0x1d0   : > { %v5230_v59 = vpop.f32.mrb[57].mxu0 }
 0x1d1   : > { %7678 = vst [vmem:[#allocation5_spill] sm:$0xff] %v7496_v45  ;;  %v5353_v44 = vpop.f32.mrb[64].mxu1  ;;  %v5231_v49 = vadd.f32 %v5230_v59, %v5229_v50  ;;  %v5232_v56 = vpop.f32.mrb[58].mxu0 }
 0x1d2   : > { %v5354_v53 = vpop.f32.mrb[65].mxu1  ;;  %v5233_v26 = vpop.f32.mrb[59].mxu0 }
 0x1d3   : > { %v5355_v32 = vadd.f32 %v5354_v53, %v5353_v44  ;;  %v5356_v36 = vpop.f32.mrb[66].mxu1  ;;  %v5234_v11 = vadd.f32 %v5233_v26, %v5232_v56 }
 0x1d4   : > { %v5357_v63 = vpop.f32.mrb[67].mxu1 }
 0x1d5   : > { %v7498_v1 = vadd.f32 %v5355_v32, %v5219_v5  ;;  %v5358_v43 = vadd.f32 %v5357_v63, %v5356_v36 }
 0x1d7   : > { %v7500_v51 = vadd.f32 %v5358_v43, %v5222_v18  ;;  %v5235_v55 = vpop.f32.mrb[60].mxu0 }
 0x1d8   : > { %v5236_v7 = vpop.f32.mrb[61].mxu0 }
 0x1d9   : > { %v5359_v15 = vpop.f32.mrb[68].mxu1  ;;  %v5237_v17 = vadd.f32 %v5236_v7, %v5235_v55  ;;  %v5238_v25 = vpop.f32.mrb[62].mxu0 }
 0x1da   : > { %v5360_v0 = vpop.f32.mrb[69].mxu1  ;;  %v5239_v61 = vpop.f32.mrb[63].mxu0 }
 0x1db   : > { %v5361_v50 = vadd.f32 %v5360_v0, %v5359_v15  ;;  %v5362_v59 = vpop.f32.mrb[70].mxu1  ;;  %v5240_v45 = vadd.f32 %v5239_v61, %v5238_v25 }
 0x1dc   : > { %v5363_v46 = vpop.f32.mrb[71].mxu1 }
 0x1dd   : > { %v7502_v44 = vadd.f32 %v5361_v50, %v5225_v28  ;;  %v5364_v56 = vadd.f32 %v5363_v46, %v5362_v59 }
 0x1df   : > { %v7504_v53 = vadd.f32 %v5364_v56, %v5228_v4  ;;  %v5555_v5 = vpop.f32.mrb[64].mxu0 }
 0x1e0   : > { %v2704_v18 = vadd.f32 %v5555_v5, %v7255_v54  ;;  %v2695_v63 = vpop.f32.mrb[65].mxu0 }
 0x1e1   : > { %v2696_v26 = vadd.f32 %v7180_v27, %v2695_v63  ;;  %v5556_v32 = vpop.f32.mrb[66].mxu0  ;;  %v5365_v36 = vpop.f32.mrb[72].mxu1 }
 0x1e2   : > { %v7509_v43 = vadd.f32 %v7408_v37, %v2704_v18  ;;  %v2707_v55 = vadd.f32 %v5556_v32, %v7259_v8  ;;  %v2698_v7 = vpop.f32.mrb[67].mxu0  ;;  %v5366_v15 = vpop.f32.mrb[73].mxu1 }
 0x1e3   : > { %v3001_v28 = vadd.f32 %v7382_v19, %v2696_v26  ;;  %v2699_v4 = vadd.f32 %v7191_v10, %v2698_v7  ;;  %v5367_v46 = vadd.f32 %v5366_v15, %v5365_v36  ;;  %v5368_v25 = vpop.f32.mrb[74].mxu1 }
 0x1e4   : > { %v7515_v54 = vadd.f32 %v7416_v9, %v2707_v55  ;;  %v5369_v0 = vpop.f32.mrb[75].mxu1 }
 0x1e5   : > { %v3004_v27 = vadd.f32 %v7390_v20, %v2699_v4  ;;  %v7518_v61 = vadd.f32 %v5367_v46, %v5231_v49  ;;  %v5370_v37 = vadd.f32 %v5369_v0, %v5368_v25 }
 0x1e7   : > { %v5559_v50 = vpop.f32.mrb[68].mxu0  ;;  %v7520_v59 = vadd.f32 %v5370_v37, %v5234_v11 }
 0x1e8   : > { %v2720_v8 = vadd.f32 %v5559_v50, %v7356_v13  ;;  %v2711_v56 = vpop.f32.mrb[69].mxu0 }
 0x1e9   : > { %v2712_v19 = vadd.f32 %v7301_v21, %v2711_v56  ;;  %v5560_v10 = vpop.f32.mrb[70].mxu0  ;;  %v5371_v5 = vpop.f32.mrb[76].mxu1 }
 0x1ea   : > { %v7525_v18 = vadd.f32 %v7446_v16, %v2720_v8  ;;  %v2723_v9 = vadd.f32 %v5560_v10, %v7362_v57  ;;  %v2714_v63 = vpop.f32.mrb[71].mxu0  ;;  %v5372_v20 = vpop.f32.mrb[77].mxu1 }
 0x1eb   : > { %v3017_v49 = vadd.f32 %v7432_v12, %v2712_v19  ;;  %v2715_v26 = vadd.f32 %v7309_v34, %v2714_v63  ;;  %v5373_v11 = vadd.f32 %v5372_v20, %v5371_v5  ;;  %v5374_v32 = vpop.f32.mrb[78].mxu1 }
 0x1ec   : > { %v3028_v13 = vadd.f32 %v7452_v2, %v2723_v9  ;;  %v5375_v36 = vpop.f32.mrb[79].mxu1 }
 0x1ed   : > { %v3020_v21 = vadd.f32 %v7439_v38, %v2715_v26  ;;  %v7532_v55 = vadd.f32 %v5373_v11, %v5237_v17  ;;  %v5376_v7 = vadd.f32 %v5375_v36, %v5374_v32 }
 0x1ef   : > { %v5563_v16 = vpop.f32.mrb[72].mxu0  ;;  %v7534_v15 = vadd.f32 %v5376_v7, %v5240_v45 }
 0x1f0   : > { %v2736_v57 = vadd.f32 %v5563_v16, %v7429_v23  ;;  %v2727_v4 = vpop.f32.mrb[73].mxu0 }
 0x1f1   : > { %v2728_v12 = vadd.f32 %v7394_v30, %v2727_v4  ;;  %v5564_v46 = vpop.f32.mrb[74].mxu0 }
 0x1f2   : > { %v7539_v34 = vadd.f32 %v7467_v62, %v2736_v57  ;;  %v2739_v2 = vadd.f32 %v5564_v46, %v7437_v41  ;;  %v2730_v25 = vpop.f32.mrb[75].mxu0 }
 0x1f3   : > { %v3033_v38 = vadd.f32 %v7458_v24, %v2728_v12  ;;  %v2731_v17 = vadd.f32 %v7399_v31, %v2730_v25 }
 0x1f4   : > { %v3044_v0 = vadd.f32 %v7472_v39, %v2739_v2 }
 0x1f5   : > { %v3036_v45 = vadd.f32 %v7462_v47, %v2731_v17 }
 0x1f7   : > { %v5567_v37 = vpop.f32.mrb[76].mxu0 }
 0x1f8   : > { %v2752_v23 = vadd.f32 %v5567_v37, %v7464_v3  ;;  %v2743_v50 = vpop.f32.mrb[77].mxu0 }
 0x1f9   : > { %v2744_v30 = vadd.f32 %v7448_v42, %v2743_v50  ;;  %v5568_v8 = vpop.f32.mrb[78].mxu0 }
 0x1fa   : > { %v7549_v62 = vadd.f32 %v7478_v6, %v2752_v23  ;;  %v2755_v41 = vadd.f32 %v5568_v8, %v7469_v22  ;;  %v2746_v56 = vpop.f32.mrb[79].mxu0 }
 0x1fb   : > { %v7553_v24 = vadd.f32 %v7474_v52, %v2744_v30  ;;  %v2747_v31 = vadd.f32 %v7455_v58, %v2746_v56 }
 0x1fc   : > { %v7557_v47 = vadd.f32 %v7480_v29, %v2755_v41 }
 0x1fd   : > { %v7560_v3 = vadd.f32 %v7476_v40, %v2747_v31 }
 0x1ff   : > { %v5417_v39 = vpop.f32.mrb[80].mxu0 }
 0x200   : > { %v5418_v42 = vpop.f32.mrb[81].mxu0 }
 0x201   : > { %v5419_v19 = vadd.f32 %v5418_v42, %v5417_v39  ;;  %v5420_v10 = vpop.f32.mrb[82].mxu0 }
 0x202   : > { %v5421_v6 = vpop.f32.mrb[83].mxu0 }
 0x203   : > { %v5422_v5 = vadd.f32 %v5421_v6, %v5420_v10  ;;  %v5703_v9 = vadd.f32 %v5419_v19, %v3001_v28 }
 0x205   : > { %v5711_v22 = vadd.f32 %v5422_v5, %v3004_v27 }
 0x207   : > { %v5423_v63 = vpop.f32.mrb[84].mxu0 }
 0x208   : > { %v5424_v20 = vpop.f32.mrb[85].mxu0 }
 0x209   : > { %v5425_v52 = vadd.f32 %v5424_v20, %v5423_v63  ;;  %v5426_v26 = vpop.f32.mrb[86].mxu0 }
 0x20a   : > { %v5427_v11 = vpop.f32.mrb[87].mxu0 }
 0x20b   : > { %v5428_v58 = vadd.f32 %v5427_v11, %v5426_v26  ;;  %v5699_v29 = vadd.f32 %v5425_v52, %v7509_v43 }
 0x20d   : > { %v5707_v32 = vadd.f32 %v5428_v58, %v7515_v54 }
 0x20f   : > { %v5429_v40 = vpop.f32.mrb[88].mxu0 }
 0x210   : > { %v5430_v36 = vpop.f32.mrb[89].mxu0 }
 0x211   : > { %v5431_v7 = vadd.f32 %v5430_v36, %v5429_v40  ;;  %v5432_v16 = vpop.f32.mrb[90].mxu0 }
 0x212   : > { %v5433_v57 = vpop.f32.mrb[91].mxu0 }
 0x213   : > { %v5434_v4 = vadd.f32 %v5433_v57, %v5432_v16  ;;  %v7564_v12 = vadd.f32 %v5431_v7, %v3017_v49 }
 0x215   : > { %v7566_v28 = vadd.f32 %v5434_v4, %v3020_v21 }
 0x217   : > { %v5435_v27 = vpop.f32.mrb[92].mxu0 }
 0x218   : > { %v5436_v46 = vpop.f32.mrb[93].mxu0 }
 0x219   : > { %v5437_v2 = vadd.f32 %v5436_v46, %v5435_v27  ;;  %v5438_v25 = vpop.f32.mrb[94].mxu0 }
 0x21a   : > { %v5439_v17 = vpop.f32.mrb[95].mxu0 }
 0x21b   : > { %v5440_v37 = vadd.f32 %v5439_v17, %v5438_v25  ;;  %v5715_v43 = vadd.f32 %v5437_v2, %v7525_v18 }
 0x21d   : > { %v5723_v23 = vadd.f32 %v5440_v37, %v3028_v13 }
 0x21f   : > { %v5441_v54 = vpop.f32.mrb[96].mxu0 }
 0x220   : > { %v5442_v50 = vpop.f32.mrb[97].mxu0 }
 0x221   : > { %v5443_v30 = vadd.f32 %v5442_v50, %v5441_v54  ;;  %v5444_v8 = vpop.f32.mrb[98].mxu0 }
 0x222   : > { %v5445_v41 = vpop.f32.mrb[99].mxu0 }
 0x223   : > { %v5446_v56 = vadd.f32 %v5445_v41, %v5444_v8  ;;  %v7569_v49 = vadd.f32 %v5443_v30, %v3033_v38 }
 0x225   : > { %v7571_v21 = vadd.f32 %v5446_v56, %v3036_v45 }
 0x227   : > { %v5447_v31 = vpop.f32.mrb[100].mxu0 }
 0x228   : > { %v5448_v39 = vpop.f32.mrb[101].mxu0 }
 0x229   : > { %v5449_v42 = vadd.f32 %v5448_v39, %v5447_v31  ;;  %v5450_v19 = vpop.f32.mrb[102].mxu0 }
 0x22a   : > { %v5451_v10 = vpop.f32.mrb[103].mxu0 }
 0x22b   : > { %v5452_v6 = vadd.f32 %v5451_v10, %v5450_v19  ;;  %v7574_v18 = vadd.f32 %v5449_v42, %v7539_v34 }
 0x22d   : > { %v7576_v13 = vadd.f32 %v5452_v6, %v3044_v0 }
 0x22f   : > { %v5453_v5 = vpop.f32.mrb[104].mxu0 }
 0x230   : > { %v5454_v63 = vpop.f32.mrb[105].mxu0 }
 0x231   : > { %v5455_v38 = vadd.f32 %v5454_v63, %v5453_v5  ;;  %v5456_v45 = vpop.f32.mrb[106].mxu0  ;;  %v5651_v20 = vpop.f32.mrb[80].mxu1 }
 0x232   : > { %v5457_v52 = vpop.f32.mrb[107].mxu0  ;;  %v5700_v34 = vadd.f32 %v5699_v29, %v5651_v20  ;;  %v4205_v26 = vpop.f32.mrb[81].mxu1 }
 0x233   : > { %v5458_v0 = vadd.f32 %v5457_v52, %v5456_v45  ;;  %v5704_v11 = vadd.f32 %v5703_v9, %v4205_v26  ;;  %v5652_v58 = vpop.f32.mrb[82].mxu1  ;;  %v7585_v40 = vadd.f32 %v5455_v38, %v7553_v24 }
 0x234   : > { %4366 = vst [vmem:[%s7582_s28 + $0x10] sm:$0xff] %v5700_v34  ;;  %v5708_v36 = vadd.f32 %v5707_v32, %v5652_v58  ;;  %v4208_v7 = vpop.f32.mrb[83].mxu1  ;;  %v4435_v24 = vmul.f32 %v5700_v34, %v5700_v34 }
 0x235   : > { %4364 = vst [vmem:[%s7582_s28] sm:$0xff] %v5704_v11  ;;  %v5712_v16 = vadd.f32 %v5711_v22, %v4208_v7  ;;  %v7590_v57 = vadd.f32 %v5458_v0, %v7560_v3  ;;  %v4433_v27 = vmul.f32 %v5704_v11, %v5704_v11 }
 0x236   : > { %4367 = vst [vmem:[%s7582_s28 + $0x18] sm:$0xff] %v5708_v36  ;;  %v4436_v22 = vmul.f32 %v5708_v36, %v5708_v36 }
 0x237   : > { %v5459_v4 = vpop.f32.mrb[108].mxu0  ;;  %4365 = vst [vmem:[%s7582_s28 + $0x8] sm:$0xff] %v5712_v16  ;;  %v4396_v29 = vadd.f32 %v5712_v16, %v5704_v11  ;;  %v4434_v46 = vmul.f32 %v5712_v16, %v5712_v16 }
 0x238   : > { %v5460_v2 = vpop.f32.mrb[109].mxu0 }
 0x239   : > { %v5461_v9 = vadd.f32 %v5460_v2, %v5459_v4  ;;  %v5462_v25 = vpop.f32.mrb[110].mxu0  ;;  %v4397_v17 = vadd.f32 %v5700_v34, %v4396_v29  ;;  %v4465_v32 = vadd.f32 %v4434_v46, %v4433_v27  ;;  %v5655_v37 = vpop.f32.mrb[84].mxu1 }
 0x23a   : > { %v5463_v54 = vpop.f32.mrb[111].mxu0  ;;  %v5716_v50 = vadd.f32 %v5715_v43, %v5655_v37  ;;  %v4221_v3 = vpop.f32.mrb[85].mxu1 }
 0x23b   : > { %v5464_v30 = vadd.f32 %v5463_v54, %v5462_v25  ;;  %v4466_v8 = vadd.f32 %v4465_v32, %v4435_v24  ;;  %v5720_v41 = vadd.f32 %v7564_v12, %v4221_v3  ;;  %v4398_v56 = vadd.f32 %v5708_v36, %v4397_v17  ;;  %v5656_v31 = vpop.f32.mrb[86].mxu1 }
 0x23c   : > { %4370 = vst [vmem:[%s7582_s28 + $0x30] sm:$0xff] %v5716_v50  ;;  %v5724_v39 = vadd.f32 %v5723_v23, %v5656_v31  ;;  %v4224_v42 = vpop.f32.mrb[87].mxu1  ;;  %v5747_v19 = vadd.f32 %v5461_v9, %v7549_v62  ;;  %v4439_v26 = vmul.f32 %v5716_v50, %v5716_v50 }
 0x23d   : > { %4368 = vst [vmem:[%s7582_s28 + $0x20] sm:$0xff] %v5720_v41  ;;  %v4399_v10 = vadd.f32 %v5720_v41, %v4398_v56  ;;  %v4437_v6 = vmul.f32 %v5720_v41, %v5720_v41  ;;  %v4467_v5 = vadd.f32 %v4466_v8, %v4436_v22  ;;  %v5728_v43 = vadd.f32 %v7566_v28, %v4224_v42 }
 0x23e   : > { %4371 = vst [vmem:[%s7582_s28 + $0x38] sm:$0xff] %v5724_v39  ;;  %v5755_v63 = vadd.f32 %v5464_v30, %v7557_v47  ;;  %v4440_v36 = vmul.f32 %v5724_v39, %v5724_v39 }
 0x23f   : > { %v5465_v38 = vpop.f32.mrb[112].mxu0  ;;  %v4468_v45 = vadd.f32 %v4467_v5, %v4437_v6  ;;  %4369 = vst [vmem:[%s7582_s28 + $0x28] sm:$0xff] %v5728_v43  ;;  %v4400_v12 = vadd.f32 %v5728_v43, %v4399_v10  ;;  %v4438_v20 = vmul.f32 %v5728_v43, %v5728_v43 }
 0x240   : > { %v5466_v52 = vpop.f32.mrb[113].mxu0 }
 0x241   : > { %v5467_v23 = vadd.f32 %v5466_v52, %v5465_v38  ;;  %v5468_v34 = vpop.f32.mrb[114].mxu0  ;;  %v4401_v62 = vadd.f32 %v5716_v50, %v4400_v12  ;;  %v4469_v0 = vadd.f32 %v4468_v45, %v4438_v20  ;;  %v5659_v11 = vpop.f32.mrb[88].mxu1 }
 0x242   : > { %v5469_v58 = vpop.f32.mrb[115].mxu0  ;;  %v5732_v28 = vadd.f32 %v7574_v18, %v5659_v11  ;;  %v4237_v47 = vpop.f32.mrb[89].mxu1 }
 0x243   : > { %v5470_v7 = vadd.f32 %v5469_v58, %v5468_v34  ;;  %v4470_v16 = vadd.f32 %v4469_v0, %v4439_v26  ;;  %v5736_v4 = vadd.f32 %v7569_v49, %v4237_v47  ;;  %v4402_v27 = vadd.f32 %v5724_v39, %v4401_v62  ;;  %v5660_v29 = vpop.f32.mrb[90].mxu1 }
 0x244   : > { %4374 = vst [vmem:[%s7582_s28 + $0x50] sm:$0xff] %v5732_v28  ;;  %v5740_v46 = vadd.f32 %v7576_v13, %v5660_v29  ;;  %v4240_v2 = vpop.f32.mrb[91].mxu1  ;;  %v5765_v9 = vadd.f32 %v7482_v35, %v5467_v23  ;;  %v4443_v30 = vmul.f32 %v5732_v28, %v5732_v28 }
 0x245   : > { %4372 = vst [vmem:[%s7582_s28 + $0x40] sm:$0xff] %v5736_v4  ;;  %v4403_v25 = vadd.f32 %v5736_v4, %v4402_v27  ;;  %v4441_v24 = vmul.f32 %v5736_v4, %v5736_v4  ;;  %v4471_v17 = vadd.f32 %v4470_v16, %v4440_v36  ;;  %v5744_v18 = vadd.f32 %v7571_v21, %v4240_v2 }
 0x246   : > { %4375 = vst [vmem:[%s7582_s28 + $0x58] sm:$0xff] %v5740_v46  ;;  %v5771_v32 = vadd.f32 %v7484_v14, %v5470_v7  ;;  %v4444_v31 = vmul.f32 %v5740_v46, %v5740_v46 }
 0x247   : > { %v5471_v37 = vpop.f32.mrb[116].mxu0  ;;  %v4472_v49 = vadd.f32 %v4471_v17, %v4441_v24  ;;  %4373 = vst [vmem:[%s7582_s28 + $0x48] sm:$0xff] %v5744_v18  ;;  %v4404_v54 = vadd.f32 %v5744_v18, %v4403_v25  ;;  %v4442_v22 = vmul.f32 %v5744_v18, %v5744_v18 }
 0x248   : > { %v5472_v50 = vpop.f32.mrb[117].mxu0 }
 0x249   : > { %v5473_v13 = vadd.f32 %v5472_v50, %v5471_v37  ;;  %v5474_v3 = vpop.f32.mrb[118].mxu0  ;;  %v4405_v35 = vadd.f32 %v5732_v28, %v4404_v54  ;;  %v4473_v8 = vadd.f32 %v4472_v49, %v4442_v22  ;;  %v5663_v41 = vpop.f32.mrb[92].mxu1  ;;  %v7679_v54 = vld [vmem:[#allocation3_spill] sm:$0xff] }
 0x24a   : > { %v5475_v56 = vpop.f32.mrb[119].mxu0  ;;  %v5748_v21 = vadd.f32 %v5747_v19, %v5663_v41  ;;  %v4253_v39 = vpop.f32.mrb[93].mxu1 }
 0x24b   : > { %v5476_v14 = vadd.f32 %v5475_v56, %v5474_v3  ;;  %v4474_v42 = vadd.f32 %v4473_v8, %v4443_v30  ;;  %v5752_v10 = vadd.f32 %v7585_v40, %v4253_v39  ;;  %v4406_v6 = vadd.f32 %v5740_v46, %v4405_v35  ;;  %v5664_v5 = vpop.f32.mrb[94].mxu1 }
 0x24c   : > { %4378 = vst [vmem:[%s7582_s28 + $0x70] sm:$0xff] %v5748_v21  ;;  %v5756_v43 = vadd.f32 %v5755_v63, %v5664_v5  ;;  %v4256_v38 = vpop.f32.mrb[95].mxu1  ;;  %v5762_v45 = vadd.f32 %v7486_v60, %v5473_v13  ;;  %v4447_v58 = vmul.f32 %v5748_v21, %v5748_v21 }
 0x24d   : > { %4376 = vst [vmem:[%s7582_s28 + $0x60] sm:$0xff] %v5752_v10  ;;  %v4407_v12 = vadd.f32 %v5752_v10, %v4406_v6  ;;  %v4445_v20 = vmul.f32 %v5752_v10, %v5752_v10  ;;  %v4475_v52 = vadd.f32 %v4474_v42, %v4444_v31  ;;  %v5760_v19 = vadd.f32 %v7590_v57, %v4256_v38  ;;  %v7680_v10 = vld [vmem:[#allocation4_spill] sm:$0xff] }
 0x24e   : > { %4379 = vst [vmem:[%s7582_s28 + $0x78] sm:$0xff] %v5756_v43  ;;  %v5768_v23 = vadd.f32 %v7488_v33, %v5476_v14  ;;  %v4448_v7 = vmul.f32 %v5756_v43, %v5756_v43 }
 0x24f   : > { %v5477_v34 = vpop.f32.mrb[120].mxu0  ;;  %v4476_v26 = vadd.f32 %v4475_v52, %v4445_v20  ;;  %4377 = vst [vmem:[%s7582_s28 + $0x68] sm:$0xff] %v5760_v19  ;;  %v4408_v40 = vadd.f32 %v5760_v19, %v4407_v12  ;;  %v4446_v62 = vmul.f32 %v5760_v19, %v5760_v19  ;;  %v7681_v19 = vld [vmem:[#allocation5_spill] sm:$0xff] }
 0x250   : > { %v5478_v0 = vpop.f32.mrb[121].mxu0 }
 0x251   : > { %v5479_v63 = vadd.f32 %v5478_v0, %v5477_v34  ;;  %v5480_v11 = vpop.f32.mrb[122].mxu0  ;;  %v4409_v60 = vadd.f32 %v5748_v21, %v4408_v40  ;;  %v4477_v36 = vadd.f32 %v4476_v26, %v4446_v62  ;;  %v5667_v28 = vpop.f32.mrb[0].mxu1 }
 0x252   : > { %v5481_v47 = vpop.f32.mrb[123].mxu0  ;;  %v5763_v57 = vadd.f32 %v5762_v45, %v5667_v28  ;;  %v4269_v16 = vpop.f32.mrb[1].mxu1 }
 0x253   : > { %v5482_v33 = vadd.f32 %v5481_v47, %v5480_v11  ;;  %v4478_v4 = vadd.f32 %v4477_v36, %v4447_v58  ;;  %v5766_v27 = vadd.f32 %v5765_v9, %v4269_v16  ;;  %v4410_v29 = vadd.f32 %v5756_v43, %v4409_v60  ;;  %v5668_v46 = vpop.f32.mrb[2].mxu1 }
 0x254   : > { %4382 = vst [vmem:[%s7582_s28 + $0x90] sm:$0xff] %v5763_v57  ;;  %v5769_v2 = vadd.f32 %v5768_v23, %v5668_v46  ;;  %v4272_v25 = vpop.f32.mrb[3].mxu1  ;;  %v5777_v24 = vadd.f32 %v7490_v48, %v5479_v63  ;;  %v4451_v41 = vmul.f32 %v5763_v57, %v5763_v57 }
 0x255   : > { %4380 = vst [vmem:[%s7582_s28 + $0x80] sm:$0xff] %v5766_v27  ;;  %v4411_v17 = vadd.f32 %v5766_v27, %v4410_v29  ;;  %v4449_v18 = vmul.f32 %v5766_v27, %v5766_v27  ;;  %v4479_v37 = vadd.f32 %v4478_v4, %v4448_v7  ;;  %v5772_v49 = vadd.f32 %v5771_v32, %v4272_v25 }
 0x256   : > { %4383 = vst [vmem:[%s7582_s28 + $0x98] sm:$0xff] %v5769_v2  ;;  %v5783_v22 = vadd.f32 %v7679_v54, %v5482_v33  ;;  %v4452_v39 = vmul.f32 %v5769_v2, %v5769_v2 }
 0x257   : > { %v5483_v50 = vpop.f32.mrb[124].mxu0  ;;  %v4480_v13 = vadd.f32 %v4479_v37, %v4449_v18  ;;  %4381 = vst [vmem:[%s7582_s28 + $0x88] sm:$0xff] %v5772_v49  ;;  %v4412_v9 = vadd.f32 %v5772_v49, %v4411_v17  ;;  %v4450_v3 = vmul.f32 %v5772_v49, %v5772_v49 }
 0x258   : > { %v5484_v30 = vpop.f32.mrb[125].mxu0 }
 0x259   : > { %v5485_v35 = vadd.f32 %v5484_v30, %v5483_v50  ;;  %v5486_v8 = vpop.f32.mrb[126].mxu0  ;;  %v4413_v56 = vadd.f32 %v5763_v57, %v4412_v9  ;;  %v4481_v48 = vadd.f32 %v4480_v13, %v4450_v3  ;;  %v5671_v31 = vpop.f32.mrb[4].mxu1 }
 0x25a   : > { %v5487_v21 = vpop.f32.mrb[127].mxu0  ;;  %v4285_v14 = vpop.f32.mrb[5].mxu1 }
 0x25b   : > { %v5488_v32 = vadd.f32 %v5487_v21, %v5486_v8  ;;  %v4482_v42 = vadd.f32 %v4481_v48, %v4451_v41  ;;  %v5774_v6 = vadd.f32 %v7680_v10, %v5485_v35  ;;  %v5778_v5 = vadd.f32 %v5777_v24, %v4285_v14  ;;  %v5672_v43 = vpop.f32.mrb[6].mxu1 }
 0x25c   : > { %v4414_v38 = vadd.f32 %v5769_v2, %v4413_v56  ;;  %v4288_v45 = vpop.f32.mrb[7].mxu1 }
 0x25d   : > { %v5775_v12 = vadd.f32 %v5774_v6, %v5671_v31  ;;  %4384 = vst [vmem:[%s7582_s28 + $0xa0] sm:$0xff] %v5778_v5  ;;  %v4453_v20 = vmul.f32 %v5778_v5, %v5778_v5  ;;  %v4483_v52 = vadd.f32 %v4482_v42, %v4452_v39  ;;  %v5780_v23 = vadd.f32 %v7681_v19, %v5488_v32 }
 0x25e   : > { %v4415_v34 = vadd.f32 %v5778_v5, %v4414_v38  ;;  %v5784_v26 = vadd.f32 %v5783_v22, %v4288_v45 }
 0x25f   : > { %v5489_v40 = vpop.f32.mrb[128].mxu0  ;;  %4386 = vst [vmem:[%s7582_s28 + $0xb0] sm:$0xff] %v5775_v12  ;;  %v4484_v62 = vadd.f32 %v4483_v52, %v4453_v20  ;;  %v5781_v0 = vadd.f32 %v5780_v23, %v5672_v43  ;;  %v4455_v7 = vmul.f32 %v5775_v12, %v5775_v12 }
 0x260   : > { %v5490_v63 = vpop.f32.mrb[129].mxu0  ;;  %4385 = vst [vmem:[%s7582_s28 + $0xa8] sm:$0xff] %v5784_v26  ;;  %v4416_v11 = vadd.f32 %v5784_v26, %v4415_v34  ;;  %v4454_v58 = vmul.f32 %v5784_v26, %v5784_v26 }
 0x261   : > { %v5491_v60 = vadd.f32 %v5490_v63, %v5489_v40  ;;  %v5492_v36 = vpop.f32.mrb[130].mxu0  ;;  %4387 = vst [vmem:[%s7582_s28 + $0xb8] sm:$0xff] %v5781_v0  ;;  %v5675_v28 = vpop.f32.mrb[8].mxu1  ;;  %v4456_v46 = vmul.f32 %v5781_v0, %v5781_v0 }
 0x262   : > { %v5493_v47 = vpop.f32.mrb[131].mxu0  ;;  %v4417_v57 = vadd.f32 %v5775_v12, %v4416_v11  ;;  %v4485_v16 = vadd.f32 %v4484_v62, %v4454_v58  ;;  %v4301_v33 = vpop.f32.mrb[9].mxu1 }
 0x263   : > { %v5494_v4 = vadd.f32 %v5493_v47, %v5492_v36  ;;  %v5789_v27 = vadd.f32 %v7498_v1, %v5491_v60  ;;  %v5676_v29 = vpop.f32.mrb[10].mxu1 }
 0x264   : > { %v4486_v2 = vadd.f32 %v4485_v16, %v4455_v7  ;;  %v4418_v25 = vadd.f32 %v5781_v0, %v4417_v57  ;;  %v4304_v24 = vpop.f32.mrb[11].mxu1 }
 0x265   : > { %v5790_v17 = vadd.f32 %v5789_v27, %v4301_v33  ;;  %v5795_v18 = vadd.f32 %v7500_v51, %v5494_v4 }
 0x266   : > { %v4487_v37 = vadd.f32 %v4486_v2, %v4456_v46 }
 0x267   : > { %v5495_v49 = vpop.f32.mrb[132].mxu0  ;;  %4388 = vst [vmem:[%s7582_s28 + $0xc0] sm:$0xff] %v5790_v17  ;;  %v4419_v54 = vadd.f32 %v5790_v17, %v4418_v25  ;;  %v4457_v22 = vmul.f32 %v5790_v17, %v5790_v17  ;;  %v5796_v50 = vadd.f32 %v5795_v18, %v4304_v24 }
 0x268   : > { %v5496_v13 = vpop.f32.mrb[133].mxu0 }
 0x269   : > { %v5497_v9 = vadd.f32 %v5496_v13, %v5495_v49  ;;  %v5498_v3 = vpop.f32.mrb[134].mxu0  ;;  %v4488_v1 = vadd.f32 %v4487_v37, %v4457_v22  ;;  %4389 = vst [vmem:[%s7582_s28 + $0xc8] sm:$0xff] %v5796_v50  ;;  %v4420_v30 = vadd.f32 %v5796_v50, %v4419_v54  ;;  %v4458_v35 = vmul.f32 %v5796_v50, %v5796_v50  ;;  %v5679_v8 = vpop.f32.mrb[12].mxu1 }
 0x26a   : > { %v5499_v41 = vpop.f32.mrb[135].mxu0  ;;  %v4317_v56 = vpop.f32.mrb[13].mxu1 }
 0x26b   : > { %v5500_v48 = vadd.f32 %v5499_v41, %v5498_v3  ;;  %v5786_v51 = vadd.f32 %v7502_v44, %v5497_v9  ;;  %v4489_v31 = vadd.f32 %v4488_v1, %v4458_v35  ;;  %v5680_v21 = vpop.f32.mrb[14].mxu1 }
 0x26c   : > { %v4320_v39 = vpop.f32.mrb[15].mxu1 }
 0x26d   : > { %v5787_v14 = vadd.f32 %v5786_v51, %v5675_v28  ;;  %v5792_v32 = vadd.f32 %v7504_v53, %v5500_v48 }
 0x26f   : > { %4390 = vst [vmem:[%s7582_s28 + $0xd0] sm:$0xff] %v5787_v14  ;;  %v4459_v42 = vmul.f32 %v5787_v14, %v5787_v14  ;;  %v5793_v10 = vadd.f32 %v5792_v32, %v5676_v29  ;;  %v4421_v6 = vadd.f32 %v5787_v14, %v4420_v30  ;;  %v5501_v5 = vpop.f32.mrb[136].mxu0 }
 0x270   : > { %v5502_v43 = vpop.f32.mrb[137].mxu0 }
 0x271   : > { %4391 = vst [vmem:[%s7582_s28 + $0xd8] sm:$0xff] %v5793_v10  ;;  %v4460_v38 = vmul.f32 %v5793_v10, %v5793_v10  ;;  %v4490_v45 = vadd.f32 %v4489_v31, %v4459_v42  ;;  %v5503_v12 = vadd.f32 %v5502_v43, %v5501_v5  ;;  %v5504_v20 = vpop.f32.mrb[138].mxu0  ;;  %v4422_v44 = vadd.f32 %v5793_v10, %v4421_v6 }
 0x272   : > { %v5505_v52 = vpop.f32.mrb[139].mxu0 }
 0x273   : > { %v5506_v19 = vadd.f32 %v5505_v52, %v5504_v20  ;;  %v5801_v23 = vadd.f32 %v7518_v61, %v5503_v12  ;;  %v4491_v34 = vadd.f32 %v4490_v45, %v4460_v38 }
 0x275   : > { %v5802_v53 = vadd.f32 %v5801_v23, %v4317_v56  ;;  %v5807_v26 = vadd.f32 %v7520_v59, %v5506_v19 }
 0x277   : > { %4392 = vst [vmem:[%s7582_s28 + $0xe0] sm:$0xff] %v5802_v53  ;;  %v4423_v40 = vadd.f32 %v5802_v53, %v4422_v44  ;;  %v4461_v62 = vmul.f32 %v5802_v53, %v5802_v53  ;;  %v5808_v0 = vadd.f32 %v5807_v26, %v4320_v39  ;;  %v5507_v63 = vpop.f32.mrb[140].mxu0 }
 0x278   : > { %v5508_v11 = vpop.f32.mrb[141].mxu0 }
 0x279   : > { %v4492_v58 = vadd.f32 %v4491_v34, %v4461_v62  ;;  %4393 = vst [vmem:[%s7582_s28 + $0xe8] sm:$0xff] %v5808_v0  ;;  %v4424_v60 = vadd.f32 %v5808_v0, %v4423_v40  ;;  %v4462_v36 = vmul.f32 %v5808_v0, %v5808_v0  ;;  %v5509_v28 = vadd.f32 %v5508_v11, %v5507_v63  ;;  %v5510_v47 = vpop.f32.mrb[142].mxu0 }
 0x27a   : > { %v5511_v7 = vpop.f32.mrb[143].mxu0 }
 0x27b   : > { %v4493_v61 = vadd.f32 %v4492_v58, %v4462_v36  ;;  %v5798_v57 = vadd.f32 %v7532_v55, %v5509_v28  ;;  %v5512_v16 = vadd.f32 %v5511_v7, %v5510_v47 }
 0x27d   : > { %v5799_v59 = vadd.f32 %v5798_v57, %v5679_v8  ;;  %v5804_v33 = vadd.f32 %v7534_v15, %v5512_v16 }
 0x27f   : > { %4394 = vst [vmem:[%s7582_s28 + $0xf0] sm:$0xff] %v5799_v59  ;;  %v4425_v4 = vadd.f32 %v5799_v59, %v4424_v60  ;;  %v4463_v27 = vmul.f32 %v5799_v59, %v5799_v59  ;;  %v5805_v29 = vadd.f32 %v5804_v33, %v5680_v21 }
 0x281   : > { %v4494_v46 = vadd.f32 %v4493_v61, %v4463_v27  ;;  %4395 = vst [vmem:[%s7582_s28 + $0xf8] sm:$0xff] %v5805_v29  ;;  %v4426_v2 = vadd.f32 %v5805_v29, %v4425_v4  ;;  %v4464_v25 = vmul.f32 %v5805_v29, %v5805_v29 }
 0x283   : > { %v4427_v24 = vrot.slane %v4426_v2, 4  ;;  %v4495_v17 = vadd.f32 %v4494_v46, %v4464_v25 }
 0x285   : > { %v4428_v18 = vadd.f32 %v4427_v24, %v4426_v2  ;;  %v4496_v37 = vrot.slane %v4495_v17, 4 }
 0x287   : > { %v4429_v49 = vrot.slane %v4428_v18, 2  ;;  %v4497_v54 = vadd.f32 %v4496_v37, %v4495_v17 }
 0x289   : > { %v4430_v55 = vadd.f32 %v4429_v49, %v4428_v18  ;;  %v4498_v22 = vrot.slane %v4497_v54, 2 }
 0x28b   : > { %v4431_v50 = vrot.slane %v4430_v55, 1  ;;  %v4499_v13 = vadd.f32 %v4498_v22, %v4497_v54 }
 0x28d   : > { %v4500_v15 = vrot.slane %v4499_v13, 1  ;;  %v4432_v9 = vadd.f32 %v4431_v50, %v4430_v55 }
 0x28f   : > { %v4501_v3 = vadd.f32 %v4500_v15, %v4499_v13 }
 0x291   : > { %v4503_v1 = vsel %vm956_vm4, %v4432_v9, %v4501_v3 }
 0x292   : > { %4504 = vst [vmem:[%s282_s7] sm:$0x3] %v4503_v1 }
 0x293 PF: > { %s16_s20 = sadd.s32 1, %s6162_s20   ;;  %s7682_s18 = smov %s6158_s19 }
 0x294   : > { %p13_p5 = scmp.ge.s32.totalorder %s16_s20, 4   ;;  %s7683_s19 = smov %s7685_s21 }
 0x296   :  { %15 = sbr.rel (!%p13_p5) target bundleno = 2 (0x2), region = 87 }

</bundles_post_ra>
